<compile_context>
chip_gen: v5e
topology: v5e:2x2
jax: 0.10.0
libtpu: 0.0.40
codegen_flags: <defaults>
</compile_context>

<pallas_src>
import functools
import math

import jax
import jax.numpy as jnp
from jax.experimental import pallas as pl
from jax.experimental.pallas import tpu as pltpu

# ----------------------------- config (small) -----------------------------
HIDDEN = 32
N_HEADS = 4
HEAD = HIDDEN // N_HEADS
INTER = 64
VIS_FEAT_DIM = 16
VIS_POS_DIM = 4
L_LAYERS = 2
R_LAYERS = 1
X_LAYERS = 1
LN_EPS = 1e-12


def _vmem_spec():
    return pl.BlockSpec(memory_space=pltpu.MemorySpace.VMEM)


# --------------------------------------------------------------------------
# In-kernel building blocks.  `bufs` maps packed-buffer name -> VMEM ref;
# `slot` dicts are STATIC Python metadata {buf, row, nrows}.  Activations are
# plain 2-D values.
# --------------------------------------------------------------------------
def _ld(bufs, slot):
    r = slot["row"]
    return bufs[slot["buf"]][r:r + slot["nrows"], :]


def _dense(bufs, x, lin):
    """x @ W + b   (W:(K,N), b:(1,N)) -- one MXU push."""
    return (jnp.dot(x, _ld(bufs, lin["w"]), preferred_element_type=jnp.float32)
            + _ld(bufs, lin["b"]))


def _layernorm(bufs, y, lnp):
    """LayerNorm over the last dim (eps=1e-12) with affine g/beta."""
    mean = jnp.mean(y, axis=-1, keepdims=True)
    var = jnp.mean(jnp.square(y - mean), axis=-1, keepdims=True)
    return ((y - mean) * jax.lax.rsqrt(var + LN_EPS) * _ld(bufs, lnp["g"])
            + _ld(bufs, lnp["beta"]))


def _gelu(y):
    # TODO(synk): torch F.gelu defaults to the exact erf form; tanh approx
    # used here (erf lowering in Mosaic is not relied upon).
    c = math.sqrt(2.0 / math.pi)
    return 0.5 * y * (1.0 + jnp.tanh(c * (y + 0.044715 * y * y * y)))


def _split_qkv(proj):
    return (proj[:, :HIDDEN], proj[:, HIDDEN:2 * HIDDEN], proj[:, 2 * HIDDEN:])


def _attn_ctx(q_rows, kT, v_rows, mask, B, S, T):
    """Multi-head attention contexts, reassembled as one (B*S, HIDDEN) value.

    q_rows:(B*S,H)  kT:(H,B*T) (already transposed, sliced per head/batch)
    v_rows:(B*T,H)  mask:(B,T) additive (0 / -10000).
    Heads exist only as small values; they are lane-concatenated so the caller
    can apply the output projection as a SINGLE matmul.
    """
    scale = 1.0 / math.sqrt(HEAD)
    per_batch = []
    for b in range(B):
        m_b = mask[b:b + 1, :]                                     # (1, T)
        heads = []
        for h in range(N_HEADS):
            lo = h * HEAD
            qh = q_rows[b * S:(b + 1) * S, lo:lo + HEAD] * scale    # (S, d)
            khT = kT[lo:lo + HEAD, b * T:(b + 1) * T]               # (d, T)
            s = jnp.dot(qh, khT, preferred_element_type=jnp.float32) + m_b
            s = s - jnp.max(s, axis=-1, keepdims=True)
            e = jnp.exp(s)
            p = e * pl.reciprocal(jnp.sum(e, axis=-1, keepdims=True),
                                  approx=True)
            vh = v_rows[b * T:(b + 1) * T, lo:lo + HEAD]            # (T, d)
            heads.append(jnp.dot(p, vh, preferred_element_type=jnp.float32))
        per_batch.append(jnp.concatenate(heads, axis=1))            # (S, H)
    return jnp.concatenate(per_batch, axis=0)                       # (B*S, H)


def _self_attn_layer(bufs, x_rows, B, S, mask, blk):
    """bert_selfattnlayer: packed-QKV attention + dense + residual + LN."""
    q, k, v = _split_qkv(_dense(bufs, x_rows, blk["qkv"]))
    kT = k.T                          # single transpose per attention block
    ctx = _attn_ctx(q, kT, v, mask, B, S, S)
    att = _dense(bufs, ctx, blk["out"])      # one (rows,32)@(32,32) dot
    return _layernorm(bufs, att + x_rows, blk["out"])


def _bert_layer(bufs, x_rows, B, S, mask, p):
    """bertlayer: self-attn -> intermediate (gelu) -> output (dense+res+LN)."""
    a = _self_attn_layer(bufs, x_rows, B, S, mask, p["self"])
    inter = _gelu(_dense(bufs, a, p["inter"]))
    return _layernorm(bufs, _dense(bufs, inter, p["out"]) + a, p["out"])


def _x_layer(bufs, rows, B, S_L, S_V, lmask, vmask, p):
    """LXRTXLayer on the combined (B*S_L + B*S_V, H) row buffer."""
    NL = B * S_L
    xa = p["visual_attention"]

    # -- cross attention: SAME weights both directions -> one shared packed
    #    QKV dot over all lang+visn rows, one shared output dense + LN.
    q, k, v = _split_qkv(_dense(bufs, rows, xa["qkv"]))
    kT = k.T                                     # one transpose, both dirs
    l_ctx = _attn_ctx(q[:NL], kT[:, NL:], v[NL:], vmask, B, S_L, S_V)
    v_ctx = _attn_ctx(q[NL:], kT[:, :NL], v[:NL], lmask, B, S_V, S_L)
    ctx = jnp.concatenate([l_ctx, v_ctx], axis=0)
    att = _dense(bufs, ctx, xa["out"])
    rows = _layernorm(bufs, att + rows, xa["out"])

    # -- self attention (per-modality weights -> separate row-slice passes)
    l_rows = _self_attn_layer(bufs, rows[:NL], B, S_L, lmask,
                              p["lang_self_att"])
    v_rows = _self_attn_layer(bufs, rows[NL:], B, S_V, vmask,
                              p["visn_self_att"])
    rows = jnp.concatenate([l_rows, v_rows], axis=0)

    # -- FFN.  The reference module applies self.lang_output to BOTH branches
    #    (visn_output is constructed but never used) -- reproduced exactly and
    #    exploited: the shared dense + LN run once over all rows.
    l_int = _gelu(_dense(bufs, rows[:NL], p["lang_inter"]))
    v_int = _gelu(_dense(bufs, rows[NL:], p["visn_inter"]))
    inter = jnp.concatenate([l_int, v_int], axis=0)
    y = _dense(bufs, inter, p["lang_output"])
    return _layernorm(bufs, y + rows, p["lang_output"])


# --------------------------------------------------------------------------
# The single fused kernel.
# --------------------------------------------------------------------------
def _lxrt_kernel(lang_ref, vis_ref, mask_ref, p32_ref, p64_ref, p96_ref,
                 out_ref, *, layout, B, S_L, S_V):
    bufs = {"p32": p32_ref, "p64": p64_ref, "p96": p96_ref}

    masks = mask_ref[...]                      # (B, S_L + S_V), additive
    lmask = masks[:, :S_L]
    vmask = masks[:, S_L:]

    # VisualFeatEncoder: (LN(fc(feats)) + LN(fc(boxes))) / 2
    vf = layout["visn_fc"]
    vis = vis_ref[...]                         # (B*S_V, 16 + 4) packed
    feats = vis[:, :VIS_FEAT_DIM]
    boxes = vis[:, VIS_FEAT_DIM:]
    visn_rows = 0.5 * (
        _layernorm(bufs, _dense(bufs, feats, vf["visn"]), vf["visn"])
        + _layernorm(bufs, _dense(bufs, boxes, vf["box"]), vf["box"]))
    lang_rows = lang_ref[...]                  # (B*S_L, H)

    for lp in layout["l_layers"]:
        lang_rows = _bert_layer(bufs, lang_rows, B, S_L, lmask, lp)
    for rp in layout["r_layers"]:
        visn_rows = _bert_layer(bufs, visn_rows, B, S_V, vmask, rp)

    # One persistent combined row buffer for the whole x-layer stage + output.
    rows = jnp.concatenate([lang_rows, visn_rows], axis=0)
    for xp in layout["x_layers"]:
        rows = _x_layer(bufs, rows, B, S_L, S_V, lmask, vmask, xp)

    out_ref[...] = rows                        # (B*(S_L+S_V), H)


# ----------------------------- host-side wrapper -----------------------------
def lxrt_encoder(lang_feats, lang_mask, visn_feats, visn_boxes, visn_mask,
                 packed_params, layout):
    B, S_L, H = lang_feats.shape
    _, S_V, _ = visn_feats.shape
    NL, NV = B * S_L, B * S_V

    # 2-D, few-input packing of the activations (reshapes here are views in
    # HBM row-major layout; no in-kernel relayouts needed).
    lang2d = lang_feats.reshape(NL, H)
    vis2d = jnp.concatenate([visn_feats, visn_boxes],
                            axis=-1).reshape(NV, VIS_FEAT_DIM + VIS_POS_DIM)
    masks = jnp.concatenate([lang_mask, visn_mask], axis=-1)       # (B, S_L+S_V)

    kernel = functools.partial(_lxrt_kernel, layout=layout,
                               B=B, S_L=S_L, S_V=S_V)
    out = pl.pallas_call(
        kernel,
        out_shape=jax.ShapeDtypeStruct((NL + NV, H), jnp.float32),
        in_specs=[_vmem_spec()] * 6,
        out_specs=_vmem_spec(),
    )(lang2d, vis2d, masks,
      packed_params["p32"], packed_params["p64"], packed_params["p96"])

    lang_out = out[:NL].reshape(B, S_L, H)
    visn_out = out[NL:].reshape(B, S_V, H)
    return lang_out, visn_out


# ------------------------- deterministic packed params -------------------------
class _Keys:
    def __init__(self, seed):
        self._k = jax.random.PRNGKey(seed)

    def __call__(self):
        self._k, sub = jax.random.split(self._k)
        return sub


class _Packer:
    """Packs parameter tensors into three lane-width-classed f32 buffers.

    Every slot is padded to an 8-row (sublane) boundary so all in-kernel
    weight loads are sublane-aligned static slices.
    """
    WIDTHS = {"p32": HIDDEN, "p64": INTER, "p96": 3 * HIDDEN}

    def __init__(self):
        self._chunks = {k: [] for k in self.WIDTHS}
        self._rows = {k: 0 for k in self.WIDTHS}

    def add(self, arr):
        arr = jnp.asarray(arr, jnp.float32)
        r, c = arr.shape
        buf = {HIDDEN: "p32", INTER: "p64", 3 * HIDDEN: "p96"}[c]
        pad = (-r) % 8
        if pad:
            arr = jnp.concatenate(
                [arr, jnp.zeros((pad, c), jnp.float32)], axis=0)
        slot = {"buf": buf, "row": self._rows[buf], "nrows": r}
        self._chunks[buf].append(arr)
        self._rows[buf] += r + pad
        return slot

    def finalize(self):
        return {k: (jnp.concatenate(v, axis=0) if v
                    else jnp.zeros((8, self.WIDTHS[k]), jnp.float32))
                for k, v in self._chunks.items()}


def _init_linear(pk, kg, din, dout):
    w = jax.random.normal(kg(), (din, dout), jnp.float32) * 0.02
    b = jnp.zeros((1, dout), jnp.float32)
    return {"w": pk.add(w), "b": pk.add(b)}


def _init_linear_ln(pk, kg, din, dout):
    p = _init_linear(pk, kg, din, dout)
    p["g"] = pk.add(jnp.ones((1, dout), jnp.float32))
    p["beta"] = pk.add(jnp.zeros((1, dout), jnp.float32))
    return p


def _init_attn_block(pk, kg):
    wq = jax.random.normal(kg(), (HIDDEN, HIDDEN), jnp.float32) * 0.02
    wk = jax.random.normal(kg(), (HIDDEN, HIDDEN), jnp.float32) * 0.02
    wv = jax.random.normal(kg(), (HIDDEN, HIDDEN), jnp.float32) * 0.02
    # packed QKV: one (H, 3H) weight / (1, 3H) bias -> single MXU push
    qkv_w = jnp.concatenate([wq, wk, wv], axis=1)
    qkv_b = jnp.zeros((1, 3 * HIDDEN), jnp.float32)
    return {"qkv": {"w": pk.add(qkv_w), "b": pk.add(qkv_b)},
            "out": _init_linear_ln(pk, kg, HIDDEN, HIDDEN)}


def _init_bert_layer(pk, kg):
    return {"self": _init_attn_block(pk, kg),
            "inter": _init_linear(pk, kg, HIDDEN, INTER),
            "out": _init_linear_ln(pk, kg, INTER, HIDDEN)}


def _init_x_layer(pk, kg):
    # NOTE: the reference LXRTXLayer also constructs `visn_output`, but its
    # forward never uses it (lang_output is applied to both branches), so it
    # is not materialized here.
    return {"visual_attention": _init_attn_block(pk, kg),
            "lang_self_att": _init_attn_block(pk, kg),
            "visn_self_att": _init_attn_block(pk, kg),
            "lang_inter": _init_linear(pk, kg, HIDDEN, INTER),
            "lang_output": _init_linear_ln(pk, kg, INTER, HIDDEN),
            "visn_inter": _init_linear(pk, kg, HIDDEN, INTER)}


def init_params(seed=42):
    """Returns (packed_buffers, static_layout)."""
    kg = _Keys(seed)
    pk = _Packer()
    layout = {
        "visn_fc": {"visn": _init_linear_ln(pk, kg, VIS_FEAT_DIM, HIDDEN),
                    "box": _init_linear_ln(pk, kg, VIS_POS_DIM, HIDDEN)},
        "l_layers": [_init_bert_layer(pk, kg) for _ in range(L_LAYERS)],
        "r_layers": [_init_bert_layer(pk, kg) for _ in range(R_LAYERS)],
        "x_layers": [_init_x_layer(pk, kg) for _ in range(X_LAYERS)],
    }
    return pk.finalize(), layout


# ----------------------------- main -----------------------------
if __name__ == "__main__":
    B, S_LANG, S_VIS = 2, 8, 8

    key = jax.random.PRNGKey(0)
    k1, k2, k3 = jax.random.split(key, 3)
    lang_feats = jax.random.normal(k1, (B, S_LANG, HIDDEN), jnp.float32)
    visn_feats = jax.random.normal(k2, (B, S_VIS, VIS_FEAT_DIM), jnp.float32)
    visn_boxes = jax.random.uniform(k3, (B, S_VIS, VIS_POS_DIM), jnp.float32)

    # additive attention masks: 0 = attend, -10000 = masked
    lang_lens = jnp.array([S_LANG, S_LANG - 2])
    visn_lens = jnp.array([S_VIS, S_VIS - 3])
    lang_mask = jnp.where(jnp.arange(S_LANG)[None, :] < lang_lens[:, None],
                          0.0, -10000.0).astype(jnp.float32)
    visn_mask = jnp.where(jnp.arange(S_VIS)[None, :] < visn_lens[:, None],
                          0.0, -10000.0).astype(jnp.float32)

    packed, layout = init_params(seed=42)

    fwd = jax.jit(functools.partial(lxrt_encoder, layout=layout))
    lang_out, visn_out = fwd(lang_feats, lang_mask, visn_feats, visn_boxes,
                             visn_mask, packed)
    jax.block_until_ready((lang_out, visn_out))

    assert lang_out.shape == (B, S_LANG, HIDDEN)
    assert visn_out.shape == (B, S_VIS, HIDDEN)
    assert jnp.all(jnp.isfinite(lang_out)) and jnp.all(jnp.isfinite(visn_out))
    print("KERNEL_OK")
</pallas_src>

<mosaic_0001>
module attributes {stable_mosaic.version = 11 : i64} {
  func.func @_lxrt_kernel(%arg0: memref<16x32xf32, #tpu.memory_space<vmem>>, %arg1: memref<16x20xf32, #tpu.memory_space<vmem>>, %arg2: memref<2x16xf32, #tpu.memory_space<vmem>>, %arg3: memref<760x32xf32, #tpu.memory_space<vmem>>, %arg4: memref<200x64xf32, #tpu.memory_space<vmem>>, %arg5: memref<240x96xf32, #tpu.memory_space<vmem>>, %arg6: memref<32x32xf32, #tpu.memory_space<vmem>>) attributes {dimension_semantics = [], scalar_prefetch = 0 : i64, scratch_operands = 0 : i64, tpu.core_type = #tpu.core_type<tc>} {
    %c0 = arith.constant 0 : index
    %c0_0 = arith.constant 0 : index
    %0 = vector.load %arg2[%c0, %c0_0] : memref<2x16xf32, #tpu.memory_space<vmem>>, vector<2x16xf32>
    %1 = vector.extract_strided_slice %0 {offsets = [0, 0], sizes = [2, 8], strides = [1, 1]} : vector<2x16xf32> to vector<2x8xf32>
    %2 = vector.extract_strided_slice %0 {offsets = [0, 8], sizes = [2, 8], strides = [1, 1]} : vector<2x16xf32> to vector<2x8xf32>
    %c0_1 = arith.constant 0 : index
    %c0_2 = arith.constant 0 : index
    %3 = vector.load %arg1[%c0_1, %c0_2] : memref<16x20xf32, #tpu.memory_space<vmem>>, vector<16x20xf32>
    %4 = vector.extract_strided_slice %3 {offsets = [0, 0], sizes = [16, 16], strides = [1, 1]} : vector<16x20xf32> to vector<16x16xf32>
    %5 = vector.extract_strided_slice %3 {offsets = [0, 16], sizes = [16, 4], strides = [1, 1]} : vector<16x20xf32> to vector<16x4xf32>
    %c0_3 = arith.constant 0 : index
    %c0_4 = arith.constant 0 : index
    %6 = vector.load %arg3[%c0_3, %c0_4] : memref<760x32xf32, #tpu.memory_space<vmem>>, vector<16x32xf32>
    %cst = arith.constant dense<0.000000e+00> : vector<16x32xf32>
    %7 = tpu.matmul %4, %6, %cst {dimension_numbers = #tpu.dot_dimension_numbers<[1], [0], [0], [1], [0, 0, 1, 1], [], []>} : vector<16x16xf32>, vector<16x32xf32>, vector<16x32xf32> -> vector<16x32xf32>
    %c16 = arith.constant 16 : index
    %c0_5 = arith.constant 0 : index
    %8 = vector.load %arg3[%c16, %c0_5] : memref<760x32xf32, #tpu.memory_space<vmem>>, vector<1x32xf32>
    %9 = vector.broadcast %8 : vector<1x32xf32> to vector<16x32xf32>
    %10 = arith.addf %7, %9 : vector<16x32xf32>
    %cst_6 = arith.constant dense<0.000000e+00> : vector<16xf32>
    %11 = vector.multi_reduction <add>, %10, %cst_6 [1] : vector<16x32xf32> to vector<16xf32>
    %12 = vector.shape_cast %11 : vector<16xf32> to vector<16x1xf32>
    %cst_7 = arith.constant 3.200000e+01 : f32
    %13 = vector.broadcast %cst_7 : f32 to vector<16x1xf32>
    %14 = arith.divf %12, %13 : vector<16x1xf32>
    %15 = vector.broadcast %14 : vector<16x1xf32> to vector<16x32xf32>
    %16 = arith.subf %10, %15 : vector<16x32xf32>
    %17 = arith.mulf %16, %16 : vector<16x32xf32>
    %cst_8 = arith.constant dense<0.000000e+00> : vector<16xf32>
    %18 = vector.multi_reduction <add>, %17, %cst_8 [1] : vector<16x32xf32> to vector<16xf32>
    %19 = vector.shape_cast %18 : vector<16xf32> to vector<16x1xf32>
    %cst_9 = arith.constant 3.200000e+01 : f32
    %20 = vector.broadcast %cst_9 : f32 to vector<16x1xf32>
    %21 = arith.divf %19, %20 : vector<16x1xf32>
    %22 = vector.broadcast %14 : vector<16x1xf32> to vector<16x32xf32>
    %23 = arith.subf %10, %22 : vector<16x32xf32>
    %cst_10 = arith.constant 9.99999996E-13 : f32
    %24 = vector.broadcast %cst_10 : f32 to vector<16x1xf32>
    %25 = arith.addf %21, %24 : vector<16x1xf32>
    %26 = math.rsqrt %25 : vector<16x1xf32>
    %27 = vector.broadcast %26 : vector<16x1xf32> to vector<16x32xf32>
    %28 = arith.mulf %23, %27 : vector<16x32xf32>
    %c24 = arith.constant 24 : index
    %c0_11 = arith.constant 0 : index
    %29 = vector.load %arg3[%c24, %c0_11] : memref<760x32xf32, #tpu.memory_space<vmem>>, vector<1x32xf32>
    %30 = vector.broadcast %29 : vector<1x32xf32> to vector<16x32xf32>
    %31 = arith.mulf %28, %30 : vector<16x32xf32>
    %c32 = arith.constant 32 : index
    %c0_12 = arith.constant 0 : index
    %32 = vector.load %arg3[%c32, %c0_12] : memref<760x32xf32, #tpu.memory_space<vmem>>, vector<1x32xf32>
    %33 = vector.broadcast %32 : vector<1x32xf32> to vector<16x32xf32>
    %34 = arith.addf %31, %33 : vector<16x32xf32>
    %c40 = arith.constant 40 : index
    %c0_13 = arith.constant 0 : index
    %35 = vector.load %arg3[%c40, %c0_13] : memref<760x32xf32, #tpu.memory_space<vmem>>, vector<4x32xf32>
    %cst_14 = arith.constant dense<0.000000e+00> : vector<16x32xf32>
    %36 = tpu.matmul %5, %35, %cst_14 {dimension_numbers = #tpu.dot_dimension_numbers<[1], [0], [0], [1], [0, 0, 1, 1], [], []>} : vector<16x4xf32>, vector<4x32xf32>, vector<16x32xf32> -> vector<16x32xf32>
    %c48 = arith.constant 48 : index
    %c0_15 = arith.constant 0 : index
    %37 = vector.load %arg3[%c48, %c0_15] : memref<760x32xf32, #tpu.memory_space<vmem>>, vector<1x32xf32>
    %38 = vector.broadcast %37 : vector<1x32xf32> to vector<16x32xf32>
    %39 = arith.addf %36, %38 : vector<16x32xf32>
    %cst_16 = arith.constant dense<0.000000e+00> : vector<16xf32>
    %40 = vector.multi_reduction <add>, %39, %cst_16 [1] : vector<16x32xf32> to vector<16xf32>
    %41 = vector.shape_cast %40 : vector<16xf32> to vector<16x1xf32>
    %cst_17 = arith.constant 3.200000e+01 : f32
    %42 = vector.broadcast %cst_17 : f32 to vector<16x1xf32>
    %43 = arith.divf %41, %42 : vector<16x1xf32>
    %44 = vector.broadcast %43 : vector<16x1xf32> to vector<16x32xf32>
    %45 = arith.subf %39, %44 : vector<16x32xf32>
    %46 = arith.mulf %45, %45 : vector<16x32xf32>
    %cst_18 = arith.constant dense<0.000000e+00> : vector<16xf32>
    %47 = vector.multi_reduction <add>, %46, %cst_18 [1] : vector<16x32xf32> to vector<16xf32>
    %48 = vector.shape_cast %47 : vector<16xf32> to vector<16x1xf32>
    %cst_19 = arith.constant 3.200000e+01 : f32
    %49 = vector.broadcast %cst_19 : f32 to vector<16x1xf32>
    %50 = arith.divf %48, %49 : vector<16x1xf32>
    %51 = vector.broadcast %43 : vector<16x1xf32> to vector<16x32xf32>
    %52 = arith.subf %39, %51 : vector<16x32xf32>
    %cst_20 = arith.constant 9.99999996E-13 : f32
    %53 = vector.broadcast %cst_20 : f32 to vector<16x1xf32>
    %54 = arith.addf %50, %53 : vector<16x1xf32>
    %55 = math.rsqrt %54 : vector<16x1xf32>
    %56 = vector.broadcast %55 : vector<16x1xf32> to vector<16x32xf32>
    %57 = arith.mulf %52, %56 : vector<16x32xf32>
    %c56 = arith.constant 56 : index
    %c0_21 = arith.constant 0 : index
    %58 = vector.load %arg3[%c56, %c0_21] : memref<760x32xf32, #tpu.memory_space<vmem>>, vector<1x32xf32>
    %59 = vector.broadcast %58 : vector<1x32xf32> to vector<16x32xf32>
    %60 = arith.mulf %57, %59 : vector<16x32xf32>
    %c64 = arith.constant 64 : index
    %c0_22 = arith.constant 0 : index
    %61 = vector.load %arg3[%c64, %c0_22] : memref<760x32xf32, #tpu.memory_space<vmem>>, vector<1x32xf32>
    %62 = vector.broadcast %61 : vector<1x32xf32> to vector<16x32xf32>
    %63 = arith.addf %60, %62 : vector<16x32xf32>
    %64 = arith.addf %34, %63 : vector<16x32xf32>
    %cst_23 = arith.constant 5.000000e-01 : f32
    %65 = vector.broadcast %cst_23 : f32 to vector<16x32xf32>
    %66 = arith.mulf %65, %64 : vector<16x32xf32>
    %c0_24 = arith.constant 0 : index
    %c0_25 = arith.constant 0 : index
    %67 = vector.load %arg0[%c0_24, %c0_25] : memref<16x32xf32, #tpu.memory_space<vmem>>, vector<16x32xf32>
    %c0_26 = arith.constant 0 : index
    %c0_27 = arith.constant 0 : index
    %68 = vector.load %arg5[%c0_26, %c0_27] : memref<240x96xf32, #tpu.memory_space<vmem>>, vector<32x96xf32>
    %cst_28 = arith.constant dense<0.000000e+00> : vector<16x96xf32>
    %69 = tpu.matmul %67, %68, %cst_28 {dimension_numbers = #tpu.dot_dimension_numbers<[1], [0], [0], [1], [0, 0, 1, 1], [], []>} : vector<16x32xf32>, vector<32x96xf32>, vector<16x96xf32> -> vector<16x96xf32>
    %c32_29 = arith.constant 32 : index
    %c0_30 = arith.constant 0 : index
    %70 = vector.load %arg5[%c32_29, %c0_30] : memref<240x96xf32, #tpu.memory_space<vmem>>, vector<1x96xf32>
    %71 = vector.broadcast %70 : vector<1x96xf32> to vector<16x96xf32>
    %72 = arith.addf %69, %71 : vector<16x96xf32>
    %73 = vector.extract_strided_slice %72 {offsets = [0, 0], sizes = [16, 32], strides = [1, 1]} : vector<16x96xf32> to vector<16x32xf32>
    %74 = vector.extract_strided_slice %72 {offsets = [0, 32], sizes = [16, 32], strides = [1, 1]} : vector<16x96xf32> to vector<16x32xf32>
    %75 = vector.extract_strided_slice %72 {offsets = [0, 64], sizes = [16, 32], strides = [1, 1]} : vector<16x96xf32> to vector<16x32xf32>
    %76 = tpu.transpose %74, [1, 0] : vector<16x32xf32> -> vector<32x16xf32>
    %77 = vector.extract_strided_slice %1 {offsets = [0, 0], sizes = [1, 8], strides = [1, 1]} : vector<2x8xf32> to vector<1x8xf32>
    %78 = vector.extract_strided_slice %73 {offsets = [0, 0], sizes = [8, 8], strides = [1, 1]} : vector<16x32xf32> to vector<8x8xf32>
    %cst_31 = arith.constant 0.353553385 : f32
    %79 = vector.broadcast %cst_31 : f32 to vector<8x8xf32>
    %80 = arith.mulf %78, %79 : vector<8x8xf32>
    %81 = vector.extract_strided_slice %76 {offsets = [0, 0], sizes = [8, 8], strides = [1, 1]} : vector<32x16xf32> to vector<8x8xf32>
    %cst_32 = arith.constant dense<0.000000e+00> : vector<8x8xf32>
    %82 = tpu.matmul %80, %81, %cst_32 {dimension_numbers = #tpu.dot_dimension_numbers<[1], [0], [0], [1], [0, 0, 1, 1], [], []>} : vector<8x8xf32>, vector<8x8xf32>, vector<8x8xf32> -> vector<8x8xf32>
    %83 = vector.broadcast %77 : vector<1x8xf32> to vector<8x8xf32>
    %84 = arith.addf %82, %83 : vector<8x8xf32>
    %cst_33 = arith.constant dense<0xFF800000> : vector<8xf32>
    %85 = vector.multi_reduction <maximumf>, %84, %cst_33 [1] : vector<8x8xf32> to vector<8xf32>
    %86 = vector.shape_cast %85 : vector<8xf32> to vector<8x1xf32>
    %87 = vector.broadcast %86 : vector<8x1xf32> to vector<8x8xf32>
    %88 = arith.subf %84, %87 : vector<8x8xf32>
    %89 = math.exp %88 : vector<8x8xf32>
    %cst_34 = arith.constant dense<0.000000e+00> : vector<8xf32>
    %90 = vector.multi_reduction <add>, %89, %cst_34 [1] : vector<8x8xf32> to vector<8xf32>
    %91 = vector.shape_cast %90 : vector<8xf32> to vector<8x1xf32>
    %92 = tpu.reciprocal %91 {approx = true} : vector<8x1xf32> -> vector<8x1xf32>
    %93 = vector.broadcast %92 : vector<8x1xf32> to vector<8x8xf32>
    %94 = arith.mulf %89, %93 : vector<8x8xf32>
    %95 = vector.extract_strided_slice %75 {offsets = [0, 0], sizes = [8, 8], strides = [1, 1]} : vector<16x32xf32> to vector<8x8xf32>
    %cst_35 = arith.constant dense<0.000000e+00> : vector<8x8xf32>
    %96 = tpu.matmul %94, %95, %cst_35 {dimension_numbers = #tpu.dot_dimension_numbers<[1], [0], [0], [1], [0, 0, 1, 1], [], []>} : vector<8x8xf32>, vector<8x8xf32>, vector<8x8xf32> -> vector<8x8xf32>
    %97 = vector.extract_strided_slice %73 {offsets = [0, 8], sizes = [8, 8], strides = [1, 1]} : vector<16x32xf32> to vector<8x8xf32>
    %cst_36 = arith.constant 0.353553385 : f32
    %98 = vector.broadcast %cst_36 : f32 to vector<8x8xf32>
    %99 = arith.mulf %97, %98 : vector<8x8xf32>
    %100 = vector.extract_strided_slice %76 {offsets = [8, 0], sizes = [8, 8], strides = [1, 1]} : vector<32x16xf32> to vector<8x8xf32>
    %cst_37 = arith.constant dense<0.000000e+00> : vector<8x8xf32>
    %101 = tpu.matmul %99, %100, %cst_37 {dimension_numbers = #tpu.dot_dimension_numbers<[1], [0], [0], [1], [0, 0, 1, 1], [], []>} : vector<8x8xf32>, vector<8x8xf32>, vector<8x8xf32> -> vector<8x8xf32>
    %102 = vector.broadcast %77 : vector<1x8xf32> to vector<8x8xf32>
    %103 = arith.addf %101, %102 : vector<8x8xf32>
    %cst_38 = arith.constant dense<0xFF800000> : vector<8xf32>
    %104 = vector.multi_reduction <maximumf>, %103, %cst_38 [1] : vector<8x8xf32> to vector<8xf32>
    %105 = vector.shape_cast %104 : vector<8xf32> to vector<8x1xf32>
    %106 = vector.broadcast %105 : vector<8x1xf32> to vector<8x8xf32>
    %107 = arith.subf %103, %106 : vector<8x8xf32>
    %108 = math.exp %107 : vector<8x8xf32>
    %cst_39 = arith.constant dense<0.000000e+00> : vector<8xf32>
    %109 = vector.multi_reduction <add>, %108, %cst_39 [1] : vector<8x8xf32> to vector<8xf32>
    %110 = vector.shape_cast %109 : vector<8xf32> to vector<8x1xf32>
    %111 = tpu.reciprocal %110 {approx = true} : vector<8x1xf32> -> vector<8x1xf32>
    %112 = vector.broadcast %111 : vector<8x1xf32> to vector<8x8xf32>
    %113 = arith.mulf %108, %112 : vector<8x8xf32>
    %114 = vector.extract_strided_slice %75 {offsets = [0, 8], sizes = [8, 8], strides = [1, 1]} : vector<16x32xf32> to vector<8x8xf32>
    %cst_40 = arith.constant dense<0.000000e+00> : vector<8x8xf32>
    %115 = tpu.matmul %113, %114, %cst_40 {dimension_numbers = #tpu.dot_dimension_numbers<[1], [0], [0], [1], [0, 0, 1, 1], [], []>} : vector<8x8xf32>, vector<8x8xf32>, vector<8x8xf32> -> vector<8x8xf32>
    %116 = vector.extract_strided_slice %73 {offsets = [0, 16], sizes = [8, 8], strides = [1, 1]} : vector<16x32xf32> to vector<8x8xf32>
    %cst_41 = arith.constant 0.353553385 : f32
    %117 = vector.broadcast %cst_41 : f32 to vector<8x8xf32>
    %118 = arith.mulf %116, %117 : vector<8x8xf32>
    %119 = vector.extract_strided_slice %76 {offsets = [16, 0], sizes = [8, 8], strides = [1, 1]} : vector<32x16xf32> to vector<8x8xf32>
    %cst_42 = arith.constant dense<0.000000e+00> : vector<8x8xf32>
    %120 = tpu.matmul %118, %119, %cst_42 {dimension_numbers = #tpu.dot_dimension_numbers<[1], [0], [0], [1], [0, 0, 1, 1], [], []>} : vector<8x8xf32>, vector<8x8xf32>, vector<8x8xf32> -> vector<8x8xf32>
    %121 = vector.broadcast %77 : vector<1x8xf32> to vector<8x8xf32>
    %122 = arith.addf %120, %121 : vector<8x8xf32>
    %cst_43 = arith.constant dense<0xFF800000> : vector<8xf32>
    %123 = vector.multi_reduction <maximumf>, %122, %cst_43 [1] : vector<8x8xf32> to vector<8xf32>
    %124 = vector.shape_cast %123 : vector<8xf32> to vector<8x1xf32>
    %125 = vector.broadcast %124 : vector<8x1xf32> to vector<8x8xf32>
    %126 = arith.subf %122, %125 : vector<8x8xf32>
    %127 = math.exp %126 : vector<8x8xf32>
    %cst_44 = arith.constant dense<0.000000e+00> : vector<8xf32>
    %128 = vector.multi_reduction <add>, %127, %cst_44 [1] : vector<8x8xf32> to vector<8xf32>
    %129 = vector.shape_cast %128 : vector<8xf32> to vector<8x1xf32>
    %130 = tpu.reciprocal %129 {approx = true} : vector<8x1xf32> -> vector<8x1xf32>
    %131 = vector.broadcast %130 : vector<8x1xf32> to vector<8x8xf32>
    %132 = arith.mulf %127, %131 : vector<8x8xf32>
    %133 = vector.extract_strided_slice %75 {offsets = [0, 16], sizes = [8, 8], strides = [1, 1]} : vector<16x32xf32> to vector<8x8xf32>
    %cst_45 = arith.constant dense<0.000000e+00> : vector<8x8xf32>
    %134 = tpu.matmul %132, %133, %cst_45 {dimension_numbers = #tpu.dot_dimension_numbers<[1], [0], [0], [1], [0, 0, 1, 1], [], []>} : vector<8x8xf32>, vector<8x8xf32>, vector<8x8xf32> -> vector<8x8xf32>
    %135 = vector.extract_strided_slice %73 {offsets = [0, 24], sizes = [8, 8], strides = [1, 1]} : vector<16x32xf32> to vector<8x8xf32>
    %cst_46 = arith.constant 0.353553385 : f32
    %136 = vector.broadcast %cst_46 : f32 to vector<8x8xf32>
    %137 = arith.mulf %135, %136 : vector<8x8xf32>
    %138 = vector.extract_strided_slice %76 {offsets = [24, 0], sizes = [8, 8], strides = [1, 1]} : vector<32x16xf32> to vector<8x8xf32>
    %cst_47 = arith.constant dense<0.000000e+00> : vector<8x8xf32>
    %139 = tpu.matmul %137, %138, %cst_47 {dimension_numbers = #tpu.dot_dimension_numbers<[1], [0], [0], [1], [0, 0, 1, 1], [], []>} : vector<8x8xf32>, vector<8x8xf32>, vector<8x8xf32> -> vector<8x8xf32>
    %140 = vector.broadcast %77 : vector<1x8xf32> to vector<8x8xf32>
    %141 = arith.addf %139, %140 : vector<8x8xf32>
    %cst_48 = arith.constant dense<0xFF800000> : vector<8xf32>
    %142 = vector.multi_reduction <maximumf>, %141, %cst_48 [1] : vector<8x8xf32> to vector<8xf32>
    %143 = vector.shape_cast %142 : vector<8xf32> to vector<8x1xf32>
    %144 = vector.broadcast %143 : vector<8x1xf32> to vector<8x8xf32>
    %145 = arith.subf %141, %144 : vector<8x8xf32>
    %146 = math.exp %145 : vector<8x8xf32>
    %cst_49 = arith.constant dense<0.000000e+00> : vector<8xf32>
    %147 = vector.multi_reduction <add>, %146, %cst_49 [1] : vector<8x8xf32> to vector<8xf32>
    %148 = vector.shape_cast %147 : vector<8xf32> to vector<8x1xf32>
    %149 = tpu.reciprocal %148 {approx = true} : vector<8x1xf32> -> vector<8x1xf32>
    %150 = vector.broadcast %149 : vector<8x1xf32> to vector<8x8xf32>
    %151 = arith.mulf %146, %150 : vector<8x8xf32>
    %152 = vector.extract_strided_slice %75 {offsets = [0, 24], sizes = [8, 8], strides = [1, 1]} : vector<16x32xf32> to vector<8x8xf32>
    %cst_50 = arith.constant dense<0.000000e+00> : vector<8x8xf32>
    %153 = tpu.matmul %151, %152, %cst_50 {dimension_numbers = #tpu.dot_dimension_numbers<[1], [0], [0], [1], [0, 0, 1, 1], [], []>} : vector<8x8xf32>, vector<8x8xf32>, vector<8x8xf32> -> vector<8x8xf32>
    %154 = tpu.concatenate %96, %115, %134, %153 in 1 : vector<8x8xf32>, vector<8x8xf32>, vector<8x8xf32>, vector<8x8xf32> -> vector<8x32xf32>
    %155 = vector.extract_strided_slice %1 {offsets = [1, 0], sizes = [1, 8], strides = [1, 1]} : vector<2x8xf32> to vector<1x8xf32>
    %156 = vector.extract_strided_slice %73 {offsets = [8, 0], sizes = [8, 8], strides = [1, 1]} : vector<16x32xf32> to vector<8x8xf32>
    %cst_51 = arith.constant 0.353553385 : f32
    %157 = vector.broadcast %cst_51 : f32 to vector<8x8xf32>
    %158 = arith.mulf %156, %157 : vector<8x8xf32>
    %159 = vector.extract_strided_slice %76 {offsets = [0, 8], sizes = [8, 8], strides = [1, 1]} : vector<32x16xf32> to vector<8x8xf32>
    %cst_52 = arith.constant dense<0.000000e+00> : vector<8x8xf32>
    %160 = tpu.matmul %158, %159, %cst_52 {dimension_numbers = #tpu.dot_dimension_numbers<[1], [0], [0], [1], [0, 0, 1, 1], [], []>} : vector<8x8xf32>, vector<8x8xf32>, vector<8x8xf32> -> vector<8x8xf32>
    %161 = vector.broadcast %155 : vector<1x8xf32> to vector<8x8xf32>
    %162 = arith.addf %160, %161 : vector<8x8xf32>
    %cst_53 = arith.constant dense<0xFF800000> : vector<8xf32>
    %163 = vector.multi_reduction <maximumf>, %162, %cst_53 [1] : vector<8x8xf32> to vector<8xf32>
    %164 = vector.shape_cast %163 : vector<8xf32> to vector<8x1xf32>
    %165 = vector.broadcast %164 : vector<8x1xf32> to vector<8x8xf32>
    %166 = arith.subf %162, %165 : vector<8x8xf32>
    %167 = math.exp %166 : vector<8x8xf32>
    %cst_54 = arith.constant dense<0.000000e+00> : vector<8xf32>
    %168 = vector.multi_reduction <add>, %167, %cst_54 [1] : vector<8x8xf32> to vector<8xf32>
    %169 = vector.shape_cast %168 : vector<8xf32> to vector<8x1xf32>
    %170 = tpu.reciprocal %169 {approx = true} : vector<8x1xf32> -> vector<8x1xf32>
    %171 = vector.broadcast %170 : vector<8x1xf32> to vector<8x8xf32>
    %172 = arith.mulf %167, %171 : vector<8x8xf32>
    %173 = vector.extract_strided_slice %75 {offsets = [8, 0], sizes = [8, 8], strides = [1, 1]} : vector<16x32xf32> to vector<8x8xf32>
    %cst_55 = arith.constant dense<0.000000e+00> : vector<8x8xf32>
    %174 = tpu.matmul %172, %173, %cst_55 {dimension_numbers = #tpu.dot_dimension_numbers<[1], [0], [0], [1], [0, 0, 1, 1], [], []>} : vector<8x8xf32>, vector<8x8xf32>, vector<8x8xf32> -> vector<8x8xf32>
    %175 = vector.extract_strided_slice %73 {offsets = [8, 8], sizes = [8, 8], strides = [1, 1]} : vector<16x32xf32> to vector<8x8xf32>
    %cst_56 = arith.constant 0.353553385 : f32
    %176 = vector.broadcast %cst_56 : f32 to vector<8x8xf32>
    %177 = arith.mulf %175, %176 : vector<8x8xf32>
    %178 = vector.extract_strided_slice %76 {offsets = [8, 8], sizes = [8, 8], strides = [1, 1]} : vector<32x16xf32> to vector<8x8xf32>
    %cst_57 = arith.constant dense<0.000000e+00> : vector<8x8xf32>
    %179 = tpu.matmul %177, %178, %cst_57 {dimension_numbers = #tpu.dot_dimension_numbers<[1], [0], [0], [1], [0, 0, 1, 1], [], []>} : vector<8x8xf32>, vector<8x8xf32>, vector<8x8xf32> -> vector<8x8xf32>
    %180 = vector.broadcast %155 : vector<1x8xf32> to vector<8x8xf32>
    %181 = arith.addf %179, %180 : vector<8x8xf32>
    %cst_58 = arith.constant dense<0xFF800000> : vector<8xf32>
    %182 = vector.multi_reduction <maximumf>, %181, %cst_58 [1] : vector<8x8xf32> to vector<8xf32>
    %183 = vector.shape_cast %182 : vector<8xf32> to vector<8x1xf32>
    %184 = vector.broadcast %183 : vector<8x1xf32> to vector<8x8xf32>
    %185 = arith.subf %181, %184 : vector<8x8xf32>
    %186 = math.exp %185 : vector<8x8xf32>
    %cst_59 = arith.constant dense<0.000000e+00> : vector<8xf32>
    %187 = vector.multi_reduction <add>, %186, %cst_59 [1] : vector<8x8xf32> to vector<8xf32>
    %188 = vector.shape_cast %187 : vector<8xf32> to vector<8x1xf32>
    %189 = tpu.reciprocal %188 {approx = true} : vector<8x1xf32> -> vector<8x1xf32>
    %190 = vector.broadcast %189 : vector<8x1xf32> to vector<8x8xf32>
    %191 = arith.mulf %186, %190 : vector<8x8xf32>
    %192 = vector.extract_strided_slice %75 {offsets = [8, 8], sizes = [8, 8], strides = [1, 1]} : vector<16x32xf32> to vector<8x8xf32>
    %cst_60 = arith.constant dense<0.000000e+00> : vector<8x8xf32>
    %193 = tpu.matmul %191, %192, %cst_60 {dimension_numbers = #tpu.dot_dimension_numbers<[1], [0], [0], [1], [0, 0, 1, 1], [], []>} : vector<8x8xf32>, vector<8x8xf32>, vector<8x8xf32> -> vector<8x8xf32>
    %194 = vector.extract_strided_slice %73 {offsets = [8, 16], sizes = [8, 8], strides = [1, 1]} : vector<16x32xf32> to vector<8x8xf32>
    %cst_61 = arith.constant 0.353553385 : f32
    %195 = vector.broadcast %cst_61 : f32 to vector<8x8xf32>
    %196 = arith.mulf %194, %195 : vector<8x8xf32>
    %197 = vector.extract_strided_slice %76 {offsets = [16, 8], sizes = [8, 8], strides = [1, 1]} : vector<32x16xf32> to vector<8x8xf32>
    %cst_62 = arith.constant dense<0.000000e+00> : vector<8x8xf32>
    %198 = tpu.matmul %196, %197, %cst_62 {dimension_numbers = #tpu.dot_dimension_numbers<[1], [0], [0], [1], [0, 0, 1, 1], [], []>} : vector<8x8xf32>, vector<8x8xf32>, vector<8x8xf32> -> vector<8x8xf32>
    %199 = vector.broadcast %155 : vector<1x8xf32> to vector<8x8xf32>
    %200 = arith.addf %198, %199 : vector<8x8xf32>
    %cst_63 = arith.constant dense<0xFF800000> : vector<8xf32>
    %201 = vector.multi_reduction <maximumf>, %200, %cst_63 [1] : vector<8x8xf32> to vector<8xf32>
    %202 = vector.shape_cast %201 : vector<8xf32> to vector<8x1xf32>
    %203 = vector.broadcast %202 : vector<8x1xf32> to vector<8x8xf32>
    %204 = arith.subf %200, %203 : vector<8x8xf32>
    %205 = math.exp %204 : vector<8x8xf32>
    %cst_64 = arith.constant dense<0.000000e+00> : vector<8xf32>
    %206 = vector.multi_reduction <add>, %205, %cst_64 [1] : vector<8x8xf32> to vector<8xf32>
    %207 = vector.shape_cast %206 : vector<8xf32> to vector<8x1xf32>
    %208 = tpu.reciprocal %207 {approx = true} : vector<8x1xf32> -> vector<8x1xf32>
    %209 = vector.broadcast %208 : vector<8x1xf32> to vector<8x8xf32>
    %210 = arith.mulf %205, %209 : vector<8x8xf32>
    %211 = vector.extract_strided_slice %75 {offsets = [8, 16], sizes = [8, 8], strides = [1, 1]} : vector<16x32xf32> to vector<8x8xf32>
    %cst_65 = arith.constant dense<0.000000e+00> : vector<8x8xf32>
    %212 = tpu.matmul %210, %211, %cst_65 {dimension_numbers = #tpu.dot_dimension_numbers<[1], [0], [0], [1], [0, 0, 1, 1], [], []>} : vector<8x8xf32>, vector<8x8xf32>, vector<8x8xf32> -> vector<8x8xf32>
    %213 = vector.extract_strided_slice %73 {offsets = [8, 24], sizes = [8, 8], strides = [1, 1]} : vector<16x32xf32> to vector<8x8xf32>
    %cst_66 = arith.constant 0.353553385 : f32
    %214 = vector.broadcast %cst_66 : f32 to vector<8x8xf32>
    %215 = arith.mulf %213, %214 : vector<8x8xf32>
    %216 = vector.extract_strided_slice %76 {offsets = [24, 8], sizes = [8, 8], strides = [1, 1]} : vector<32x16xf32> to vector<8x8xf32>
    %cst_67 = arith.constant dense<0.000000e+00> : vector<8x8xf32>
    %217 = tpu.matmul %215, %216, %cst_67 {dimension_numbers = #tpu.dot_dimension_numbers<[1], [0], [0], [1], [0, 0, 1, 1], [], []>} : vector<8x8xf32>, vector<8x8xf32>, vector<8x8xf32> -> vector<8x8xf32>
    %218 = vector.broadcast %155 : vector<1x8xf32> to vector<8x8xf32>
    %219 = arith.addf %217, %218 : vector<8x8xf32>
    %cst_68 = arith.constant dense<0xFF800000> : vector<8xf32>
    %220 = vector.multi_reduction <maximumf>, %219, %cst_68 [1] : vector<8x8xf32> to vector<8xf32>
    %221 = vector.shape_cast %220 : vector<8xf32> to vector<8x1xf32>
    %222 = vector.broadcast %221 : vector<8x1xf32> to vector<8x8xf32>
    %223 = arith.subf %219, %222 : vector<8x8xf32>
    %224 = math.exp %223 : vector<8x8xf32>
    %cst_69 = arith.constant dense<0.000000e+00> : vector<8xf32>
    %225 = vector.multi_reduction <add>, %224, %cst_69 [1] : vector<8x8xf32> to vector<8xf32>
    %226 = vector.shape_cast %225 : vector<8xf32> to vector<8x1xf32>
    %227 = tpu.reciprocal %226 {approx = true} : vector<8x1xf32> -> vector<8x1xf32>
    %228 = vector.broadcast %227 : vector<8x1xf32> to vector<8x8xf32>
    %229 = arith.mulf %224, %228 : vector<8x8xf32>
    %230 = vector.extract_strided_slice %75 {offsets = [8, 24], sizes = [8, 8], strides = [1, 1]} : vector<16x32xf32> to vector<8x8xf32>
    %cst_70 = arith.constant dense<0.000000e+00> : vector<8x8xf32>
    %231 = tpu.matmul %229, %230, %cst_70 {dimension_numbers = #tpu.dot_dimension_numbers<[1], [0], [0], [1], [0, 0, 1, 1], [], []>} : vector<8x8xf32>, vector<8x8xf32>, vector<8x8xf32> -> vector<8x8xf32>
    %232 = tpu.concatenate %174, %193, %212, %231 in 1 : vector<8x8xf32>, vector<8x8xf32>, vector<8x8xf32>, vector<8x8xf32> -> vector<8x32xf32>
    %233 = tpu.concatenate %154, %232 in 0 : vector<8x32xf32>, vector<8x32xf32> -> vector<16x32xf32>
    %c72 = arith.constant 72 : index
    %c0_71 = arith.constant 0 : index
    %234 = vector.load %arg3[%c72, %c0_71] : memref<760x32xf32, #tpu.memory_space<vmem>>, vector<32x32xf32>
    %cst_72 = arith.constant dense<0.000000e+00> : vector<16x32xf32>
    %235 = tpu.matmul %233, %234, %cst_72 {dimension_numbers = #tpu.dot_dimension_numbers<[1], [0], [0], [1], [0, 0, 1, 1], [], []>} : vector<16x32xf32>, vector<32x32xf32>, vector<16x32xf32> -> vector<16x32xf32>
    %c104 = arith.constant 104 : index
    %c0_73 = arith.constant 0 : index
    %236 = vector.load %arg3[%c104, %c0_73] : memref<760x32xf32, #tpu.memory_space<vmem>>, vector<1x32xf32>
    %237 = vector.broadcast %236 : vector<1x32xf32> to vector<16x32xf32>
    %238 = arith.addf %235, %237 : vector<16x32xf32>
    %239 = arith.addf %238, %67 : vector<16x32xf32>
    %cst_74 = arith.constant dense<0.000000e+00> : vector<16xf32>
    %240 = vector.multi_reduction <add>, %239, %cst_74 [1] : vector<16x32xf32> to vector<16xf32>
    %241 = vector.shape_cast %240 : vector<16xf32> to vector<16x1xf32>
    %cst_75 = arith.constant 3.200000e+01 : f32
    %242 = vector.broadcast %cst_75 : f32 to vector<16x1xf32>
    %243 = arith.divf %241, %242 : vector<16x1xf32>
    %244 = vector.broadcast %243 : vector<16x1xf32> to vector<16x32xf32>
    %245 = arith.subf %239, %244 : vector<16x32xf32>
    %246 = arith.mulf %245, %245 : vector<16x32xf32>
    %cst_76 = arith.constant dense<0.000000e+00> : vector<16xf32>
    %247 = vector.multi_reduction <add>, %246, %cst_76 [1] : vector<16x32xf32> to vector<16xf32>
    %248 = vector.shape_cast %247 : vector<16xf32> to vector<16x1xf32>
    %cst_77 = arith.constant 3.200000e+01 : f32
    %249 = vector.broadcast %cst_77 : f32 to vector<16x1xf32>
    %250 = arith.divf %248, %249 : vector<16x1xf32>
    %251 = vector.broadcast %243 : vector<16x1xf32> to vector<16x32xf32>
    %252 = arith.subf %239, %251 : vector<16x32xf32>
    %cst_78 = arith.constant 9.99999996E-13 : f32
    %253 = vector.broadcast %cst_78 : f32 to vector<16x1xf32>
    %254 = arith.addf %250, %253 : vector<16x1xf32>
    %255 = math.rsqrt %254 : vector<16x1xf32>
    %256 = vector.broadcast %255 : vector<16x1xf32> to vector<16x32xf32>
    %257 = arith.mulf %252, %256 : vector<16x32xf32>
    %c112 = arith.constant 112 : index
    %c0_79 = arith.constant 0 : index
    %258 = vector.load %arg3[%c112, %c0_79] : memref<760x32xf32, #tpu.memory_space<vmem>>, vector<1x32xf32>
    %259 = vector.broadcast %258 : vector<1x32xf32> to vector<16x32xf32>
    %260 = arith.mulf %257, %259 : vector<16x32xf32>
    %c120 = arith.constant 120 : index
    %c0_80 = arith.constant 0 : index
    %261 = vector.load %arg3[%c120, %c0_80] : memref<760x32xf32, #tpu.memory_space<vmem>>, vector<1x32xf32>
    %262 = vector.broadcast %261 : vector<1x32xf32> to vector<16x32xf32>
    %263 = arith.addf %260, %262 : vector<16x32xf32>
    %c0_81 = arith.constant 0 : index
    %c0_82 = arith.constant 0 : index
    %264 = vector.load %arg4[%c0_81, %c0_82] : memref<200x64xf32, #tpu.memory_space<vmem>>, vector<32x64xf32>
    %cst_83 = arith.constant dense<0.000000e+00> : vector<16x64xf32>
    %265 = tpu.matmul %263, %264, %cst_83 {dimension_numbers = #tpu.dot_dimension_numbers<[1], [0], [0], [1], [0, 0, 1, 1], [], []>} : vector<16x32xf32>, vector<32x64xf32>, vector<16x64xf32> -> vector<16x64xf32>
    %c32_84 = arith.constant 32 : index
    %c0_85 = arith.constant 0 : index
    %266 = vector.load %arg4[%c32_84, %c0_85] : memref<200x64xf32, #tpu.memory_space<vmem>>, vector<1x64xf32>
    %267 = vector.broadcast %266 : vector<1x64xf32> to vector<16x64xf32>
    %268 = arith.addf %265, %267 : vector<16x64xf32>
    %cst_86 = arith.constant 5.000000e-01 : f32
    %269 = vector.broadcast %cst_86 : f32 to vector<16x64xf32>
    %270 = arith.mulf %269, %268 : vector<16x64xf32>
    %cst_87 = arith.constant 4.471500e-02 : f32
    %271 = vector.broadcast %cst_87 : f32 to vector<16x64xf32>
    %272 = arith.mulf %271, %268 : vector<16x64xf32>
    %273 = arith.mulf %272, %268 : vector<16x64xf32>
    %274 = arith.mulf %273, %268 : vector<16x64xf32>
    %275 = arith.addf %268, %274 : vector<16x64xf32>
    %cst_88 = arith.constant 0.797884583 : f32
    %276 = vector.broadcast %cst_88 : f32 to vector<16x64xf32>
    %277 = arith.mulf %276, %275 : vector<16x64xf32>
    %278 = math.tanh %277 : vector<16x64xf32>
    %cst_89 = arith.constant 1.000000e+00 : f32
    %279 = vector.broadcast %cst_89 : f32 to vector<16x64xf32>
    %280 = arith.addf %279, %278 : vector<16x64xf32>
    %281 = arith.mulf %270, %280 : vector<16x64xf32>
    %c128 = arith.constant 128 : index
    %c0_90 = arith.constant 0 : index
    %282 = vector.load %arg3[%c128, %c0_90] : memref<760x32xf32, #tpu.memory_space<vmem>>, vector<64x32xf32>
    %cst_91 = arith.constant dense<0.000000e+00> : vector<16x32xf32>
    %283 = tpu.matmul %281, %282, %cst_91 {dimension_numbers = #tpu.dot_dimension_numbers<[1], [0], [0], [1], [0, 0, 1, 1], [], []>} : vector<16x64xf32>, vector<64x32xf32>, vector<16x32xf32> -> vector<16x32xf32>
    %c192 = arith.constant 192 : index
    %c0_92 = arith.constant 0 : index
    %284 = vector.load %arg3[%c192, %c0_92] : memref<760x32xf32, #tpu.memory_space<vmem>>, vector<1x32xf32>
    %285 = vector.broadcast %284 : vector<1x32xf32> to vector<16x32xf32>
    %286 = arith.addf %283, %285 : vector<16x32xf32>
    %287 = arith.addf %286, %263 : vector<16x32xf32>
    %cst_93 = arith.constant dense<0.000000e+00> : vector<16xf32>
    %288 = vector.multi_reduction <add>, %287, %cst_93 [1] : vector<16x32xf32> to vector<16xf32>
    %289 = vector.shape_cast %288 : vector<16xf32> to vector<16x1xf32>
    %cst_94 = arith.constant 3.200000e+01 : f32
    %290 = vector.broadcast %cst_94 : f32 to vector<16x1xf32>
    %291 = arith.divf %289, %290 : vector<16x1xf32>
    %292 = vector.broadcast %291 : vector<16x1xf32> to vector<16x32xf32>
    %293 = arith.subf %287, %292 : vector<16x32xf32>
    %294 = arith.mulf %293, %293 : vector<16x32xf32>
    %cst_95 = arith.constant dense<0.000000e+00> : vector<16xf32>
    %295 = vector.multi_reduction <add>, %294, %cst_95 [1] : vector<16x32xf32> to vector<16xf32>
    %296 = vector.shape_cast %295 : vector<16xf32> to vector<16x1xf32>
    %cst_96 = arith.constant 3.200000e+01 : f32
    %297 = vector.broadcast %cst_96 : f32 to vector<16x1xf32>
    %298 = arith.divf %296, %297 : vector<16x1xf32>
    %299 = vector.broadcast %291 : vector<16x1xf32> to vector<16x32xf32>
    %300 = arith.subf %287, %299 : vector<16x32xf32>
    %cst_97 = arith.constant 9.99999996E-13 : f32
    %301 = vector.broadcast %cst_97 : f32 to vector<16x1xf32>
    %302 = arith.addf %298, %301 : vector<16x1xf32>
    %303 = math.rsqrt %302 : vector<16x1xf32>
    %304 = vector.broadcast %303 : vector<16x1xf32> to vector<16x32xf32>
    %305 = arith.mulf %300, %304 : vector<16x32xf32>
    %c200 = arith.constant 200 : index
    %c0_98 = arith.constant 0 : index
    %306 = vector.load %arg3[%c200, %c0_98] : memref<760x32xf32, #tpu.memory_space<vmem>>, vector<1x32xf32>
    %307 = vector.broadcast %306 : vector<1x32xf32> to vector<16x32xf32>
    %308 = arith.mulf %305, %307 : vector<16x32xf32>
    %c208 = arith.constant 208 : index
    %c0_99 = arith.constant 0 : index
    %309 = vector.load %arg3[%c208, %c0_99] : memref<760x32xf32, #tpu.memory_space<vmem>>, vector<1x32xf32>
    %310 = vector.broadcast %309 : vector<1x32xf32> to vector<16x32xf32>
    %311 = arith.addf %308, %310 : vector<16x32xf32>
    %c40_100 = arith.constant 40 : index
    %c0_101 = arith.constant 0 : index
    %312 = vector.load %arg5[%c40_100, %c0_101] : memref<240x96xf32, #tpu.memory_space<vmem>>, vector<32x96xf32>
    %cst_102 = arith.constant dense<0.000000e+00> : vector<16x96xf32>
    %313 = tpu.matmul %311, %312, %cst_102 {dimension_numbers = #tpu.dot_dimension_numbers<[1], [0], [0], [1], [0, 0, 1, 1], [], []>} : vector<16x32xf32>, vector<32x96xf32>, vector<16x96xf32> -> vector<16x96xf32>
    %c72_103 = arith.constant 72 : index
    %c0_104 = arith.constant 0 : index
    %314 = vector.load %arg5[%c72_103, %c0_104] : memref<240x96xf32, #tpu.memory_space<vmem>>, vector<1x96xf32>
    %315 = vector.broadcast %314 : vector<1x96xf32> to vector<16x96xf32>
    %316 = arith.addf %313, %315 : vector<16x96xf32>
    %317 = vector.extract_strided_slice %316 {offsets = [0, 0], sizes = [16, 32], strides = [1, 1]} : vector<16x96xf32> to vector<16x32xf32>
    %318 = vector.extract_strided_slice %316 {offsets = [0, 32], sizes = [16, 32], strides = [1, 1]} : vector<16x96xf32> to vector<16x32xf32>
    %319 = vector.extract_strided_slice %316 {offsets = [0, 64], sizes = [16, 32], strides = [1, 1]} : vector<16x96xf32> to vector<16x32xf32>
    %320 = tpu.transpose %318, [1, 0] : vector<16x32xf32> -> vector<32x16xf32>
    %321 = vector.extract_strided_slice %1 {offsets = [0, 0], sizes = [1, 8], strides = [1, 1]} : vector<2x8xf32> to vector<1x8xf32>
    %322 = vector.extract_strided_slice %317 {offsets = [0, 0], sizes = [8, 8], strides = [1, 1]} : vector<16x32xf32> to vector<8x8xf32>
    %cst_105 = arith.constant 0.353553385 : f32
    %323 = vector.broadcast %cst_105 : f32 to vector<8x8xf32>
    %324 = arith.mulf %322, %323 : vector<8x8xf32>
    %325 = vector.extract_strided_slice %320 {offsets = [0, 0], sizes = [8, 8], strides = [1, 1]} : vector<32x16xf32> to vector<8x8xf32>
    %cst_106 = arith.constant dense<0.000000e+00> : vector<8x8xf32>
    %326 = tpu.matmul %324, %325, %cst_106 {dimension_numbers = #tpu.dot_dimension_numbers<[1], [0], [0], [1], [0, 0, 1, 1], [], []>} : vector<8x8xf32>, vector<8x8xf32>, vector<8x8xf32> -> vector<8x8xf32>
    %327 = vector.broadcast %321 : vector<1x8xf32> to vector<8x8xf32>
    %328 = arith.addf %326, %327 : vector<8x8xf32>
    %cst_107 = arith.constant dense<0xFF800000> : vector<8xf32>
    %329 = vector.multi_reduction <maximumf>, %328, %cst_107 [1] : vector<8x8xf32> to vector<8xf32>
    %330 = vector.shape_cast %329 : vector<8xf32> to vector<8x1xf32>
    %331 = vector.broadcast %330 : vector<8x1xf32> to vector<8x8xf32>
    %332 = arith.subf %328, %331 : vector<8x8xf32>
    %333 = math.exp %332 : vector<8x8xf32>
    %cst_108 = arith.constant dense<0.000000e+00> : vector<8xf32>
    %334 = vector.multi_reduction <add>, %333, %cst_108 [1] : vector<8x8xf32> to vector<8xf32>
    %335 = vector.shape_cast %334 : vector<8xf32> to vector<8x1xf32>
    %336 = tpu.reciprocal %335 {approx = true} : vector<8x1xf32> -> vector<8x1xf32>
    %337 = vector.broadcast %336 : vector<8x1xf32> to vector<8x8xf32>
    %338 = arith.mulf %333, %337 : vector<8x8xf32>
    %339 = vector.extract_strided_slice %319 {offsets = [0, 0], sizes = [8, 8], strides = [1, 1]} : vector<16x32xf32> to vector<8x8xf32>
    %cst_109 = arith.constant dense<0.000000e+00> : vector<8x8xf32>
    %340 = tpu.matmul %338, %339, %cst_109 {dimension_numbers = #tpu.dot_dimension_numbers<[1], [0], [0], [1], [0, 0, 1, 1], [], []>} : vector<8x8xf32>, vector<8x8xf32>, vector<8x8xf32> -> vector<8x8xf32>
    %341 = vector.extract_strided_slice %317 {offsets = [0, 8], sizes = [8, 8], strides = [1, 1]} : vector<16x32xf32> to vector<8x8xf32>
    %cst_110 = arith.constant 0.353553385 : f32
    %342 = vector.broadcast %cst_110 : f32 to vector<8x8xf32>
    %343 = arith.mulf %341, %342 : vector<8x8xf32>
    %344 = vector.extract_strided_slice %320 {offsets = [8, 0], sizes = [8, 8], strides = [1, 1]} : vector<32x16xf32> to vector<8x8xf32>
    %cst_111 = arith.constant dense<0.000000e+00> : vector<8x8xf32>
    %345 = tpu.matmul %343, %344, %cst_111 {dimension_numbers = #tpu.dot_dimension_numbers<[1], [0], [0], [1], [0, 0, 1, 1], [], []>} : vector<8x8xf32>, vector<8x8xf32>, vector<8x8xf32> -> vector<8x8xf32>
    %346 = vector.broadcast %321 : vector<1x8xf32> to vector<8x8xf32>
    %347 = arith.addf %345, %346 : vector<8x8xf32>
    %cst_112 = arith.constant dense<0xFF800000> : vector<8xf32>
    %348 = vector.multi_reduction <maximumf>, %347, %cst_112 [1] : vector<8x8xf32> to vector<8xf32>
    %349 = vector.shape_cast %348 : vector<8xf32> to vector<8x1xf32>
    %350 = vector.broadcast %349 : vector<8x1xf32> to vector<8x8xf32>
    %351 = arith.subf %347, %350 : vector<8x8xf32>
    %352 = math.exp %351 : vector<8x8xf32>
    %cst_113 = arith.constant dense<0.000000e+00> : vector<8xf32>
    %353 = vector.multi_reduction <add>, %352, %cst_113 [1] : vector<8x8xf32> to vector<8xf32>
    %354 = vector.shape_cast %353 : vector<8xf32> to vector<8x1xf32>
    %355 = tpu.reciprocal %354 {approx = true} : vector<8x1xf32> -> vector<8x1xf32>
    %356 = vector.broadcast %355 : vector<8x1xf32> to vector<8x8xf32>
    %357 = arith.mulf %352, %356 : vector<8x8xf32>
    %358 = vector.extract_strided_slice %319 {offsets = [0, 8], sizes = [8, 8], strides = [1, 1]} : vector<16x32xf32> to vector<8x8xf32>
    %cst_114 = arith.constant dense<0.000000e+00> : vector<8x8xf32>
    %359 = tpu.matmul %357, %358, %cst_114 {dimension_numbers = #tpu.dot_dimension_numbers<[1], [0], [0], [1], [0, 0, 1, 1], [], []>} : vector<8x8xf32>, vector<8x8xf32>, vector<8x8xf32> -> vector<8x8xf32>
    %360 = vector.extract_strided_slice %317 {offsets = [0, 16], sizes = [8, 8], strides = [1, 1]} : vector<16x32xf32> to vector<8x8xf32>
    %cst_115 = arith.constant 0.353553385 : f32
    %361 = vector.broadcast %cst_115 : f32 to vector<8x8xf32>
    %362 = arith.mulf %360, %361 : vector<8x8xf32>
    %363 = vector.extract_strided_slice %320 {offsets = [16, 0], sizes = [8, 8], strides = [1, 1]} : vector<32x16xf32> to vector<8x8xf32>
    %cst_116 = arith.constant dense<0.000000e+00> : vector<8x8xf32>
    %364 = tpu.matmul %362, %363, %cst_116 {dimension_numbers = #tpu.dot_dimension_numbers<[1], [0], [0], [1], [0, 0, 1, 1], [], []>} : vector<8x8xf32>, vector<8x8xf32>, vector<8x8xf32> -> vector<8x8xf32>
    %365 = vector.broadcast %321 : vector<1x8xf32> to vector<8x8xf32>
    %366 = arith.addf %364, %365 : vector<8x8xf32>
    %cst_117 = arith.constant dense<0xFF800000> : vector<8xf32>
    %367 = vector.multi_reduction <maximumf>, %366, %cst_117 [1] : vector<8x8xf32> to vector<8xf32>
    %368 = vector.shape_cast %367 : vector<8xf32> to vector<8x1xf32>
    %369 = vector.broadcast %368 : vector<8x1xf32> to vector<8x8xf32>
    %370 = arith.subf %366, %369 : vector<8x8xf32>
    %371 = math.exp %370 : vector<8x8xf32>
    %cst_118 = arith.constant dense<0.000000e+00> : vector<8xf32>
    %372 = vector.multi_reduction <add>, %371, %cst_118 [1] : vector<8x8xf32> to vector<8xf32>
    %373 = vector.shape_cast %372 : vector<8xf32> to vector<8x1xf32>
    %374 = tpu.reciprocal %373 {approx = true} : vector<8x1xf32> -> vector<8x1xf32>
    %375 = vector.broadcast %374 : vector<8x1xf32> to vector<8x8xf32>
    %376 = arith.mulf %371, %375 : vector<8x8xf32>
    %377 = vector.extract_strided_slice %319 {offsets = [0, 16], sizes = [8, 8], strides = [1, 1]} : vector<16x32xf32> to vector<8x8xf32>
    %cst_119 = arith.constant dense<0.000000e+00> : vector<8x8xf32>
    %378 = tpu.matmul %376, %377, %cst_119 {dimension_numbers = #tpu.dot_dimension_numbers<[1], [0], [0], [1], [0, 0, 1, 1], [], []>} : vector<8x8xf32>, vector<8x8xf32>, vector<8x8xf32> -> vector<8x8xf32>
    %379 = vector.extract_strided_slice %317 {offsets = [0, 24], sizes = [8, 8], strides = [1, 1]} : vector<16x32xf32> to vector<8x8xf32>
    %cst_120 = arith.constant 0.353553385 : f32
    %380 = vector.broadcast %cst_120 : f32 to vector<8x8xf32>
    %381 = arith.mulf %379, %380 : vector<8x8xf32>
    %382 = vector.extract_strided_slice %320 {offsets = [24, 0], sizes = [8, 8], strides = [1, 1]} : vector<32x16xf32> to vector<8x8xf32>
    %cst_121 = arith.constant dense<0.000000e+00> : vector<8x8xf32>
    %383 = tpu.matmul %381, %382, %cst_121 {dimension_numbers = #tpu.dot_dimension_numbers<[1], [0], [0], [1], [0, 0, 1, 1], [], []>} : vector<8x8xf32>, vector<8x8xf32>, vector<8x8xf32> -> vector<8x8xf32>
    %384 = vector.broadcast %321 : vector<1x8xf32> to vector<8x8xf32>
    %385 = arith.addf %383, %384 : vector<8x8xf32>
    %cst_122 = arith.constant dense<0xFF800000> : vector<8xf32>
    %386 = vector.multi_reduction <maximumf>, %385, %cst_122 [1] : vector<8x8xf32> to vector<8xf32>
    %387 = vector.shape_cast %386 : vector<8xf32> to vector<8x1xf32>
    %388 = vector.broadcast %387 : vector<8x1xf32> to vector<8x8xf32>
    %389 = arith.subf %385, %388 : vector<8x8xf32>
    %390 = math.exp %389 : vector<8x8xf32>
    %cst_123 = arith.constant dense<0.000000e+00> : vector<8xf32>
    %391 = vector.multi_reduction <add>, %390, %cst_123 [1] : vector<8x8xf32> to vector<8xf32>
    %392 = vector.shape_cast %391 : vector<8xf32> to vector<8x1xf32>
    %393 = tpu.reciprocal %392 {approx = true} : vector<8x1xf32> -> vector<8x1xf32>
    %394 = vector.broadcast %393 : vector<8x1xf32> to vector<8x8xf32>
    %395 = arith.mulf %390, %394 : vector<8x8xf32>
    %396 = vector.extract_strided_slice %319 {offsets = [0, 24], sizes = [8, 8], strides = [1, 1]} : vector<16x32xf32> to vector<8x8xf32>
    %cst_124 = arith.constant dense<0.000000e+00> : vector<8x8xf32>
    %397 = tpu.matmul %395, %396, %cst_124 {dimension_numbers = #tpu.dot_dimension_numbers<[1], [0], [0], [1], [0, 0, 1, 1], [], []>} : vector<8x8xf32>, vector<8x8xf32>, vector<8x8xf32> -> vector<8x8xf32>
    %398 = tpu.concatenate %340, %359, %378, %397 in 1 : vector<8x8xf32>, vector<8x8xf32>, vector<8x8xf32>, vector<8x8xf32> -> vector<8x32xf32>
    %399 = vector.extract_strided_slice %1 {offsets = [1, 0], sizes = [1, 8], strides = [1, 1]} : vector<2x8xf32> to vector<1x8xf32>
    %400 = vector.extract_strided_slice %317 {offsets = [8, 0], sizes = [8, 8], strides = [1, 1]} : vector<16x32xf32> to vector<8x8xf32>
    %cst_125 = arith.constant 0.353553385 : f32
    %401 = vector.broadcast %cst_125 : f32 to vector<8x8xf32>
    %402 = arith.mulf %400, %401 : vector<8x8xf32>
    %403 = vector.extract_strided_slice %320 {offsets = [0, 8], sizes = [8, 8], strides = [1, 1]} : vector<32x16xf32> to vector<8x8xf32>
    %cst_126 = arith.constant dense<0.000000e+00> : vector<8x8xf32>
    %404 = tpu.matmul %402, %403, %cst_126 {dimension_numbers = #tpu.dot_dimension_numbers<[1], [0], [0], [1], [0, 0, 1, 1], [], []>} : vector<8x8xf32>, vector<8x8xf32>, vector<8x8xf32> -> vector<8x8xf32>
    %405 = vector.broadcast %399 : vector<1x8xf32> to vector<8x8xf32>
    %406 = arith.addf %404, %405 : vector<8x8xf32>
    %cst_127 = arith.constant dense<0xFF800000> : vector<8xf32>
    %407 = vector.multi_reduction <maximumf>, %406, %cst_127 [1] : vector<8x8xf32> to vector<8xf32>
    %408 = vector.shape_cast %407 : vector<8xf32> to vector<8x1xf32>
    %409 = vector.broadcast %408 : vector<8x1xf32> to vector<8x8xf32>
    %410 = arith.subf %406, %409 : vector<8x8xf32>
    %411 = math.exp %410 : vector<8x8xf32>
    %cst_128 = arith.constant dense<0.000000e+00> : vector<8xf32>
    %412 = vector.multi_reduction <add>, %411, %cst_128 [1] : vector<8x8xf32> to vector<8xf32>
    %413 = vector.shape_cast %412 : vector<8xf32> to vector<8x1xf32>
    %414 = tpu.reciprocal %413 {approx = true} : vector<8x1xf32> -> vector<8x1xf32>
    %415 = vector.broadcast %414 : vector<8x1xf32> to vector<8x8xf32>
    %416 = arith.mulf %411, %415 : vector<8x8xf32>
    %417 = vector.extract_strided_slice %319 {offsets = [8, 0], sizes = [8, 8], strides = [1, 1]} : vector<16x32xf32> to vector<8x8xf32>
    %cst_129 = arith.constant dense<0.000000e+00> : vector<8x8xf32>
    %418 = tpu.matmul %416, %417, %cst_129 {dimension_numbers = #tpu.dot_dimension_numbers<[1], [0], [0], [1], [0, 0, 1, 1], [], []>} : vector<8x8xf32>, vector<8x8xf32>, vector<8x8xf32> -> vector<8x8xf32>
    %419 = vector.extract_strided_slice %317 {offsets = [8, 8], sizes = [8, 8], strides = [1, 1]} : vector<16x32xf32> to vector<8x8xf32>
    %cst_130 = arith.constant 0.353553385 : f32
    %420 = vector.broadcast %cst_130 : f32 to vector<8x8xf32>
    %421 = arith.mulf %419, %420 : vector<8x8xf32>
    %422 = vector.extract_strided_slice %320 {offsets = [8, 8], sizes = [8, 8], strides = [1, 1]} : vector<32x16xf32> to vector<8x8xf32>
    %cst_131 = arith.constant dense<0.000000e+00> : vector<8x8xf32>
    %423 = tpu.matmul %421, %422, %cst_131 {dimension_numbers = #tpu.dot_dimension_numbers<[1], [0], [0], [1], [0, 0, 1, 1], [], []>} : vector<8x8xf32>, vector<8x8xf32>, vector<8x8xf32> -> vector<8x8xf32>
    %424 = vector.broadcast %399 : vector<1x8xf32> to vector<8x8xf32>
    %425 = arith.addf %423, %424 : vector<8x8xf32>
    %cst_132 = arith.constant dense<0xFF800000> : vector<8xf32>
    %426 = vector.multi_reduction <maximumf>, %425, %cst_132 [1] : vector<8x8xf32> to vector<8xf32>
    %427 = vector.shape_cast %426 : vector<8xf32> to vector<8x1xf32>
    %428 = vector.broadcast %427 : vector<8x1xf32> to vector<8x8xf32>
    %429 = arith.subf %425, %428 : vector<8x8xf32>
    %430 = math.exp %429 : vector<8x8xf32>
    %cst_133 = arith.constant dense<0.000000e+00> : vector<8xf32>
    %431 = vector.multi_reduction <add>, %430, %cst_133 [1] : vector<8x8xf32> to vector<8xf32>
    %432 = vector.shape_cast %431 : vector<8xf32> to vector<8x1xf32>
    %433 = tpu.reciprocal %432 {approx = true} : vector<8x1xf32> -> vector<8x1xf32>
    %434 = vector.broadcast %433 : vector<8x1xf32> to vector<8x8xf32>
    %435 = arith.mulf %430, %434 : vector<8x8xf32>
    %436 = vector.extract_strided_slice %319 {offsets = [8, 8], sizes = [8, 8], strides = [1, 1]} : vector<16x32xf32> to vector<8x8xf32>
    %cst_134 = arith.constant dense<0.000000e+00> : vector<8x8xf32>
    %437 = tpu.matmul %435, %436, %cst_134 {dimension_numbers = #tpu.dot_dimension_numbers<[1], [0], [0], [1], [0, 0, 1, 1], [], []>} : vector<8x8xf32>, vector<8x8xf32>, vector<8x8xf32> -> vector<8x8xf32>
    %438 = vector.extract_strided_slice %317 {offsets = [8, 16], sizes = [8, 8], strides = [1, 1]} : vector<16x32xf32> to vector<8x8xf32>
    %cst_135 = arith.constant 0.353553385 : f32
    %439 = vector.broadcast %cst_135 : f32 to vector<8x8xf32>
    %440 = arith.mulf %438, %439 : vector<8x8xf32>
    %441 = vector.extract_strided_slice %320 {offsets = [16, 8], sizes = [8, 8], strides = [1, 1]} : vector<32x16xf32> to vector<8x8xf32>
    %cst_136 = arith.constant dense<0.000000e+00> : vector<8x8xf32>
    %442 = tpu.matmul %440, %441, %cst_136 {dimension_numbers = #tpu.dot_dimension_numbers<[1], [0], [0], [1], [0, 0, 1, 1], [], []>} : vector<8x8xf32>, vector<8x8xf32>, vector<8x8xf32> -> vector<8x8xf32>
    %443 = vector.broadcast %399 : vector<1x8xf32> to vector<8x8xf32>
    %444 = arith.addf %442, %443 : vector<8x8xf32>
    %cst_137 = arith.constant dense<0xFF800000> : vector<8xf32>
    %445 = vector.multi_reduction <maximumf>, %444, %cst_137 [1] : vector<8x8xf32> to vector<8xf32>
    %446 = vector.shape_cast %445 : vector<8xf32> to vector<8x1xf32>
    %447 = vector.broadcast %446 : vector<8x1xf32> to vector<8x8xf32>
    %448 = arith.subf %444, %447 : vector<8x8xf32>
    %449 = math.exp %448 : vector<8x8xf32>
    %cst_138 = arith.constant dense<0.000000e+00> : vector<8xf32>
    %450 = vector.multi_reduction <add>, %449, %cst_138 [1] : vector<8x8xf32> to vector<8xf32>
    %451 = vector.shape_cast %450 : vector<8xf32> to vector<8x1xf32>
    %452 = tpu.reciprocal %451 {approx = true} : vector<8x1xf32> -> vector<8x1xf32>
    %453 = vector.broadcast %452 : vector<8x1xf32> to vector<8x8xf32>
    %454 = arith.mulf %449, %453 : vector<8x8xf32>
    %455 = vector.extract_strided_slice %319 {offsets = [8, 16], sizes = [8, 8], strides = [1, 1]} : vector<16x32xf32> to vector<8x8xf32>
    %cst_139 = arith.constant dense<0.000000e+00> : vector<8x8xf32>
    %456 = tpu.matmul %454, %455, %cst_139 {dimension_numbers = #tpu.dot_dimension_numbers<[1], [0], [0], [1], [0, 0, 1, 1], [], []>} : vector<8x8xf32>, vector<8x8xf32>, vector<8x8xf32> -> vector<8x8xf32>
    %457 = vector.extract_strided_slice %317 {offsets = [8, 24], sizes = [8, 8], strides = [1, 1]} : vector<16x32xf32> to vector<8x8xf32>
    %cst_140 = arith.constant 0.353553385 : f32
    %458 = vector.broadcast %cst_140 : f32 to vector<8x8xf32>
    %459 = arith.mulf %457, %458 : vector<8x8xf32>
    %460 = vector.extract_strided_slice %320 {offsets = [24, 8], sizes = [8, 8], strides = [1, 1]} : vector<32x16xf32> to vector<8x8xf32>
    %cst_141 = arith.constant dense<0.000000e+00> : vector<8x8xf32>
    %461 = tpu.matmul %459, %460, %cst_141 {dimension_numbers = #tpu.dot_dimension_numbers<[1], [0], [0], [1], [0, 0, 1, 1], [], []>} : vector<8x8xf32>, vector<8x8xf32>, vector<8x8xf32> -> vector<8x8xf32>
    %462 = vector.broadcast %399 : vector<1x8xf32> to vector<8x8xf32>
    %463 = arith.addf %461, %462 : vector<8x8xf32>
    %cst_142 = arith.constant dense<0xFF800000> : vector<8xf32>
    %464 = vector.multi_reduction <maximumf>, %463, %cst_142 [1] : vector<8x8xf32> to vector<8xf32>
    %465 = vector.shape_cast %464 : vector<8xf32> to vector<8x1xf32>
    %466 = vector.broadcast %465 : vector<8x1xf32> to vector<8x8xf32>
    %467 = arith.subf %463, %466 : vector<8x8xf32>
    %468 = math.exp %467 : vector<8x8xf32>
    %cst_143 = arith.constant dense<0.000000e+00> : vector<8xf32>
    %469 = vector.multi_reduction <add>, %468, %cst_143 [1] : vector<8x8xf32> to vector<8xf32>
    %470 = vector.shape_cast %469 : vector<8xf32> to vector<8x1xf32>
    %471 = tpu.reciprocal %470 {approx = true} : vector<8x1xf32> -> vector<8x1xf32>
    %472 = vector.broadcast %471 : vector<8x1xf32> to vector<8x8xf32>
    %473 = arith.mulf %468, %472 : vector<8x8xf32>
    %474 = vector.extract_strided_slice %319 {offsets = [8, 24], sizes = [8, 8], strides = [1, 1]} : vector<16x32xf32> to vector<8x8xf32>
    %cst_144 = arith.constant dense<0.000000e+00> : vector<8x8xf32>
    %475 = tpu.matmul %473, %474, %cst_144 {dimension_numbers = #tpu.dot_dimension_numbers<[1], [0], [0], [1], [0, 0, 1, 1], [], []>} : vector<8x8xf32>, vector<8x8xf32>, vector<8x8xf32> -> vector<8x8xf32>
    %476 = tpu.concatenate %418, %437, %456, %475 in 1 : vector<8x8xf32>, vector<8x8xf32>, vector<8x8xf32>, vector<8x8xf32> -> vector<8x32xf32>
    %477 = tpu.concatenate %398, %476 in 0 : vector<8x32xf32>, vector<8x32xf32> -> vector<16x32xf32>
    %c216 = arith.constant 216 : index
    %c0_145 = arith.constant 0 : index
    %478 = vector.load %arg3[%c216, %c0_145] : memref<760x32xf32, #tpu.memory_space<vmem>>, vector<32x32xf32>
    %cst_146 = arith.constant dense<0.000000e+00> : vector<16x32xf32>
    %479 = tpu.matmul %477, %478, %cst_146 {dimension_numbers = #tpu.dot_dimension_numbers<[1], [0], [0], [1], [0, 0, 1, 1], [], []>} : vector<16x32xf32>, vector<32x32xf32>, vector<16x32xf32> -> vector<16x32xf32>
    %c248 = arith.constant 248 : index
    %c0_147 = arith.constant 0 : index
    %480 = vector.load %arg3[%c248, %c0_147] : memref<760x32xf32, #tpu.memory_space<vmem>>, vector<1x32xf32>
    %481 = vector.broadcast %480 : vector<1x32xf32> to vector<16x32xf32>
    %482 = arith.addf %479, %481 : vector<16x32xf32>
    %483 = arith.addf %482, %311 : vector<16x32xf32>
    %cst_148 = arith.constant dense<0.000000e+00> : vector<16xf32>
    %484 = vector.multi_reduction <add>, %483, %cst_148 [1] : vector<16x32xf32> to vector<16xf32>
    %485 = vector.shape_cast %484 : vector<16xf32> to vector<16x1xf32>
    %cst_149 = arith.constant 3.200000e+01 : f32
    %486 = vector.broadcast %cst_149 : f32 to vector<16x1xf32>
    %487 = arith.divf %485, %486 : vector<16x1xf32>
    %488 = vector.broadcast %487 : vector<16x1xf32> to vector<16x32xf32>
    %489 = arith.subf %483, %488 : vector<16x32xf32>
    %490 = arith.mulf %489, %489 : vector<16x32xf32>
    %cst_150 = arith.constant dense<0.000000e+00> : vector<16xf32>
    %491 = vector.multi_reduction <add>, %490, %cst_150 [1] : vector<16x32xf32> to vector<16xf32>
    %492 = vector.shape_cast %491 : vector<16xf32> to vector<16x1xf32>
    %cst_151 = arith.constant 3.200000e+01 : f32
    %493 = vector.broadcast %cst_151 : f32 to vector<16x1xf32>
    %494 = arith.divf %492, %493 : vector<16x1xf32>
    %495 = vector.broadcast %487 : vector<16x1xf32> to vector<16x32xf32>
    %496 = arith.subf %483, %495 : vector<16x32xf32>
    %cst_152 = arith.constant 9.99999996E-13 : f32
    %497 = vector.broadcast %cst_152 : f32 to vector<16x1xf32>
    %498 = arith.addf %494, %497 : vector<16x1xf32>
    %499 = math.rsqrt %498 : vector<16x1xf32>
    %500 = vector.broadcast %499 : vector<16x1xf32> to vector<16x32xf32>
    %501 = arith.mulf %496, %500 : vector<16x32xf32>
    %c256 = arith.constant 256 : index
    %c0_153 = arith.constant 0 : index
    %502 = vector.load %arg3[%c256, %c0_153] : memref<760x32xf32, #tpu.memory_space<vmem>>, vector<1x32xf32>
    %503 = vector.broadcast %502 : vector<1x32xf32> to vector<16x32xf32>
    %504 = arith.mulf %501, %503 : vector<16x32xf32>
    %c264 = arith.constant 264 : index
    %c0_154 = arith.constant 0 : index
    %505 = vector.load %arg3[%c264, %c0_154] : memref<760x32xf32, #tpu.memory_space<vmem>>, vector<1x32xf32>
    %506 = vector.broadcast %505 : vector<1x32xf32> to vector<16x32xf32>
    %507 = arith.addf %504, %506 : vector<16x32xf32>
    %c40_155 = arith.constant 40 : index
    %c0_156 = arith.constant 0 : index
    %508 = vector.load %arg4[%c40_155, %c0_156] : memref<200x64xf32, #tpu.memory_space<vmem>>, vector<32x64xf32>
    %cst_157 = arith.constant dense<0.000000e+00> : vector<16x64xf32>
    %509 = tpu.matmul %507, %508, %cst_157 {dimension_numbers = #tpu.dot_dimension_numbers<[1], [0], [0], [1], [0, 0, 1, 1], [], []>} : vector<16x32xf32>, vector<32x64xf32>, vector<16x64xf32> -> vector<16x64xf32>
    %c72_158 = arith.constant 72 : index
    %c0_159 = arith.constant 0 : index
    %510 = vector.load %arg4[%c72_158, %c0_159] : memref<200x64xf32, #tpu.memory_space<vmem>>, vector<1x64xf32>
    %511 = vector.broadcast %510 : vector<1x64xf32> to vector<16x64xf32>
    %512 = arith.addf %509, %511 : vector<16x64xf32>
    %cst_160 = arith.constant 5.000000e-01 : f32
    %513 = vector.broadcast %cst_160 : f32 to vector<16x64xf32>
    %514 = arith.mulf %513, %512 : vector<16x64xf32>
    %cst_161 = arith.constant 4.471500e-02 : f32
    %515 = vector.broadcast %cst_161 : f32 to vector<16x64xf32>
    %516 = arith.mulf %515, %512 : vector<16x64xf32>
    %517 = arith.mulf %516, %512 : vector<16x64xf32>
    %518 = arith.mulf %517, %512 : vector<16x64xf32>
    %519 = arith.addf %512, %518 : vector<16x64xf32>
    %cst_162 = arith.constant 0.797884583 : f32
    %520 = vector.broadcast %cst_162 : f32 to vector<16x64xf32>
    %521 = arith.mulf %520, %519 : vector<16x64xf32>
    %522 = math.tanh %521 : vector<16x64xf32>
    %cst_163 = arith.constant 1.000000e+00 : f32
    %523 = vector.broadcast %cst_163 : f32 to vector<16x64xf32>
    %524 = arith.addf %523, %522 : vector<16x64xf32>
    %525 = arith.mulf %514, %524 : vector<16x64xf32>
    %c272 = arith.constant 272 : index
    %c0_164 = arith.constant 0 : index
    %526 = vector.load %arg3[%c272, %c0_164] : memref<760x32xf32, #tpu.memory_space<vmem>>, vector<64x32xf32>
    %cst_165 = arith.constant dense<0.000000e+00> : vector<16x32xf32>
    %527 = tpu.matmul %525, %526, %cst_165 {dimension_numbers = #tpu.dot_dimension_numbers<[1], [0], [0], [1], [0, 0, 1, 1], [], []>} : vector<16x64xf32>, vector<64x32xf32>, vector<16x32xf32> -> vector<16x32xf32>
    %c336 = arith.constant 336 : index
    %c0_166 = arith.constant 0 : index
    %528 = vector.load %arg3[%c336, %c0_166] : memref<760x32xf32, #tpu.memory_space<vmem>>, vector<1x32xf32>
    %529 = vector.broadcast %528 : vector<1x32xf32> to vector<16x32xf32>
    %530 = arith.addf %527, %529 : vector<16x32xf32>
    %531 = arith.addf %530, %507 : vector<16x32xf32>
    %cst_167 = arith.constant dense<0.000000e+00> : vector<16xf32>
    %532 = vector.multi_reduction <add>, %531, %cst_167 [1] : vector<16x32xf32> to vector<16xf32>
    %533 = vector.shape_cast %532 : vector<16xf32> to vector<16x1xf32>
    %cst_168 = arith.constant 3.200000e+01 : f32
    %534 = vector.broadcast %cst_168 : f32 to vector<16x1xf32>
    %535 = arith.divf %533, %534 : vector<16x1xf32>
    %536 = vector.broadcast %535 : vector<16x1xf32> to vector<16x32xf32>
    %537 = arith.subf %531, %536 : vector<16x32xf32>
    %538 = arith.mulf %537, %537 : vector<16x32xf32>
    %cst_169 = arith.constant dense<0.000000e+00> : vector<16xf32>
    %539 = vector.multi_reduction <add>, %538, %cst_169 [1] : vector<16x32xf32> to vector<16xf32>
    %540 = vector.shape_cast %539 : vector<16xf32> to vector<16x1xf32>
    %cst_170 = arith.constant 3.200000e+01 : f32
    %541 = vector.broadcast %cst_170 : f32 to vector<16x1xf32>
    %542 = arith.divf %540, %541 : vector<16x1xf32>
    %543 = vector.broadcast %535 : vector<16x1xf32> to vector<16x32xf32>
    %544 = arith.subf %531, %543 : vector<16x32xf32>
    %cst_171 = arith.constant 9.99999996E-13 : f32
    %545 = vector.broadcast %cst_171 : f32 to vector<16x1xf32>
    %546 = arith.addf %542, %545 : vector<16x1xf32>
    %547 = math.rsqrt %546 : vector<16x1xf32>
    %548 = vector.broadcast %547 : vector<16x1xf32> to vector<16x32xf32>
    %549 = arith.mulf %544, %548 : vector<16x32xf32>
    %c344 = arith.constant 344 : index
    %c0_172 = arith.constant 0 : index
    %550 = vector.load %arg3[%c344, %c0_172] : memref<760x32xf32, #tpu.memory_space<vmem>>, vector<1x32xf32>
    %551 = vector.broadcast %550 : vector<1x32xf32> to vector<16x32xf32>
    %552 = arith.mulf %549, %551 : vector<16x32xf32>
    %c352 = arith.constant 352 : index
    %c0_173 = arith.constant 0 : index
    %553 = vector.load %arg3[%c352, %c0_173] : memref<760x32xf32, #tpu.memory_space<vmem>>, vector<1x32xf32>
    %554 = vector.broadcast %553 : vector<1x32xf32> to vector<16x32xf32>
    %555 = arith.addf %552, %554 : vector<16x32xf32>
    %c80 = arith.constant 80 : index
    %c0_174 = arith.constant 0 : index
    %556 = vector.load %arg5[%c80, %c0_174] : memref<240x96xf32, #tpu.memory_space<vmem>>, vector<32x96xf32>
    %cst_175 = arith.constant dense<0.000000e+00> : vector<16x96xf32>
    %557 = tpu.matmul %66, %556, %cst_175 {dimension_numbers = #tpu.dot_dimension_numbers<[1], [0], [0], [1], [0, 0, 1, 1], [], []>} : vector<16x32xf32>, vector<32x96xf32>, vector<16x96xf32> -> vector<16x96xf32>
    %c112_176 = arith.constant 112 : index
    %c0_177 = arith.constant 0 : index
    %558 = vector.load %arg5[%c112_176, %c0_177] : memref<240x96xf32, #tpu.memory_space<vmem>>, vector<1x96xf32>
    %559 = vector.broadcast %558 : vector<1x96xf32> to vector<16x96xf32>
    %560 = arith.addf %557, %559 : vector<16x96xf32>
    %561 = vector.extract_strided_slice %560 {offsets = [0, 0], sizes = [16, 32], strides = [1, 1]} : vector<16x96xf32> to vector<16x32xf32>
    %562 = vector.extract_strided_slice %560 {offsets = [0, 32], sizes = [16, 32], strides = [1, 1]} : vector<16x96xf32> to vector<16x32xf32>
    %563 = vector.extract_strided_slice %560 {offsets = [0, 64], sizes = [16, 32], strides = [1, 1]} : vector<16x96xf32> to vector<16x32xf32>
    %564 = tpu.transpose %562, [1, 0] : vector<16x32xf32> -> vector<32x16xf32>
    %565 = vector.extract_strided_slice %2 {offsets = [0, 0], sizes = [1, 8], strides = [1, 1]} : vector<2x8xf32> to vector<1x8xf32>
    %566 = vector.extract_strided_slice %561 {offsets = [0, 0], sizes = [8, 8], strides = [1, 1]} : vector<16x32xf32> to vector<8x8xf32>
    %cst_178 = arith.constant 0.353553385 : f32
    %567 = vector.broadcast %cst_178 : f32 to vector<8x8xf32>
    %568 = arith.mulf %566, %567 : vector<8x8xf32>
    %569 = vector.extract_strided_slice %564 {offsets = [0, 0], sizes = [8, 8], strides = [1, 1]} : vector<32x16xf32> to vector<8x8xf32>
    %cst_179 = arith.constant dense<0.000000e+00> : vector<8x8xf32>
    %570 = tpu.matmul %568, %569, %cst_179 {dimension_numbers = #tpu.dot_dimension_numbers<[1], [0], [0], [1], [0, 0, 1, 1], [], []>} : vector<8x8xf32>, vector<8x8xf32>, vector<8x8xf32> -> vector<8x8xf32>
    %571 = vector.broadcast %565 : vector<1x8xf32> to vector<8x8xf32>
    %572 = arith.addf %570, %571 : vector<8x8xf32>
    %cst_180 = arith.constant dense<0xFF800000> : vector<8xf32>
    %573 = vector.multi_reduction <maximumf>, %572, %cst_180 [1] : vector<8x8xf32> to vector<8xf32>
    %574 = vector.shape_cast %573 : vector<8xf32> to vector<8x1xf32>
    %575 = vector.broadcast %574 : vector<8x1xf32> to vector<8x8xf32>
    %576 = arith.subf %572, %575 : vector<8x8xf32>
    %577 = math.exp %576 : vector<8x8xf32>
    %cst_181 = arith.constant dense<0.000000e+00> : vector<8xf32>
    %578 = vector.multi_reduction <add>, %577, %cst_181 [1] : vector<8x8xf32> to vector<8xf32>
    %579 = vector.shape_cast %578 : vector<8xf32> to vector<8x1xf32>
    %580 = tpu.reciprocal %579 {approx = true} : vector<8x1xf32> -> vector<8x1xf32>
    %581 = vector.broadcast %580 : vector<8x1xf32> to vector<8x8xf32>
    %582 = arith.mulf %577, %581 : vector<8x8xf32>
    %583 = vector.extract_strided_slice %563 {offsets = [0, 0], sizes = [8, 8], strides = [1, 1]} : vector<16x32xf32> to vector<8x8xf32>
    %cst_182 = arith.constant dense<0.000000e+00> : vector<8x8xf32>
    %584 = tpu.matmul %582, %583, %cst_182 {dimension_numbers = #tpu.dot_dimension_numbers<[1], [0], [0], [1], [0, 0, 1, 1], [], []>} : vector<8x8xf32>, vector<8x8xf32>, vector<8x8xf32> -> vector<8x8xf32>
    %585 = vector.extract_strided_slice %561 {offsets = [0, 8], sizes = [8, 8], strides = [1, 1]} : vector<16x32xf32> to vector<8x8xf32>
    %cst_183 = arith.constant 0.353553385 : f32
    %586 = vector.broadcast %cst_183 : f32 to vector<8x8xf32>
    %587 = arith.mulf %585, %586 : vector<8x8xf32>
    %588 = vector.extract_strided_slice %564 {offsets = [8, 0], sizes = [8, 8], strides = [1, 1]} : vector<32x16xf32> to vector<8x8xf32>
    %cst_184 = arith.constant dense<0.000000e+00> : vector<8x8xf32>
    %589 = tpu.matmul %587, %588, %cst_184 {dimension_numbers = #tpu.dot_dimension_numbers<[1], [0], [0], [1], [0, 0, 1, 1], [], []>} : vector<8x8xf32>, vector<8x8xf32>, vector<8x8xf32> -> vector<8x8xf32>
    %590 = vector.broadcast %565 : vector<1x8xf32> to vector<8x8xf32>
    %591 = arith.addf %589, %590 : vector<8x8xf32>
    %cst_185 = arith.constant dense<0xFF800000> : vector<8xf32>
    %592 = vector.multi_reduction <maximumf>, %591, %cst_185 [1] : vector<8x8xf32> to vector<8xf32>
    %593 = vector.shape_cast %592 : vector<8xf32> to vector<8x1xf32>
    %594 = vector.broadcast %593 : vector<8x1xf32> to vector<8x8xf32>
    %595 = arith.subf %591, %594 : vector<8x8xf32>
    %596 = math.exp %595 : vector<8x8xf32>
    %cst_186 = arith.constant dense<0.000000e+00> : vector<8xf32>
    %597 = vector.multi_reduction <add>, %596, %cst_186 [1] : vector<8x8xf32> to vector<8xf32>
    %598 = vector.shape_cast %597 : vector<8xf32> to vector<8x1xf32>
    %599 = tpu.reciprocal %598 {approx = true} : vector<8x1xf32> -> vector<8x1xf32>
    %600 = vector.broadcast %599 : vector<8x1xf32> to vector<8x8xf32>
    %601 = arith.mulf %596, %600 : vector<8x8xf32>
    %602 = vector.extract_strided_slice %563 {offsets = [0, 8], sizes = [8, 8], strides = [1, 1]} : vector<16x32xf32> to vector<8x8xf32>
    %cst_187 = arith.constant dense<0.000000e+00> : vector<8x8xf32>
    %603 = tpu.matmul %601, %602, %cst_187 {dimension_numbers = #tpu.dot_dimension_numbers<[1], [0], [0], [1], [0, 0, 1, 1], [], []>} : vector<8x8xf32>, vector<8x8xf32>, vector<8x8xf32> -> vector<8x8xf32>
    %604 = vector.extract_strided_slice %561 {offsets = [0, 16], sizes = [8, 8], strides = [1, 1]} : vector<16x32xf32> to vector<8x8xf32>
    %cst_188 = arith.constant 0.353553385 : f32
    %605 = vector.broadcast %cst_188 : f32 to vector<8x8xf32>
    %606 = arith.mulf %604, %605 : vector<8x8xf32>
    %607 = vector.extract_strided_slice %564 {offsets = [16, 0], sizes = [8, 8], strides = [1, 1]} : vector<32x16xf32> to vector<8x8xf32>
    %cst_189 = arith.constant dense<0.000000e+00> : vector<8x8xf32>
    %608 = tpu.matmul %606, %607, %cst_189 {dimension_numbers = #tpu.dot_dimension_numbers<[1], [0], [0], [1], [0, 0, 1, 1], [], []>} : vector<8x8xf32>, vector<8x8xf32>, vector<8x8xf32> -> vector<8x8xf32>
    %609 = vector.broadcast %565 : vector<1x8xf32> to vector<8x8xf32>
    %610 = arith.addf %608, %609 : vector<8x8xf32>
    %cst_190 = arith.constant dense<0xFF800000> : vector<8xf32>
    %611 = vector.multi_reduction <maximumf>, %610, %cst_190 [1] : vector<8x8xf32> to vector<8xf32>
    %612 = vector.shape_cast %611 : vector<8xf32> to vector<8x1xf32>
    %613 = vector.broadcast %612 : vector<8x1xf32> to vector<8x8xf32>
    %614 = arith.subf %610, %613 : vector<8x8xf32>
    %615 = math.exp %614 : vector<8x8xf32>
    %cst_191 = arith.constant dense<0.000000e+00> : vector<8xf32>
    %616 = vector.multi_reduction <add>, %615, %cst_191 [1] : vector<8x8xf32> to vector<8xf32>
    %617 = vector.shape_cast %616 : vector<8xf32> to vector<8x1xf32>
    %618 = tpu.reciprocal %617 {approx = true} : vector<8x1xf32> -> vector<8x1xf32>
    %619 = vector.broadcast %618 : vector<8x1xf32> to vector<8x8xf32>
    %620 = arith.mulf %615, %619 : vector<8x8xf32>
    %621 = vector.extract_strided_slice %563 {offsets = [0, 16], sizes = [8, 8], strides = [1, 1]} : vector<16x32xf32> to vector<8x8xf32>
    %cst_192 = arith.constant dense<0.000000e+00> : vector<8x8xf32>
    %622 = tpu.matmul %620, %621, %cst_192 {dimension_numbers = #tpu.dot_dimension_numbers<[1], [0], [0], [1], [0, 0, 1, 1], [], []>} : vector<8x8xf32>, vector<8x8xf32>, vector<8x8xf32> -> vector<8x8xf32>
    %623 = vector.extract_strided_slice %561 {offsets = [0, 24], sizes = [8, 8], strides = [1, 1]} : vector<16x32xf32> to vector<8x8xf32>
    %cst_193 = arith.constant 0.353553385 : f32
    %624 = vector.broadcast %cst_193 : f32 to vector<8x8xf32>
    %625 = arith.mulf %623, %624 : vector<8x8xf32>
    %626 = vector.extract_strided_slice %564 {offsets = [24, 0], sizes = [8, 8], strides = [1, 1]} : vector<32x16xf32> to vector<8x8xf32>
    %cst_194 = arith.constant dense<0.000000e+00> : vector<8x8xf32>
    %627 = tpu.matmul %625, %626, %cst_194 {dimension_numbers = #tpu.dot_dimension_numbers<[1], [0], [0], [1], [0, 0, 1, 1], [], []>} : vector<8x8xf32>, vector<8x8xf32>, vector<8x8xf32> -> vector<8x8xf32>
    %628 = vector.broadcast %565 : vector<1x8xf32> to vector<8x8xf32>
    %629 = arith.addf %627, %628 : vector<8x8xf32>
    %cst_195 = arith.constant dense<0xFF800000> : vector<8xf32>
    %630 = vector.multi_reduction <maximumf>, %629, %cst_195 [1] : vector<8x8xf32> to vector<8xf32>
    %631 = vector.shape_cast %630 : vector<8xf32> to vector<8x1xf32>
    %632 = vector.broadcast %631 : vector<8x1xf32> to vector<8x8xf32>
    %633 = arith.subf %629, %632 : vector<8x8xf32>
    %634 = math.exp %633 : vector<8x8xf32>
    %cst_196 = arith.constant dense<0.000000e+00> : vector<8xf32>
    %635 = vector.multi_reduction <add>, %634, %cst_196 [1] : vector<8x8xf32> to vector<8xf32>
    %636 = vector.shape_cast %635 : vector<8xf32> to vector<8x1xf32>
    %637 = tpu.reciprocal %636 {approx = true} : vector<8x1xf32> -> vector<8x1xf32>
    %638 = vector.broadcast %637 : vector<8x1xf32> to vector<8x8xf32>
    %639 = arith.mulf %634, %638 : vector<8x8xf32>
    %640 = vector.extract_strided_slice %563 {offsets = [0, 24], sizes = [8, 8], strides = [1, 1]} : vector<16x32xf32> to vector<8x8xf32>
    %cst_197 = arith.constant dense<0.000000e+00> : vector<8x8xf32>
    %641 = tpu.matmul %639, %640, %cst_197 {dimension_numbers = #tpu.dot_dimension_numbers<[1], [0], [0], [1], [0, 0, 1, 1], [], []>} : vector<8x8xf32>, vector<8x8xf32>, vector<8x8xf32> -> vector<8x8xf32>
    %642 = tpu.concatenate %584, %603, %622, %641 in 1 : vector<8x8xf32>, vector<8x8xf32>, vector<8x8xf32>, vector<8x8xf32> -> vector<8x32xf32>
    %643 = vector.extract_strided_slice %2 {offsets = [1, 0], sizes = [1, 8], strides = [1, 1]} : vector<2x8xf32> to vector<1x8xf32>
    %644 = vector.extract_strided_slice %561 {offsets = [8, 0], sizes = [8, 8], strides = [1, 1]} : vector<16x32xf32> to vector<8x8xf32>
    %cst_198 = arith.constant 0.353553385 : f32
    %645 = vector.broadcast %cst_198 : f32 to vector<8x8xf32>
    %646 = arith.mulf %644, %645 : vector<8x8xf32>
    %647 = vector.extract_strided_slice %564 {offsets = [0, 8], sizes = [8, 8], strides = [1, 1]} : vector<32x16xf32> to vector<8x8xf32>
    %cst_199 = arith.constant dense<0.000000e+00> : vector<8x8xf32>
    %648 = tpu.matmul %646, %647, %cst_199 {dimension_numbers = #tpu.dot_dimension_numbers<[1], [0], [0], [1], [0, 0, 1, 1], [], []>} : vector<8x8xf32>, vector<8x8xf32>, vector<8x8xf32> -> vector<8x8xf32>
    %649 = vector.broadcast %643 : vector<1x8xf32> to vector<8x8xf32>
    %650 = arith.addf %648, %649 : vector<8x8xf32>
    %cst_200 = arith.constant dense<0xFF800000> : vector<8xf32>
    %651 = vector.multi_reduction <maximumf>, %650, %cst_200 [1] : vector<8x8xf32> to vector<8xf32>
    %652 = vector.shape_cast %651 : vector<8xf32> to vector<8x1xf32>
    %653 = vector.broadcast %652 : vector<8x1xf32> to vector<8x8xf32>
    %654 = arith.subf %650, %653 : vector<8x8xf32>
    %655 = math.exp %654 : vector<8x8xf32>
    %cst_201 = arith.constant dense<0.000000e+00> : vector<8xf32>
    %656 = vector.multi_reduction <add>, %655, %cst_201 [1] : vector<8x8xf32> to vector<8xf32>
    %657 = vector.shape_cast %656 : vector<8xf32> to vector<8x1xf32>
    %658 = tpu.reciprocal %657 {approx = true} : vector<8x1xf32> -> vector<8x1xf32>
    %659 = vector.broadcast %658 : vector<8x1xf32> to vector<8x8xf32>
    %660 = arith.mulf %655, %659 : vector<8x8xf32>
    %661 = vector.extract_strided_slice %563 {offsets = [8, 0], sizes = [8, 8], strides = [1, 1]} : vector<16x32xf32> to vector<8x8xf32>
    %cst_202 = arith.constant dense<0.000000e+00> : vector<8x8xf32>
    %662 = tpu.matmul %660, %661, %cst_202 {dimension_numbers = #tpu.dot_dimension_numbers<[1], [0], [0], [1], [0, 0, 1, 1], [], []>} : vector<8x8xf32>, vector<8x8xf32>, vector<8x8xf32> -> vector<8x8xf32>
    %663 = vector.extract_strided_slice %561 {offsets = [8, 8], sizes = [8, 8], strides = [1, 1]} : vector<16x32xf32> to vector<8x8xf32>
    %cst_203 = arith.constant 0.353553385 : f32
    %664 = vector.broadcast %cst_203 : f32 to vector<8x8xf32>
    %665 = arith.mulf %663, %664 : vector<8x8xf32>
    %666 = vector.extract_strided_slice %564 {offsets = [8, 8], sizes = [8, 8], strides = [1, 1]} : vector<32x16xf32> to vector<8x8xf32>
    %cst_204 = arith.constant dense<0.000000e+00> : vector<8x8xf32>
    %667 = tpu.matmul %665, %666, %cst_204 {dimension_numbers = #tpu.dot_dimension_numbers<[1], [0], [0], [1], [0, 0, 1, 1], [], []>} : vector<8x8xf32>, vector<8x8xf32>, vector<8x8xf32> -> vector<8x8xf32>
    %668 = vector.broadcast %643 : vector<1x8xf32> to vector<8x8xf32>
    %669 = arith.addf %667, %668 : vector<8x8xf32>
    %cst_205 = arith.constant dense<0xFF800000> : vector<8xf32>
    %670 = vector.multi_reduction <maximumf>, %669, %cst_205 [1] : vector<8x8xf32> to vector<8xf32>
    %671 = vector.shape_cast %670 : vector<8xf32> to vector<8x1xf32>
    %672 = vector.broadcast %671 : vector<8x1xf32> to vector<8x8xf32>
    %673 = arith.subf %669, %672 : vector<8x8xf32>
    %674 = math.exp %673 : vector<8x8xf32>
    %cst_206 = arith.constant dense<0.000000e+00> : vector<8xf32>
    %675 = vector.multi_reduction <add>, %674, %cst_206 [1] : vector<8x8xf32> to vector<8xf32>
    %676 = vector.shape_cast %675 : vector<8xf32> to vector<8x1xf32>
    %677 = tpu.reciprocal %676 {approx = true} : vector<8x1xf32> -> vector<8x1xf32>
    %678 = vector.broadcast %677 : vector<8x1xf32> to vector<8x8xf32>
    %679 = arith.mulf %674, %678 : vector<8x8xf32>
    %680 = vector.extract_strided_slice %563 {offsets = [8, 8], sizes = [8, 8], strides = [1, 1]} : vector<16x32xf32> to vector<8x8xf32>
    %cst_207 = arith.constant dense<0.000000e+00> : vector<8x8xf32>
    %681 = tpu.matmul %679, %680, %cst_207 {dimension_numbers = #tpu.dot_dimension_numbers<[1], [0], [0], [1], [0, 0, 1, 1], [], []>} : vector<8x8xf32>, vector<8x8xf32>, vector<8x8xf32> -> vector<8x8xf32>
    %682 = vector.extract_strided_slice %561 {offsets = [8, 16], sizes = [8, 8], strides = [1, 1]} : vector<16x32xf32> to vector<8x8xf32>
    %cst_208 = arith.constant 0.353553385 : f32
    %683 = vector.broadcast %cst_208 : f32 to vector<8x8xf32>
    %684 = arith.mulf %682, %683 : vector<8x8xf32>
    %685 = vector.extract_strided_slice %564 {offsets = [16, 8], sizes = [8, 8], strides = [1, 1]} : vector<32x16xf32> to vector<8x8xf32>
    %cst_209 = arith.constant dense<0.000000e+00> : vector<8x8xf32>
    %686 = tpu.matmul %684, %685, %cst_209 {dimension_numbers = #tpu.dot_dimension_numbers<[1], [0], [0], [1], [0, 0, 1, 1], [], []>} : vector<8x8xf32>, vector<8x8xf32>, vector<8x8xf32> -> vector<8x8xf32>
    %687 = vector.broadcast %643 : vector<1x8xf32> to vector<8x8xf32>
    %688 = arith.addf %686, %687 : vector<8x8xf32>
    %cst_210 = arith.constant dense<0xFF800000> : vector<8xf32>
    %689 = vector.multi_reduction <maximumf>, %688, %cst_210 [1] : vector<8x8xf32> to vector<8xf32>
    %690 = vector.shape_cast %689 : vector<8xf32> to vector<8x1xf32>
    %691 = vector.broadcast %690 : vector<8x1xf32> to vector<8x8xf32>
    %692 = arith.subf %688, %691 : vector<8x8xf32>
    %693 = math.exp %692 : vector<8x8xf32>
    %cst_211 = arith.constant dense<0.000000e+00> : vector<8xf32>
    %694 = vector.multi_reduction <add>, %693, %cst_211 [1] : vector<8x8xf32> to vector<8xf32>
    %695 = vector.shape_cast %694 : vector<8xf32> to vector<8x1xf32>
    %696 = tpu.reciprocal %695 {approx = true} : vector<8x1xf32> -> vector<8x1xf32>
    %697 = vector.broadcast %696 : vector<8x1xf32> to vector<8x8xf32>
    %698 = arith.mulf %693, %697 : vector<8x8xf32>
    %699 = vector.extract_strided_slice %563 {offsets = [8, 16], sizes = [8, 8], strides = [1, 1]} : vector<16x32xf32> to vector<8x8xf32>
    %cst_212 = arith.constant dense<0.000000e+00> : vector<8x8xf32>
    %700 = tpu.matmul %698, %699, %cst_212 {dimension_numbers = #tpu.dot_dimension_numbers<[1], [0], [0], [1], [0, 0, 1, 1], [], []>} : vector<8x8xf32>, vector<8x8xf32>, vector<8x8xf32> -> vector<8x8xf32>
    %701 = vector.extract_strided_slice %561 {offsets = [8, 24], sizes = [8, 8], strides = [1, 1]} : vector<16x32xf32> to vector<8x8xf32>
    %cst_213 = arith.constant 0.353553385 : f32
    %702 = vector.broadcast %cst_213 : f32 to vector<8x8xf32>
    %703 = arith.mulf %701, %702 : vector<8x8xf32>
    %704 = vector.extract_strided_slice %564 {offsets = [24, 8], sizes = [8, 8], strides = [1, 1]} : vector<32x16xf32> to vector<8x8xf32>
    %cst_214 = arith.constant dense<0.000000e+00> : vector<8x8xf32>
    %705 = tpu.matmul %703, %704, %cst_214 {dimension_numbers = #tpu.dot_dimension_numbers<[1], [0], [0], [1], [0, 0, 1, 1], [], []>} : vector<8x8xf32>, vector<8x8xf32>, vector<8x8xf32> -> vector<8x8xf32>
    %706 = vector.broadcast %643 : vector<1x8xf32> to vector<8x8xf32>
    %707 = arith.addf %705, %706 : vector<8x8xf32>
    %cst_215 = arith.constant dense<0xFF800000> : vector<8xf32>
    %708 = vector.multi_reduction <maximumf>, %707, %cst_215 [1] : vector<8x8xf32> to vector<8xf32>
    %709 = vector.shape_cast %708 : vector<8xf32> to vector<8x1xf32>
    %710 = vector.broadcast %709 : vector<8x1xf32> to vector<8x8xf32>
    %711 = arith.subf %707, %710 : vector<8x8xf32>
    %712 = math.exp %711 : vector<8x8xf32>
    %cst_216 = arith.constant dense<0.000000e+00> : vector<8xf32>
    %713 = vector.multi_reduction <add>, %712, %cst_216 [1] : vector<8x8xf32> to vector<8xf32>
    %714 = vector.shape_cast %713 : vector<8xf32> to vector<8x1xf32>
    %715 = tpu.reciprocal %714 {approx = true} : vector<8x1xf32> -> vector<8x1xf32>
    %716 = vector.broadcast %715 : vector<8x1xf32> to vector<8x8xf32>
    %717 = arith.mulf %712, %716 : vector<8x8xf32>
    %718 = vector.extract_strided_slice %563 {offsets = [8, 24], sizes = [8, 8], strides = [1, 1]} : vector<16x32xf32> to vector<8x8xf32>
    %cst_217 = arith.constant dense<0.000000e+00> : vector<8x8xf32>
    %719 = tpu.matmul %717, %718, %cst_217 {dimension_numbers = #tpu.dot_dimension_numbers<[1], [0], [0], [1], [0, 0, 1, 1], [], []>} : vector<8x8xf32>, vector<8x8xf32>, vector<8x8xf32> -> vector<8x8xf32>
    %720 = tpu.concatenate %662, %681, %700, %719 in 1 : vector<8x8xf32>, vector<8x8xf32>, vector<8x8xf32>, vector<8x8xf32> -> vector<8x32xf32>
    %721 = tpu.concatenate %642, %720 in 0 : vector<8x32xf32>, vector<8x32xf32> -> vector<16x32xf32>
    %c360 = arith.constant 360 : index
    %c0_218 = arith.constant 0 : index
    %722 = vector.load %arg3[%c360, %c0_218] : memref<760x32xf32, #tpu.memory_space<vmem>>, vector<32x32xf32>
    %cst_219 = arith.constant dense<0.000000e+00> : vector<16x32xf32>
    %723 = tpu.matmul %721, %722, %cst_219 {dimension_numbers = #tpu.dot_dimension_numbers<[1], [0], [0], [1], [0, 0, 1, 1], [], []>} : vector<16x32xf32>, vector<32x32xf32>, vector<16x32xf32> -> vector<16x32xf32>
    %c392 = arith.constant 392 : index
    %c0_220 = arith.constant 0 : index
    %724 = vector.load %arg3[%c392, %c0_220] : memref<760x32xf32, #tpu.memory_space<vmem>>, vector<1x32xf32>
    %725 = vector.broadcast %724 : vector<1x32xf32> to vector<16x32xf32>
    %726 = arith.addf %723, %725 : vector<16x32xf32>
    %727 = arith.addf %726, %66 : vector<16x32xf32>
    %cst_221 = arith.constant dense<0.000000e+00> : vector<16xf32>
    %728 = vector.multi_reduction <add>, %727, %cst_221 [1] : vector<16x32xf32> to vector<16xf32>
    %729 = vector.shape_cast %728 : vector<16xf32> to vector<16x1xf32>
    %cst_222 = arith.constant 3.200000e+01 : f32
    %730 = vector.broadcast %cst_222 : f32 to vector<16x1xf32>
    %731 = arith.divf %729, %730 : vector<16x1xf32>
    %732 = vector.broadcast %731 : vector<16x1xf32> to vector<16x32xf32>
    %733 = arith.subf %727, %732 : vector<16x32xf32>
    %734 = arith.mulf %733, %733 : vector<16x32xf32>
    %cst_223 = arith.constant dense<0.000000e+00> : vector<16xf32>
    %735 = vector.multi_reduction <add>, %734, %cst_223 [1] : vector<16x32xf32> to vector<16xf32>
    %736 = vector.shape_cast %735 : vector<16xf32> to vector<16x1xf32>
    %cst_224 = arith.constant 3.200000e+01 : f32
    %737 = vector.broadcast %cst_224 : f32 to vector<16x1xf32>
    %738 = arith.divf %736, %737 : vector<16x1xf32>
    %739 = vector.broadcast %731 : vector<16x1xf32> to vector<16x32xf32>
    %740 = arith.subf %727, %739 : vector<16x32xf32>
    %cst_225 = arith.constant 9.99999996E-13 : f32
    %741 = vector.broadcast %cst_225 : f32 to vector<16x1xf32>
    %742 = arith.addf %738, %741 : vector<16x1xf32>
    %743 = math.rsqrt %742 : vector<16x1xf32>
    %744 = vector.broadcast %743 : vector<16x1xf32> to vector<16x32xf32>
    %745 = arith.mulf %740, %744 : vector<16x32xf32>
    %c400 = arith.constant 400 : index
    %c0_226 = arith.constant 0 : index
    %746 = vector.load %arg3[%c400, %c0_226] : memref<760x32xf32, #tpu.memory_space<vmem>>, vector<1x32xf32>
    %747 = vector.broadcast %746 : vector<1x32xf32> to vector<16x32xf32>
    %748 = arith.mulf %745, %747 : vector<16x32xf32>
    %c408 = arith.constant 408 : index
    %c0_227 = arith.constant 0 : index
    %749 = vector.load %arg3[%c408, %c0_227] : memref<760x32xf32, #tpu.memory_space<vmem>>, vector<1x32xf32>
    %750 = vector.broadcast %749 : vector<1x32xf32> to vector<16x32xf32>
    %751 = arith.addf %748, %750 : vector<16x32xf32>
    %c80_228 = arith.constant 80 : index
    %c0_229 = arith.constant 0 : index
    %752 = vector.load %arg4[%c80_228, %c0_229] : memref<200x64xf32, #tpu.memory_space<vmem>>, vector<32x64xf32>
    %cst_230 = arith.constant dense<0.000000e+00> : vector<16x64xf32>
    %753 = tpu.matmul %751, %752, %cst_230 {dimension_numbers = #tpu.dot_dimension_numbers<[1], [0], [0], [1], [0, 0, 1, 1], [], []>} : vector<16x32xf32>, vector<32x64xf32>, vector<16x64xf32> -> vector<16x64xf32>
    %c112_231 = arith.constant 112 : index
    %c0_232 = arith.constant 0 : index
    %754 = vector.load %arg4[%c112_231, %c0_232] : memref<200x64xf32, #tpu.memory_space<vmem>>, vector<1x64xf32>
    %755 = vector.broadcast %754 : vector<1x64xf32> to vector<16x64xf32>
    %756 = arith.addf %753, %755 : vector<16x64xf32>
    %cst_233 = arith.constant 5.000000e-01 : f32
    %757 = vector.broadcast %cst_233 : f32 to vector<16x64xf32>
    %758 = arith.mulf %757, %756 : vector<16x64xf32>
    %cst_234 = arith.constant 4.471500e-02 : f32
    %759 = vector.broadcast %cst_234 : f32 to vector<16x64xf32>
    %760 = arith.mulf %759, %756 : vector<16x64xf32>
    %761 = arith.mulf %760, %756 : vector<16x64xf32>
    %762 = arith.mulf %761, %756 : vector<16x64xf32>
    %763 = arith.addf %756, %762 : vector<16x64xf32>
    %cst_235 = arith.constant 0.797884583 : f32
    %764 = vector.broadcast %cst_235 : f32 to vector<16x64xf32>
    %765 = arith.mulf %764, %763 : vector<16x64xf32>
    %766 = math.tanh %765 : vector<16x64xf32>
    %cst_236 = arith.constant 1.000000e+00 : f32
    %767 = vector.broadcast %cst_236 : f32 to vector<16x64xf32>
    %768 = arith.addf %767, %766 : vector<16x64xf32>
    %769 = arith.mulf %758, %768 : vector<16x64xf32>
    %c416 = arith.constant 416 : index
    %c0_237 = arith.constant 0 : index
    %770 = vector.load %arg3[%c416, %c0_237] : memref<760x32xf32, #tpu.memory_space<vmem>>, vector<64x32xf32>
    %cst_238 = arith.constant dense<0.000000e+00> : vector<16x32xf32>
    %771 = tpu.matmul %769, %770, %cst_238 {dimension_numbers = #tpu.dot_dimension_numbers<[1], [0], [0], [1], [0, 0, 1, 1], [], []>} : vector<16x64xf32>, vector<64x32xf32>, vector<16x32xf32> -> vector<16x32xf32>
    %c480 = arith.constant 480 : index
    %c0_239 = arith.constant 0 : index
    %772 = vector.load %arg3[%c480, %c0_239] : memref<760x32xf32, #tpu.memory_space<vmem>>, vector<1x32xf32>
    %773 = vector.broadcast %772 : vector<1x32xf32> to vector<16x32xf32>
    %774 = arith.addf %771, %773 : vector<16x32xf32>
    %775 = arith.addf %774, %751 : vector<16x32xf32>
    %cst_240 = arith.constant dense<0.000000e+00> : vector<16xf32>
    %776 = vector.multi_reduction <add>, %775, %cst_240 [1] : vector<16x32xf32> to vector<16xf32>
    %777 = vector.shape_cast %776 : vector<16xf32> to vector<16x1xf32>
    %cst_241 = arith.constant 3.200000e+01 : f32
    %778 = vector.broadcast %cst_241 : f32 to vector<16x1xf32>
    %779 = arith.divf %777, %778 : vector<16x1xf32>
    %780 = vector.broadcast %779 : vector<16x1xf32> to vector<16x32xf32>
    %781 = arith.subf %775, %780 : vector<16x32xf32>
    %782 = arith.mulf %781, %781 : vector<16x32xf32>
    %cst_242 = arith.constant dense<0.000000e+00> : vector<16xf32>
    %783 = vector.multi_reduction <add>, %782, %cst_242 [1] : vector<16x32xf32> to vector<16xf32>
    %784 = vector.shape_cast %783 : vector<16xf32> to vector<16x1xf32>
    %cst_243 = arith.constant 3.200000e+01 : f32
    %785 = vector.broadcast %cst_243 : f32 to vector<16x1xf32>
    %786 = arith.divf %784, %785 : vector<16x1xf32>
    %787 = vector.broadcast %779 : vector<16x1xf32> to vector<16x32xf32>
    %788 = arith.subf %775, %787 : vector<16x32xf32>
    %cst_244 = arith.constant 9.99999996E-13 : f32
    %789 = vector.broadcast %cst_244 : f32 to vector<16x1xf32>
    %790 = arith.addf %786, %789 : vector<16x1xf32>
    %791 = math.rsqrt %790 : vector<16x1xf32>
    %792 = vector.broadcast %791 : vector<16x1xf32> to vector<16x32xf32>
    %793 = arith.mulf %788, %792 : vector<16x32xf32>
    %c488 = arith.constant 488 : index
    %c0_245 = arith.constant 0 : index
    %794 = vector.load %arg3[%c488, %c0_245] : memref<760x32xf32, #tpu.memory_space<vmem>>, vector<1x32xf32>
    %795 = vector.broadcast %794 : vector<1x32xf32> to vector<16x32xf32>
    %796 = arith.mulf %793, %795 : vector<16x32xf32>
    %c496 = arith.constant 496 : index
    %c0_246 = arith.constant 0 : index
    %797 = vector.load %arg3[%c496, %c0_246] : memref<760x32xf32, #tpu.memory_space<vmem>>, vector<1x32xf32>
    %798 = vector.broadcast %797 : vector<1x32xf32> to vector<16x32xf32>
    %799 = arith.addf %796, %798 : vector<16x32xf32>
    %800 = tpu.concatenate %555, %799 in 0 : vector<16x32xf32>, vector<16x32xf32> -> vector<32x32xf32>
    %c120_247 = arith.constant 120 : index
    %c0_248 = arith.constant 0 : index
    %801 = vector.load %arg5[%c120_247, %c0_248] : memref<240x96xf32, #tpu.memory_space<vmem>>, vector<32x96xf32>
    %cst_249 = arith.constant dense<0.000000e+00> : vector<32x96xf32>
    %802 = tpu.matmul %800, %801, %cst_249 {dimension_numbers = #tpu.dot_dimension_numbers<[1], [0], [0], [1], [0, 0, 1, 1], [], []>} : vector<32x32xf32>, vector<32x96xf32>, vector<32x96xf32> -> vector<32x96xf32>
    %c152 = arith.constant 152 : index
    %c0_250 = arith.constant 0 : index
    %803 = vector.load %arg5[%c152, %c0_250] : memref<240x96xf32, #tpu.memory_space<vmem>>, vector<1x96xf32>
    %804 = vector.broadcast %803 : vector<1x96xf32> to vector<32x96xf32>
    %805 = arith.addf %802, %804 : vector<32x96xf32>
    %806 = vector.extract_strided_slice %805 {offsets = [0, 0], sizes = [32, 32], strides = [1, 1]} : vector<32x96xf32> to vector<32x32xf32>
    %807 = vector.extract_strided_slice %805 {offsets = [0, 32], sizes = [32, 32], strides = [1, 1]} : vector<32x96xf32> to vector<32x32xf32>
    %808 = vector.extract_strided_slice %805 {offsets = [0, 64], sizes = [32, 32], strides = [1, 1]} : vector<32x96xf32> to vector<32x32xf32>
    %809 = tpu.transpose %807, [1, 0] : vector<32x32xf32> -> vector<32x32xf32>
    %810 = vector.extract_strided_slice %806 {offsets = [0, 0], sizes = [16, 32], strides = [1, 1]} : vector<32x32xf32> to vector<16x32xf32>
    %811 = vector.extract_strided_slice %809 {offsets = [0, 16], sizes = [32, 16], strides = [1, 1]} : vector<32x32xf32> to vector<32x16xf32>
    %812 = vector.extract_strided_slice %808 {offsets = [16, 0], sizes = [16, 32], strides = [1, 1]} : vector<32x32xf32> to vector<16x32xf32>
    %813 = vector.extract_strided_slice %2 {offsets = [0, 0], sizes = [1, 8], strides = [1, 1]} : vector<2x8xf32> to vector<1x8xf32>
    %814 = vector.extract_strided_slice %810 {offsets = [0, 0], sizes = [8, 8], strides = [1, 1]} : vector<16x32xf32> to vector<8x8xf32>
    %cst_251 = arith.constant 0.353553385 : f32
    %815 = vector.broadcast %cst_251 : f32 to vector<8x8xf32>
    %816 = arith.mulf %814, %815 : vector<8x8xf32>
    %817 = vector.extract_strided_slice %811 {offsets = [0, 0], sizes = [8, 8], strides = [1, 1]} : vector<32x16xf32> to vector<8x8xf32>
    %cst_252 = arith.constant dense<0.000000e+00> : vector<8x8xf32>
    %818 = tpu.matmul %816, %817, %cst_252 {dimension_numbers = #tpu.dot_dimension_numbers<[1], [0], [0], [1], [0, 0, 1, 1], [], []>} : vector<8x8xf32>, vector<8x8xf32>, vector<8x8xf32> -> vector<8x8xf32>
    %819 = vector.broadcast %813 : vector<1x8xf32> to vector<8x8xf32>
    %820 = arith.addf %818, %819 : vector<8x8xf32>
    %cst_253 = arith.constant dense<0xFF800000> : vector<8xf32>
    %821 = vector.multi_reduction <maximumf>, %820, %cst_253 [1] : vector<8x8xf32> to vector<8xf32>
    %822 = vector.shape_cast %821 : vector<8xf32> to vector<8x1xf32>
    %823 = vector.broadcast %822 : vector<8x1xf32> to vector<8x8xf32>
    %824 = arith.subf %820, %823 : vector<8x8xf32>
    %825 = math.exp %824 : vector<8x8xf32>
    %cst_254 = arith.constant dense<0.000000e+00> : vector<8xf32>
    %826 = vector.multi_reduction <add>, %825, %cst_254 [1] : vector<8x8xf32> to vector<8xf32>
    %827 = vector.shape_cast %826 : vector<8xf32> to vector<8x1xf32>
    %828 = tpu.reciprocal %827 {approx = true} : vector<8x1xf32> -> vector<8x1xf32>
    %829 = vector.broadcast %828 : vector<8x1xf32> to vector<8x8xf32>
    %830 = arith.mulf %825, %829 : vector<8x8xf32>
    %831 = vector.extract_strided_slice %812 {offsets = [0, 0], sizes = [8, 8], strides = [1, 1]} : vector<16x32xf32> to vector<8x8xf32>
    %cst_255 = arith.constant dense<0.000000e+00> : vector<8x8xf32>
    %832 = tpu.matmul %830, %831, %cst_255 {dimension_numbers = #tpu.dot_dimension_numbers<[1], [0], [0], [1], [0, 0, 1, 1], [], []>} : vector<8x8xf32>, vector<8x8xf32>, vector<8x8xf32> -> vector<8x8xf32>
    %833 = vector.extract_strided_slice %810 {offsets = [0, 8], sizes = [8, 8], strides = [1, 1]} : vector<16x32xf32> to vector<8x8xf32>
    %cst_256 = arith.constant 0.353553385 : f32
    %834 = vector.broadcast %cst_256 : f32 to vector<8x8xf32>
    %835 = arith.mulf %833, %834 : vector<8x8xf32>
    %836 = vector.extract_strided_slice %811 {offsets = [8, 0], sizes = [8, 8], strides = [1, 1]} : vector<32x16xf32> to vector<8x8xf32>
    %cst_257 = arith.constant dense<0.000000e+00> : vector<8x8xf32>
    %837 = tpu.matmul %835, %836, %cst_257 {dimension_numbers = #tpu.dot_dimension_numbers<[1], [0], [0], [1], [0, 0, 1, 1], [], []>} : vector<8x8xf32>, vector<8x8xf32>, vector<8x8xf32> -> vector<8x8xf32>
    %838 = vector.broadcast %813 : vector<1x8xf32> to vector<8x8xf32>
    %839 = arith.addf %837, %838 : vector<8x8xf32>
    %cst_258 = arith.constant dense<0xFF800000> : vector<8xf32>
    %840 = vector.multi_reduction <maximumf>, %839, %cst_258 [1] : vector<8x8xf32> to vector<8xf32>
    %841 = vector.shape_cast %840 : vector<8xf32> to vector<8x1xf32>
    %842 = vector.broadcast %841 : vector<8x1xf32> to vector<8x8xf32>
    %843 = arith.subf %839, %842 : vector<8x8xf32>
    %844 = math.exp %843 : vector<8x8xf32>
    %cst_259 = arith.constant dense<0.000000e+00> : vector<8xf32>
    %845 = vector.multi_reduction <add>, %844, %cst_259 [1] : vector<8x8xf32> to vector<8xf32>
    %846 = vector.shape_cast %845 : vector<8xf32> to vector<8x1xf32>
    %847 = tpu.reciprocal %846 {approx = true} : vector<8x1xf32> -> vector<8x1xf32>
    %848 = vector.broadcast %847 : vector<8x1xf32> to vector<8x8xf32>
    %849 = arith.mulf %844, %848 : vector<8x8xf32>
    %850 = vector.extract_strided_slice %812 {offsets = [0, 8], sizes = [8, 8], strides = [1, 1]} : vector<16x32xf32> to vector<8x8xf32>
    %cst_260 = arith.constant dense<0.000000e+00> : vector<8x8xf32>
    %851 = tpu.matmul %849, %850, %cst_260 {dimension_numbers = #tpu.dot_dimension_numbers<[1], [0], [0], [1], [0, 0, 1, 1], [], []>} : vector<8x8xf32>, vector<8x8xf32>, vector<8x8xf32> -> vector<8x8xf32>
    %852 = vector.extract_strided_slice %810 {offsets = [0, 16], sizes = [8, 8], strides = [1, 1]} : vector<16x32xf32> to vector<8x8xf32>
    %cst_261 = arith.constant 0.353553385 : f32
    %853 = vector.broadcast %cst_261 : f32 to vector<8x8xf32>
    %854 = arith.mulf %852, %853 : vector<8x8xf32>
    %855 = vector.extract_strided_slice %811 {offsets = [16, 0], sizes = [8, 8], strides = [1, 1]} : vector<32x16xf32> to vector<8x8xf32>
    %cst_262 = arith.constant dense<0.000000e+00> : vector<8x8xf32>
    %856 = tpu.matmul %854, %855, %cst_262 {dimension_numbers = #tpu.dot_dimension_numbers<[1], [0], [0], [1], [0, 0, 1, 1], [], []>} : vector<8x8xf32>, vector<8x8xf32>, vector<8x8xf32> -> vector<8x8xf32>
    %857 = vector.broadcast %813 : vector<1x8xf32> to vector<8x8xf32>
    %858 = arith.addf %856, %857 : vector<8x8xf32>
    %cst_263 = arith.constant dense<0xFF800000> : vector<8xf32>
    %859 = vector.multi_reduction <maximumf>, %858, %cst_263 [1] : vector<8x8xf32> to vector<8xf32>
    %860 = vector.shape_cast %859 : vector<8xf32> to vector<8x1xf32>
    %861 = vector.broadcast %860 : vector<8x1xf32> to vector<8x8xf32>
    %862 = arith.subf %858, %861 : vector<8x8xf32>
    %863 = math.exp %862 : vector<8x8xf32>
    %cst_264 = arith.constant dense<0.000000e+00> : vector<8xf32>
    %864 = vector.multi_reduction <add>, %863, %cst_264 [1] : vector<8x8xf32> to vector<8xf32>
    %865 = vector.shape_cast %864 : vector<8xf32> to vector<8x1xf32>
    %866 = tpu.reciprocal %865 {approx = true} : vector<8x1xf32> -> vector<8x1xf32>
    %867 = vector.broadcast %866 : vector<8x1xf32> to vector<8x8xf32>
    %868 = arith.mulf %863, %867 : vector<8x8xf32>
    %869 = vector.extract_strided_slice %812 {offsets = [0, 16], sizes = [8, 8], strides = [1, 1]} : vector<16x32xf32> to vector<8x8xf32>
    %cst_265 = arith.constant dense<0.000000e+00> : vector<8x8xf32>
    %870 = tpu.matmul %868, %869, %cst_265 {dimension_numbers = #tpu.dot_dimension_numbers<[1], [0], [0], [1], [0, 0, 1, 1], [], []>} : vector<8x8xf32>, vector<8x8xf32>, vector<8x8xf32> -> vector<8x8xf32>
    %871 = vector.extract_strided_slice %810 {offsets = [0, 24], sizes = [8, 8], strides = [1, 1]} : vector<16x32xf32> to vector<8x8xf32>
    %cst_266 = arith.constant 0.353553385 : f32
    %872 = vector.broadcast %cst_266 : f32 to vector<8x8xf32>
    %873 = arith.mulf %871, %872 : vector<8x8xf32>
    %874 = vector.extract_strided_slice %811 {offsets = [24, 0], sizes = [8, 8], strides = [1, 1]} : vector<32x16xf32> to vector<8x8xf32>
    %cst_267 = arith.constant dense<0.000000e+00> : vector<8x8xf32>
    %875 = tpu.matmul %873, %874, %cst_267 {dimension_numbers = #tpu.dot_dimension_numbers<[1], [0], [0], [1], [0, 0, 1, 1], [], []>} : vector<8x8xf32>, vector<8x8xf32>, vector<8x8xf32> -> vector<8x8xf32>
    %876 = vector.broadcast %813 : vector<1x8xf32> to vector<8x8xf32>
    %877 = arith.addf %875, %876 : vector<8x8xf32>
    %cst_268 = arith.constant dense<0xFF800000> : vector<8xf32>
    %878 = vector.multi_reduction <maximumf>, %877, %cst_268 [1] : vector<8x8xf32> to vector<8xf32>
    %879 = vector.shape_cast %878 : vector<8xf32> to vector<8x1xf32>
    %880 = vector.broadcast %879 : vector<8x1xf32> to vector<8x8xf32>
    %881 = arith.subf %877, %880 : vector<8x8xf32>
    %882 = math.exp %881 : vector<8x8xf32>
    %cst_269 = arith.constant dense<0.000000e+00> : vector<8xf32>
    %883 = vector.multi_reduction <add>, %882, %cst_269 [1] : vector<8x8xf32> to vector<8xf32>
    %884 = vector.shape_cast %883 : vector<8xf32> to vector<8x1xf32>
    %885 = tpu.reciprocal %884 {approx = true} : vector<8x1xf32> -> vector<8x1xf32>
    %886 = vector.broadcast %885 : vector<8x1xf32> to vector<8x8xf32>
    %887 = arith.mulf %882, %886 : vector<8x8xf32>
    %888 = vector.extract_strided_slice %812 {offsets = [0, 24], sizes = [8, 8], strides = [1, 1]} : vector<16x32xf32> to vector<8x8xf32>
    %cst_270 = arith.constant dense<0.000000e+00> : vector<8x8xf32>
    %889 = tpu.matmul %887, %888, %cst_270 {dimension_numbers = #tpu.dot_dimension_numbers<[1], [0], [0], [1], [0, 0, 1, 1], [], []>} : vector<8x8xf32>, vector<8x8xf32>, vector<8x8xf32> -> vector<8x8xf32>
    %890 = tpu.concatenate %832, %851, %870, %889 in 1 : vector<8x8xf32>, vector<8x8xf32>, vector<8x8xf32>, vector<8x8xf32> -> vector<8x32xf32>
    %891 = vector.extract_strided_slice %2 {offsets = [1, 0], sizes = [1, 8], strides = [1, 1]} : vector<2x8xf32> to vector<1x8xf32>
    %892 = vector.extract_strided_slice %810 {offsets = [8, 0], sizes = [8, 8], strides = [1, 1]} : vector<16x32xf32> to vector<8x8xf32>
    %cst_271 = arith.constant 0.353553385 : f32
    %893 = vector.broadcast %cst_271 : f32 to vector<8x8xf32>
    %894 = arith.mulf %892, %893 : vector<8x8xf32>
    %895 = vector.extract_strided_slice %811 {offsets = [0, 8], sizes = [8, 8], strides = [1, 1]} : vector<32x16xf32> to vector<8x8xf32>
    %cst_272 = arith.constant dense<0.000000e+00> : vector<8x8xf32>
    %896 = tpu.matmul %894, %895, %cst_272 {dimension_numbers = #tpu.dot_dimension_numbers<[1], [0], [0], [1], [0, 0, 1, 1], [], []>} : vector<8x8xf32>, vector<8x8xf32>, vector<8x8xf32> -> vector<8x8xf32>
    %897 = vector.broadcast %891 : vector<1x8xf32> to vector<8x8xf32>
    %898 = arith.addf %896, %897 : vector<8x8xf32>
    %cst_273 = arith.constant dense<0xFF800000> : vector<8xf32>
    %899 = vector.multi_reduction <maximumf>, %898, %cst_273 [1] : vector<8x8xf32> to vector<8xf32>
    %900 = vector.shape_cast %899 : vector<8xf32> to vector<8x1xf32>
    %901 = vector.broadcast %900 : vector<8x1xf32> to vector<8x8xf32>
    %902 = arith.subf %898, %901 : vector<8x8xf32>
    %903 = math.exp %902 : vector<8x8xf32>
    %cst_274 = arith.constant dense<0.000000e+00> : vector<8xf32>
    %904 = vector.multi_reduction <add>, %903, %cst_274 [1] : vector<8x8xf32> to vector<8xf32>
    %905 = vector.shape_cast %904 : vector<8xf32> to vector<8x1xf32>
    %906 = tpu.reciprocal %905 {approx = true} : vector<8x1xf32> -> vector<8x1xf32>
    %907 = vector.broadcast %906 : vector<8x1xf32> to vector<8x8xf32>
    %908 = arith.mulf %903, %907 : vector<8x8xf32>
    %909 = vector.extract_strided_slice %812 {offsets = [8, 0], sizes = [8, 8], strides = [1, 1]} : vector<16x32xf32> to vector<8x8xf32>
    %cst_275 = arith.constant dense<0.000000e+00> : vector<8x8xf32>
    %910 = tpu.matmul %908, %909, %cst_275 {dimension_numbers = #tpu.dot_dimension_numbers<[1], [0], [0], [1], [0, 0, 1, 1], [], []>} : vector<8x8xf32>, vector<8x8xf32>, vector<8x8xf32> -> vector<8x8xf32>
    %911 = vector.extract_strided_slice %810 {offsets = [8, 8], sizes = [8, 8], strides = [1, 1]} : vector<16x32xf32> to vector<8x8xf32>
    %cst_276 = arith.constant 0.353553385 : f32
    %912 = vector.broadcast %cst_276 : f32 to vector<8x8xf32>
    %913 = arith.mulf %911, %912 : vector<8x8xf32>
    %914 = vector.extract_strided_slice %811 {offsets = [8, 8], sizes = [8, 8], strides = [1, 1]} : vector<32x16xf32> to vector<8x8xf32>
    %cst_277 = arith.constant dense<0.000000e+00> : vector<8x8xf32>
    %915 = tpu.matmul %913, %914, %cst_277 {dimension_numbers = #tpu.dot_dimension_numbers<[1], [0], [0], [1], [0, 0, 1, 1], [], []>} : vector<8x8xf32>, vector<8x8xf32>, vector<8x8xf32> -> vector<8x8xf32>
    %916 = vector.broadcast %891 : vector<1x8xf32> to vector<8x8xf32>
    %917 = arith.addf %915, %916 : vector<8x8xf32>
    %cst_278 = arith.constant dense<0xFF800000> : vector<8xf32>
    %918 = vector.multi_reduction <maximumf>, %917, %cst_278 [1] : vector<8x8xf32> to vector<8xf32>
    %919 = vector.shape_cast %918 : vector<8xf32> to vector<8x1xf32>
    %920 = vector.broadcast %919 : vector<8x1xf32> to vector<8x8xf32>
    %921 = arith.subf %917, %920 : vector<8x8xf32>
    %922 = math.exp %921 : vector<8x8xf32>
    %cst_279 = arith.constant dense<0.000000e+00> : vector<8xf32>
    %923 = vector.multi_reduction <add>, %922, %cst_279 [1] : vector<8x8xf32> to vector<8xf32>
    %924 = vector.shape_cast %923 : vector<8xf32> to vector<8x1xf32>
    %925 = tpu.reciprocal %924 {approx = true} : vector<8x1xf32> -> vector<8x1xf32>
    %926 = vector.broadcast %925 : vector<8x1xf32> to vector<8x8xf32>
    %927 = arith.mulf %922, %926 : vector<8x8xf32>
    %928 = vector.extract_strided_slice %812 {offsets = [8, 8], sizes = [8, 8], strides = [1, 1]} : vector<16x32xf32> to vector<8x8xf32>
    %cst_280 = arith.constant dense<0.000000e+00> : vector<8x8xf32>
    %929 = tpu.matmul %927, %928, %cst_280 {dimension_numbers = #tpu.dot_dimension_numbers<[1], [0], [0], [1], [0, 0, 1, 1], [], []>} : vector<8x8xf32>, vector<8x8xf32>, vector<8x8xf32> -> vector<8x8xf32>
    %930 = vector.extract_strided_slice %810 {offsets = [8, 16], sizes = [8, 8], strides = [1, 1]} : vector<16x32xf32> to vector<8x8xf32>
    %cst_281 = arith.constant 0.353553385 : f32
    %931 = vector.broadcast %cst_281 : f32 to vector<8x8xf32>
    %932 = arith.mulf %930, %931 : vector<8x8xf32>
    %933 = vector.extract_strided_slice %811 {offsets = [16, 8], sizes = [8, 8], strides = [1, 1]} : vector<32x16xf32> to vector<8x8xf32>
    %cst_282 = arith.constant dense<0.000000e+00> : vector<8x8xf32>
    %934 = tpu.matmul %932, %933, %cst_282 {dimension_numbers = #tpu.dot_dimension_numbers<[1], [0], [0], [1], [0, 0, 1, 1], [], []>} : vector<8x8xf32>, vector<8x8xf32>, vector<8x8xf32> -> vector<8x8xf32>
    %935 = vector.broadcast %891 : vector<1x8xf32> to vector<8x8xf32>
    %936 = arith.addf %934, %935 : vector<8x8xf32>
    %cst_283 = arith.constant dense<0xFF800000> : vector<8xf32>
    %937 = vector.multi_reduction <maximumf>, %936, %cst_283 [1] : vector<8x8xf32> to vector<8xf32>
    %938 = vector.shape_cast %937 : vector<8xf32> to vector<8x1xf32>
    %939 = vector.broadcast %938 : vector<8x1xf32> to vector<8x8xf32>
    %940 = arith.subf %936, %939 : vector<8x8xf32>
    %941 = math.exp %940 : vector<8x8xf32>
    %cst_284 = arith.constant dense<0.000000e+00> : vector<8xf32>
    %942 = vector.multi_reduction <add>, %941, %cst_284 [1] : vector<8x8xf32> to vector<8xf32>
    %943 = vector.shape_cast %942 : vector<8xf32> to vector<8x1xf32>
    %944 = tpu.reciprocal %943 {approx = true} : vector<8x1xf32> -> vector<8x1xf32>
    %945 = vector.broadcast %944 : vector<8x1xf32> to vector<8x8xf32>
    %946 = arith.mulf %941, %945 : vector<8x8xf32>
    %947 = vector.extract_strided_slice %812 {offsets = [8, 16], sizes = [8, 8], strides = [1, 1]} : vector<16x32xf32> to vector<8x8xf32>
    %cst_285 = arith.constant dense<0.000000e+00> : vector<8x8xf32>
    %948 = tpu.matmul %946, %947, %cst_285 {dimension_numbers = #tpu.dot_dimension_numbers<[1], [0], [0], [1], [0, 0, 1, 1], [], []>} : vector<8x8xf32>, vector<8x8xf32>, vector<8x8xf32> -> vector<8x8xf32>
    %949 = vector.extract_strided_slice %810 {offsets = [8, 24], sizes = [8, 8], strides = [1, 1]} : vector<16x32xf32> to vector<8x8xf32>
    %cst_286 = arith.constant 0.353553385 : f32
    %950 = vector.broadcast %cst_286 : f32 to vector<8x8xf32>
    %951 = arith.mulf %949, %950 : vector<8x8xf32>
    %952 = vector.extract_strided_slice %811 {offsets = [24, 8], sizes = [8, 8], strides = [1, 1]} : vector<32x16xf32> to vector<8x8xf32>
    %cst_287 = arith.constant dense<0.000000e+00> : vector<8x8xf32>
    %953 = tpu.matmul %951, %952, %cst_287 {dimension_numbers = #tpu.dot_dimension_numbers<[1], [0], [0], [1], [0, 0, 1, 1], [], []>} : vector<8x8xf32>, vector<8x8xf32>, vector<8x8xf32> -> vector<8x8xf32>
    %954 = vector.broadcast %891 : vector<1x8xf32> to vector<8x8xf32>
    %955 = arith.addf %953, %954 : vector<8x8xf32>
    %cst_288 = arith.constant dense<0xFF800000> : vector<8xf32>
    %956 = vector.multi_reduction <maximumf>, %955, %cst_288 [1] : vector<8x8xf32> to vector<8xf32>
    %957 = vector.shape_cast %956 : vector<8xf32> to vector<8x1xf32>
    %958 = vector.broadcast %957 : vector<8x1xf32> to vector<8x8xf32>
    %959 = arith.subf %955, %958 : vector<8x8xf32>
    %960 = math.exp %959 : vector<8x8xf32>
    %cst_289 = arith.constant dense<0.000000e+00> : vector<8xf32>
    %961 = vector.multi_reduction <add>, %960, %cst_289 [1] : vector<8x8xf32> to vector<8xf32>
    %962 = vector.shape_cast %961 : vector<8xf32> to vector<8x1xf32>
    %963 = tpu.reciprocal %962 {approx = true} : vector<8x1xf32> -> vector<8x1xf32>
    %964 = vector.broadcast %963 : vector<8x1xf32> to vector<8x8xf32>
    %965 = arith.mulf %960, %964 : vector<8x8xf32>
    %966 = vector.extract_strided_slice %812 {offsets = [8, 24], sizes = [8, 8], strides = [1, 1]} : vector<16x32xf32> to vector<8x8xf32>
    %cst_290 = arith.constant dense<0.000000e+00> : vector<8x8xf32>
    %967 = tpu.matmul %965, %966, %cst_290 {dimension_numbers = #tpu.dot_dimension_numbers<[1], [0], [0], [1], [0, 0, 1, 1], [], []>} : vector<8x8xf32>, vector<8x8xf32>, vector<8x8xf32> -> vector<8x8xf32>
    %968 = tpu.concatenate %910, %929, %948, %967 in 1 : vector<8x8xf32>, vector<8x8xf32>, vector<8x8xf32>, vector<8x8xf32> -> vector<8x32xf32>
    %969 = tpu.concatenate %890, %968 in 0 : vector<8x32xf32>, vector<8x32xf32> -> vector<16x32xf32>
    %970 = vector.extract_strided_slice %806 {offsets = [16, 0], sizes = [16, 32], strides = [1, 1]} : vector<32x32xf32> to vector<16x32xf32>
    %971 = vector.extract_strided_slice %809 {offsets = [0, 0], sizes = [32, 16], strides = [1, 1]} : vector<32x32xf32> to vector<32x16xf32>
    %972 = vector.extract_strided_slice %808 {offsets = [0, 0], sizes = [16, 32], strides = [1, 1]} : vector<32x32xf32> to vector<16x32xf32>
    %973 = vector.extract_strided_slice %1 {offsets = [0, 0], sizes = [1, 8], strides = [1, 1]} : vector<2x8xf32> to vector<1x8xf32>
    %974 = vector.extract_strided_slice %970 {offsets = [0, 0], sizes = [8, 8], strides = [1, 1]} : vector<16x32xf32> to vector<8x8xf32>
    %cst_291 = arith.constant 0.353553385 : f32
    %975 = vector.broadcast %cst_291 : f32 to vector<8x8xf32>
    %976 = arith.mulf %974, %975 : vector<8x8xf32>
    %977 = vector.extract_strided_slice %971 {offsets = [0, 0], sizes = [8, 8], strides = [1, 1]} : vector<32x16xf32> to vector<8x8xf32>
    %cst_292 = arith.constant dense<0.000000e+00> : vector<8x8xf32>
    %978 = tpu.matmul %976, %977, %cst_292 {dimension_numbers = #tpu.dot_dimension_numbers<[1], [0], [0], [1], [0, 0, 1, 1], [], []>} : vector<8x8xf32>, vector<8x8xf32>, vector<8x8xf32> -> vector<8x8xf32>
    %979 = vector.broadcast %973 : vector<1x8xf32> to vector<8x8xf32>
    %980 = arith.addf %978, %979 : vector<8x8xf32>
    %cst_293 = arith.constant dense<0xFF800000> : vector<8xf32>
    %981 = vector.multi_reduction <maximumf>, %980, %cst_293 [1] : vector<8x8xf32> to vector<8xf32>
    %982 = vector.shape_cast %981 : vector<8xf32> to vector<8x1xf32>
    %983 = vector.broadcast %982 : vector<8x1xf32> to vector<8x8xf32>
    %984 = arith.subf %980, %983 : vector<8x8xf32>
    %985 = math.exp %984 : vector<8x8xf32>
    %cst_294 = arith.constant dense<0.000000e+00> : vector<8xf32>
    %986 = vector.multi_reduction <add>, %985, %cst_294 [1] : vector<8x8xf32> to vector<8xf32>
    %987 = vector.shape_cast %986 : vector<8xf32> to vector<8x1xf32>
    %988 = tpu.reciprocal %987 {approx = true} : vector<8x1xf32> -> vector<8x1xf32>
    %989 = vector.broadcast %988 : vector<8x1xf32> to vector<8x8xf32>
    %990 = arith.mulf %985, %989 : vector<8x8xf32>
    %991 = vector.extract_strided_slice %972 {offsets = [0, 0], sizes = [8, 8], strides = [1, 1]} : vector<16x32xf32> to vector<8x8xf32>
    %cst_295 = arith.constant dense<0.000000e+00> : vector<8x8xf32>
    %992 = tpu.matmul %990, %991, %cst_295 {dimension_numbers = #tpu.dot_dimension_numbers<[1], [0], [0], [1], [0, 0, 1, 1], [], []>} : vector<8x8xf32>, vector<8x8xf32>, vector<8x8xf32> -> vector<8x8xf32>
    %993 = vector.extract_strided_slice %970 {offsets = [0, 8], sizes = [8, 8], strides = [1, 1]} : vector<16x32xf32> to vector<8x8xf32>
    %cst_296 = arith.constant 0.353553385 : f32
    %994 = vector.broadcast %cst_296 : f32 to vector<8x8xf32>
    %995 = arith.mulf %993, %994 : vector<8x8xf32>
    %996 = vector.extract_strided_slice %971 {offsets = [8, 0], sizes = [8, 8], strides = [1, 1]} : vector<32x16xf32> to vector<8x8xf32>
    %cst_297 = arith.constant dense<0.000000e+00> : vector<8x8xf32>
    %997 = tpu.matmul %995, %996, %cst_297 {dimension_numbers = #tpu.dot_dimension_numbers<[1], [0], [0], [1], [0, 0, 1, 1], [], []>} : vector<8x8xf32>, vector<8x8xf32>, vector<8x8xf32> -> vector<8x8xf32>
    %998 = vector.broadcast %973 : vector<1x8xf32> to vector<8x8xf32>
    %999 = arith.addf %997, %998 : vector<8x8xf32>
    %cst_298 = arith.constant dense<0xFF800000> : vector<8xf32>
    %1000 = vector.multi_reduction <maximumf>, %999, %cst_298 [1] : vector<8x8xf32> to vector<8xf32>
    %1001 = vector.shape_cast %1000 : vector<8xf32> to vector<8x1xf32>
    %1002 = vector.broadcast %1001 : vector<8x1xf32> to vector<8x8xf32>
    %1003 = arith.subf %999, %1002 : vector<8x8xf32>
    %1004 = math.exp %1003 : vector<8x8xf32>
    %cst_299 = arith.constant dense<0.000000e+00> : vector<8xf32>
    %1005 = vector.multi_reduction <add>, %1004, %cst_299 [1] : vector<8x8xf32> to vector<8xf32>
    %1006 = vector.shape_cast %1005 : vector<8xf32> to vector<8x1xf32>
    %1007 = tpu.reciprocal %1006 {approx = true} : vector<8x1xf32> -> vector<8x1xf32>
    %1008 = vector.broadcast %1007 : vector<8x1xf32> to vector<8x8xf32>
    %1009 = arith.mulf %1004, %1008 : vector<8x8xf32>
    %1010 = vector.extract_strided_slice %972 {offsets = [0, 8], sizes = [8, 8], strides = [1, 1]} : vector<16x32xf32> to vector<8x8xf32>
    %cst_300 = arith.constant dense<0.000000e+00> : vector<8x8xf32>
    %1011 = tpu.matmul %1009, %1010, %cst_300 {dimension_numbers = #tpu.dot_dimension_numbers<[1], [0], [0], [1], [0, 0, 1, 1], [], []>} : vector<8x8xf32>, vector<8x8xf32>, vector<8x8xf32> -> vector<8x8xf32>
    %1012 = vector.extract_strided_slice %970 {offsets = [0, 16], sizes = [8, 8], strides = [1, 1]} : vector<16x32xf32> to vector<8x8xf32>
    %cst_301 = arith.constant 0.353553385 : f32
    %1013 = vector.broadcast %cst_301 : f32 to vector<8x8xf32>
    %1014 = arith.mulf %1012, %1013 : vector<8x8xf32>
    %1015 = vector.extract_strided_slice %971 {offsets = [16, 0], sizes = [8, 8], strides = [1, 1]} : vector<32x16xf32> to vector<8x8xf32>
    %cst_302 = arith.constant dense<0.000000e+00> : vector<8x8xf32>
    %1016 = tpu.matmul %1014, %1015, %cst_302 {dimension_numbers = #tpu.dot_dimension_numbers<[1], [0], [0], [1], [0, 0, 1, 1], [], []>} : vector<8x8xf32>, vector<8x8xf32>, vector<8x8xf32> -> vector<8x8xf32>
    %1017 = vector.broadcast %973 : vector<1x8xf32> to vector<8x8xf32>
    %1018 = arith.addf %1016, %1017 : vector<8x8xf32>
    %cst_303 = arith.constant dense<0xFF800000> : vector<8xf32>
    %1019 = vector.multi_reduction <maximumf>, %1018, %cst_303 [1] : vector<8x8xf32> to vector<8xf32>
    %1020 = vector.shape_cast %1019 : vector<8xf32> to vector<8x1xf32>
    %1021 = vector.broadcast %1020 : vector<8x1xf32> to vector<8x8xf32>
    %1022 = arith.subf %1018, %1021 : vector<8x8xf32>
    %1023 = math.exp %1022 : vector<8x8xf32>
    %cst_304 = arith.constant dense<0.000000e+00> : vector<8xf32>
    %1024 = vector.multi_reduction <add>, %1023, %cst_304 [1] : vector<8x8xf32> to vector<8xf32>
    %1025 = vector.shape_cast %1024 : vector<8xf32> to vector<8x1xf32>
    %1026 = tpu.reciprocal %1025 {approx = true} : vector<8x1xf32> -> vector<8x1xf32>
    %1027 = vector.broadcast %1026 : vector<8x1xf32> to vector<8x8xf32>
    %1028 = arith.mulf %1023, %1027 : vector<8x8xf32>
    %1029 = vector.extract_strided_slice %972 {offsets = [0, 16], sizes = [8, 8], strides = [1, 1]} : vector<16x32xf32> to vector<8x8xf32>
    %cst_305 = arith.constant dense<0.000000e+00> : vector<8x8xf32>
    %1030 = tpu.matmul %1028, %1029, %cst_305 {dimension_numbers = #tpu.dot_dimension_numbers<[1], [0], [0], [1], [0, 0, 1, 1], [], []>} : vector<8x8xf32>, vector<8x8xf32>, vector<8x8xf32> -> vector<8x8xf32>
    %1031 = vector.extract_strided_slice %970 {offsets = [0, 24], sizes = [8, 8], strides = [1, 1]} : vector<16x32xf32> to vector<8x8xf32>
    %cst_306 = arith.constant 0.353553385 : f32
    %1032 = vector.broadcast %cst_306 : f32 to vector<8x8xf32>
    %1033 = arith.mulf %1031, %1032 : vector<8x8xf32>
    %1034 = vector.extract_strided_slice %971 {offsets = [24, 0], sizes = [8, 8], strides = [1, 1]} : vector<32x16xf32> to vector<8x8xf32>
    %cst_307 = arith.constant dense<0.000000e+00> : vector<8x8xf32>
    %1035 = tpu.matmul %1033, %1034, %cst_307 {dimension_numbers = #tpu.dot_dimension_numbers<[1], [0], [0], [1], [0, 0, 1, 1], [], []>} : vector<8x8xf32>, vector<8x8xf32>, vector<8x8xf32> -> vector<8x8xf32>
    %1036 = vector.broadcast %973 : vector<1x8xf32> to vector<8x8xf32>
    %1037 = arith.addf %1035, %1036 : vector<8x8xf32>
    %cst_308 = arith.constant dense<0xFF800000> : vector<8xf32>
    %1038 = vector.multi_reduction <maximumf>, %1037, %cst_308 [1] : vector<8x8xf32> to vector<8xf32>
    %1039 = vector.shape_cast %1038 : vector<8xf32> to vector<8x1xf32>
    %1040 = vector.broadcast %1039 : vector<8x1xf32> to vector<8x8xf32>
    %1041 = arith.subf %1037, %1040 : vector<8x8xf32>
    %1042 = math.exp %1041 : vector<8x8xf32>
    %cst_309 = arith.constant dense<0.000000e+00> : vector<8xf32>
    %1043 = vector.multi_reduction <add>, %1042, %cst_309 [1] : vector<8x8xf32> to vector<8xf32>
    %1044 = vector.shape_cast %1043 : vector<8xf32> to vector<8x1xf32>
    %1045 = tpu.reciprocal %1044 {approx = true} : vector<8x1xf32> -> vector<8x1xf32>
    %1046 = vector.broadcast %1045 : vector<8x1xf32> to vector<8x8xf32>
    %1047 = arith.mulf %1042, %1046 : vector<8x8xf32>
    %1048 = vector.extract_strided_slice %972 {offsets = [0, 24], sizes = [8, 8], strides = [1, 1]} : vector<16x32xf32> to vector<8x8xf32>
    %cst_310 = arith.constant dense<0.000000e+00> : vector<8x8xf32>
    %1049 = tpu.matmul %1047, %1048, %cst_310 {dimension_numbers = #tpu.dot_dimension_numbers<[1], [0], [0], [1], [0, 0, 1, 1], [], []>} : vector<8x8xf32>, vector<8x8xf32>, vector<8x8xf32> -> vector<8x8xf32>
    %1050 = tpu.concatenate %992, %1011, %1030, %1049 in 1 : vector<8x8xf32>, vector<8x8xf32>, vector<8x8xf32>, vector<8x8xf32> -> vector<8x32xf32>
    %1051 = vector.extract_strided_slice %1 {offsets = [1, 0], sizes = [1, 8], strides = [1, 1]} : vector<2x8xf32> to vector<1x8xf32>
    %1052 = vector.extract_strided_slice %970 {offsets = [8, 0], sizes = [8, 8], strides = [1, 1]} : vector<16x32xf32> to vector<8x8xf32>
    %cst_311 = arith.constant 0.353553385 : f32
    %1053 = vector.broadcast %cst_311 : f32 to vector<8x8xf32>
    %1054 = arith.mulf %1052, %1053 : vector<8x8xf32>
    %1055 = vector.extract_strided_slice %971 {offsets = [0, 8], sizes = [8, 8], strides = [1, 1]} : vector<32x16xf32> to vector<8x8xf32>
    %cst_312 = arith.constant dense<0.000000e+00> : vector<8x8xf32>
    %1056 = tpu.matmul %1054, %1055, %cst_312 {dimension_numbers = #tpu.dot_dimension_numbers<[1], [0], [0], [1], [0, 0, 1, 1], [], []>} : vector<8x8xf32>, vector<8x8xf32>, vector<8x8xf32> -> vector<8x8xf32>
    %1057 = vector.broadcast %1051 : vector<1x8xf32> to vector<8x8xf32>
    %1058 = arith.addf %1056, %1057 : vector<8x8xf32>
    %cst_313 = arith.constant dense<0xFF800000> : vector<8xf32>
    %1059 = vector.multi_reduction <maximumf>, %1058, %cst_313 [1] : vector<8x8xf32> to vector<8xf32>
    %1060 = vector.shape_cast %1059 : vector<8xf32> to vector<8x1xf32>
    %1061 = vector.broadcast %1060 : vector<8x1xf32> to vector<8x8xf32>
    %1062 = arith.subf %1058, %1061 : vector<8x8xf32>
    %1063 = math.exp %1062 : vector<8x8xf32>
    %cst_314 = arith.constant dense<0.000000e+00> : vector<8xf32>
    %1064 = vector.multi_reduction <add>, %1063, %cst_314 [1] : vector<8x8xf32> to vector<8xf32>
    %1065 = vector.shape_cast %1064 : vector<8xf32> to vector<8x1xf32>
    %1066 = tpu.reciprocal %1065 {approx = true} : vector<8x1xf32> -> vector<8x1xf32>
    %1067 = vector.broadcast %1066 : vector<8x1xf32> to vector<8x8xf32>
    %1068 = arith.mulf %1063, %1067 : vector<8x8xf32>
    %1069 = vector.extract_strided_slice %972 {offsets = [8, 0], sizes = [8, 8], strides = [1, 1]} : vector<16x32xf32> to vector<8x8xf32>
    %cst_315 = arith.constant dense<0.000000e+00> : vector<8x8xf32>
    %1070 = tpu.matmul %1068, %1069, %cst_315 {dimension_numbers = #tpu.dot_dimension_numbers<[1], [0], [0], [1], [0, 0, 1, 1], [], []>} : vector<8x8xf32>, vector<8x8xf32>, vector<8x8xf32> -> vector<8x8xf32>
    %1071 = vector.extract_strided_slice %970 {offsets = [8, 8], sizes = [8, 8], strides = [1, 1]} : vector<16x32xf32> to vector<8x8xf32>
    %cst_316 = arith.constant 0.353553385 : f32
    %1072 = vector.broadcast %cst_316 : f32 to vector<8x8xf32>
    %1073 = arith.mulf %1071, %1072 : vector<8x8xf32>
    %1074 = vector.extract_strided_slice %971 {offsets = [8, 8], sizes = [8, 8], strides = [1, 1]} : vector<32x16xf32> to vector<8x8xf32>
    %cst_317 = arith.constant dense<0.000000e+00> : vector<8x8xf32>
    %1075 = tpu.matmul %1073, %1074, %cst_317 {dimension_numbers = #tpu.dot_dimension_numbers<[1], [0], [0], [1], [0, 0, 1, 1], [], []>} : vector<8x8xf32>, vector<8x8xf32>, vector<8x8xf32> -> vector<8x8xf32>
    %1076 = vector.broadcast %1051 : vector<1x8xf32> to vector<8x8xf32>
    %1077 = arith.addf %1075, %1076 : vector<8x8xf32>
    %cst_318 = arith.constant dense<0xFF800000> : vector<8xf32>
    %1078 = vector.multi_reduction <maximumf>, %1077, %cst_318 [1] : vector<8x8xf32> to vector<8xf32>
    %1079 = vector.shape_cast %1078 : vector<8xf32> to vector<8x1xf32>
    %1080 = vector.broadcast %1079 : vector<8x1xf32> to vector<8x8xf32>
    %1081 = arith.subf %1077, %1080 : vector<8x8xf32>
    %1082 = math.exp %1081 : vector<8x8xf32>
    %cst_319 = arith.constant dense<0.000000e+00> : vector<8xf32>
    %1083 = vector.multi_reduction <add>, %1082, %cst_319 [1] : vector<8x8xf32> to vector<8xf32>
    %1084 = vector.shape_cast %1083 : vector<8xf32> to vector<8x1xf32>
    %1085 = tpu.reciprocal %1084 {approx = true} : vector<8x1xf32> -> vector<8x1xf32>
    %1086 = vector.broadcast %1085 : vector<8x1xf32> to vector<8x8xf32>
    %1087 = arith.mulf %1082, %1086 : vector<8x8xf32>
    %1088 = vector.extract_strided_slice %972 {offsets = [8, 8], sizes = [8, 8], strides = [1, 1]} : vector<16x32xf32> to vector<8x8xf32>
    %cst_320 = arith.constant dense<0.000000e+00> : vector<8x8xf32>
    %1089 = tpu.matmul %1087, %1088, %cst_320 {dimension_numbers = #tpu.dot_dimension_numbers<[1], [0], [0], [1], [0, 0, 1, 1], [], []>} : vector<8x8xf32>, vector<8x8xf32>, vector<8x8xf32> -> vector<8x8xf32>
    %1090 = vector.extract_strided_slice %970 {offsets = [8, 16], sizes = [8, 8], strides = [1, 1]} : vector<16x32xf32> to vector<8x8xf32>
    %cst_321 = arith.constant 0.353553385 : f32
    %1091 = vector.broadcast %cst_321 : f32 to vector<8x8xf32>
    %1092 = arith.mulf %1090, %1091 : vector<8x8xf32>
    %1093 = vector.extract_strided_slice %971 {offsets = [16, 8], sizes = [8, 8], strides = [1, 1]} : vector<32x16xf32> to vector<8x8xf32>
    %cst_322 = arith.constant dense<0.000000e+00> : vector<8x8xf32>
    %1094 = tpu.matmul %1092, %1093, %cst_322 {dimension_numbers = #tpu.dot_dimension_numbers<[1], [0], [0], [1], [0, 0, 1, 1], [], []>} : vector<8x8xf32>, vector<8x8xf32>, vector<8x8xf32> -> vector<8x8xf32>
    %1095 = vector.broadcast %1051 : vector<1x8xf32> to vector<8x8xf32>
    %1096 = arith.addf %1094, %1095 : vector<8x8xf32>
    %cst_323 = arith.constant dense<0xFF800000> : vector<8xf32>
    %1097 = vector.multi_reduction <maximumf>, %1096, %cst_323 [1] : vector<8x8xf32> to vector<8xf32>
    %1098 = vector.shape_cast %1097 : vector<8xf32> to vector<8x1xf32>
    %1099 = vector.broadcast %1098 : vector<8x1xf32> to vector<8x8xf32>
    %1100 = arith.subf %1096, %1099 : vector<8x8xf32>
    %1101 = math.exp %1100 : vector<8x8xf32>
    %cst_324 = arith.constant dense<0.000000e+00> : vector<8xf32>
    %1102 = vector.multi_reduction <add>, %1101, %cst_324 [1] : vector<8x8xf32> to vector<8xf32>
    %1103 = vector.shape_cast %1102 : vector<8xf32> to vector<8x1xf32>
    %1104 = tpu.reciprocal %1103 {approx = true} : vector<8x1xf32> -> vector<8x1xf32>
    %1105 = vector.broadcast %1104 : vector<8x1xf32> to vector<8x8xf32>
    %1106 = arith.mulf %1101, %1105 : vector<8x8xf32>
    %1107 = vector.extract_strided_slice %972 {offsets = [8, 16], sizes = [8, 8], strides = [1, 1]} : vector<16x32xf32> to vector<8x8xf32>
    %cst_325 = arith.constant dense<0.000000e+00> : vector<8x8xf32>
    %1108 = tpu.matmul %1106, %1107, %cst_325 {dimension_numbers = #tpu.dot_dimension_numbers<[1], [0], [0], [1], [0, 0, 1, 1], [], []>} : vector<8x8xf32>, vector<8x8xf32>, vector<8x8xf32> -> vector<8x8xf32>
    %1109 = vector.extract_strided_slice %970 {offsets = [8, 24], sizes = [8, 8], strides = [1, 1]} : vector<16x32xf32> to vector<8x8xf32>
    %cst_326 = arith.constant 0.353553385 : f32
    %1110 = vector.broadcast %cst_326 : f32 to vector<8x8xf32>
    %1111 = arith.mulf %1109, %1110 : vector<8x8xf32>
    %1112 = vector.extract_strided_slice %971 {offsets = [24, 8], sizes = [8, 8], strides = [1, 1]} : vector<32x16xf32> to vector<8x8xf32>
    %cst_327 = arith.constant dense<0.000000e+00> : vector<8x8xf32>
    %1113 = tpu.matmul %1111, %1112, %cst_327 {dimension_numbers = #tpu.dot_dimension_numbers<[1], [0], [0], [1], [0, 0, 1, 1], [], []>} : vector<8x8xf32>, vector<8x8xf32>, vector<8x8xf32> -> vector<8x8xf32>
    %1114 = vector.broadcast %1051 : vector<1x8xf32> to vector<8x8xf32>
    %1115 = arith.addf %1113, %1114 : vector<8x8xf32>
    %cst_328 = arith.constant dense<0xFF800000> : vector<8xf32>
    %1116 = vector.multi_reduction <maximumf>, %1115, %cst_328 [1] : vector<8x8xf32> to vector<8xf32>
    %1117 = vector.shape_cast %1116 : vector<8xf32> to vector<8x1xf32>
    %1118 = vector.broadcast %1117 : vector<8x1xf32> to vector<8x8xf32>
    %1119 = arith.subf %1115, %1118 : vector<8x8xf32>
    %1120 = math.exp %1119 : vector<8x8xf32>
    %cst_329 = arith.constant dense<0.000000e+00> : vector<8xf32>
    %1121 = vector.multi_reduction <add>, %1120, %cst_329 [1] : vector<8x8xf32> to vector<8xf32>
    %1122 = vector.shape_cast %1121 : vector<8xf32> to vector<8x1xf32>
    %1123 = tpu.reciprocal %1122 {approx = true} : vector<8x1xf32> -> vector<8x1xf32>
    %1124 = vector.broadcast %1123 : vector<8x1xf32> to vector<8x8xf32>
    %1125 = arith.mulf %1120, %1124 : vector<8x8xf32>
    %1126 = vector.extract_strided_slice %972 {offsets = [8, 24], sizes = [8, 8], strides = [1, 1]} : vector<16x32xf32> to vector<8x8xf32>
    %cst_330 = arith.constant dense<0.000000e+00> : vector<8x8xf32>
    %1127 = tpu.matmul %1125, %1126, %cst_330 {dimension_numbers = #tpu.dot_dimension_numbers<[1], [0], [0], [1], [0, 0, 1, 1], [], []>} : vector<8x8xf32>, vector<8x8xf32>, vector<8x8xf32> -> vector<8x8xf32>
    %1128 = tpu.concatenate %1070, %1089, %1108, %1127 in 1 : vector<8x8xf32>, vector<8x8xf32>, vector<8x8xf32>, vector<8x8xf32> -> vector<8x32xf32>
    %1129 = tpu.concatenate %1050, %1128 in 0 : vector<8x32xf32>, vector<8x32xf32> -> vector<16x32xf32>
    %1130 = tpu.concatenate %969, %1129 in 0 : vector<16x32xf32>, vector<16x32xf32> -> vector<32x32xf32>
    %c504 = arith.constant 504 : index
    %c0_331 = arith.constant 0 : index
    %1131 = vector.load %arg3[%c504, %c0_331] : memref<760x32xf32, #tpu.memory_space<vmem>>, vector<32x32xf32>
    %cst_332 = arith.constant dense<0.000000e+00> : vector<32x32xf32>
    %1132 = tpu.matmul %1130, %1131, %cst_332 {dimension_numbers = #tpu.dot_dimension_numbers<[1], [0], [0], [1], [0, 0, 1, 1], [], []>} : vector<32x32xf32>, vector<32x32xf32>, vector<32x32xf32> -> vector<32x32xf32>
    %c536 = arith.constant 536 : index
    %c0_333 = arith.constant 0 : index
    %1133 = vector.load %arg3[%c536, %c0_333] : memref<760x32xf32, #tpu.memory_space<vmem>>, vector<1x32xf32>
    %1134 = vector.broadcast %1133 : vector<1x32xf32> to vector<32x32xf32>
    %1135 = arith.addf %1132, %1134 : vector<32x32xf32>
    %1136 = arith.addf %1135, %800 : vector<32x32xf32>
    %cst_334 = arith.constant dense<0.000000e+00> : vector<32xf32>
    %1137 = vector.multi_reduction <add>, %1136, %cst_334 [1] : vector<32x32xf32> to vector<32xf32>
    %1138 = vector.shape_cast %1137 : vector<32xf32> to vector<32x1xf32>
    %cst_335 = arith.constant 3.200000e+01 : f32
    %1139 = vector.broadcast %cst_335 : f32 to vector<32x1xf32>
    %1140 = arith.divf %1138, %1139 : vector<32x1xf32>
    %1141 = vector.broadcast %1140 : vector<32x1xf32> to vector<32x32xf32>
    %1142 = arith.subf %1136, %1141 : vector<32x32xf32>
    %1143 = arith.mulf %1142, %1142 : vector<32x32xf32>
    %cst_336 = arith.constant dense<0.000000e+00> : vector<32xf32>
    %1144 = vector.multi_reduction <add>, %1143, %cst_336 [1] : vector<32x32xf32> to vector<32xf32>
    %1145 = vector.shape_cast %1144 : vector<32xf32> to vector<32x1xf32>
    %cst_337 = arith.constant 3.200000e+01 : f32
    %1146 = vector.broadcast %cst_337 : f32 to vector<32x1xf32>
    %1147 = arith.divf %1145, %1146 : vector<32x1xf32>
    %1148 = vector.broadcast %1140 : vector<32x1xf32> to vector<32x32xf32>
    %1149 = arith.subf %1136, %1148 : vector<32x32xf32>
    %cst_338 = arith.constant 9.99999996E-13 : f32
    %1150 = vector.broadcast %cst_338 : f32 to vector<32x1xf32>
    %1151 = arith.addf %1147, %1150 : vector<32x1xf32>
    %1152 = math.rsqrt %1151 : vector<32x1xf32>
    %1153 = vector.broadcast %1152 : vector<32x1xf32> to vector<32x32xf32>
    %1154 = arith.mulf %1149, %1153 : vector<32x32xf32>
    %c544 = arith.constant 544 : index
    %c0_339 = arith.constant 0 : index
    %1155 = vector.load %arg3[%c544, %c0_339] : memref<760x32xf32, #tpu.memory_space<vmem>>, vector<1x32xf32>
    %1156 = vector.broadcast %1155 : vector<1x32xf32> to vector<32x32xf32>
    %1157 = arith.mulf %1154, %1156 : vector<32x32xf32>
    %c552 = arith.constant 552 : index
    %c0_340 = arith.constant 0 : index
    %1158 = vector.load %arg3[%c552, %c0_340] : memref<760x32xf32, #tpu.memory_space<vmem>>, vector<1x32xf32>
    %1159 = vector.broadcast %1158 : vector<1x32xf32> to vector<32x32xf32>
    %1160 = arith.addf %1157, %1159 : vector<32x32xf32>
    %1161 = vector.extract_strided_slice %1160 {offsets = [0, 0], sizes = [16, 32], strides = [1, 1]} : vector<32x32xf32> to vector<16x32xf32>
    %c160 = arith.constant 160 : index
    %c0_341 = arith.constant 0 : index
    %1162 = vector.load %arg5[%c160, %c0_341] : memref<240x96xf32, #tpu.memory_space<vmem>>, vector<32x96xf32>
    %cst_342 = arith.constant dense<0.000000e+00> : vector<16x96xf32>
    %1163 = tpu.matmul %1161, %1162, %cst_342 {dimension_numbers = #tpu.dot_dimension_numbers<[1], [0], [0], [1], [0, 0, 1, 1], [], []>} : vector<16x32xf32>, vector<32x96xf32>, vector<16x96xf32> -> vector<16x96xf32>
    %c192_343 = arith.constant 192 : index
    %c0_344 = arith.constant 0 : index
    %1164 = vector.load %arg5[%c192_343, %c0_344] : memref<240x96xf32, #tpu.memory_space<vmem>>, vector<1x96xf32>
    %1165 = vector.broadcast %1164 : vector<1x96xf32> to vector<16x96xf32>
    %1166 = arith.addf %1163, %1165 : vector<16x96xf32>
    %1167 = vector.extract_strided_slice %1166 {offsets = [0, 0], sizes = [16, 32], strides = [1, 1]} : vector<16x96xf32> to vector<16x32xf32>
    %1168 = vector.extract_strided_slice %1166 {offsets = [0, 32], sizes = [16, 32], strides = [1, 1]} : vector<16x96xf32> to vector<16x32xf32>
    %1169 = vector.extract_strided_slice %1166 {offsets = [0, 64], sizes = [16, 32], strides = [1, 1]} : vector<16x96xf32> to vector<16x32xf32>
    %1170 = tpu.transpose %1168, [1, 0] : vector<16x32xf32> -> vector<32x16xf32>
    %1171 = vector.extract_strided_slice %1 {offsets = [0, 0], sizes = [1, 8], strides = [1, 1]} : vector<2x8xf32> to vector<1x8xf32>
    %1172 = vector.extract_strided_slice %1167 {offsets = [0, 0], sizes = [8, 8], strides = [1, 1]} : vector<16x32xf32> to vector<8x8xf32>
    %cst_345 = arith.constant 0.353553385 : f32
    %1173 = vector.broadcast %cst_345 : f32 to vector<8x8xf32>
    %1174 = arith.mulf %1172, %1173 : vector<8x8xf32>
    %1175 = vector.extract_strided_slice %1170 {offsets = [0, 0], sizes = [8, 8], strides = [1, 1]} : vector<32x16xf32> to vector<8x8xf32>
    %cst_346 = arith.constant dense<0.000000e+00> : vector<8x8xf32>
    %1176 = tpu.matmul %1174, %1175, %cst_346 {dimension_numbers = #tpu.dot_dimension_numbers<[1], [0], [0], [1], [0, 0, 1, 1], [], []>} : vector<8x8xf32>, vector<8x8xf32>, vector<8x8xf32> -> vector<8x8xf32>
    %1177 = vector.broadcast %1171 : vector<1x8xf32> to vector<8x8xf32>
    %1178 = arith.addf %1176, %1177 : vector<8x8xf32>
    %cst_347 = arith.constant dense<0xFF800000> : vector<8xf32>
    %1179 = vector.multi_reduction <maximumf>, %1178, %cst_347 [1] : vector<8x8xf32> to vector<8xf32>
    %1180 = vector.shape_cast %1179 : vector<8xf32> to vector<8x1xf32>
    %1181 = vector.broadcast %1180 : vector<8x1xf32> to vector<8x8xf32>
    %1182 = arith.subf %1178, %1181 : vector<8x8xf32>
    %1183 = math.exp %1182 : vector<8x8xf32>
    %cst_348 = arith.constant dense<0.000000e+00> : vector<8xf32>
    %1184 = vector.multi_reduction <add>, %1183, %cst_348 [1] : vector<8x8xf32> to vector<8xf32>
    %1185 = vector.shape_cast %1184 : vector<8xf32> to vector<8x1xf32>
    %1186 = tpu.reciprocal %1185 {approx = true} : vector<8x1xf32> -> vector<8x1xf32>
    %1187 = vector.broadcast %1186 : vector<8x1xf32> to vector<8x8xf32>
    %1188 = arith.mulf %1183, %1187 : vector<8x8xf32>
    %1189 = vector.extract_strided_slice %1169 {offsets = [0, 0], sizes = [8, 8], strides = [1, 1]} : vector<16x32xf32> to vector<8x8xf32>
    %cst_349 = arith.constant dense<0.000000e+00> : vector<8x8xf32>
    %1190 = tpu.matmul %1188, %1189, %cst_349 {dimension_numbers = #tpu.dot_dimension_numbers<[1], [0], [0], [1], [0, 0, 1, 1], [], []>} : vector<8x8xf32>, vector<8x8xf32>, vector<8x8xf32> -> vector<8x8xf32>
    %1191 = vector.extract_strided_slice %1167 {offsets = [0, 8], sizes = [8, 8], strides = [1, 1]} : vector<16x32xf32> to vector<8x8xf32>
    %cst_350 = arith.constant 0.353553385 : f32
    %1192 = vector.broadcast %cst_350 : f32 to vector<8x8xf32>
    %1193 = arith.mulf %1191, %1192 : vector<8x8xf32>
    %1194 = vector.extract_strided_slice %1170 {offsets = [8, 0], sizes = [8, 8], strides = [1, 1]} : vector<32x16xf32> to vector<8x8xf32>
    %cst_351 = arith.constant dense<0.000000e+00> : vector<8x8xf32>
    %1195 = tpu.matmul %1193, %1194, %cst_351 {dimension_numbers = #tpu.dot_dimension_numbers<[1], [0], [0], [1], [0, 0, 1, 1], [], []>} : vector<8x8xf32>, vector<8x8xf32>, vector<8x8xf32> -> vector<8x8xf32>
    %1196 = vector.broadcast %1171 : vector<1x8xf32> to vector<8x8xf32>
    %1197 = arith.addf %1195, %1196 : vector<8x8xf32>
    %cst_352 = arith.constant dense<0xFF800000> : vector<8xf32>
    %1198 = vector.multi_reduction <maximumf>, %1197, %cst_352 [1] : vector<8x8xf32> to vector<8xf32>
    %1199 = vector.shape_cast %1198 : vector<8xf32> to vector<8x1xf32>
    %1200 = vector.broadcast %1199 : vector<8x1xf32> to vector<8x8xf32>
    %1201 = arith.subf %1197, %1200 : vector<8x8xf32>
    %1202 = math.exp %1201 : vector<8x8xf32>
    %cst_353 = arith.constant dense<0.000000e+00> : vector<8xf32>
    %1203 = vector.multi_reduction <add>, %1202, %cst_353 [1] : vector<8x8xf32> to vector<8xf32>
    %1204 = vector.shape_cast %1203 : vector<8xf32> to vector<8x1xf32>
    %1205 = tpu.reciprocal %1204 {approx = true} : vector<8x1xf32> -> vector<8x1xf32>
    %1206 = vector.broadcast %1205 : vector<8x1xf32> to vector<8x8xf32>
    %1207 = arith.mulf %1202, %1206 : vector<8x8xf32>
    %1208 = vector.extract_strided_slice %1169 {offsets = [0, 8], sizes = [8, 8], strides = [1, 1]} : vector<16x32xf32> to vector<8x8xf32>
    %cst_354 = arith.constant dense<0.000000e+00> : vector<8x8xf32>
    %1209 = tpu.matmul %1207, %1208, %cst_354 {dimension_numbers = #tpu.dot_dimension_numbers<[1], [0], [0], [1], [0, 0, 1, 1], [], []>} : vector<8x8xf32>, vector<8x8xf32>, vector<8x8xf32> -> vector<8x8xf32>
    %1210 = vector.extract_strided_slice %1167 {offsets = [0, 16], sizes = [8, 8], strides = [1, 1]} : vector<16x32xf32> to vector<8x8xf32>
    %cst_355 = arith.constant 0.353553385 : f32
    %1211 = vector.broadcast %cst_355 : f32 to vector<8x8xf32>
    %1212 = arith.mulf %1210, %1211 : vector<8x8xf32>
    %1213 = vector.extract_strided_slice %1170 {offsets = [16, 0], sizes = [8, 8], strides = [1, 1]} : vector<32x16xf32> to vector<8x8xf32>
    %cst_356 = arith.constant dense<0.000000e+00> : vector<8x8xf32>
    %1214 = tpu.matmul %1212, %1213, %cst_356 {dimension_numbers = #tpu.dot_dimension_numbers<[1], [0], [0], [1], [0, 0, 1, 1], [], []>} : vector<8x8xf32>, vector<8x8xf32>, vector<8x8xf32> -> vector<8x8xf32>
    %1215 = vector.broadcast %1171 : vector<1x8xf32> to vector<8x8xf32>
    %1216 = arith.addf %1214, %1215 : vector<8x8xf32>
    %cst_357 = arith.constant dense<0xFF800000> : vector<8xf32>
    %1217 = vector.multi_reduction <maximumf>, %1216, %cst_357 [1] : vector<8x8xf32> to vector<8xf32>
    %1218 = vector.shape_cast %1217 : vector<8xf32> to vector<8x1xf32>
    %1219 = vector.broadcast %1218 : vector<8x1xf32> to vector<8x8xf32>
    %1220 = arith.subf %1216, %1219 : vector<8x8xf32>
    %1221 = math.exp %1220 : vector<8x8xf32>
    %cst_358 = arith.constant dense<0.000000e+00> : vector<8xf32>
    %1222 = vector.multi_reduction <add>, %1221, %cst_358 [1] : vector<8x8xf32> to vector<8xf32>
    %1223 = vector.shape_cast %1222 : vector<8xf32> to vector<8x1xf32>
    %1224 = tpu.reciprocal %1223 {approx = true} : vector<8x1xf32> -> vector<8x1xf32>
    %1225 = vector.broadcast %1224 : vector<8x1xf32> to vector<8x8xf32>
    %1226 = arith.mulf %1221, %1225 : vector<8x8xf32>
    %1227 = vector.extract_strided_slice %1169 {offsets = [0, 16], sizes = [8, 8], strides = [1, 1]} : vector<16x32xf32> to vector<8x8xf32>
    %cst_359 = arith.constant dense<0.000000e+00> : vector<8x8xf32>
    %1228 = tpu.matmul %1226, %1227, %cst_359 {dimension_numbers = #tpu.dot_dimension_numbers<[1], [0], [0], [1], [0, 0, 1, 1], [], []>} : vector<8x8xf32>, vector<8x8xf32>, vector<8x8xf32> -> vector<8x8xf32>
    %1229 = vector.extract_strided_slice %1167 {offsets = [0, 24], sizes = [8, 8], strides = [1, 1]} : vector<16x32xf32> to vector<8x8xf32>
    %cst_360 = arith.constant 0.353553385 : f32
    %1230 = vector.broadcast %cst_360 : f32 to vector<8x8xf32>
    %1231 = arith.mulf %1229, %1230 : vector<8x8xf32>
    %1232 = vector.extract_strided_slice %1170 {offsets = [24, 0], sizes = [8, 8], strides = [1, 1]} : vector<32x16xf32> to vector<8x8xf32>
    %cst_361 = arith.constant dense<0.000000e+00> : vector<8x8xf32>
    %1233 = tpu.matmul %1231, %1232, %cst_361 {dimension_numbers = #tpu.dot_dimension_numbers<[1], [0], [0], [1], [0, 0, 1, 1], [], []>} : vector<8x8xf32>, vector<8x8xf32>, vector<8x8xf32> -> vector<8x8xf32>
    %1234 = vector.broadcast %1171 : vector<1x8xf32> to vector<8x8xf32>
    %1235 = arith.addf %1233, %1234 : vector<8x8xf32>
    %cst_362 = arith.constant dense<0xFF800000> : vector<8xf32>
    %1236 = vector.multi_reduction <maximumf>, %1235, %cst_362 [1] : vector<8x8xf32> to vector<8xf32>
    %1237 = vector.shape_cast %1236 : vector<8xf32> to vector<8x1xf32>
    %1238 = vector.broadcast %1237 : vector<8x1xf32> to vector<8x8xf32>
    %1239 = arith.subf %1235, %1238 : vector<8x8xf32>
    %1240 = math.exp %1239 : vector<8x8xf32>
    %cst_363 = arith.constant dense<0.000000e+00> : vector<8xf32>
    %1241 = vector.multi_reduction <add>, %1240, %cst_363 [1] : vector<8x8xf32> to vector<8xf32>
    %1242 = vector.shape_cast %1241 : vector<8xf32> to vector<8x1xf32>
    %1243 = tpu.reciprocal %1242 {approx = true} : vector<8x1xf32> -> vector<8x1xf32>
    %1244 = vector.broadcast %1243 : vector<8x1xf32> to vector<8x8xf32>
    %1245 = arith.mulf %1240, %1244 : vector<8x8xf32>
    %1246 = vector.extract_strided_slice %1169 {offsets = [0, 24], sizes = [8, 8], strides = [1, 1]} : vector<16x32xf32> to vector<8x8xf32>
    %cst_364 = arith.constant dense<0.000000e+00> : vector<8x8xf32>
    %1247 = tpu.matmul %1245, %1246, %cst_364 {dimension_numbers = #tpu.dot_dimension_numbers<[1], [0], [0], [1], [0, 0, 1, 1], [], []>} : vector<8x8xf32>, vector<8x8xf32>, vector<8x8xf32> -> vector<8x8xf32>
    %1248 = tpu.concatenate %1190, %1209, %1228, %1247 in 1 : vector<8x8xf32>, vector<8x8xf32>, vector<8x8xf32>, vector<8x8xf32> -> vector<8x32xf32>
    %1249 = vector.extract_strided_slice %1 {offsets = [1, 0], sizes = [1, 8], strides = [1, 1]} : vector<2x8xf32> to vector<1x8xf32>
    %1250 = vector.extract_strided_slice %1167 {offsets = [8, 0], sizes = [8, 8], strides = [1, 1]} : vector<16x32xf32> to vector<8x8xf32>
    %cst_365 = arith.constant 0.353553385 : f32
    %1251 = vector.broadcast %cst_365 : f32 to vector<8x8xf32>
    %1252 = arith.mulf %1250, %1251 : vector<8x8xf32>
    %1253 = vector.extract_strided_slice %1170 {offsets = [0, 8], sizes = [8, 8], strides = [1, 1]} : vector<32x16xf32> to vector<8x8xf32>
    %cst_366 = arith.constant dense<0.000000e+00> : vector<8x8xf32>
    %1254 = tpu.matmul %1252, %1253, %cst_366 {dimension_numbers = #tpu.dot_dimension_numbers<[1], [0], [0], [1], [0, 0, 1, 1], [], []>} : vector<8x8xf32>, vector<8x8xf32>, vector<8x8xf32> -> vector<8x8xf32>
    %1255 = vector.broadcast %1249 : vector<1x8xf32> to vector<8x8xf32>
    %1256 = arith.addf %1254, %1255 : vector<8x8xf32>
    %cst_367 = arith.constant dense<0xFF800000> : vector<8xf32>
    %1257 = vector.multi_reduction <maximumf>, %1256, %cst_367 [1] : vector<8x8xf32> to vector<8xf32>
    %1258 = vector.shape_cast %1257 : vector<8xf32> to vector<8x1xf32>
    %1259 = vector.broadcast %1258 : vector<8x1xf32> to vector<8x8xf32>
    %1260 = arith.subf %1256, %1259 : vector<8x8xf32>
    %1261 = math.exp %1260 : vector<8x8xf32>
    %cst_368 = arith.constant dense<0.000000e+00> : vector<8xf32>
    %1262 = vector.multi_reduction <add>, %1261, %cst_368 [1] : vector<8x8xf32> to vector<8xf32>
    %1263 = vector.shape_cast %1262 : vector<8xf32> to vector<8x1xf32>
    %1264 = tpu.reciprocal %1263 {approx = true} : vector<8x1xf32> -> vector<8x1xf32>
    %1265 = vector.broadcast %1264 : vector<8x1xf32> to vector<8x8xf32>
    %1266 = arith.mulf %1261, %1265 : vector<8x8xf32>
    %1267 = vector.extract_strided_slice %1169 {offsets = [8, 0], sizes = [8, 8], strides = [1, 1]} : vector<16x32xf32> to vector<8x8xf32>
    %cst_369 = arith.constant dense<0.000000e+00> : vector<8x8xf32>
    %1268 = tpu.matmul %1266, %1267, %cst_369 {dimension_numbers = #tpu.dot_dimension_numbers<[1], [0], [0], [1], [0, 0, 1, 1], [], []>} : vector<8x8xf32>, vector<8x8xf32>, vector<8x8xf32> -> vector<8x8xf32>
    %1269 = vector.extract_strided_slice %1167 {offsets = [8, 8], sizes = [8, 8], strides = [1, 1]} : vector<16x32xf32> to vector<8x8xf32>
    %cst_370 = arith.constant 0.353553385 : f32
    %1270 = vector.broadcast %cst_370 : f32 to vector<8x8xf32>
    %1271 = arith.mulf %1269, %1270 : vector<8x8xf32>
    %1272 = vector.extract_strided_slice %1170 {offsets = [8, 8], sizes = [8, 8], strides = [1, 1]} : vector<32x16xf32> to vector<8x8xf32>
    %cst_371 = arith.constant dense<0.000000e+00> : vector<8x8xf32>
    %1273 = tpu.matmul %1271, %1272, %cst_371 {dimension_numbers = #tpu.dot_dimension_numbers<[1], [0], [0], [1], [0, 0, 1, 1], [], []>} : vector<8x8xf32>, vector<8x8xf32>, vector<8x8xf32> -> vector<8x8xf32>
    %1274 = vector.broadcast %1249 : vector<1x8xf32> to vector<8x8xf32>
    %1275 = arith.addf %1273, %1274 : vector<8x8xf32>
    %cst_372 = arith.constant dense<0xFF800000> : vector<8xf32>
    %1276 = vector.multi_reduction <maximumf>, %1275, %cst_372 [1] : vector<8x8xf32> to vector<8xf32>
    %1277 = vector.shape_cast %1276 : vector<8xf32> to vector<8x1xf32>
    %1278 = vector.broadcast %1277 : vector<8x1xf32> to vector<8x8xf32>
    %1279 = arith.subf %1275, %1278 : vector<8x8xf32>
    %1280 = math.exp %1279 : vector<8x8xf32>
    %cst_373 = arith.constant dense<0.000000e+00> : vector<8xf32>
    %1281 = vector.multi_reduction <add>, %1280, %cst_373 [1] : vector<8x8xf32> to vector<8xf32>
    %1282 = vector.shape_cast %1281 : vector<8xf32> to vector<8x1xf32>
    %1283 = tpu.reciprocal %1282 {approx = true} : vector<8x1xf32> -> vector<8x1xf32>
    %1284 = vector.broadcast %1283 : vector<8x1xf32> to vector<8x8xf32>
    %1285 = arith.mulf %1280, %1284 : vector<8x8xf32>
    %1286 = vector.extract_strided_slice %1169 {offsets = [8, 8], sizes = [8, 8], strides = [1, 1]} : vector<16x32xf32> to vector<8x8xf32>
    %cst_374 = arith.constant dense<0.000000e+00> : vector<8x8xf32>
    %1287 = tpu.matmul %1285, %1286, %cst_374 {dimension_numbers = #tpu.dot_dimension_numbers<[1], [0], [0], [1], [0, 0, 1, 1], [], []>} : vector<8x8xf32>, vector<8x8xf32>, vector<8x8xf32> -> vector<8x8xf32>
    %1288 = vector.extract_strided_slice %1167 {offsets = [8, 16], sizes = [8, 8], strides = [1, 1]} : vector<16x32xf32> to vector<8x8xf32>
    %cst_375 = arith.constant 0.353553385 : f32
    %1289 = vector.broadcast %cst_375 : f32 to vector<8x8xf32>
    %1290 = arith.mulf %1288, %1289 : vector<8x8xf32>
    %1291 = vector.extract_strided_slice %1170 {offsets = [16, 8], sizes = [8, 8], strides = [1, 1]} : vector<32x16xf32> to vector<8x8xf32>
    %cst_376 = arith.constant dense<0.000000e+00> : vector<8x8xf32>
    %1292 = tpu.matmul %1290, %1291, %cst_376 {dimension_numbers = #tpu.dot_dimension_numbers<[1], [0], [0], [1], [0, 0, 1, 1], [], []>} : vector<8x8xf32>, vector<8x8xf32>, vector<8x8xf32> -> vector<8x8xf32>
    %1293 = vector.broadcast %1249 : vector<1x8xf32> to vector<8x8xf32>
    %1294 = arith.addf %1292, %1293 : vector<8x8xf32>
    %cst_377 = arith.constant dense<0xFF800000> : vector<8xf32>
    %1295 = vector.multi_reduction <maximumf>, %1294, %cst_377 [1] : vector<8x8xf32> to vector<8xf32>
    %1296 = vector.shape_cast %1295 : vector<8xf32> to vector<8x1xf32>
    %1297 = vector.broadcast %1296 : vector<8x1xf32> to vector<8x8xf32>
    %1298 = arith.subf %1294, %1297 : vector<8x8xf32>
    %1299 = math.exp %1298 : vector<8x8xf32>
    %cst_378 = arith.constant dense<0.000000e+00> : vector<8xf32>
    %1300 = vector.multi_reduction <add>, %1299, %cst_378 [1] : vector<8x8xf32> to vector<8xf32>
    %1301 = vector.shape_cast %1300 : vector<8xf32> to vector<8x1xf32>
    %1302 = tpu.reciprocal %1301 {approx = true} : vector<8x1xf32> -> vector<8x1xf32>
    %1303 = vector.broadcast %1302 : vector<8x1xf32> to vector<8x8xf32>
    %1304 = arith.mulf %1299, %1303 : vector<8x8xf32>
    %1305 = vector.extract_strided_slice %1169 {offsets = [8, 16], sizes = [8, 8], strides = [1, 1]} : vector<16x32xf32> to vector<8x8xf32>
    %cst_379 = arith.constant dense<0.000000e+00> : vector<8x8xf32>
    %1306 = tpu.matmul %1304, %1305, %cst_379 {dimension_numbers = #tpu.dot_dimension_numbers<[1], [0], [0], [1], [0, 0, 1, 1], [], []>} : vector<8x8xf32>, vector<8x8xf32>, vector<8x8xf32> -> vector<8x8xf32>
    %1307 = vector.extract_strided_slice %1167 {offsets = [8, 24], sizes = [8, 8], strides = [1, 1]} : vector<16x32xf32> to vector<8x8xf32>
    %cst_380 = arith.constant 0.353553385 : f32
    %1308 = vector.broadcast %cst_380 : f32 to vector<8x8xf32>
    %1309 = arith.mulf %1307, %1308 : vector<8x8xf32>
    %1310 = vector.extract_strided_slice %1170 {offsets = [24, 8], sizes = [8, 8], strides = [1, 1]} : vector<32x16xf32> to vector<8x8xf32>
    %cst_381 = arith.constant dense<0.000000e+00> : vector<8x8xf32>
    %1311 = tpu.matmul %1309, %1310, %cst_381 {dimension_numbers = #tpu.dot_dimension_numbers<[1], [0], [0], [1], [0, 0, 1, 1], [], []>} : vector<8x8xf32>, vector<8x8xf32>, vector<8x8xf32> -> vector<8x8xf32>
    %1312 = vector.broadcast %1249 : vector<1x8xf32> to vector<8x8xf32>
    %1313 = arith.addf %1311, %1312 : vector<8x8xf32>
    %cst_382 = arith.constant dense<0xFF800000> : vector<8xf32>
    %1314 = vector.multi_reduction <maximumf>, %1313, %cst_382 [1] : vector<8x8xf32> to vector<8xf32>
    %1315 = vector.shape_cast %1314 : vector<8xf32> to vector<8x1xf32>
    %1316 = vector.broadcast %1315 : vector<8x1xf32> to vector<8x8xf32>
    %1317 = arith.subf %1313, %1316 : vector<8x8xf32>
    %1318 = math.exp %1317 : vector<8x8xf32>
    %cst_383 = arith.constant dense<0.000000e+00> : vector<8xf32>
    %1319 = vector.multi_reduction <add>, %1318, %cst_383 [1] : vector<8x8xf32> to vector<8xf32>
    %1320 = vector.shape_cast %1319 : vector<8xf32> to vector<8x1xf32>
    %1321 = tpu.reciprocal %1320 {approx = true} : vector<8x1xf32> -> vector<8x1xf32>
    %1322 = vector.broadcast %1321 : vector<8x1xf32> to vector<8x8xf32>
    %1323 = arith.mulf %1318, %1322 : vector<8x8xf32>
    %1324 = vector.extract_strided_slice %1169 {offsets = [8, 24], sizes = [8, 8], strides = [1, 1]} : vector<16x32xf32> to vector<8x8xf32>
    %cst_384 = arith.constant dense<0.000000e+00> : vector<8x8xf32>
    %1325 = tpu.matmul %1323, %1324, %cst_384 {dimension_numbers = #tpu.dot_dimension_numbers<[1], [0], [0], [1], [0, 0, 1, 1], [], []>} : vector<8x8xf32>, vector<8x8xf32>, vector<8x8xf32> -> vector<8x8xf32>
    %1326 = tpu.concatenate %1268, %1287, %1306, %1325 in 1 : vector<8x8xf32>, vector<8x8xf32>, vector<8x8xf32>, vector<8x8xf32> -> vector<8x32xf32>
    %1327 = tpu.concatenate %1248, %1326 in 0 : vector<8x32xf32>, vector<8x32xf32> -> vector<16x32xf32>
    %c560 = arith.constant 560 : index
    %c0_385 = arith.constant 0 : index
    %1328 = vector.load %arg3[%c560, %c0_385] : memref<760x32xf32, #tpu.memory_space<vmem>>, vector<32x32xf32>
    %cst_386 = arith.constant dense<0.000000e+00> : vector<16x32xf32>
    %1329 = tpu.matmul %1327, %1328, %cst_386 {dimension_numbers = #tpu.dot_dimension_numbers<[1], [0], [0], [1], [0, 0, 1, 1], [], []>} : vector<16x32xf32>, vector<32x32xf32>, vector<16x32xf32> -> vector<16x32xf32>
    %c592 = arith.constant 592 : index
    %c0_387 = arith.constant 0 : index
    %1330 = vector.load %arg3[%c592, %c0_387] : memref<760x32xf32, #tpu.memory_space<vmem>>, vector<1x32xf32>
    %1331 = vector.broadcast %1330 : vector<1x32xf32> to vector<16x32xf32>
    %1332 = arith.addf %1329, %1331 : vector<16x32xf32>
    %1333 = arith.addf %1332, %1161 : vector<16x32xf32>
    %cst_388 = arith.constant dense<0.000000e+00> : vector<16xf32>
    %1334 = vector.multi_reduction <add>, %1333, %cst_388 [1] : vector<16x32xf32> to vector<16xf32>
    %1335 = vector.shape_cast %1334 : vector<16xf32> to vector<16x1xf32>
    %cst_389 = arith.constant 3.200000e+01 : f32
    %1336 = vector.broadcast %cst_389 : f32 to vector<16x1xf32>
    %1337 = arith.divf %1335, %1336 : vector<16x1xf32>
    %1338 = vector.broadcast %1337 : vector<16x1xf32> to vector<16x32xf32>
    %1339 = arith.subf %1333, %1338 : vector<16x32xf32>
    %1340 = arith.mulf %1339, %1339 : vector<16x32xf32>
    %cst_390 = arith.constant dense<0.000000e+00> : vector<16xf32>
    %1341 = vector.multi_reduction <add>, %1340, %cst_390 [1] : vector<16x32xf32> to vector<16xf32>
    %1342 = vector.shape_cast %1341 : vector<16xf32> to vector<16x1xf32>
    %cst_391 = arith.constant 3.200000e+01 : f32
    %1343 = vector.broadcast %cst_391 : f32 to vector<16x1xf32>
    %1344 = arith.divf %1342, %1343 : vector<16x1xf32>
    %1345 = vector.broadcast %1337 : vector<16x1xf32> to vector<16x32xf32>
    %1346 = arith.subf %1333, %1345 : vector<16x32xf32>
    %cst_392 = arith.constant 9.99999996E-13 : f32
    %1347 = vector.broadcast %cst_392 : f32 to vector<16x1xf32>
    %1348 = arith.addf %1344, %1347 : vector<16x1xf32>
    %1349 = math.rsqrt %1348 : vector<16x1xf32>
    %1350 = vector.broadcast %1349 : vector<16x1xf32> to vector<16x32xf32>
    %1351 = arith.mulf %1346, %1350 : vector<16x32xf32>
    %c600 = arith.constant 600 : index
    %c0_393 = arith.constant 0 : index
    %1352 = vector.load %arg3[%c600, %c0_393] : memref<760x32xf32, #tpu.memory_space<vmem>>, vector<1x32xf32>
    %1353 = vector.broadcast %1352 : vector<1x32xf32> to vector<16x32xf32>
    %1354 = arith.mulf %1351, %1353 : vector<16x32xf32>
    %c608 = arith.constant 608 : index
    %c0_394 = arith.constant 0 : index
    %1355 = vector.load %arg3[%c608, %c0_394] : memref<760x32xf32, #tpu.memory_space<vmem>>, vector<1x32xf32>
    %1356 = vector.broadcast %1355 : vector<1x32xf32> to vector<16x32xf32>
    %1357 = arith.addf %1354, %1356 : vector<16x32xf32>
    %1358 = vector.extract_strided_slice %1160 {offsets = [16, 0], sizes = [16, 32], strides = [1, 1]} : vector<32x32xf32> to vector<16x32xf32>
    %c200_395 = arith.constant 200 : index
    %c0_396 = arith.constant 0 : index
    %1359 = vector.load %arg5[%c200_395, %c0_396] : memref<240x96xf32, #tpu.memory_space<vmem>>, vector<32x96xf32>
    %cst_397 = arith.constant dense<0.000000e+00> : vector<16x96xf32>
    %1360 = tpu.matmul %1358, %1359, %cst_397 {dimension_numbers = #tpu.dot_dimension_numbers<[1], [0], [0], [1], [0, 0, 1, 1], [], []>} : vector<16x32xf32>, vector<32x96xf32>, vector<16x96xf32> -> vector<16x96xf32>
    %c232 = arith.constant 232 : index
    %c0_398 = arith.constant 0 : index
    %1361 = vector.load %arg5[%c232, %c0_398] : memref<240x96xf32, #tpu.memory_space<vmem>>, vector<1x96xf32>
    %1362 = vector.broadcast %1361 : vector<1x96xf32> to vector<16x96xf32>
    %1363 = arith.addf %1360, %1362 : vector<16x96xf32>
    %1364 = vector.extract_strided_slice %1363 {offsets = [0, 0], sizes = [16, 32], strides = [1, 1]} : vector<16x96xf32> to vector<16x32xf32>
    %1365 = vector.extract_strided_slice %1363 {offsets = [0, 32], sizes = [16, 32], strides = [1, 1]} : vector<16x96xf32> to vector<16x32xf32>
    %1366 = vector.extract_strided_slice %1363 {offsets = [0, 64], sizes = [16, 32], strides = [1, 1]} : vector<16x96xf32> to vector<16x32xf32>
    %1367 = tpu.transpose %1365, [1, 0] : vector<16x32xf32> -> vector<32x16xf32>
    %1368 = vector.extract_strided_slice %2 {offsets = [0, 0], sizes = [1, 8], strides = [1, 1]} : vector<2x8xf32> to vector<1x8xf32>
    %1369 = vector.extract_strided_slice %1364 {offsets = [0, 0], sizes = [8, 8], strides = [1, 1]} : vector<16x32xf32> to vector<8x8xf32>
    %cst_399 = arith.constant 0.353553385 : f32
    %1370 = vector.broadcast %cst_399 : f32 to vector<8x8xf32>
    %1371 = arith.mulf %1369, %1370 : vector<8x8xf32>
    %1372 = vector.extract_strided_slice %1367 {offsets = [0, 0], sizes = [8, 8], strides = [1, 1]} : vector<32x16xf32> to vector<8x8xf32>
    %cst_400 = arith.constant dense<0.000000e+00> : vector<8x8xf32>
    %1373 = tpu.matmul %1371, %1372, %cst_400 {dimension_numbers = #tpu.dot_dimension_numbers<[1], [0], [0], [1], [0, 0, 1, 1], [], []>} : vector<8x8xf32>, vector<8x8xf32>, vector<8x8xf32> -> vector<8x8xf32>
    %1374 = vector.broadcast %1368 : vector<1x8xf32> to vector<8x8xf32>
    %1375 = arith.addf %1373, %1374 : vector<8x8xf32>
    %cst_401 = arith.constant dense<0xFF800000> : vector<8xf32>
    %1376 = vector.multi_reduction <maximumf>, %1375, %cst_401 [1] : vector<8x8xf32> to vector<8xf32>
    %1377 = vector.shape_cast %1376 : vector<8xf32> to vector<8x1xf32>
    %1378 = vector.broadcast %1377 : vector<8x1xf32> to vector<8x8xf32>
    %1379 = arith.subf %1375, %1378 : vector<8x8xf32>
    %1380 = math.exp %1379 : vector<8x8xf32>
    %cst_402 = arith.constant dense<0.000000e+00> : vector<8xf32>
    %1381 = vector.multi_reduction <add>, %1380, %cst_402 [1] : vector<8x8xf32> to vector<8xf32>
    %1382 = vector.shape_cast %1381 : vector<8xf32> to vector<8x1xf32>
    %1383 = tpu.reciprocal %1382 {approx = true} : vector<8x1xf32> -> vector<8x1xf32>
    %1384 = vector.broadcast %1383 : vector<8x1xf32> to vector<8x8xf32>
    %1385 = arith.mulf %1380, %1384 : vector<8x8xf32>
    %1386 = vector.extract_strided_slice %1366 {offsets = [0, 0], sizes = [8, 8], strides = [1, 1]} : vector<16x32xf32> to vector<8x8xf32>
    %cst_403 = arith.constant dense<0.000000e+00> : vector<8x8xf32>
    %1387 = tpu.matmul %1385, %1386, %cst_403 {dimension_numbers = #tpu.dot_dimension_numbers<[1], [0], [0], [1], [0, 0, 1, 1], [], []>} : vector<8x8xf32>, vector<8x8xf32>, vector<8x8xf32> -> vector<8x8xf32>
    %1388 = vector.extract_strided_slice %1364 {offsets = [0, 8], sizes = [8, 8], strides = [1, 1]} : vector<16x32xf32> to vector<8x8xf32>
    %cst_404 = arith.constant 0.353553385 : f32
    %1389 = vector.broadcast %cst_404 : f32 to vector<8x8xf32>
    %1390 = arith.mulf %1388, %1389 : vector<8x8xf32>
    %1391 = vector.extract_strided_slice %1367 {offsets = [8, 0], sizes = [8, 8], strides = [1, 1]} : vector<32x16xf32> to vector<8x8xf32>
    %cst_405 = arith.constant dense<0.000000e+00> : vector<8x8xf32>
    %1392 = tpu.matmul %1390, %1391, %cst_405 {dimension_numbers = #tpu.dot_dimension_numbers<[1], [0], [0], [1], [0, 0, 1, 1], [], []>} : vector<8x8xf32>, vector<8x8xf32>, vector<8x8xf32> -> vector<8x8xf32>
    %1393 = vector.broadcast %1368 : vector<1x8xf32> to vector<8x8xf32>
    %1394 = arith.addf %1392, %1393 : vector<8x8xf32>
    %cst_406 = arith.constant dense<0xFF800000> : vector<8xf32>
    %1395 = vector.multi_reduction <maximumf>, %1394, %cst_406 [1] : vector<8x8xf32> to vector<8xf32>
    %1396 = vector.shape_cast %1395 : vector<8xf32> to vector<8x1xf32>
    %1397 = vector.broadcast %1396 : vector<8x1xf32> to vector<8x8xf32>
    %1398 = arith.subf %1394, %1397 : vector<8x8xf32>
    %1399 = math.exp %1398 : vector<8x8xf32>
    %cst_407 = arith.constant dense<0.000000e+00> : vector<8xf32>
    %1400 = vector.multi_reduction <add>, %1399, %cst_407 [1] : vector<8x8xf32> to vector<8xf32>
    %1401 = vector.shape_cast %1400 : vector<8xf32> to vector<8x1xf32>
    %1402 = tpu.reciprocal %1401 {approx = true} : vector<8x1xf32> -> vector<8x1xf32>
    %1403 = vector.broadcast %1402 : vector<8x1xf32> to vector<8x8xf32>
    %1404 = arith.mulf %1399, %1403 : vector<8x8xf32>
    %1405 = vector.extract_strided_slice %1366 {offsets = [0, 8], sizes = [8, 8], strides = [1, 1]} : vector<16x32xf32> to vector<8x8xf32>
    %cst_408 = arith.constant dense<0.000000e+00> : vector<8x8xf32>
    %1406 = tpu.matmul %1404, %1405, %cst_408 {dimension_numbers = #tpu.dot_dimension_numbers<[1], [0], [0], [1], [0, 0, 1, 1], [], []>} : vector<8x8xf32>, vector<8x8xf32>, vector<8x8xf32> -> vector<8x8xf32>
    %1407 = vector.extract_strided_slice %1364 {offsets = [0, 16], sizes = [8, 8], strides = [1, 1]} : vector<16x32xf32> to vector<8x8xf32>
    %cst_409 = arith.constant 0.353553385 : f32
    %1408 = vector.broadcast %cst_409 : f32 to vector<8x8xf32>
    %1409 = arith.mulf %1407, %1408 : vector<8x8xf32>
    %1410 = vector.extract_strided_slice %1367 {offsets = [16, 0], sizes = [8, 8], strides = [1, 1]} : vector<32x16xf32> to vector<8x8xf32>
    %cst_410 = arith.constant dense<0.000000e+00> : vector<8x8xf32>
    %1411 = tpu.matmul %1409, %1410, %cst_410 {dimension_numbers = #tpu.dot_dimension_numbers<[1], [0], [0], [1], [0, 0, 1, 1], [], []>} : vector<8x8xf32>, vector<8x8xf32>, vector<8x8xf32> -> vector<8x8xf32>
    %1412 = vector.broadcast %1368 : vector<1x8xf32> to vector<8x8xf32>
    %1413 = arith.addf %1411, %1412 : vector<8x8xf32>
    %cst_411 = arith.constant dense<0xFF800000> : vector<8xf32>
    %1414 = vector.multi_reduction <maximumf>, %1413, %cst_411 [1] : vector<8x8xf32> to vector<8xf32>
    %1415 = vector.shape_cast %1414 : vector<8xf32> to vector<8x1xf32>
    %1416 = vector.broadcast %1415 : vector<8x1xf32> to vector<8x8xf32>
    %1417 = arith.subf %1413, %1416 : vector<8x8xf32>
    %1418 = math.exp %1417 : vector<8x8xf32>
    %cst_412 = arith.constant dense<0.000000e+00> : vector<8xf32>
    %1419 = vector.multi_reduction <add>, %1418, %cst_412 [1] : vector<8x8xf32> to vector<8xf32>
    %1420 = vector.shape_cast %1419 : vector<8xf32> to vector<8x1xf32>
    %1421 = tpu.reciprocal %1420 {approx = true} : vector<8x1xf32> -> vector<8x1xf32>
    %1422 = vector.broadcast %1421 : vector<8x1xf32> to vector<8x8xf32>
    %1423 = arith.mulf %1418, %1422 : vector<8x8xf32>
    %1424 = vector.extract_strided_slice %1366 {offsets = [0, 16], sizes = [8, 8], strides = [1, 1]} : vector<16x32xf32> to vector<8x8xf32>
    %cst_413 = arith.constant dense<0.000000e+00> : vector<8x8xf32>
    %1425 = tpu.matmul %1423, %1424, %cst_413 {dimension_numbers = #tpu.dot_dimension_numbers<[1], [0], [0], [1], [0, 0, 1, 1], [], []>} : vector<8x8xf32>, vector<8x8xf32>, vector<8x8xf32> -> vector<8x8xf32>
    %1426 = vector.extract_strided_slice %1364 {offsets = [0, 24], sizes = [8, 8], strides = [1, 1]} : vector<16x32xf32> to vector<8x8xf32>
    %cst_414 = arith.constant 0.353553385 : f32
    %1427 = vector.broadcast %cst_414 : f32 to vector<8x8xf32>
    %1428 = arith.mulf %1426, %1427 : vector<8x8xf32>
    %1429 = vector.extract_strided_slice %1367 {offsets = [24, 0], sizes = [8, 8], strides = [1, 1]} : vector<32x16xf32> to vector<8x8xf32>
    %cst_415 = arith.constant dense<0.000000e+00> : vector<8x8xf32>
    %1430 = tpu.matmul %1428, %1429, %cst_415 {dimension_numbers = #tpu.dot_dimension_numbers<[1], [0], [0], [1], [0, 0, 1, 1], [], []>} : vector<8x8xf32>, vector<8x8xf32>, vector<8x8xf32> -> vector<8x8xf32>
    %1431 = vector.broadcast %1368 : vector<1x8xf32> to vector<8x8xf32>
    %1432 = arith.addf %1430, %1431 : vector<8x8xf32>
    %cst_416 = arith.constant dense<0xFF800000> : vector<8xf32>
    %1433 = vector.multi_reduction <maximumf>, %1432, %cst_416 [1] : vector<8x8xf32> to vector<8xf32>
    %1434 = vector.shape_cast %1433 : vector<8xf32> to vector<8x1xf32>
    %1435 = vector.broadcast %1434 : vector<8x1xf32> to vector<8x8xf32>
    %1436 = arith.subf %1432, %1435 : vector<8x8xf32>
    %1437 = math.exp %1436 : vector<8x8xf32>
    %cst_417 = arith.constant dense<0.000000e+00> : vector<8xf32>
    %1438 = vector.multi_reduction <add>, %1437, %cst_417 [1] : vector<8x8xf32> to vector<8xf32>
    %1439 = vector.shape_cast %1438 : vector<8xf32> to vector<8x1xf32>
    %1440 = tpu.reciprocal %1439 {approx = true} : vector<8x1xf32> -> vector<8x1xf32>
    %1441 = vector.broadcast %1440 : vector<8x1xf32> to vector<8x8xf32>
    %1442 = arith.mulf %1437, %1441 : vector<8x8xf32>
    %1443 = vector.extract_strided_slice %1366 {offsets = [0, 24], sizes = [8, 8], strides = [1, 1]} : vector<16x32xf32> to vector<8x8xf32>
    %cst_418 = arith.constant dense<0.000000e+00> : vector<8x8xf32>
    %1444 = tpu.matmul %1442, %1443, %cst_418 {dimension_numbers = #tpu.dot_dimension_numbers<[1], [0], [0], [1], [0, 0, 1, 1], [], []>} : vector<8x8xf32>, vector<8x8xf32>, vector<8x8xf32> -> vector<8x8xf32>
    %1445 = tpu.concatenate %1387, %1406, %1425, %1444 in 1 : vector<8x8xf32>, vector<8x8xf32>, vector<8x8xf32>, vector<8x8xf32> -> vector<8x32xf32>
    %1446 = vector.extract_strided_slice %2 {offsets = [1, 0], sizes = [1, 8], strides = [1, 1]} : vector<2x8xf32> to vector<1x8xf32>
    %1447 = vector.extract_strided_slice %1364 {offsets = [8, 0], sizes = [8, 8], strides = [1, 1]} : vector<16x32xf32> to vector<8x8xf32>
    %cst_419 = arith.constant 0.353553385 : f32
    %1448 = vector.broadcast %cst_419 : f32 to vector<8x8xf32>
    %1449 = arith.mulf %1447, %1448 : vector<8x8xf32>
    %1450 = vector.extract_strided_slice %1367 {offsets = [0, 8], sizes = [8, 8], strides = [1, 1]} : vector<32x16xf32> to vector<8x8xf32>
    %cst_420 = arith.constant dense<0.000000e+00> : vector<8x8xf32>
    %1451 = tpu.matmul %1449, %1450, %cst_420 {dimension_numbers = #tpu.dot_dimension_numbers<[1], [0], [0], [1], [0, 0, 1, 1], [], []>} : vector<8x8xf32>, vector<8x8xf32>, vector<8x8xf32> -> vector<8x8xf32>
    %1452 = vector.broadcast %1446 : vector<1x8xf32> to vector<8x8xf32>
    %1453 = arith.addf %1451, %1452 : vector<8x8xf32>
    %cst_421 = arith.constant dense<0xFF800000> : vector<8xf32>
    %1454 = vector.multi_reduction <maximumf>, %1453, %cst_421 [1] : vector<8x8xf32> to vector<8xf32>
    %1455 = vector.shape_cast %1454 : vector<8xf32> to vector<8x1xf32>
    %1456 = vector.broadcast %1455 : vector<8x1xf32> to vector<8x8xf32>
    %1457 = arith.subf %1453, %1456 : vector<8x8xf32>
    %1458 = math.exp %1457 : vector<8x8xf32>
    %cst_422 = arith.constant dense<0.000000e+00> : vector<8xf32>
    %1459 = vector.multi_reduction <add>, %1458, %cst_422 [1] : vector<8x8xf32> to vector<8xf32>
    %1460 = vector.shape_cast %1459 : vector<8xf32> to vector<8x1xf32>
    %1461 = tpu.reciprocal %1460 {approx = true} : vector<8x1xf32> -> vector<8x1xf32>
    %1462 = vector.broadcast %1461 : vector<8x1xf32> to vector<8x8xf32>
    %1463 = arith.mulf %1458, %1462 : vector<8x8xf32>
    %1464 = vector.extract_strided_slice %1366 {offsets = [8, 0], sizes = [8, 8], strides = [1, 1]} : vector<16x32xf32> to vector<8x8xf32>
    %cst_423 = arith.constant dense<0.000000e+00> : vector<8x8xf32>
    %1465 = tpu.matmul %1463, %1464, %cst_423 {dimension_numbers = #tpu.dot_dimension_numbers<[1], [0], [0], [1], [0, 0, 1, 1], [], []>} : vector<8x8xf32>, vector<8x8xf32>, vector<8x8xf32> -> vector<8x8xf32>
    %1466 = vector.extract_strided_slice %1364 {offsets = [8, 8], sizes = [8, 8], strides = [1, 1]} : vector<16x32xf32> to vector<8x8xf32>
    %cst_424 = arith.constant 0.353553385 : f32
    %1467 = vector.broadcast %cst_424 : f32 to vector<8x8xf32>
    %1468 = arith.mulf %1466, %1467 : vector<8x8xf32>
    %1469 = vector.extract_strided_slice %1367 {offsets = [8, 8], sizes = [8, 8], strides = [1, 1]} : vector<32x16xf32> to vector<8x8xf32>
    %cst_425 = arith.constant dense<0.000000e+00> : vector<8x8xf32>
    %1470 = tpu.matmul %1468, %1469, %cst_425 {dimension_numbers = #tpu.dot_dimension_numbers<[1], [0], [0], [1], [0, 0, 1, 1], [], []>} : vector<8x8xf32>, vector<8x8xf32>, vector<8x8xf32> -> vector<8x8xf32>
    %1471 = vector.broadcast %1446 : vector<1x8xf32> to vector<8x8xf32>
    %1472 = arith.addf %1470, %1471 : vector<8x8xf32>
    %cst_426 = arith.constant dense<0xFF800000> : vector<8xf32>
    %1473 = vector.multi_reduction <maximumf>, %1472, %cst_426 [1] : vector<8x8xf32> to vector<8xf32>
    %1474 = vector.shape_cast %1473 : vector<8xf32> to vector<8x1xf32>
    %1475 = vector.broadcast %1474 : vector<8x1xf32> to vector<8x8xf32>
    %1476 = arith.subf %1472, %1475 : vector<8x8xf32>
    %1477 = math.exp %1476 : vector<8x8xf32>
    %cst_427 = arith.constant dense<0.000000e+00> : vector<8xf32>
    %1478 = vector.multi_reduction <add>, %1477, %cst_427 [1] : vector<8x8xf32> to vector<8xf32>
    %1479 = vector.shape_cast %1478 : vector<8xf32> to vector<8x1xf32>
    %1480 = tpu.reciprocal %1479 {approx = true} : vector<8x1xf32> -> vector<8x1xf32>
    %1481 = vector.broadcast %1480 : vector<8x1xf32> to vector<8x8xf32>
    %1482 = arith.mulf %1477, %1481 : vector<8x8xf32>
    %1483 = vector.extract_strided_slice %1366 {offsets = [8, 8], sizes = [8, 8], strides = [1, 1]} : vector<16x32xf32> to vector<8x8xf32>
    %cst_428 = arith.constant dense<0.000000e+00> : vector<8x8xf32>
    %1484 = tpu.matmul %1482, %1483, %cst_428 {dimension_numbers = #tpu.dot_dimension_numbers<[1], [0], [0], [1], [0, 0, 1, 1], [], []>} : vector<8x8xf32>, vector<8x8xf32>, vector<8x8xf32> -> vector<8x8xf32>
    %1485 = vector.extract_strided_slice %1364 {offsets = [8, 16], sizes = [8, 8], strides = [1, 1]} : vector<16x32xf32> to vector<8x8xf32>
    %cst_429 = arith.constant 0.353553385 : f32
    %1486 = vector.broadcast %cst_429 : f32 to vector<8x8xf32>
    %1487 = arith.mulf %1485, %1486 : vector<8x8xf32>
    %1488 = vector.extract_strided_slice %1367 {offsets = [16, 8], sizes = [8, 8], strides = [1, 1]} : vector<32x16xf32> to vector<8x8xf32>
    %cst_430 = arith.constant dense<0.000000e+00> : vector<8x8xf32>
    %1489 = tpu.matmul %1487, %1488, %cst_430 {dimension_numbers = #tpu.dot_dimension_numbers<[1], [0], [0], [1], [0, 0, 1, 1], [], []>} : vector<8x8xf32>, vector<8x8xf32>, vector<8x8xf32> -> vector<8x8xf32>
    %1490 = vector.broadcast %1446 : vector<1x8xf32> to vector<8x8xf32>
    %1491 = arith.addf %1489, %1490 : vector<8x8xf32>
    %cst_431 = arith.constant dense<0xFF800000> : vector<8xf32>
    %1492 = vector.multi_reduction <maximumf>, %1491, %cst_431 [1] : vector<8x8xf32> to vector<8xf32>
    %1493 = vector.shape_cast %1492 : vector<8xf32> to vector<8x1xf32>
    %1494 = vector.broadcast %1493 : vector<8x1xf32> to vector<8x8xf32>
    %1495 = arith.subf %1491, %1494 : vector<8x8xf32>
    %1496 = math.exp %1495 : vector<8x8xf32>
    %cst_432 = arith.constant dense<0.000000e+00> : vector<8xf32>
    %1497 = vector.multi_reduction <add>, %1496, %cst_432 [1] : vector<8x8xf32> to vector<8xf32>
    %1498 = vector.shape_cast %1497 : vector<8xf32> to vector<8x1xf32>
    %1499 = tpu.reciprocal %1498 {approx = true} : vector<8x1xf32> -> vector<8x1xf32>
    %1500 = vector.broadcast %1499 : vector<8x1xf32> to vector<8x8xf32>
    %1501 = arith.mulf %1496, %1500 : vector<8x8xf32>
    %1502 = vector.extract_strided_slice %1366 {offsets = [8, 16], sizes = [8, 8], strides = [1, 1]} : vector<16x32xf32> to vector<8x8xf32>
    %cst_433 = arith.constant dense<0.000000e+00> : vector<8x8xf32>
    %1503 = tpu.matmul %1501, %1502, %cst_433 {dimension_numbers = #tpu.dot_dimension_numbers<[1], [0], [0], [1], [0, 0, 1, 1], [], []>} : vector<8x8xf32>, vector<8x8xf32>, vector<8x8xf32> -> vector<8x8xf32>
    %1504 = vector.extract_strided_slice %1364 {offsets = [8, 24], sizes = [8, 8], strides = [1, 1]} : vector<16x32xf32> to vector<8x8xf32>
    %cst_434 = arith.constant 0.353553385 : f32
    %1505 = vector.broadcast %cst_434 : f32 to vector<8x8xf32>
    %1506 = arith.mulf %1504, %1505 : vector<8x8xf32>
    %1507 = vector.extract_strided_slice %1367 {offsets = [24, 8], sizes = [8, 8], strides = [1, 1]} : vector<32x16xf32> to vector<8x8xf32>
    %cst_435 = arith.constant dense<0.000000e+00> : vector<8x8xf32>
    %1508 = tpu.matmul %1506, %1507, %cst_435 {dimension_numbers = #tpu.dot_dimension_numbers<[1], [0], [0], [1], [0, 0, 1, 1], [], []>} : vector<8x8xf32>, vector<8x8xf32>, vector<8x8xf32> -> vector<8x8xf32>
    %1509 = vector.broadcast %1446 : vector<1x8xf32> to vector<8x8xf32>
    %1510 = arith.addf %1508, %1509 : vector<8x8xf32>
    %cst_436 = arith.constant dense<0xFF800000> : vector<8xf32>
    %1511 = vector.multi_reduction <maximumf>, %1510, %cst_436 [1] : vector<8x8xf32> to vector<8xf32>
    %1512 = vector.shape_cast %1511 : vector<8xf32> to vector<8x1xf32>
    %1513 = vector.broadcast %1512 : vector<8x1xf32> to vector<8x8xf32>
    %1514 = arith.subf %1510, %1513 : vector<8x8xf32>
    %1515 = math.exp %1514 : vector<8x8xf32>
    %cst_437 = arith.constant dense<0.000000e+00> : vector<8xf32>
    %1516 = vector.multi_reduction <add>, %1515, %cst_437 [1] : vector<8x8xf32> to vector<8xf32>
    %1517 = vector.shape_cast %1516 : vector<8xf32> to vector<8x1xf32>
    %1518 = tpu.reciprocal %1517 {approx = true} : vector<8x1xf32> -> vector<8x1xf32>
    %1519 = vector.broadcast %1518 : vector<8x1xf32> to vector<8x8xf32>
    %1520 = arith.mulf %1515, %1519 : vector<8x8xf32>
    %1521 = vector.extract_strided_slice %1366 {offsets = [8, 24], sizes = [8, 8], strides = [1, 1]} : vector<16x32xf32> to vector<8x8xf32>
    %cst_438 = arith.constant dense<0.000000e+00> : vector<8x8xf32>
    %1522 = tpu.matmul %1520, %1521, %cst_438 {dimension_numbers = #tpu.dot_dimension_numbers<[1], [0], [0], [1], [0, 0, 1, 1], [], []>} : vector<8x8xf32>, vector<8x8xf32>, vector<8x8xf32> -> vector<8x8xf32>
    %1523 = tpu.concatenate %1465, %1484, %1503, %1522 in 1 : vector<8x8xf32>, vector<8x8xf32>, vector<8x8xf32>, vector<8x8xf32> -> vector<8x32xf32>
    %1524 = tpu.concatenate %1445, %1523 in 0 : vector<8x32xf32>, vector<8x32xf32> -> vector<16x32xf32>
    %c616 = arith.constant 616 : index
    %c0_439 = arith.constant 0 : index
    %1525 = vector.load %arg3[%c616, %c0_439] : memref<760x32xf32, #tpu.memory_space<vmem>>, vector<32x32xf32>
    %cst_440 = arith.constant dense<0.000000e+00> : vector<16x32xf32>
    %1526 = tpu.matmul %1524, %1525, %cst_440 {dimension_numbers = #tpu.dot_dimension_numbers<[1], [0], [0], [1], [0, 0, 1, 1], [], []>} : vector<16x32xf32>, vector<32x32xf32>, vector<16x32xf32> -> vector<16x32xf32>
    %c648 = arith.constant 648 : index
    %c0_441 = arith.constant 0 : index
    %1527 = vector.load %arg3[%c648, %c0_441] : memref<760x32xf32, #tpu.memory_space<vmem>>, vector<1x32xf32>
    %1528 = vector.broadcast %1527 : vector<1x32xf32> to vector<16x32xf32>
    %1529 = arith.addf %1526, %1528 : vector<16x32xf32>
    %1530 = arith.addf %1529, %1358 : vector<16x32xf32>
    %cst_442 = arith.constant dense<0.000000e+00> : vector<16xf32>
    %1531 = vector.multi_reduction <add>, %1530, %cst_442 [1] : vector<16x32xf32> to vector<16xf32>
    %1532 = vector.shape_cast %1531 : vector<16xf32> to vector<16x1xf32>
    %cst_443 = arith.constant 3.200000e+01 : f32
    %1533 = vector.broadcast %cst_443 : f32 to vector<16x1xf32>
    %1534 = arith.divf %1532, %1533 : vector<16x1xf32>
    %1535 = vector.broadcast %1534 : vector<16x1xf32> to vector<16x32xf32>
    %1536 = arith.subf %1530, %1535 : vector<16x32xf32>
    %1537 = arith.mulf %1536, %1536 : vector<16x32xf32>
    %cst_444 = arith.constant dense<0.000000e+00> : vector<16xf32>
    %1538 = vector.multi_reduction <add>, %1537, %cst_444 [1] : vector<16x32xf32> to vector<16xf32>
    %1539 = vector.shape_cast %1538 : vector<16xf32> to vector<16x1xf32>
    %cst_445 = arith.constant 3.200000e+01 : f32
    %1540 = vector.broadcast %cst_445 : f32 to vector<16x1xf32>
    %1541 = arith.divf %1539, %1540 : vector<16x1xf32>
    %1542 = vector.broadcast %1534 : vector<16x1xf32> to vector<16x32xf32>
    %1543 = arith.subf %1530, %1542 : vector<16x32xf32>
    %cst_446 = arith.constant 9.99999996E-13 : f32
    %1544 = vector.broadcast %cst_446 : f32 to vector<16x1xf32>
    %1545 = arith.addf %1541, %1544 : vector<16x1xf32>
    %1546 = math.rsqrt %1545 : vector<16x1xf32>
    %1547 = vector.broadcast %1546 : vector<16x1xf32> to vector<16x32xf32>
    %1548 = arith.mulf %1543, %1547 : vector<16x32xf32>
    %c656 = arith.constant 656 : index
    %c0_447 = arith.constant 0 : index
    %1549 = vector.load %arg3[%c656, %c0_447] : memref<760x32xf32, #tpu.memory_space<vmem>>, vector<1x32xf32>
    %1550 = vector.broadcast %1549 : vector<1x32xf32> to vector<16x32xf32>
    %1551 = arith.mulf %1548, %1550 : vector<16x32xf32>
    %c664 = arith.constant 664 : index
    %c0_448 = arith.constant 0 : index
    %1552 = vector.load %arg3[%c664, %c0_448] : memref<760x32xf32, #tpu.memory_space<vmem>>, vector<1x32xf32>
    %1553 = vector.broadcast %1552 : vector<1x32xf32> to vector<16x32xf32>
    %1554 = arith.addf %1551, %1553 : vector<16x32xf32>
    %1555 = tpu.concatenate %1357, %1554 in 0 : vector<16x32xf32>, vector<16x32xf32> -> vector<32x32xf32>
    %1556 = vector.extract_strided_slice %1555 {offsets = [0, 0], sizes = [16, 32], strides = [1, 1]} : vector<32x32xf32> to vector<16x32xf32>
    %c120_449 = arith.constant 120 : index
    %c0_450 = arith.constant 0 : index
    %1557 = vector.load %arg4[%c120_449, %c0_450] : memref<200x64xf32, #tpu.memory_space<vmem>>, vector<32x64xf32>
    %cst_451 = arith.constant dense<0.000000e+00> : vector<16x64xf32>
    %1558 = tpu.matmul %1556, %1557, %cst_451 {dimension_numbers = #tpu.dot_dimension_numbers<[1], [0], [0], [1], [0, 0, 1, 1], [], []>} : vector<16x32xf32>, vector<32x64xf32>, vector<16x64xf32> -> vector<16x64xf32>
    %c152_452 = arith.constant 152 : index
    %c0_453 = arith.constant 0 : index
    %1559 = vector.load %arg4[%c152_452, %c0_453] : memref<200x64xf32, #tpu.memory_space<vmem>>, vector<1x64xf32>
    %1560 = vector.broadcast %1559 : vector<1x64xf32> to vector<16x64xf32>
    %1561 = arith.addf %1558, %1560 : vector<16x64xf32>
    %cst_454 = arith.constant 5.000000e-01 : f32
    %1562 = vector.broadcast %cst_454 : f32 to vector<16x64xf32>
    %1563 = arith.mulf %1562, %1561 : vector<16x64xf32>
    %cst_455 = arith.constant 4.471500e-02 : f32
    %1564 = vector.broadcast %cst_455 : f32 to vector<16x64xf32>
    %1565 = arith.mulf %1564, %1561 : vector<16x64xf32>
    %1566 = arith.mulf %1565, %1561 : vector<16x64xf32>
    %1567 = arith.mulf %1566, %1561 : vector<16x64xf32>
    %1568 = arith.addf %1561, %1567 : vector<16x64xf32>
    %cst_456 = arith.constant 0.797884583 : f32
    %1569 = vector.broadcast %cst_456 : f32 to vector<16x64xf32>
    %1570 = arith.mulf %1569, %1568 : vector<16x64xf32>
    %1571 = math.tanh %1570 : vector<16x64xf32>
    %cst_457 = arith.constant 1.000000e+00 : f32
    %1572 = vector.broadcast %cst_457 : f32 to vector<16x64xf32>
    %1573 = arith.addf %1572, %1571 : vector<16x64xf32>
    %1574 = arith.mulf %1563, %1573 : vector<16x64xf32>
    %1575 = vector.extract_strided_slice %1555 {offsets = [16, 0], sizes = [16, 32], strides = [1, 1]} : vector<32x32xf32> to vector<16x32xf32>
    %c160_458 = arith.constant 160 : index
    %c0_459 = arith.constant 0 : index
    %1576 = vector.load %arg4[%c160_458, %c0_459] : memref<200x64xf32, #tpu.memory_space<vmem>>, vector<32x64xf32>
    %cst_460 = arith.constant dense<0.000000e+00> : vector<16x64xf32>
    %1577 = tpu.matmul %1575, %1576, %cst_460 {dimension_numbers = #tpu.dot_dimension_numbers<[1], [0], [0], [1], [0, 0, 1, 1], [], []>} : vector<16x32xf32>, vector<32x64xf32>, vector<16x64xf32> -> vector<16x64xf32>
    %c192_461 = arith.constant 192 : index
    %c0_462 = arith.constant 0 : index
    %1578 = vector.load %arg4[%c192_461, %c0_462] : memref<200x64xf32, #tpu.memory_space<vmem>>, vector<1x64xf32>
    %1579 = vector.broadcast %1578 : vector<1x64xf32> to vector<16x64xf32>
    %1580 = arith.addf %1577, %1579 : vector<16x64xf32>
    %cst_463 = arith.constant 5.000000e-01 : f32
    %1581 = vector.broadcast %cst_463 : f32 to vector<16x64xf32>
    %1582 = arith.mulf %1581, %1580 : vector<16x64xf32>
    %cst_464 = arith.constant 4.471500e-02 : f32
    %1583 = vector.broadcast %cst_464 : f32 to vector<16x64xf32>
    %1584 = arith.mulf %1583, %1580 : vector<16x64xf32>
    %1585 = arith.mulf %1584, %1580 : vector<16x64xf32>
    %1586 = arith.mulf %1585, %1580 : vector<16x64xf32>
    %1587 = arith.addf %1580, %1586 : vector<16x64xf32>
    %cst_465 = arith.constant 0.797884583 : f32
    %1588 = vector.broadcast %cst_465 : f32 to vector<16x64xf32>
    %1589 = arith.mulf %1588, %1587 : vector<16x64xf32>
    %1590 = math.tanh %1589 : vector<16x64xf32>
    %cst_466 = arith.constant 1.000000e+00 : f32
    %1591 = vector.broadcast %cst_466 : f32 to vector<16x64xf32>
    %1592 = arith.addf %1591, %1590 : vector<16x64xf32>
    %1593 = arith.mulf %1582, %1592 : vector<16x64xf32>
    %1594 = tpu.concatenate %1574, %1593 in 0 : vector<16x64xf32>, vector<16x64xf32> -> vector<32x64xf32>
    %c672 = arith.constant 672 : index
    %c0_467 = arith.constant 0 : index
    %1595 = vector.load %arg3[%c672, %c0_467] : memref<760x32xf32, #tpu.memory_space<vmem>>, vector<64x32xf32>
    %cst_468 = arith.constant dense<0.000000e+00> : vector<32x32xf32>
    %1596 = tpu.matmul %1594, %1595, %cst_468 {dimension_numbers = #tpu.dot_dimension_numbers<[1], [0], [0], [1], [0, 0, 1, 1], [], []>} : vector<32x64xf32>, vector<64x32xf32>, vector<32x32xf32> -> vector<32x32xf32>
    %c736 = arith.constant 736 : index
    %c0_469 = arith.constant 0 : index
    %1597 = vector.load %arg3[%c736, %c0_469] : memref<760x32xf32, #tpu.memory_space<vmem>>, vector<1x32xf32>
    %1598 = vector.broadcast %1597 : vector<1x32xf32> to vector<32x32xf32>
    %1599 = arith.addf %1596, %1598 : vector<32x32xf32>
    %1600 = arith.addf %1599, %1555 : vector<32x32xf32>
    %cst_470 = arith.constant dense<0.000000e+00> : vector<32xf32>
    %1601 = vector.multi_reduction <add>, %1600, %cst_470 [1] : vector<32x32xf32> to vector<32xf32>
    %1602 = vector.shape_cast %1601 : vector<32xf32> to vector<32x1xf32>
    %cst_471 = arith.constant 3.200000e+01 : f32
    %1603 = vector.broadcast %cst_471 : f32 to vector<32x1xf32>
    %1604 = arith.divf %1602, %1603 : vector<32x1xf32>
    %1605 = vector.broadcast %1604 : vector<32x1xf32> to vector<32x32xf32>
    %1606 = arith.subf %1600, %1605 : vector<32x32xf32>
    %1607 = arith.mulf %1606, %1606 : vector<32x32xf32>
    %cst_472 = arith.constant dense<0.000000e+00> : vector<32xf32>
    %1608 = vector.multi_reduction <add>, %1607, %cst_472 [1] : vector<32x32xf32> to vector<32xf32>
    %1609 = vector.shape_cast %1608 : vector<32xf32> to vector<32x1xf32>
    %cst_473 = arith.constant 3.200000e+01 : f32
    %1610 = vector.broadcast %cst_473 : f32 to vector<32x1xf32>
    %1611 = arith.divf %1609, %1610 : vector<32x1xf32>
    %1612 = vector.broadcast %1604 : vector<32x1xf32> to vector<32x32xf32>
    %1613 = arith.subf %1600, %1612 : vector<32x32xf32>
    %cst_474 = arith.constant 9.99999996E-13 : f32
    %1614 = vector.broadcast %cst_474 : f32 to vector<32x1xf32>
    %1615 = arith.addf %1611, %1614 : vector<32x1xf32>
    %1616 = math.rsqrt %1615 : vector<32x1xf32>
    %1617 = vector.broadcast %1616 : vector<32x1xf32> to vector<32x32xf32>
    %1618 = arith.mulf %1613, %1617 : vector<32x32xf32>
    %c744 = arith.constant 744 : index
    %c0_475 = arith.constant 0 : index
    %1619 = vector.load %arg3[%c744, %c0_475] : memref<760x32xf32, #tpu.memory_space<vmem>>, vector<1x32xf32>
    %1620 = vector.broadcast %1619 : vector<1x32xf32> to vector<32x32xf32>
    %1621 = arith.mulf %1618, %1620 : vector<32x32xf32>
    %c752 = arith.constant 752 : index
    %c0_476 = arith.constant 0 : index
    %1622 = vector.load %arg3[%c752, %c0_476] : memref<760x32xf32, #tpu.memory_space<vmem>>, vector<1x32xf32>
    %1623 = vector.broadcast %1622 : vector<1x32xf32> to vector<32x32xf32>
    %1624 = arith.addf %1621, %1623 : vector<32x32xf32>
    %c0_477 = arith.constant 0 : index
    %c0_478 = arith.constant 0 : index
    %1625 = vector.load %arg6[%c0_477, %c0_478] : memref<32x32xf32, #tpu.memory_space<vmem>>, vector<32x32xf32>
    tpu.vector_store %arg6[%c0_477, %c0_478], %1624 {strides = array<i32>} : memref<32x32xf32, #tpu.memory_space<vmem>>, vector<32x32xf32>,
    return
  }
}

</mosaic_0001>

<bundles_post_ra>
// kernel: lxrt_encoder.1
= control target key start
LH: loop header
LB: loop body
LE: loop exit
PB: predicated region body
PF: predicated region fallthrough
CT: control target
= control target key end

     0   :  { %s6215_s29 = smov 112   ;;  %vm60_vm0 = vcmask 261120   ;;  %s6216_s12 = smov 64   ;;  %vm132_vm1 = vcmask 1043456   ;;  %vm127_vm2 = vcmask 31744   ;;  %vm257_vm3 = vcmask 64512   ;;  %s8144_s5 = inlined_call_operand.vmem [shape: f32[240,96], index: 5, kind: input, shape index: {}]   ;;  %s8145_s1 = inlined_call_operand.vmem [shape: f32[16,20], index: 1, kind: input, shape index: {}]   ;;  %s8146_s0 = inlined_call_operand.vmem [shape: f32[16,32], index: 0, kind: input, shape index: {}]   ;;  %s8147_s3 = inlined_call_operand.vmem [shape: f32[760,32], index: 3, kind: input, shape index: {}]   ;;  %s8148_s2 = inlined_call_operand.vmem [shape: f32[2,16], index: 2, kind: input, shape index: {}]   ;;  %s8149_s4 = inlined_call_operand.vmem [shape: f32[200,64], index: 4, kind: input, shape index: {}]   ;;  %s8150_s6 = inlined_call_operand.vmem [shape: f32[32,32], index: 6, kind: output, shape index: {}]  }
   0x1   :  { %v220_v0 = vld [vmem:[%s8144_s5 + $0x18] sm:$0xff]  ;;  %v219_v1 = vld [vmem:[%s8144_s5 + $0x10] sm:$0xff]  ;;  %v6274_v2 = vld [vmem:[%s8145_s1 + $0x8] sm:$0xff]  ;;  %s6217_s13 = smov 96   ;;  %s6218_s16 = smov 80   ;;  %vm30_vm4 = vcmask 130048  }
   0x2   :  { %241 = vmatpush.msra.mxu2 %v220_v0  ;;  %v218_v3 = vld [vmem:[%s8144_s5 + $0x8] sm:$0xff]  ;;  %125 = vrot.lane.b32.xlu0 %v6274_v2, %s6215_s29  ;;  %v217_v4 = vld [vmem:[%s8144_s5] sm:$0xff]  ;;  %s6219_s17 = smov 88   ;;  %s6220_s18 = smov 120   ;;  %vm529_vm5 = vcmask 195584   ;;  %vm960_vm10 = vcmask 523264  }
   0x3   :  { %v6287_v5 = vld [vmem:[%s8146_s0] sm:$0xff]  ;;  %s6221_s19 = smov 72   ;;  %v120_v11 = vld [vmem:[%s8147_s3 + $0x28] sm:$0xf]  ;;  %s6224_s24 = smov 56  }
   0x4   :  { %242 = vmatpush.msra.mxu2 %v219_v1  ;;  %v6294_v6 = vld [vmem:[%s8144_s5 + $0x20] ss:$0 sm:$0xff]  ;;  %5621 = vmatpush.msk.msra.mxu1 %vm132_vm1, %v120_v11  ;;  %s6225_s25 = smov 40   ;;  %v6359_v44 = vld [vmem:[%s8146_s0 + $0x8] sm:$0xff]  ;;  %s6226_s8 = smov 8  }
   0x5   :  { %v6306_v9 = vld [vmem:[%s8145_s1] sm:$0xff]  ;;  %s6222_s1 = smov 104   ;;  %5840 = vmatpush.msk.msra.mxu3 %vm132_vm1, %v120_v11  ;;  %v27_v51 = vld [vmem:[%s8147_s3 + $0x8] sm:$0xff]  ;;  %s6227_s9 = smov 24  }
   0x6   :  { %243 = vmatpush.msra.mxu2 %v218_v3  ;;  %v6334_v22 = vld [vmem:[%s8148_s2] sm:$0x3]  ;;  %s6223_s2 = smov 48   ;;  %51 = vmatpush.msra.mxu0 %v27_v51  ;;  %s6228_s10 = smov 16  }
   0x7   :  { %v6339_v24 = vperm.slane %v6334_v22, 0  ;;  %v26_v52 = vld [vmem:[%s8147_s3] sm:$0xff] }
   0x8   :  { %244 = vmatpush.msra.mxu2 %v217_v4  ;;  %52 = vmatpush.msra.mxu0 %v26_v52 }
   0x9   :  { %5624 = vmatmul.msk.f32.vlgmr.msra.gmra.mxu2 %vm60_vm0, %v6287_v5  ;;  %5619 = vmatmul.msk.f32.vlgmr.msra.gmra.mxu0 %vm30_vm4, %v6306_v9 }
  0x11   :  { %5625 = vmatmul.msk.f32.gmra.mxu2 %vm60_vm0, %v6359_v44  ;;  %5620 = vmatmul.msk.f32.gmra.mxu0 %vm30_vm4, %v6274_v2 }
  0x74   :  { %v126_v12 = vpop.permute.xlu0 %125 }
  0x75   :  { %5623 = vmatmul.msk.f32.vlgmr.msra.gmra.mxu3 %vm127_vm2, %v126_v12 }
  0x8c   :  { %v246_v7 = vpop.f32.mrf.mxu2 }
  0x8d   :  { %v6297_v8 = vadd.f32 %v6294_v6, %v246_v7 }
  0x8f   :  { %294 = vrot.lane.b32.xlu2 %v6297_v8, %s6216_s12  ;;  %255 = vrot.lane.b32.xlu0 %v6297_v8, %s6217_s13  ;;  %v252_v10 = vmul.f32 0.35355338, %v6297_v8 }
  0x94   :  { %v249_v58 = vpop.f32.mrf.mxu2 }
  0x95   :  { %v6377_v59 = vadd.f32 %v6294_v6, %v249_v58  ;;  %v6393_v6 = vpop.f32.mrf.mxu0  ;;  %v811_v58 = vld [vmem:[%s8147_s3 + $0x60] sm:$0xff] }
  0x97   :  { %123 = vrot.lane.b32.xlu2 %v6306_v9, %s6215_s29  ;;  %387 = vrot.lane.b32.xlu0 %v6297_v8, %s6218_s16  ;;  %v531_v3 = vmul.f32 0.35355338, %v6377_v59 }
  0x9d   :  { %v6396_v7 = vpop.f32.mrf.mxu0 }
  0x9f   :  { %322 = vrot.lane.b32.xlu2 %v6297_v8, %s6219_s17  ;;  %320 = vrot.lane.b32.xlu0 %v252_v10, %s6220_s18 }
  0xa7   :  { %452 = vrot.lane.b32.xlu2 %v6297_v8, %s6221_s19  ;;  %450 = vrot.lane.b32.xlu0 %v252_v10, %s6222_s1 }
  0xe9   :  { %v295_v13 = vpop.permute.xlu2 %294 }
  0xf1   :  { %v124_v14 = vpop.permute.xlu2 %123 }
  0xf2   :  { %5622 = vmatmul.msk.f32.vlgmr.msra.gmra.mxu1 %vm127_vm2, %v124_v14 }
  0xf8   :  { %v6329_v21 = vpop.f32.mrf.mxu3 }
  0xf9   :  { %v323_v15 = vpop.permute.xlu2 %322 }
  0xfa   :  { %5629 = vmatpush.xpose.msk.msrb.mxu1 %vm257_vm3, %v323_v15 }
 0x101   :  { %v453_v16 = vpop.permute.xlu2 %452  ;;  %v256_v17 = vpop.permute.xlu0 %255 }
 0x102   :  { %5626 = vmatpush.xpose.msk.msrb.mxu3 %vm257_vm3, %v256_v17  ;;  %5635 = vmatpush.xpose.msk.msra.mxu1 %vm257_vm3, %v453_v16 }
 0x105   :  { %5627 = vmatmul.msk.f32.vlgmr.msrb.gmra.mxu3 %vm257_vm3, %v252_v10 }
 0x106   :  { %315 = vmatpush.msra.mxu3 %v295_v13 }
 0x109   :  { %v388_v18 = vpop.permute.xlu0 %387 }
 0x10a   :  { %5632 = vmatpush.xpose.msk.msrb.mxu3 %vm257_vm3, %v388_v18 }
 0x111   :  { %v321_v19 = vpop.permute.xlu0 %320 }
 0x112   :  { %5630 = vmatmul.msk.f32.vlgmr.msrb.gmra.mxu1 %vm257_vm3, %v321_v19 }
 0x119   :  { %v451_v20 = vpop.permute.xlu0 %450 }
 0x11a   :  { %5636 = vmatmul.msk.f32.vlgmr.msra.gmra.mxu1 %vm257_vm3, %v451_v20 }
 0x16f   :  { %v6336_v23 = vpop.f32.mrf.mxu1 }
 0x188   :  { %v280_v25 = vpop.f32.mrf.mxu3 }
 0x189   :  { %v281_v26 = vadd.f32 %v280_v25, %v6339_v24 }
 0x18b   :  { %v283_v27 = vsel %vm257_vm3, %v281_v26, -inf }
 0x18c   :  { %284 = vmax.xlane.f32.xlu1 %v283_v27 }
 0x18f   :  { %v345_v28 = vpop.f32.mrf.mxu1 }
 0x190   :  { %v346_v29 = vadd.f32 %v345_v28, %v6339_v24 }
 0x192   :  { %v348_v30 = vsel %vm257_vm3, %v346_v29, -inf }
 0x193   :  { %349 = vmax.xlane.f32.xlu2 %v348_v30 }
 0x197   :  { %v475_v41 = vpop.f32.mrf.mxu1 }
 0x198   :  { %v476_v42 = vadd.f32 %v475_v41, %v6339_v24 }
 0x19a   :  { %v478_v43 = vsel %vm257_vm3, %v476_v42, -inf }
 0x1ff   :  { %v285_v31 = vpop.xlane.xlu1 %284 }
 0x200   :  { %v286_v32 = vsub.f32 %v281_v26, %v285_v31 }
 0x202   :  { %v287_v33 = vmul.f32 1.442695, %v286_v32  ;;  %v6414_v32 = vperm.slane %v6334_v22, 1 }
 0x204   :  { %5913 = vpow2.f32 %v287_v33 }
 0x206   :  { %v350_v34 = vpop.xlane.xlu2 %349 }
 0x207   :  { %v351_v35 = vsub.f32 %v346_v29, %v350_v34 }
 0x209   :  { %v352_v36 = vmul.f32 1.442695, %v351_v35 }
 0x20a   :  { %v5914_v37 = vpop.eup %5913 }
 0x20b   :  { %5915 = vpow2.f32 %v352_v36  ;;  %v289_v38 = vsel %vm257_vm3, %v5914_v37, 0.0 }
 0x20c   :  { %290 = vadd.xlane.f32.xlu1 %v289_v38 }
 0x211   :  { %v5916_v39 = vpop.eup %5915 }
 0x212   :  { %v354_v40 = vsel %vm257_vm3, %v5916_v39, 0.0 }
 0x213   :  { %355 = vadd.xlane.f32.xlu2 %v354_v40 }
 0x225   :  { %385 = vrot.lane.b32.xlu1 %v252_v10, %s6215_s29 }
 0x22b   :  { %424 = vrot.lane.b32.xlu2 %v6297_v8, %s6223_s2 }
 0x233   :  { %663 = vrot.lane.b32.xlu2 %v531_v3, %s6215_s29 }
 0x24f   :  { %479 = vmax.xlane.f32.xlu1 %v478_v43 }
 0x268   :  { %359 = vrot.lane.b32.xlu1 %v6297_v8, %s6224_s24 }
 0x270   :  { %489 = vrot.lane.b32.xlu1 %v6297_v8, %s6225_s25 }
 0x278   :  { %600 = vrot.lane.b32.xlu1 %v6377_v59, %s6219_s17 }
 0x27f   :  { %v291_v45 = vpop.xlane.xlu1 %290 }
 0x280   :  { %5917 = vrcp.f32 %v291_v45  ;;  %728 = vrot.lane.b32.xlu1 %v531_v3, %s6222_s1 }
 0x286   :  { %v5918_v46 = vpop.eup %5917  ;;  %v356_v47 = vpop.xlane.xlu2 %355 }
 0x287   :  { %v293_v48 = vmul.f32 %v5918_v46, %v5914_v37  ;;  %5919 = vrcp.f32 %v356_v47 }
 0x289   :  { %5628 = vmatmul.msk.f32.vlgmr.msra.gmra.mxu3 %vm257_vm3, %v293_v48 }
 0x28d   :  { %v5920_v54 = vpop.eup %5919 }
 0x28e   :  { %v425_v49 = vpop.permute.xlu2 %424  ;;  %v358_v56 = vmul.f32 %v5920_v54, %v5916_v39 }
 0x28f   :  { %445 = vmatpush.msrb.mxu2 %v425_v49 }
 0x296   :  { %v664_v20 = vpop.permute.xlu2 %663 }
 0x297   :  { %v386_v50 = vpop.permute.xlu1 %385 }
 0x298   :  { %5633 = vmatmul.msk.f32.vlgmr.msrb.gmra.mxu3 %vm257_vm3, %v386_v50 }
 0x2c2   :  { %v480_v53 = vpop.xlane.xlu1 %479 }
 0x2c3   :  { %v481_v61 = vsub.f32 %v476_v42, %v480_v53 }
 0x2c5   :  { %v482_v62 = vmul.f32 1.442695, %v481_v61  ;;  %v810_v61 = vld [vmem:[%s8147_s3 + $0x58] sm:$0xff] }
 0x2c7   :  { %5921 = vpow2.f32 %v482_v62  ;;  %v809_v62 = vld [vmem:[%s8147_s3 + $0x50] sm:$0xff] }
 0x2cd   :  { %v5922_v2 = vpop.eup %5921 }
 0x2ce   :  { %v484_v4 = vsel %vm257_vm3, %v5922_v2, 0.0 }
 0x2da   :  { %v360_v55 = vpop.permute.xlu1 %359 }
 0x2db   :  { %380 = vmatpush.msrb.mxu0 %v360_v55 }
 0x2dc   :  { %5631 = vmatmul.msk.f32.vlgmr.msrb.gmra.mxu0 %vm257_vm3, %v358_v56 }
 0x2e2   :  { %v490_v57 = vpop.permute.xlu1 %489 }
 0x2e3   :  { %510 = vmatpush.msra.mxu0 %v490_v57 }
 0x2ea   :  { %v601_v18 = vpop.permute.xlu1 %600 }
 0x2eb   :  { %5641 = vmatpush.xpose.msk.msrb.mxu1 %vm257_vm3, %v601_v18 }
 0x2f2   :  { %v729_v30 = vpop.permute.xlu1 %728 }
 0x30c   :  { %v6381_v60 = vpop.f32.mrf.mxu3 }
 0x31b   :  { %v410_v63 = vpop.f32.mrf.mxu3 }
 0x31c   :  { %v411_v0 = vadd.f32 %v410_v63, %v6339_v24  ;;  %v808_v63 = vld [vmem:[%s8147_s3 + $0x48] sm:$0xff] }
 0x31e   :  { %v413_v1 = vsel %vm257_vm3, %v411_v0, -inf }
 0x31f   :  { %414 = vmax.xlane.f32.xlu0 %v413_v1 }
 0x327   :  { %485 = vadd.xlane.f32.xlu0 %v484_v4 }
 0x33b   :  { %534 = vrot.lane.b32.xlu0 %v6377_v59, %s6217_s13 }
 0x343   :  { %665 = vrot.lane.b32.xlu0 %v6377_v59, %s6218_s16 }
 0x34b   :  { %598 = vrot.lane.b32.xlu0 %v531_v3, %s6220_s18 }
 0x359   :  { %v382_v8 = vpop.f32.mrf.mxu0 }
 0x35a   :  { %516 = vrot.lane.b32.xlu0 %v382_v8, %s6226_s8 }
 0x392   :  { %v415_v9 = vpop.xlane.xlu0 %414 }
 0x393   :  { %v416_v10 = vsub.f32 %v411_v0, %v415_v9 }
 0x395   :  { %v417_v11 = vmul.f32 1.442695, %v416_v10 }
 0x397   :  { %5923 = vpow2.f32 %v417_v11 }
 0x39a   :  { %v486_v12 = vpop.xlane.xlu0 %485 }
 0x39b   :  { %5925 = vrcp.f32 %v486_v12 }
 0x39d   :  { %v5924_v13 = vpop.eup %5923 }
 0x39e   :  { %v419_v14 = vsel %vm257_vm3, %v5924_v13, 0.0 }
 0x39f   :  { %420 = vadd.xlane.f32.xlu2 %v419_v14 }
 0x3a1   :  { %v5926_v15 = vpop.eup %5925 }
 0x3a2   :  { %v488_v16 = vmul.f32 %v5926_v15, %v5922_v2 }
 0x3a4   :  { %5637 = vmatmul.msk.f32.vlgmr.msra.gmra.mxu0 %vm257_vm3, %v488_v16 }
 0x3ad   :  { %v535_v17 = vpop.permute.xlu0 %534 }
 0x3ae   :  { %5638 = vmatpush.xpose.msk.msra.mxu3 %vm257_vm3, %v535_v17 }
 0x3b1   :  { %5639 = vmatmul.msk.f32.vlgmr.msra.gmra.mxu3 %vm257_vm3, %v531_v3 }
 0x3b5   :  { %v666_v19 = vpop.permute.xlu0 %665 }
 0x3b6   :  { %5644 = vmatpush.xpose.msk.msrb.mxu3 %vm257_vm3, %v666_v19 }
 0x3b7   :  { %730 = vrot.lane.b32.xlu2 %v6377_v59, %s6221_s19 }
 0x3b9   :  { %5645 = vmatmul.msk.f32.vlgmr.msrb.gmra.mxu3 %vm257_vm3, %v664_v20 }
 0x3ba   :  { %832 = vmatpush.msra.mxu3 %v811_v58  ;;  %v898_v58 = vld [vmem:[%s8149_s4 + $0x8] sm:$0xff] }
 0x3bc   :  { %833 = vmatpush.msra.mxu3 %v810_v61  ;;  %v897_v61 = vld [vmem:[%s8149_s4] sm:$0xff] }
 0x3bd   :  { %v599_v25 = vpop.permute.xlu0 %598 }
 0x3be   :  { %5642 = vmatmul.msk.f32.vlgmr.msrb.gmra.mxu1 %vm257_vm3, %v599_v25  ;;  %834 = vmatpush.msra.mxu3 %v809_v62 }
 0x3c0   :  { %835 = vmatpush.msra.mxu3 %v808_v63 }
 0x3cc   :  { %v517_v43 = vpop.permute.xlu0 %516 }
 0x3cd   :  { %v527_v0 = vsel %vm257_vm3, %v6381_v60, %v517_v43 }
 0x412   :  { %v421_v26 = vpop.xlane.xlu2 %420 }
 0x413   :  { %5927 = vrcp.f32 %v421_v26 }
 0x419   :  { %v5928_v27 = vpop.eup %5927 }
 0x41a   :  { %v731_v28 = vpop.permute.xlu2 %730  ;;  %v423_v29 = vmul.f32 %v5928_v27, %v5924_v13  ;;  %v6461_v27 = vld [vmem:[%s8147_s3 + $0x68] ss:$0 sm:$0xff] }
 0x41b   :  { %5647 = vmatpush.xpose.msk.msra.mxu1 %vm257_vm3, %v731_v28 }
 0x41c   :  { %5634 = vmatmul.msk.f32.vlgmr.msrb.gmra.mxu2 %vm257_vm3, %v423_v29 }
 0x41e   :  { %5648 = vmatmul.msk.f32.vlgmr.msra.gmra.mxu1 %vm257_vm3, %v729_v30 }
 0x421   :  { %v512_v31 = vpop.f32.mrf.mxu0 }
 0x422   :  { %524 = vrot.lane.b32.xlu1 %v512_v31, %s6227_s9 }
 0x434   :  { %v558_v33 = vpop.f32.mrf.mxu3 }
 0x435   :  { %v559_v34 = vadd.f32 %v558_v33, %v6414_v32 }
 0x437   :  { %v561_v35 = vsel %vm257_vm3, %v559_v34, -inf }
 0x438   :  { %562 = vmax.xlane.f32.xlu0 %v561_v35 }
 0x43b   :  { %v623_v39 = vpop.f32.mrf.mxu1 }
 0x43c   :  { %v688_v36 = vpop.f32.mrf.mxu3  ;;  %v624_v52 = vadd.f32 %v623_v39, %v6414_v32 }
 0x43d   :  { %v689_v37 = vadd.f32 %v688_v36, %v6414_v32 }
 0x43e   :  { %v626_v53 = vsel %vm257_vm3, %v624_v52, -inf }
 0x43f   :  { %v691_v38 = vsel %vm257_vm3, %v689_v37, -inf }
 0x44c   :  { %692 = vmax.xlane.f32.xlu1 %v691_v38 }
 0x494   :  { %v525_v45 = vpop.permute.xlu1 %524 }
 0x49b   :  { %v753_v40 = vpop.f32.mrf.mxu1 }
 0x49c   :  { %v754_v41 = vadd.f32 %v753_v40, %v6414_v32  ;;  %v6229_v40 = vmov 32.0  }
 0x49e   :  { %v756_v42 = vsel %vm257_vm3, %v754_v41, -inf }
 0x49f   :  { %v447_v22 = vpop.f32.mrf.mxu2  ;;  %757 = vmax.xlane.f32.xlu0 %v756_v42 }
 0x4a0   :  { %520 = vrot.lane.b32.xlu2 %v447_v22, %s6228_s10 }
 0x4ab   :  { %v563_v46 = vpop.xlane.xlu0 %562 }
 0x4ac   :  { %v564_v47 = vsub.f32 %v559_v34, %v563_v46 }
 0x4ae   :  { %v565_v51 = vmul.f32 1.442695, %v564_v47 }
 0x4bf   :  { %v693_v48 = vpop.xlane.xlu1 %692 }
 0x4c0   :  { %v694_v49 = vsub.f32 %v689_v37, %v693_v48 }
 0x4c2   :  { %v695_v50 = vmul.f32 1.442695, %v694_v49 }
 0x4c4   :  { %5929 = vpow2.f32 %v695_v50 }
 0x4c5   :  { %5931 = vpow2.f32 %v565_v51 }
 0x4c9   :  { %627 = vmax.xlane.f32.xlu2 %v626_v53 }
 0x4ca   :  { %v6425_v54 = vpop.eup %5929 }
 0x4cb   :  { %v697_v55 = vsel %vm257_vm3, %v6425_v54, 0.0  ;;  %v5932_v56 = vpop.eup %5931 }
 0x4cc   :  { %698 = vadd.xlane.f32.xlu0 %v697_v55  ;;  %v567_v57 = vsel %vm257_vm3, %v5932_v56, 0.0 }
 0x4d1   :  { %568 = vadd.xlane.f32.xlu2 %v567_v57  ;;  %v899_v57 = vld [vmem:[%s8149_s4 + $0x10] sm:$0xff] }
 0x4e0   :  { %637 = vrot.lane.b32.xlu0 %v6377_v59, %s6224_s24 }
 0x4e9   :  { %572 = vrot.lane.b32.xlu2 %v6377_v59, %s6216_s12 }
 0x4f1   :  { %767 = vrot.lane.b32.xlu2 %v6377_v59, %s6225_s25 }
 0x4fa   :  { %v521_v1 = vpop.permute.xlu2 %520 }
 0x4fb   :  { %v528_v2 = vsel %vm30_vm4, %v527_v0, %v521_v1 }
 0x4fc   :  { %v530_v3 = vsel %vm529_vm5, %v528_v2, %v525_v45 }
 0x4fd   :  { %5650 = vmatmul.msk.f32.vlgmr.msra.gmra.mxu3 %vm60_vm0, %v530_v3 }
 0x512   :  { %v758_v4 = vpop.xlane.xlu0 %757 }
 0x513   :  { %v759_v10 = vsub.f32 %v754_v41, %v758_v4 }
 0x515   :  { %v760_v12 = vmul.f32 1.442695, %v759_v10  ;;  %v6493_v10 = vld [vmem:[%s8147_s3 + $0x70] ss:$0 sm:$0xff] }
 0x53c   :  { %v628_v8 = vpop.xlane.xlu2 %627 }
 0x53d   :  { %v629_v9 = vsub.f32 %v624_v52, %v628_v8 }
 0x53f   :  { %v630_v11 = vmul.f32 1.442695, %v629_v9  ;;  %v699_v15 = vpop.xlane.xlu0 %698 }
 0x541   :  { %5933 = vpow2.f32 %v630_v11 }
 0x544   :  { %v569_v13 = vpop.xlane.xlu2 %568 }
 0x545   :  { %5935 = vrcp.f32 %v569_v13  ;;  %v6498_v13 = vld [vmem:[%s8147_s3 + $0x78] ss:$0 sm:$0xff] }
 0x546   :  { %5937 = vpow2.f32 %v760_v12 }
 0x547   :  { %v5934_v14 = vpop.eup %5933 }
 0x548   :  { %v632_v60 = vsel %vm257_vm3, %v5934_v14, 0.0 }
 0x549   :  { %633 = vadd.xlane.f32.xlu1 %v632_v60 }
 0x54b   :  { %v5936_v16 = vpop.eup %5935 }
 0x54c   :  { %v571_v17 = vmul.f32 %v5936_v16, %v5932_v56  ;;  %v573_v18 = vpop.permute.xlu2 %572  ;;  %v5938_v19 = vpop.eup %5937  ;;  %v900_v56 = vld [vmem:[%s8149_s4 + $0x18] sm:$0xff] }
 0x54d   :  { %593 = vmatpush.msra.mxu2 %v573_v18  ;;  %v762_v20 = vsel %vm257_vm3, %v5938_v19, 0.0 }
 0x54e   :  { %5640 = vmatmul.msk.f32.vlgmr.msra.gmra.mxu2 %vm257_vm3, %v571_v17 }
 0x551   :  { %763 = vadd.xlane.f32.xlu1 %v762_v20 }
 0x552   :  { %v638_v25 = vpop.permute.xlu0 %637 }
 0x553   :  { %658 = vmatpush.msrb.mxu0 %v638_v25  ;;  %v957_v25 = vld [vmem:[%s8147_s3 + $0xb8] sm:$0xff] }
 0x554   :  { %v768_v26 = vpop.permute.xlu2 %767  ;;  %975 = vmatpush.msrb.mxu1 %v957_v25 }
 0x555   :  { %788 = vmatpush.msra.mxu0 %v768_v26  ;;  %v956_v26 = vld [vmem:[%s8147_s3 + $0xb0] sm:$0xff] }
 0x556   :  { %976 = vmatpush.msrb.mxu1 %v956_v26 }
 0x56a   :  { %702 = vrot.lane.b32.xlu1 %v6377_v59, %s6223_s2 }
 0x580   :  { %v837_v28 = vpop.f32.mrf.mxu3 }
 0x581   :  { %v838_v29 = vadd.f32 %v6461_v27, %v837_v28  ;;  %v955_v28 = vld [vmem:[%s8147_s3 + $0xa8] sm:$0xff] }
 0x582   :  { %977 = vmatpush.msrb.mxu1 %v955_v28 }
 0x583   :  { %v843_v30 = vadd.f32 %v838_v29, %v6287_v5  ;;  %v954_v29 = vld [vmem:[%s8147_s3 + $0xa0] sm:$0xff] }
 0x584   :  { %978 = vmatpush.msrb.mxu1 %v954_v29 }
 0x585   :  { %v845_v31 = vsel %vm60_vm0, %v843_v30, 0.0 }
 0x586   :  { %846 = vadd.xlane.f32.xlu0 %v845_v31  ;;  %v952_v31 = vld [vmem:[%s8147_s3 + $0x90] sm:$0xff] }
 0x5bc   :  { %v634_v33 = vpop.xlane.xlu1 %633 }
 0x5bd   :  { %5939 = vrcp.f32 %v634_v33  ;;  %v951_v33 = vld [vmem:[%s8147_s3 + $0x88] sm:$0xff] }
 0x5c3   :  { %v5940_v34 = vpop.eup %5939 }
 0x5c4   :  { %v636_v35 = vmul.f32 %v5940_v34, %v5934_v14  ;;  %v764_v36 = vpop.xlane.xlu1 %763  ;;  %v950_v34 = vld [vmem:[%s8147_s3 + $0x80] sm:$0xff] }
 0x5c5   :  { %5941 = vrcp.f32 %v764_v36 }
 0x5c6   :  { %5643 = vmatmul.msk.f32.vlgmr.msrb.gmra.mxu0 %vm257_vm3, %v636_v35  ;;  %5943 = vrcp.f32 %v699_v15  ;;  %v6534_v35 = vld [vmem:[%s8149_s4 + $0x20] ss:$0 sm:$0xff] }
 0x5c7   :  { %5945 = vrcp.f32 %v6229_v40 }
 0x5cb   :  { %v5942_v59 = vpop.eup %5941 }
 0x5cc   :  { %v766_v37 = vmul.f32 %v5942_v59, %v5938_v19  ;;  %v5944_v38 = vpop.eup %5943 }
 0x5cd   :  { %v701_v39 = vmul.f32 %v5944_v38, %v6425_v54  ;;  %v5946_v41 = vpop.eup %5945 }
 0x5ce   :  { %5649 = vmatmul.msk.f32.vlgmr.msra.gmra.mxu0 %vm257_vm3, %v766_v37  ;;  %v68_v42 = vmul.f32 32.0, %v5946_v41  ;;  %vm72_vm6 = vweird.f32 %v5946_v41 }
 0x5d0   :  { %v69_v22 = vsub.f32 1.0, %v68_v42 }
 0x5d1   :  { %v595_v53 = vpop.f32.mrf.mxu2 }
 0x5d2   :  { %v70_v43 = vmul.f32 %v5946_v41, %v69_v22 }
 0x5d4   :  { %v71_v45 = vadd.f32 %v5946_v41, %v70_v43 }
 0x5d6   :  { %v6470_v46 = vsel %vm72_vm6, %v5946_v41, %v71_v45 }
 0x5dc   :  { %v703_v5 = vpop.permute.xlu1 %702 }
 0x5dd   :  { %723 = vmatpush.msrb.mxu2 %v703_v5 }
 0x5de   :  { %5646 = vmatmul.msk.f32.vlgmr.msrb.gmra.mxu2 %vm257_vm3, %v701_v39 }
 0x5df   :  { %921 = vmatpush.msra.mxu2 %v900_v56 }
 0x5e1   :  { %922 = vmatpush.msra.mxu2 %v899_v57 }
 0x5e3   :  { %923 = vmatpush.msra.mxu2 %v898_v58 }
 0x5e5   :  { %924 = vmatpush.msra.mxu2 %v897_v61 }
 0x5f9   :  { %v847_v47 = vpop.xlane.xlu0 %846 }
 0x5fa   :  { %v851_v48 = vmul.f32 %v847_v47, %v6470_v46 }
 0x5fc   :  { %v853_v49 = vsub.f32 %v843_v30, %v851_v48  ;;  %v953_v30 = vld [vmem:[%s8147_s3 + $0x98] sm:$0xff] }
 0x5fd   :  { %979 = vmatpush.msrb.mxu1 %v953_v30 }
 0x5fe   :  { %v855_v50 = vmul.f32 %v853_v49, %v853_v49 }
 0x5ff   :  { %980 = vmatpush.msrb.mxu1 %v952_v31 }
 0x600   :  { %v857_v51 = vsel %vm60_vm0, %v855_v50, 0.0  ;;  %v6544_v50 = vld [vmem:[%s8147_s3 + $0xc0] ss:$0 sm:$0xff] }
 0x601   :  { %858 = vadd.xlane.f32.xlu2 %v857_v51  ;;  %981 = vmatpush.msrb.mxu1 %v951_v33 }
 0x603   :  { %982 = vmatpush.msrb.mxu1 %v950_v34 }
 0x643   :  { %v660_v52 = vpop.f32.mrf.mxu0 }
 0x644   :  { %794 = vrot.lane.b32.xlu1 %v660_v52, %s6226_s8 }
 0x64b   :  { %v790_v55 = vpop.f32.mrf.mxu0 }
 0x661   :  { %v725_v54 = vpop.f32.mrf.mxu2 }
 0x662   :  { %798 = vrot.lane.b32.xlu1 %v725_v54, %s6228_s10 }
 0x66a   :  { %802 = vrot.lane.b32.xlu1 %v790_v55, %s6227_s9 }
 0x674   :  { %v859_v62 = vpop.xlane.xlu2 %858 }
 0x675   :  { %v863_v63 = vmul.f32 %v859_v62, %v6470_v46 }
 0x677   :  { %v865_v0 = vadd.f32 1e-12, %v863_v63 }
 0x679   :  { %5947 = vrsqrt.f32 %v865_v0  ;;  %vm873_vm8 = vweird.f32 %v865_v0 }
 0x67f   :  { %v5948_v1 = vpop.eup %5947 }
 0x680   :  { %v868_v2 = vmul.f32 %v5948_v1, %v865_v0  ;;  %vm874_vm7 = vweird.f32 %v5948_v1 }
 0x681   :  { %vm875_vm9 = vmor %vm873_vm8, %vm874_vm7 }
 0x682   :  { %v869_v3 = vmul.f32 %v5948_v1, %v868_v2 }
 0x684   :  { %v870_v4 = vmul.f32 0.5, %v869_v3 }
 0x686   :  { %v871_v8 = vsub.f32 1.5, %v870_v4 }
 0x688   :  { %v872_v9 = vmul.f32 %v5948_v1, %v871_v8 }
 0x68a   :  { %v876_v11 = vsel %vm875_vm9, %v5948_v1, %v872_v9 }
 0x68b   :  { %v887_v12 = vmul.f32 %v876_v11, %v853_v49 }
 0x68d   :  { %v891_v14 = vmul.f32 %v6493_v10, %v887_v12 }
 0x68f   :  { %v895_v60 = vadd.f32 %v6498_v13, %v891_v14 }
 0x691   :  { %5652 = vmatmul.msk.f32.vlgmr.msra.gmra.mxu2 %vm60_vm0, %v895_v60 }
 0x6b6   :  { %v795_v15 = vpop.permute.xlu1 %794 }
 0x6b7   :  { %v805_v17 = vsel %vm257_vm3, %v595_v53, %v795_v15 }
 0x6d4   :  { %v799_v16 = vpop.permute.xlu1 %798 }
 0x6d5   :  { %v806_v18 = vsel %vm30_vm4, %v805_v17, %v799_v16 }
 0x6dc   :  { %v803_v19 = vpop.permute.xlu1 %802 }
 0x6dd   :  { %v807_v20 = vsel %vm529_vm5, %v806_v18, %v803_v19  ;;  %v1047_v18 = vld [vmem:[%s8144_s5 + $0x40] sm:$0xff]  ;;  %v1046_v19 = vld [vmem:[%s8144_s5 + $0x38] sm:$0xff] }
 0x6de   :  { %5651 = vmatmul.msk.f32.gmra.mxu3 %vm60_vm0, %v807_v20  ;;  %1068 = vmatpush.msrb.mxu0 %v1047_v18  ;;  %v1045_v20 = vld [vmem:[%s8144_s5 + $0x30] sm:$0xff] }
 0x6e0   :  { %1069 = vmatpush.msrb.mxu0 %v1046_v19 }
 0x6e2   :  { %1070 = vmatpush.msrb.mxu0 %v1045_v20 }
 0x714   :  { %v926_v36 = vpop.f32.mrf.mxu2 }
 0x715   :  { %v927_v59 = vadd.f32 %v6534_v35, %v926_v36  ;;  %v6572_v36 = vld [vmem:[%s8147_s3 + $0xc8] ss:$0 sm:$0xff] }
 0x717   :  { %v934_v37 = vmul.f32 0.044715, %v927_v59  ;;  %v932_v42 = vmul.f32 0.5, %v927_v59 }
 0x719   :  { %v936_v38 = vmul.f32 %v934_v37, %v927_v59 }
 0x71b   :  { %v938_v39 = vmul.f32 %v936_v38, %v927_v59  ;;  %v6577_v38 = vld [vmem:[%s8147_s3 + $0xd0] ss:$0 sm:$0xff] }
 0x71d   :  { %v940_v5 = vadd.f32 %v938_v39, %v927_v59 }
 0x71f   :  { %v942_v40 = vmul.f32 0.7978846, %v940_v5 }
 0x721   :  { %5949 = vtanh.f32 %v942_v40 }
 0x727   :  { %v5950_v41 = vpop.eup %5949 }
 0x728   :  { %v946_v22 = vadd.f32 1.0, %v5950_v41 }
 0x72a   :  { %v948_v43 = vmul.f32 %v946_v22, %v932_v42 }
 0x72c   :  { %5654 = vmatmul.msk.f32.vlgmr.msrb.gmra.mxu1 %vm960_vm10, %v948_v43 }
 0x761   :  { %v840_v45 = vpop.f32.mrf.mxu3 }
 0x762   :  { %v841_v47 = vadd.f32 %v6461_v27, %v840_v45 }
 0x764   :  { %v844_v48 = vadd.f32 %v841_v47, %v6359_v44 }
 0x766   :  { %v848_v49 = vsel %vm60_vm0, %v844_v48, 0.0 }
 0x767   :  { %849 = vadd.xlane.f32.xlu1 %v848_v49 }
 0x7a9   :  { %v984_v51 = vpop.f32.mrf.mxu1 }
 0x7aa   :  { %v985_v52 = vadd.f32 %v6544_v50, %v984_v51 }
 0x7ac   :  { %v990_v53 = vadd.f32 %v985_v52, %v895_v60 }
 0x7ae   :  { %v992_v54 = vsel %vm60_vm0, %v990_v53, 0.0 }
 0x7af   :  { %993 = vadd.xlane.f32.xlu2 %v992_v54 }
 0x7da   :  { %v850_v55 = vpop.xlane.xlu1 %849 }
 0x7db   :  { %v852_v27 = vmul.f32 %v850_v55, %v6470_v46 }
 0x7dd   :  { %v854_v56 = vsub.f32 %v844_v48, %v852_v27 }
 0x7df   :  { %v856_v44 = vmul.f32 %v854_v56, %v854_v56 }
 0x7e1   :  { %v860_v57 = vsel %vm60_vm0, %v856_v44, 0.0 }
 0x7e2   :  { %861 = vadd.xlane.f32.xlu0 %v860_v57 }
 0x822   :  { %v994_v58 = vpop.xlane.xlu2 %993 }
 0x823   :  { %v998_v61 = vmul.f32 %v994_v58, %v6470_v46 }
 0x825   :  { %v1000_v62 = vsub.f32 %v990_v53, %v998_v61  ;;  %v5876_v53 = vld [vmem:[%s8144_s5 + $0x48] ss:$0 sm:$0xff] }
 0x827   :  { %v1002_v63 = vmul.f32 %v1000_v62, %v1000_v62 }
 0x829   :  { %v1004_v0 = vsel %vm60_vm0, %v1002_v63, 0.0 }
 0x82a   :  { %1005 = vadd.xlane.f32.xlu0 %v1004_v0 }
 0x855   :  { %v862_v1 = vpop.xlane.xlu0 %861 }
 0x856   :  { %v864_v2 = vmul.f32 %v862_v1, %v6470_v46 }
 0x858   :  { %v866_v3 = vadd.f32 1e-12, %v864_v2 }
 0x85a   :  { %5951 = vrsqrt.f32 %v866_v3  ;;  %vm883_vm12 = vweird.f32 %v866_v3 }
 0x860   :  { %v5952_v4 = vpop.eup %5951 }
 0x861   :  { %v878_v8 = vmul.f32 %v5952_v4, %v866_v3  ;;  %vm884_vm11 = vweird.f32 %v5952_v4 }
 0x862   :  { %vm885_vm13 = vmor %vm883_vm12, %vm884_vm11 }
 0x863   :  { %v879_v9 = vmul.f32 %v5952_v4, %v878_v8 }
 0x865   :  { %v880_v11 = vmul.f32 0.5, %v879_v9 }
 0x867   :  { %v881_v12 = vsub.f32 1.5, %v880_v11 }
 0x869   :  { %v882_v14 = vmul.f32 %v5952_v4, %v881_v12 }
 0x86b   :  { %v886_v60 = vsel %vm885_vm13, %v5952_v4, %v882_v14 }
 0x86c   :  { %v888_v15 = vmul.f32 %v886_v60, %v854_v56 }
 0x86e   :  { %v892_v16 = vmul.f32 %v6493_v10, %v888_v15  ;;  %v1044_v10 = vld [vmem:[%s8144_s5 + $0x28] sm:$0xff] }
 0x86f   :  { %1071 = vmatpush.msrb.mxu0 %v1044_v10 }
 0x870   :  { %v896_v17 = vadd.f32 %v6498_v13, %v892_v16 }
 0x872   :  { %5653 = vmatmul.msk.f32.gmra.mxu2 %vm60_vm0, %v896_v17 }
 0x89d   :  { %v1006_v13 = vpop.xlane.xlu0 %1005 }
 0x89e   :  { %v1010_v25 = vmul.f32 %v1006_v13, %v6470_v46 }
 0x8a0   :  { %v1012_v26 = vadd.f32 1e-12, %v1010_v25 }
 0x8a2   :  { %5953 = vrsqrt.f32 %v1012_v26  ;;  %vm1020_vm15 = vweird.f32 %v1012_v26 }
 0x8a8   :  { %v5954_v28 = vpop.eup %5953 }
 0x8a9   :  { %v1015_v29 = vmul.f32 %v5954_v28, %v1012_v26  ;;  %vm1021_vm14 = vweird.f32 %v5954_v28 }
 0x8aa   :  { %vm1022_vm1 = vmor %vm1020_vm15, %vm1021_vm14 }
 0x8ab   :  { %v1016_v30 = vmul.f32 %v5954_v28, %v1015_v29 }
 0x8ad   :  { %v1017_v31 = vmul.f32 0.5, %v1016_v30 }
 0x8af   :  { %v1018_v33 = vsub.f32 1.5, %v1017_v31 }
 0x8b1   :  { %v1019_v34 = vmul.f32 %v5954_v28, %v1018_v33 }
 0x8b3   :  { %v1023_v59 = vsel %vm1022_vm1, %v5954_v28, %v1019_v34 }
 0x8b4   :  { %v1034_v37 = vmul.f32 %v1023_v59, %v1000_v62 }
 0x8b6   :  { %v1038_v39 = vmul.f32 %v6572_v36, %v1034_v37 }
 0x8b8   :  { %v6581_v5 = vadd.f32 %v6577_v38, %v1038_v39 }
 0x8ba   :  { %5656 = vmatmul.msk.f32.vlgmr.msrb.gmra.mxu0 %vm60_vm0, %v6581_v5 }
 0x8f5   :  { %v929_v40 = vpop.f32.mrf.mxu2 }
 0x8f6   :  { %v930_v41 = vadd.f32 %v6534_v35, %v929_v40 }
 0x8f8   :  { %v935_v42 = vmul.f32 0.044715, %v930_v41  ;;  %v933_v49 = vmul.f32 0.5, %v930_v41 }
 0x8fa   :  { %v937_v22 = vmul.f32 %v935_v42, %v930_v41  ;;  %v6643_v42 = vld [vmem:[%s8147_s3 + $0x10] ss:$0 sm:$0xff] }
 0x8fc   :  { %v939_v43 = vmul.f32 %v937_v22, %v930_v41 }
 0x8fe   :  { %v941_v45 = vadd.f32 %v939_v43, %v930_v41  ;;  %v55_v43 = vadd.f32 %v6643_v42, %v6393_v6 }
 0x900   :  { %v943_v47 = vmul.f32 0.7978846, %v941_v45  ;;  %v61_v45 = vsel %vm60_vm0, %v55_v43, 0.0 }
 0x902   :  { %5955 = vtanh.f32 %v943_v47 }
 0x908   :  { %v5956_v48 = vpop.eup %5955 }
 0x909   :  { %v947_v51 = vadd.f32 1.0, %v5956_v48 }
 0x90b   :  { %v949_v52 = vmul.f32 %v947_v51, %v933_v49  ;;  %v6656_v51 = vld [vmem:[%s8147_s3 + $0x30] ss:$0 sm:$0xff] }
 0x90c   :  { %v154_v6 = vadd.f32 %v6656_v51, %v6336_v23 }
 0x90d   :  { %5655 = vmatmul.msk.f32.gmra.mxu1 %vm960_vm10, %v949_v52 }
 0x937   :  { %v1073_v54 = vpop.f32.mrf.mxu0 }
 0x938   :  { %v6590_v55 = vadd.f32 %v5876_v53, %v1073_v54  ;;  %v159_v54 = vsel %vm60_vm0, %v154_v6, 0.0 }
 0x93a   :  { %1119 = vrot.lane.b32.xlu1 %v6590_v55, %s6216_s12  ;;  %1081 = vrot.lane.b32.xlu2 %v6590_v55, %s6217_s13  ;;  %v1079_v35 = vmul.f32 0.35355338, %v6590_v55 }
 0x942   :  { %1147 = vrot.lane.b32.xlu2 %v6590_v55, %s6219_s17 }
 0x94a   :  { %1277 = vrot.lane.b32.xlu2 %v6590_v55, %s6221_s19 }
 0x952   :  { %1212 = vrot.lane.b32.xlu2 %v6590_v55, %s6218_s16 }
 0x95a   :  { %1210 = vrot.lane.b32.xlu2 %v1079_v35, %s6215_s29 }
 0x98a   :  { %v987_v27 = vpop.f32.mrf.mxu1 }
 0x98b   :  { %v988_v56 = vadd.f32 %v6544_v50, %v987_v27 }
 0x98d   :  { %v991_v44 = vadd.f32 %v988_v56, %v896_v17 }
 0x98f   :  { %v995_v57 = vsel %vm60_vm0, %v991_v44, 0.0 }
 0x990   :  { %996 = vadd.xlane.f32.xlu0 %v995_v57 }
 0x994   :  { %v1082_v58 = vpop.permute.xlu2 %1081 }
 0x995   :  { %5658 = vmatpush.xpose.msk.msrb.mxu3 %vm257_vm3, %v1082_v58 }
 0x998   :  { %5659 = vmatmul.msk.f32.vlgmr.msrb.gmra.mxu3 %vm257_vm3, %v1079_v35 }
 0x99c   :  { %v1148_v61 = vpop.permute.xlu2 %1147 }
 0x99d   :  { %5661 = vmatpush.xpose.msk.msra.mxu0 %vm257_vm3, %v1148_v61 }
 0x9a4   :  { %v1278_v62 = vpop.permute.xlu2 %1277 }
 0x9a5   :  { %5667 = vmatpush.xpose.msk.msrb.mxu0 %vm257_vm3, %v1278_v62 }
 0x9ac   :  { %v1120_v63 = vpop.permute.xlu1 %1119  ;;  %v1213_v0 = vpop.permute.xlu2 %1212 }
 0x9ad   :  { %1140 = vmatpush.msrb.mxu2 %v1120_v63 }
 0x9af   :  { %5664 = vmatpush.xpose.msk.msra.mxu2 %vm257_vm3, %v1213_v0 }
 0x9b4   :  { %v1211_v48 = vpop.permute.xlu2 %1210 }
 0xa03   :  { %v997_v50 = vpop.xlane.xlu0 %996 }
 0xa04   :  { %v999_v1 = vmul.f32 %v997_v50, %v6470_v46 }
 0xa06   :  { %v1001_v2 = vsub.f32 %v991_v44, %v999_v1 }
 0xa08   :  { %v1003_v3 = vmul.f32 %v1001_v2, %v1001_v2 }
 0xa0a   :  { %v1007_v4 = vsel %vm60_vm0, %v1003_v3, 0.0 }
 0xa0b   :  { %1008 = vadd.xlane.f32.xlu0 %v1007_v4 }
 0xa1b   :  { %v1105_v8 = vpop.f32.mrf.mxu3 }
 0xa1c   :  { %v1106_v9 = vadd.f32 %v1105_v8, %v6339_v24 }
 0xa1e   :  { %v1108_v11 = vsel %vm257_vm3, %v1106_v9, -inf }
 0xa1f   :  { %1109 = vmax.xlane.f32.xlu0 %v1108_v11 }
 0xa33   :  { %1145 = vrot.lane.b32.xlu0 %v1079_v35, %s6220_s18 }
 0xa3b   :  { %1275 = vrot.lane.b32.xlu0 %v1079_v35, %s6222_s1 }
 0xa7e   :  { %v1009_v12 = vpop.xlane.xlu0 %1008 }
 0xa7f   :  { %v1011_v14 = vmul.f32 %v1009_v12, %v6470_v46 }
 0xa81   :  { %v1013_v60 = vadd.f32 1e-12, %v1011_v14 }
 0xa83   :  { %5957 = vrsqrt.f32 %v1013_v60  ;;  %vm1030_vm6 = vweird.f32 %v1013_v60 }
 0xa89   :  { %v5958_v15 = vpop.eup %5957 }
 0xa8a   :  { %v1025_v16 = vmul.f32 %v5958_v15, %v1013_v60  ;;  %vm1031_vm2 = vweird.f32 %v5958_v15 }
 0xa8b   :  { %vm1032_vm7 = vmor %vm1030_vm6, %vm1031_vm2 }
 0xa8c   :  { %v1026_v17 = vmul.f32 %v5958_v15, %v1025_v16 }
 0xa8e   :  { %v1027_v18 = vmul.f32 0.5, %v1026_v17 }
 0xa90   :  { %v1028_v19 = vsub.f32 1.5, %v1027_v18 }
 0xa92   :  { %v1029_v20 = vmul.f32 %v5958_v15, %v1028_v19  ;;  %v1110_v28 = vpop.xlane.xlu0 %1109 }
 0xa94   :  { %v1033_v10 = vsel %vm1032_vm7, %v5958_v15, %v1029_v20 }
 0xa95   :  { %v1035_v13 = vmul.f32 %v1033_v10, %v1001_v2 }
 0xa97   :  { %v1039_v25 = vmul.f32 %v6572_v36, %v1035_v13  ;;  %v1111_v36 = vsub.f32 %v1106_v9, %v1110_v28 }
 0xa99   :  { %v6620_v26 = vadd.f32 %v6577_v38, %v1039_v25  ;;  %v1112_v59 = vmul.f32 1.442695, %v1111_v36 }
 0xa9b   :  { %5657 = vmatmul.msk.f32.gmra.mxu0 %vm60_vm0, %v6620_v26  ;;  %5959 = vpow2.f32 %v1112_v59 }
 0xaa1   :  { %v5960_v38 = vpop.eup %5959 }
 0xaa2   :  { %v1114_v39 = vsel %vm257_vm3, %v5960_v38, 0.0 }
 0xaa5   :  { %v1146_v29 = vpop.permute.xlu0 %1145 }
 0xaa6   :  { %5662 = vmatmul.msk.f32.vlgmr.msra.gmra.mxu0 %vm257_vm3, %v1146_v29 }
 0xaad   :  { %v1276_v30 = vpop.permute.xlu0 %1275 }
 0xaae   :  { %5668 = vmatmul.msk.f32.vlgmr.msrb.gmra.mxu0 %vm257_vm3, %v1276_v30 }
 0xb18   :  { %v1076_v31 = vpop.f32.mrf.mxu0 }
 0xb19   :  { %v6626_v33 = vadd.f32 %v5876_v53, %v1076_v31 }
 0xb1b   :  { %1357 = vrot.lane.b32.xlu1 %v6626_v33, %s6217_s13  ;;  %1423 = vrot.lane.b32.xlu0 %v6626_v33, %s6219_s17  ;;  %v1355_v34 = vmul.f32 0.35355338, %v6626_v33 }
 0xb1d   :  { %1421 = vrot.lane.b32.xlu2 %v1355_v34, %s6220_s18 }
 0xb23   :  { %1553 = vrot.lane.b32.xlu0 %v6626_v33, %s6221_s19  ;;  %v1170_v37 = vpop.f32.mrf.mxu0 }
 0xb24   :  { %v1171_v47 = vadd.f32 %v1170_v37, %v6339_v24 }
 0xb25   :  { %1551 = vrot.lane.b32.xlu2 %v1355_v34, %s6222_s1 }
 0xb26   :  { %v1173_v49 = vsel %vm257_vm3, %v1171_v47, -inf }
 0xb2b   :  { %1486 = vrot.lane.b32.xlu0 %v1355_v34, %s6215_s29  ;;  %v1300_v40 = vpop.f32.mrf.mxu0 }
 0xb2c   :  { %v1301_v41 = vadd.f32 %v1300_v40, %v6339_v24  ;;  %v5856_v40 = vpack.i.bf16 %v6626_v33, %v6590_v55 }
 0xb2e   :  { %v1303_v22 = vsel %vm257_vm3, %v1301_v41, -inf }
 0xb45   :  { %1115 = vadd.xlane.f32.xlu1 %v1114_v39 }
 0xb4e   :  { %1304 = vmax.xlane.f32.xlu2 %v1303_v22 }
 0xb55   :  { %62 = vadd.xlane.f32.xlu0 %v61_v45 }
 0xb5e   :  { %1488 = vrot.lane.b32.xlu1 %v6626_v33, %s6218_s16 }
 0xb77   :  { %v1422_v53 = vpop.permute.xlu2 %1421 }
 0xb7f   :  { %v1552_v27 = vpop.permute.xlu2 %1551 }
 0xb88   :  { %1174 = vmax.xlane.f32.xlu1 %v1173_v49 }
 0xb8d   :  { %v1424_v52 = vpop.permute.xlu0 %1423  ;;  %v1358_v56 = vpop.permute.xlu1 %1357 }
 0xb8e   :  { %5673 = vmatpush.xpose.msk.msra.mxu0 %vm257_vm3, %v1424_v52 }
 0xb90   :  { %160 = vadd.xlane.f32.xlu1 %v159_v54 }
 0xb91   :  { %5674 = vmatmul.msk.f32.vlgmr.msra.gmra.mxu0 %vm257_vm3, %v1422_v53 }
 0xb95   :  { %v1554_v35 = vpop.permute.xlu0 %1553 }
 0xb96   :  { %5679 = vmatpush.xpose.msk.msrb.mxu0 %vm257_vm3, %v1554_v35 }
 0xb99   :  { %5680 = vmatmul.msk.f32.vlgmr.msrb.gmra.mxu0 %vm257_vm3, %v1552_v27 }
 0xb9d   :  { %v1487_v23 = vpop.permute.xlu0 %1486 }
 0xbb8   :  { %v1116_v44 = vpop.xlane.xlu1 %1115 }
 0xbb9   :  { %5961 = vrcp.f32 %v1116_v44 }
 0xbbf   :  { %v5962_v57 = vpop.eup %5961 }
 0xbc0   :  { %v1118_v58 = vmul.f32 %v5962_v57, %v5960_v38 }
 0xbc1   :  { %v1305_v2 = vpop.xlane.xlu2 %1304 }
 0xbc2   :  { %5660 = vmatmul.msk.f32.vlgmr.msrb.gmra.mxu2 %vm257_vm3, %v1118_v58  ;;  %v1306_v3 = vsub.f32 %v1301_v41, %v1305_v2 }
 0xbc3   :  { %5670 = vmatpush.xpose.msk.msrb.mxu2 %vm257_vm3, %v1358_v56 }
 0xbc4   :  { %v1307_v4 = vmul.f32 1.442695, %v1306_v3 }
 0xbc6   :  { %5963 = vpow2.f32 %v1307_v4 }
 0xbc8   :  { %v63_v61 = vpop.xlane.xlu0 %62 }
 0xbc9   :  { %v74_v62 = vmul.f32 %v6470_v46, %v63_v61 }
 0xbca   :  { %5665 = vmatmul.msk.f32.vlgmr.msra.gmra.mxu2 %vm257_vm3, %v1211_v48 }
 0xbcb   :  { %v6669_v63 = vsub.f32 %v55_v43, %v74_v62 }
 0xbcc   :  { %v6679_v15 = vpop.eup %5963 }
 0xbcd   :  { %v78_v0 = vmul.f32 %v6669_v63, %v6669_v63  ;;  %v1309_v18 = vsel %vm257_vm3, %v6679_v15, 0.0 }
 0xbcf   :  { %v80_v50 = vsel %vm60_vm0, %v78_v0, 0.0 }
 0xbd0   :  { %v1489_v1 = vpop.permute.xlu1 %1488  ;;  %81 = vadd.xlane.f32.xlu0 %v80_v50 }
 0xbd1   :  { %5676 = vmatpush.xpose.msk.msra.mxu2 %vm257_vm3, %v1489_v1 }
 0xbd2   :  { %5671 = vmatmul.msk.f32.vlgmr.msrb.gmra.mxu2 %vm257_vm3, %v1355_v34 }
 0xbda   :  { %5677 = vmatmul.msk.f32.vlgmr.msra.gmra.mxu2 %vm257_vm3, %v1487_v23 }
 0xbfb   :  { %v1175_v8 = vpop.xlane.xlu1 %1174 }
 0xbfc   :  { %v1176_v12 = vsub.f32 %v1171_v47, %v1175_v8 }
 0xbfe   :  { %v1177_v60 = vmul.f32 1.442695, %v1176_v12 }
 0xc00   :  { %5965 = vpow2.f32 %v1177_v60 }
 0xc03   :  { %v161_v20 = vpop.xlane.xlu1 %160 }
 0xc04   :  { %v165_v10 = vmul.f32 %v161_v20, %v6470_v46 }
 0xc06   :  { %v5966_v13 = vpop.eup %5965  ;;  %v6686_v25 = vsub.f32 %v154_v6, %v165_v10 }
 0xc07   :  { %v1179_v28 = vsel %vm257_vm3, %v5966_v13, 0.0 }
 0xc08   :  { %v169_v29 = vmul.f32 %v6686_v25, %v6686_v25 }
 0xc0a   :  { %v171_v30 = vsel %vm60_vm0, %v169_v29, 0.0 }
 0xc0e   :  { %v1446_v9 = vpop.f32.mrf.mxu0 }
 0xc0f   :  { %v1447_v11 = vadd.f32 %v1446_v9, %v6414_v32 }
 0xc11   :  { %v1449_v14 = vsel %vm257_vm3, %v1447_v11, -inf }
 0xc12   :  { %1450 = vmax.xlane.f32.xlu2 %v1449_v14 }
 0xc16   :  { %v1576_v16 = vpop.f32.mrf.mxu0 }
 0xc17   :  { %v1577_v17 = vadd.f32 %v1576_v16, %v6414_v32 }
 0xc19   :  { %v1579_v19 = vsel %vm257_vm3, %v1577_v17, -inf }
 0xc1a   :  { %1310 = vadd.xlane.f32.xlu2 %v1309_v18  ;;  %1580 = vmax.xlane.f32.xlu1 %v1579_v19 }
 0xc22   :  { %1180 = vadd.xlane.f32.xlu1 %v1179_v28 }
 0xc2a   :  { %172 = vadd.xlane.f32.xlu1 %v171_v30 }
 0xc43   :  { %v82_v56 = vpop.xlane.xlu0 %81 }
 0xc44   :  { %v86_v16 = vmul.f32 %v82_v56, %v6470_v46 }
 0xc45   :  { %v6692_v31 = vpop.f32.mrf.mxu2 }
 0xc46   :  { %v88_v19 = vadd.f32 1e-12, %v86_v16 }
 0xc48   :  { %vm96_vm13 = vweird.f32 %v88_v19 }
 0xc4d   :  { %v1235_v34 = vpop.f32.mrf.mxu2 }
 0xc4e   :  { %v1236_v36 = vadd.f32 %v1235_v34, %v6339_v24 }
 0xc50   :  { %v1238_v59 = vsel %vm257_vm3, %v1236_v36, -inf }
 0xc51   :  { %1239 = vmax.xlane.f32.xlu0 %v1238_v59 }
 0xc55   :  { %v1381_v37 = vpop.f32.mrf.mxu2 }
 0xc56   :  { %v1382_v38 = vadd.f32 %v1381_v37, %v6414_v32 }
 0xc58   :  { %v1384_v39 = vsel %vm257_vm3, %v1382_v38, -inf }
 0xc59   :  { %1385 = vmax.xlane.f32.xlu2 %v1384_v39 }
 0xc5d   :  { %v1511_v52 = vpop.f32.mrf.mxu2 }
 0xc5e   :  { %v1512_v53 = vadd.f32 %v1511_v52, %v6414_v32 }
 0xc60   :  { %v1514_v27 = vsel %vm257_vm3, %v1512_v53, -inf }
 0xc71   :  { %5857 = vrot.lane.b32.xlu2 %v5856_v40, %s6224_s24 }
 0xc79   :  { %1249 = vrot.lane.b32.xlu2 %v6590_v55, %s6223_s2 }
 0xc81   :  { %1590 = vrot.lane.b32.xlu2 %v6626_v33, %s6225_s25 }
 0xc85   :  { %v1451_v41 = vpop.xlane.xlu2 %1450 }
 0xc86   :  { %v1452_v22 = vsub.f32 %v1447_v11, %v1451_v41 }
 0xc88   :  { %v1453_v43 = vmul.f32 1.442695, %v1452_v22 }
 0xc8a   :  { %5967 = vpow2.f32 %v1453_v43 }
 0xc8d   :  { %v1581_v45 = vpop.xlane.xlu1 %1580  ;;  %v1311_v44 = vpop.xlane.xlu2 %1310 }
 0xc8e   :  { %v1582_v47 = vsub.f32 %v1577_v17, %v1581_v45 }
 0xc90   :  { %v6705_v48 = vpop.eup %5967  ;;  %v1583_v49 = vmul.f32 1.442695, %v1582_v47 }
 0xc91   :  { %v1455_v6 = vsel %vm257_vm3, %v6705_v48, 0.0 }
 0xc92   :  { %5969 = vpow2.f32 %v1583_v49  ;;  %1456 = vadd.xlane.f32.xlu0 %v1455_v6 }
 0xc95   :  { %v1181_v61 = vpop.xlane.xlu1 %1180 }
 0xc98   :  { %v6710_v54 = vpop.eup %5969 }
 0xc99   :  { %v1585_v35 = vsel %vm257_vm3, %v6710_v54, 0.0 }
 0xc9a   :  { %1586 = vadd.xlane.f32.xlu1 %v1585_v35  ;;  %1515 = vmax.xlane.f32.xlu0 %v1514_v27 }
 0xc9d   :  { %v173_v14 = vpop.xlane.xlu1 %172 }
 0xc9e   :  { %v177_v60 = vmul.f32 %v173_v14, %v6470_v46 }
 0xca0   :  { %v179_v17 = vadd.f32 1e-12, %v177_v60 }
 0xca2   :  { %vm187_vm11 = vweird.f32 %v179_v17 }
 0xcae   :  { %1314 = vrot.lane.b32.xlu0 %v6590_v55, %s6225_s25 }
 0xcb6   :  { %1395 = vrot.lane.b32.xlu0 %v6626_v33, %s6216_s12 }
 0xcc4   :  { %v1240_v57 = vpop.xlane.xlu0 %1239 }
 0xcc5   :  { %v1241_v23 = vsub.f32 %v1236_v36, %v1240_v57 }
 0xcc7   :  { %v1242_v58 = vmul.f32 1.442695, %v1241_v23 }
 0xcc9   :  { %5971 = vpow2.f32 %v1242_v58 }
 0xcca   :  { %5973 = vrcp.f32 %v1181_v61  ;;  %v1869_v61 = vld [vmem:[%s8144_s5 + $0x68] sm:$0xff] }
 0xccc   :  { %v1386_v62 = vpop.xlane.xlu2 %1385 }
 0xccd   :  { %v1387_v0 = vsub.f32 %v1382_v38, %v1386_v62  ;;  %v6749_v62 = vld [vmem:[%s8147_s3 + $0x18] ss:$0 sm:$0xff] }
 0xccf   :  { %v6719_v50 = vpop.eup %5971  ;;  %v1388_v1 = vmul.f32 1.442695, %v1387_v0 }
 0xcd0   :  { %v1244_v2 = vsel %vm257_vm3, %v6719_v50, 0.0  ;;  %v5974_v55 = vpop.eup %5973 }
 0xcd1   :  { %5975 = vpow2.f32 %v1388_v1  ;;  %1245 = vadd.xlane.f32.xlu1 %v1244_v2  ;;  %v1183_v8 = vmul.f32 %v5974_v55, %v5966_v13  ;;  %v1867_v1 = vld [vmem:[%s8144_s5 + $0x58] sm:$0xff]  ;;  %v6763_v2 = vld [vmem:[%s8147_s3 + $0x40] ss:$0 sm:$0xff] }
 0xcd2   :  { %5977 = vrsqrt.f32 %v179_v17 }
 0xcd3   :  { %5979 = vrsqrt.f32 %v88_v19 }
 0xcd4   :  { %v5858_v3 = vpop.permute.xlu2 %5857 }
 0xcd5   :  { %v5859_v4 = vunpack.i.l.bf16 %v5858_v3  ;;  %v5860_v6 = vunpack.i.h.bf16 %v5858_v3  ;;  %v1866_v3 = vld [vmem:[%s8144_s5 + $0x50] sm:$0xff] }
 0xcd7   :  { %v6723_v9 = vpop.eup %5975  ;;  %1205 = vmatpush.msra.mxu3 %v5859_v4  ;;  %v6772_v4 = vld [vmem:[%s8147_s3 + $0x20] ss:$0 sm:$0xff] }
 0xcd8   :  { %5663 = vmatmul.msk.f32.vlgmr.msra.gmra.mxu3 %vm257_vm3, %v1183_v8  ;;  %v1390_v11 = vsel %vm257_vm3, %v6723_v9, 0.0  ;;  %v5978_v10 = vpop.eup %5977 }
 0xcd9   :  { %1391 = vadd.xlane.f32.xlu1 %v1390_v11  ;;  %v5980_v28 = vpop.eup %5979  ;;  %v182_v30 = vmul.f32 %v5978_v10, %v179_v17  ;;  %vm188_vm8 = vweird.f32 %v5978_v10 }
 0xcda   :  { %v91_v34 = vmul.f32 %v5980_v28, %v88_v19  ;;  %vm97_vm9 = vweird.f32 %v5980_v28  ;;  %vm189_vm12 = vmor %vm187_vm11, %vm188_vm8 }
 0xcdb   :  { %v183_v36 = vmul.f32 %v5978_v10, %v182_v30  ;;  %vm98_vm14 = vmor %vm96_vm13, %vm97_vm9 }
 0xcdc   :  { %v1250_v12 = vpop.permute.xlu2 %1249  ;;  %v92_v59 = vmul.f32 %v5980_v28, %v91_v34 }
 0xcdd   :  { %1270 = vmatpush.msra.mxu1 %v1250_v12  ;;  %v184_v38 = vmul.f32 0.5, %v183_v36  ;;  %v58_v36 = vadd.f32 %v6643_v42, %v6396_v7  ;;  %v1631_v7 = vld [vmem:[%s8147_s3 + $0xd8] sm:$0xff] }
 0xcde   :  { %v93_v40 = vmul.f32 0.5, %v92_v59 }
 0xcdf   :  { %v185_v22 = vsub.f32 1.5, %v184_v38  ;;  %v64_v59 = vsel %vm60_vm0, %v58_v36, 0.0  ;;  %v1633_v38 = vld [vmem:[%s8147_s3 + $0xe8] sm:$0xff] }
 0xce0   :  { %v94_v43 = vsub.f32 1.5, %v93_v40 }
 0xce1   :  { %v186_v49 = vmul.f32 %v5978_v10, %v185_v22 }
 0xce2   :  { %v95_v52 = vmul.f32 %v5980_v28, %v94_v43 }
 0xce3   :  { %v190_v56 = vsel %vm189_vm12, %v5978_v10, %v186_v49 }
 0xce4   :  { %v201_v57 = vmul.f32 %v190_v56, %v6686_v25  ;;  %v1868_v25 = vld [vmem:[%s8144_s5 + $0x60] sm:$0xff] }
 0xd05   :  { %v1457_v18 = vpop.xlane.xlu0 %1456 }
 0xd0d   :  { %v1516_v20 = vpop.xlane.xlu0 %1515  ;;  %v1587_v35 = vpop.xlane.xlu1 %1586 }
 0xd0e   :  { %v1517_v13 = vsub.f32 %v1512_v53, %v1516_v20  ;;  %v1591_v53 = vpop.permute.xlu2 %1590 }
 0xd10   :  { %v1518_v29 = vmul.f32 1.442695, %v1517_v13 }
 0xd12   :  { %5981 = vpow2.f32 %v1518_v29 }
 0xd13   :  { %5983 = vrcp.f32 %v1311_v44  ;;  %v6739_v44 = vld [vmem:[%s8147_s3 + $0x38] ss:$0 sm:$0xff] }
 0xd14   :  { %5985 = vrcp.f32 %v1457_v18 }
 0xd15   :  { %5987 = vrcp.f32 %v1587_v35  ;;  %v157_v35 = vadd.f32 %v6656_v51, %v6329_v21 }
 0xd18   :  { %v6730_v37 = vpop.eup %5981 }
 0xd19   :  { %v1520_v39 = vsel %vm257_vm3, %v6730_v37, 0.0  ;;  %v5984_v41 = vpop.eup %5983 }
 0xd1a   :  { %1521 = vadd.xlane.f32.xlu1 %v1520_v39  ;;  %v1313_v45 = vmul.f32 %v5984_v41, %v6679_v15  ;;  %v5986_v27 = vpop.eup %5985  ;;  %v99_v15 = vsel %vm98_vm14, %v5980_v28, %v95_v52  ;;  %v1632_v39 = vld [vmem:[%s8147_s3 + $0xe0] sm:$0xff]  ;;  %v6816_v41 = vld [vmem:[%s8144_s5 + $0x70] ss:$0 sm:$0xff] }
 0xd1b   :  { %v1459_v23 = vmul.f32 %v5986_v27, %v6705_v48  ;;  %v110_v0 = vmul.f32 %v99_v15, %v6669_v63  ;;  %v205_v48 = vmul.f32 %v6739_v44, %v201_v57  ;;  %v5988_v55 = vpop.eup %5987  ;;  %v162_v27 = vsel %vm60_vm0, %v157_v35, 0.0 }
 0xd1c   :  { %v1589_v8 = vmul.f32 %v5988_v55, %v6710_v54  ;;  %v6844_v55 = vld [vmem:[%s8147_s3 + $0xf8] ss:$0 sm:$0xff] }
 0xd1d   :  { %v114_v63 = vmul.f32 %v6749_v62, %v110_v0  ;;  %v209_v11 = vadd.f32 %v6763_v2, %v205_v48 }
 0xd1f   :  { %v118_v12 = vadd.f32 %v6772_v4, %v114_v63 }
 0xd20   :  { %v1315_v47 = vpop.permute.xlu0 %1314 }
 0xd21   :  { %1335 = vmatpush.msrb.mxu3 %v1315_v47  ;;  %v211_v14 = vadd.f32 %v209_v11, %v118_v12 }
 0xd22   :  { %5669 = vmatmul.msk.f32.vlgmr.msrb.gmra.mxu3 %vm257_vm3, %v1313_v45 }
 0xd23   :  { %1481 = vmatpush.msra.mxu3 %v5860_v6  ;;  %v6780_v60 = vmul.f32 0.5, %v211_v14 }
 0xd25   :  { %1611 = vmatpush.msrb.mxu3 %v1591_v53 }
 0xd28   :  { %v1396_v58 = vpop.permute.xlu0 %1395 }
 0xd29   :  { %1416 = vmatpush.msrb.mxu1 %v1396_v58 }
 0xd2a   :  { %5675 = vmatmul.msk.f32.vlgmr.msra.gmra.mxu3 %vm257_vm3, %v1459_v23 }
 0xd2b   :  { %1890 = vmatpush.msra.mxu3 %v1869_v61 }
 0xd2d   :  { %1891 = vmatpush.msra.mxu3 %v1868_v25 }
 0xd2f   :  { %1892 = vmatpush.msra.mxu3 %v1867_v1 }
 0xd31   :  { %1893 = vmatpush.msra.mxu3 %v1866_v3 }
 0xd32   :  { %5681 = vmatmul.msk.f32.vlgmr.msrb.gmra.mxu3 %vm257_vm3, %v1589_v8 }
 0xd33   :  { %1525 = vrot.lane.b32.xlu1 %v6626_v33, %s6223_s2 }
 0xd3a   :  { %5688 = vmatmul.msk.f32.vlgmr.msra.gmra.mxu3 %vm60_vm0, %v6780_v60 }
 0xd3b   :  { %1906 = vrot.lane.b32.xlu1 %v6339_v24, %s6220_s18 }
 0xd44   :  { %v1246_v54 = vpop.xlane.xlu1 %1245 }
 0xd45   :  { %5989 = vrcp.f32 %v1246_v54 }
 0xd4b   :  { %v5990_v16 = vpop.eup %5989 }
 0xd4c   :  { %v1248_v17 = vmul.f32 %v5990_v16, %v6719_v50  ;;  %v1392_v18 = vpop.xlane.xlu1 %1391 }
 0xd4d   :  { %5991 = vrcp.f32 %v1392_v18 }
 0xd4e   :  { %5666 = vmatmul.msk.f32.vlgmr.msra.gmra.mxu1 %vm257_vm3, %v1248_v17 }
 0xd53   :  { %v5992_v19 = vpop.eup %5991 }
 0xd54   :  { %v1394_v33 = vmul.f32 %v5992_v19, %v6723_v9 }
 0xd56   :  { %5672 = vmatmul.msk.f32.vlgmr.msrb.gmra.mxu1 %vm257_vm3, %v1394_v33 }
 0xd5b   :  { %v1207_v20 = vpop.f32.mrf.mxu3 }
 0xd5c   :  { %1341 = vrot.lane.b32.xlu2 %v1207_v20, %s6226_s8 }
 0xd8d   :  { %v1522_v10 = vpop.xlane.xlu1 %1521 }
 0xd8e   :  { %5993 = vrcp.f32 %v1522_v10 }
 0xd94   :  { %v5994_v13 = vpop.eup %5993 }
 0xd95   :  { %v1524_v28 = vmul.f32 %v5994_v13, %v6730_v37  ;;  %v1634_v37 = vld [vmem:[%s8147_s3 + $0xf0] sm:$0xff] }
 0xd96   :  { %1655 = vmatpush.msrb.mxu2 %v1634_v37 }
 0xd98   :  { %1656 = vmatpush.msrb.mxu2 %v1633_v38 }
 0xd9a   :  { %1657 = vmatpush.msrb.mxu2 %v1632_v39 }
 0xd9c   :  { %1658 = vmatpush.msrb.mxu2 %v1631_v7 }
 0xda5   :  { %v1526_v29 = vpop.permute.xlu1 %1525  ;;  %v1337_v30 = vpop.f32.mrf.mxu3 }
 0xda6   :  { %1349 = vrot.lane.b32.xlu2 %v1337_v30, %s6227_s9  ;;  %1546 = vmatpush.msra.mxu1 %v1526_v29 }
 0xda7   :  { %5678 = vmatmul.msk.f32.vlgmr.msra.gmra.mxu1 %vm257_vm3, %v1524_v28 }
 0xdad   :  { %v1483_v9 = vpop.f32.mrf.mxu3  ;;  %v6853_v19 = vpop.permute.xlu1 %1906 }
 0xdb5   :  { %v1613_v34 = vpop.f32.mrf.mxu3 }
 0xdb6   :  { %v1342_v45 = vpop.permute.xlu2 %1341 }
 0xdb7   :  { %v1352_v47 = vsel %vm257_vm3, %v6692_v31, %v1342_v45 }
 0xdbd   :  { %v1895_v22 = vpop.f32.mrf.mxu3 }
 0xdbe   :  { %v6819_v43 = vadd.f32 %v6816_v41, %v1895_v22 }
 0xdc0   :  { %v1901_v1 = vmul.f32 0.35355338, %v6819_v43 }
 0xdcb   :  { %v1272_v50 = vpop.f32.mrf.mxu1 }
 0xdcc   :  { %1345 = vrot.lane.b32.xlu0 %v1272_v50, %s6228_s10 }
 0xdd3   :  { %v1418_v40 = vpop.f32.mrf.mxu1 }
 0xdd4   :  { %1617 = vrot.lane.b32.xlu0 %v1483_v9, %s6226_s8 }
 0xddc   :  { %1625 = vrot.lane.b32.xlu0 %v1613_v34, %s6227_s9 }
 0xe00   :  { %v1350_v6 = vpop.permute.xlu2 %1349 }
 0xe06   :  { %65 = vadd.xlane.f32.xlu0 %v64_v59 }
 0xe24   :  { %v1548_v42 = vpop.f32.mrf.mxu1 }
 0xe25   :  { %1621 = vrot.lane.b32.xlu2 %v1548_v42, %s6228_s10 }
 0xe2d   :  { %1903 = vrot.lane.b32.xlu2 %v6819_v43, %s6217_s13 }
 0xe3e   :  { %v1346_v49 = vpop.permute.xlu0 %1345 }
 0xe3f   :  { %v1353_v52 = vsel %vm30_vm4, %v1352_v47, %v1346_v49 }
 0xe40   :  { %v1354_v53 = vsel %vm529_vm5, %v1353_v52, %v1350_v6 }
 0xe41   :  { %5682 = vmatmul.msk.f32.vlgmr.msrb.gmra.mxu2 %vm60_vm0, %v1354_v53 }
 0xe46   :  { %v1618_v56 = vpop.permute.xlu0 %1617 }
 0xe47   :  { %v1628_v61 = vsel %vm257_vm3, %v1418_v40, %v1618_v56 }
 0xe4e   :  { %v1626_v15 = vpop.permute.xlu0 %1625 }
 0xe56   :  { %163 = vadd.xlane.f32.xlu2 %v162_v27 }
 0xe79   :  { %v66_v57 = vpop.xlane.xlu0 %65 }
 0xe7a   :  { %v75_v23 = vmul.f32 %v6470_v46, %v66_v57 }
 0xe7c   :  { %v77_v31 = vsub.f32 %v58_v36, %v75_v23 }
 0xe7e   :  { %v79_v58 = vmul.f32 %v77_v31, %v77_v31 }
 0xe7f   :  { %v1622_v0 = vpop.permute.xlu2 %1621 }
 0xe80   :  { %v1629_v25 = vsel %vm30_vm4, %v1628_v61, %v1622_v0  ;;  %v83_v48 = vsel %vm60_vm0, %v79_v58, 0.0 }
 0xe81   :  { %84 = vadd.xlane.f32.xlu0 %v83_v48  ;;  %v1630_v21 = vsel %vm529_vm5, %v1629_v25, %v1626_v15 }
 0xe82   :  { %5683 = vmatmul.msk.f32.gmra.mxu2 %vm60_vm0, %v1630_v21 }
 0xe87   :  { %v1904_v51 = vpop.permute.xlu2 %1903 }
 0xe88   :  { %5690 = vmatpush.xpose.msk.msra.mxu2 %vm257_vm3, %v1904_v51 }
 0xe8b   :  { %5691 = vmatmul.msk.f32.vlgmr.msra.gmra.mxu2 %vm257_vm3, %v1901_v1 }
 0xe95   :  { %1971 = vrot.lane.b32.xlu0 %v1901_v1, %s6220_s18 }
 0xec4   :  { %v1660_v63 = vpop.f32.mrf.mxu2 }
 0xec5   :  { %v1661_v3 = vadd.f32 %v6844_v55, %v1660_v63 }
 0xec7   :  { %v1666_v8 = vadd.f32 %v1661_v3, %v6581_v5 }
 0xec9   :  { %v164_v11 = vpop.xlane.xlu2 %163  ;;  %v1668_v12 = vsel %vm60_vm0, %v1666_v8, 0.0 }
 0xeca   :  { %v166_v14 = vmul.f32 %v164_v11, %v6470_v46  ;;  %1669 = vadd.xlane.f32.xlu0 %v1668_v12  ;;  %v1723_v12 = vld [vmem:[%s8149_s4 + $0x40] sm:$0xff] }
 0xecb   :  { %1744 = vmatpush.msra.mxu0 %v1723_v12  ;;  %v1773_v12 = vld [vmem:[%s8147_s3 + $0x110] sm:$0xff] }
 0xecc   :  { %v168_v54 = vsub.f32 %v157_v35, %v166_v14 }
 0xece   :  { %v170_v16 = vmul.f32 %v168_v54, %v168_v54 }
 0xed0   :  { %v174_v17 = vsel %vm60_vm0, %v170_v16, 0.0 }
 0xed1   :  { %175 = vadd.xlane.f32.xlu2 %v174_v17 }
 0xef4   :  { %v85_v10 = vpop.xlane.xlu0 %84 }
 0xef5   :  { %v87_v13 = vmul.f32 %v85_v10, %v6470_v46 }
 0xef7   :  { %v89_v28 = vadd.f32 1e-12, %v87_v13 }
 0xef9   :  { %5995 = vrsqrt.f32 %v89_v28  ;;  %vm106_vm1 = vweird.f32 %v89_v28 }
 0xeff   :  { %v5996_v29 = vpop.eup %5995 }
 0xf00   :  { %v101_v30 = vmul.f32 %v5996_v29, %v89_v28  ;;  %vm107_vm15 = vweird.f32 %v5996_v29 }
 0xf01   :  { %vm108_vm2 = vmor %vm106_vm1, %vm107_vm15 }
 0xf02   :  { %v102_v50 = vmul.f32 %v5996_v29, %v101_v30 }
 0xf04   :  { %v103_v59 = vmul.f32 0.5, %v102_v50 }
 0xf05   :  { %v6851_v18 = vpop.f32.mrf.mxu2 }
 0xf06   :  { %v104_v37 = vsub.f32 1.5, %v103_v59  ;;  %v1664_v3 = vadd.f32 %v6844_v55, %v6851_v18  ;;  %v1721_v55 = vld [vmem:[%s8149_s4 + $0x30] sm:$0xff] }
 0xf07   :  { %v1972_v35 = vpop.permute.xlu0 %1971 }
 0xf08   :  { %v105_v39 = vmul.f32 %v5996_v29, %v104_v37 }
 0xf0a   :  { %v109_v42 = vsel %vm108_vm2, %v5996_v29, %v105_v39 }
 0xf0b   :  { %v111_v47 = vmul.f32 %v109_v42, %v77_v31 }
 0xf0d   :  { %v115_v52 = vmul.f32 %v6749_v62, %v111_v47 }
 0xf0e   :  { %v1931_v33 = vpop.f32.mrf.mxu2 }
 0xf0f   :  { %v1932_v20 = vadd.f32 %v1931_v33, %v6853_v19  ;;  %v119_v56 = vadd.f32 %v6772_v4, %v115_v52 }
 0xf11   :  { %v1934_v5 = vsel %vm257_vm3, %v1932_v20, -inf }
 0xf12   :  { %1935 = vmax.xlane.f32.xlu1 %v1934_v5 }
 0xf2b   :  { %1973 = vrot.lane.b32.xlu1 %v6819_v43, %s6219_s17 }
 0xf33   :  { %2101 = vrot.lane.b32.xlu1 %v1901_v1, %s6222_s1 }
 0xf3b   :  { %1945 = vrot.lane.b32.xlu1 %v6819_v43, %s6216_s12 }
 0xf3d   :  { %v1670_v58 = vpop.xlane.xlu0 %1669 }
 0xf3e   :  { %v1674_v31 = vmul.f32 %v1670_v58, %v6470_v46 }
 0xf40   :  { %v1676_v61 = vsub.f32 %v1666_v8, %v1674_v31  ;;  %v1667_v8 = vadd.f32 %v1664_v3, %v6620_v26  ;;  %v1720_v26 = vld [vmem:[%s8149_s4 + $0x28] sm:$0xff]  ;;  %v1774_v3 = vld [vmem:[%s8147_s3 + $0x118] sm:$0xff] }
 0xf42   :  { %v1678_v0 = vmul.f32 %v1676_v61, %v1676_v61  ;;  %v1671_v11 = vsel %vm60_vm0, %v1667_v8, 0.0 }
 0xf43   :  { %2038 = vrot.lane.b32.xlu1 %v6819_v43, %s6218_s16 }
 0xf44   :  { %v176_v9 = vpop.xlane.xlu2 %175  ;;  %v1680_v62 = vsel %vm60_vm0, %v1678_v0, 0.0 }
 0xf45   :  { %v178_v34 = vmul.f32 %v176_v9, %v6470_v46 }
 0xf47   :  { %v180_v36 = vadd.f32 1e-12, %v178_v34  ;;  %v6917_v34 = vld [vmem:[%s8147_s3 + $0x108] ss:$0 sm:$0xff] }
 0xf49   :  { %5997 = vrsqrt.f32 %v180_v36  ;;  %vm197_vm7 = vweird.f32 %v180_v36 }
 0xf4b   :  { %2036 = vrot.lane.b32.xlu1 %v1901_v1, %s6215_s29 }
 0xf4f   :  { %v5998_v38 = vpop.eup %5997 }
 0xf50   :  { %v192_v40 = vmul.f32 %v5998_v38, %v180_v36  ;;  %vm198_vm6 = vweird.f32 %v5998_v38 }
 0xf51   :  { %vm199_vm8 = vmor %vm197_vm7, %vm198_vm6 }
 0xf52   :  { %v193_v7 = vmul.f32 %v5998_v38, %v192_v40 }
 0xf54   :  { %v194_v22 = vmul.f32 0.5, %v193_v7 }
 0xf56   :  { %v195_v45 = vsub.f32 1.5, %v194_v22 }
 0xf58   :  { %v196_v49 = vmul.f32 %v5998_v38, %v195_v45 }
 0xf5a   :  { %v200_v6 = vsel %vm199_vm8, %v5998_v38, %v196_v49 }
 0xf5b   :  { %v202_v53 = vmul.f32 %v200_v6, %v168_v54  ;;  %v1722_v54 = vld [vmem:[%s8149_s4 + $0x38] sm:$0xff] }
 0xf5c   :  { %1745 = vmatpush.msra.mxu0 %v1722_v54 }
 0xf5d   :  { %v206_v27 = vmul.f32 %v6739_v44, %v202_v53 }
 0xf5e   :  { %1746 = vmatpush.msra.mxu0 %v1721_v55 }
 0xf5f   :  { %v210_v15 = vadd.f32 %v6763_v2, %v206_v27 }
 0xf60   :  { %1747 = vmatpush.msra.mxu0 %v1720_v26 }
 0xf61   :  { %v212_v57 = vadd.f32 %v210_v15, %v119_v56 }
 0xf63   :  { %v6871_v23 = vmul.f32 0.5, %v212_v57 }
 0xf65   :  { %5689 = vmatmul.msk.f32.gmra.mxu3 %vm60_vm0, %v6871_v23 }
 0xf75   :  { %1681 = vadd.xlane.f32.xlu1 %v1680_v62 }
 0xf85   :  { %v1936_v25 = vpop.xlane.xlu1 %1935 }
 0xf86   :  { %v1937_v44 = vsub.f32 %v1932_v20, %v1936_v25  ;;  %v1780_v25 = vld [vmem:[%s8147_s3 + $0x148] sm:$0xff] }
 0xf87   :  { %1797 = vmatpush.msrb.mxu0 %v1780_v25 }
 0xf88   :  { %v1938_v48 = vmul.f32 1.442695, %v1937_v44  ;;  %v1779_v44 = vld [vmem:[%s8147_s3 + $0x140] sm:$0xff] }
 0xf89   :  { %1798 = vmatpush.msrb.mxu0 %v1779_v44 }
 0xf8a   :  { %5999 = vpow2.f32 %v1938_v48  ;;  %v1778_v48 = vld [vmem:[%s8147_s3 + $0x138] sm:$0xff] }
 0xf8b   :  { %1799 = vmatpush.msrb.mxu0 %v1778_v48 }
 0xf8e   :  { %2140 = vrot.lane.b32.xlu1 %v6819_v43, %s6225_s25 }
 0xf90   :  { %v6000_v2 = vpop.eup %5999 }
 0xf91   :  { %v1940_v4 = vsel %vm257_vm3, %v6000_v2, 0.0 }
 0xf92   :  { %1941 = vadd.xlane.f32.xlu2 %v1940_v4  ;;  %v6973_v4 = vld [vmem:[%s8149_s4 + $0x48] ss:$0 sm:$0xff] }
 0xf9d   :  { %v1974_v21 = vpop.permute.xlu1 %1973 }
 0xf9e   :  { %5693 = vmatpush.xpose.msk.msrb.mxu3 %vm257_vm3, %v1974_v21 }
 0xfa1   :  { %5694 = vmatmul.msk.f32.vlgmr.msrb.gmra.mxu3 %vm257_vm3, %v1972_v35 }
 0xfa5   :  { %v2102_v51 = vpop.permute.xlu1 %2101 }
 0xfaa   :  { %2103 = vrot.lane.b32.xlu2 %v6819_v43, %s6221_s19 }
 0xfad   :  { %v1946_v1 = vpop.permute.xlu1 %1945 }
 0xfae   :  { %1966 = vmatpush.msrb.mxu1 %v1946_v1  ;;  %v1775_v1 = vld [vmem:[%s8147_s3 + $0x120] sm:$0xff] }
 0xfb5   :  { %v2039_v63 = vpop.permute.xlu1 %2038 }
 0xfb6   :  { %5696 = vmatpush.xpose.msk.msra.mxu1 %vm257_vm3, %v2039_v63 }
 0xfbd   :  { %v2037_v14 = vpop.permute.xlu1 %2036 }
 0xfd3   :  { %1672 = vadd.xlane.f32.xlu2 %v1671_v11 }
 0xfe8   :  { %v1898_v16 = vpop.f32.mrf.mxu3  ;;  %v1682_v17 = vpop.xlane.xlu1 %1681 }
 0xfe9   :  { %v6902_v18 = vadd.f32 %v6816_v41, %v1898_v16  ;;  %v1686_v33 = vmul.f32 %v1682_v17, %v6470_v46  ;;  %v6912_v41 = vld [vmem:[%s8147_s3 + $0x100] ss:$0 sm:$0xff] }
 0xfeb   :  { %v1688_v20 = vadd.f32 1e-12, %v1686_v33  ;;  %2183 = vrot.lane.b32.xlu1 %v6902_v18, %s6217_s13  ;;  %v6941_v27 = vmul.f32 0.35355338, %v6902_v18 }
 0xfed   :  { %6001 = vrsqrt.f32 %v1688_v20  ;;  %vm1696_vm11 = vweird.f32 %v1688_v20 }
 0xff3   :  { %v6002_v5 = vpop.eup %6001  ;;  %2318 = vrot.lane.b32.xlu1 %v6902_v18, %s6218_s16 }
 0xff4   :  { %v1691_v10 = vmul.f32 %v6002_v5, %v1688_v20  ;;  %vm1697_vm9 = vweird.f32 %v6002_v5 }
 0xff5   :  { %vm1698_vm12 = vmor %vm1696_vm11, %vm1697_vm9 }
 0xff6   :  { %v1692_v13 = vmul.f32 %v6002_v5, %v1691_v10 }
 0xff8   :  { %v1693_v28 = vmul.f32 0.5, %v1692_v13 }
 0xffa   :  { %v1694_v29 = vsub.f32 1.5, %v1693_v28 }
 0xffc   :  { %v1695_v30 = vmul.f32 %v6002_v5, %v1694_v29 }
 0xffe   :  { %v1699_v50 = vsel %vm1698_vm12, %v6002_v5, %v1695_v30 }
 0xfff   :  { %v1710_v9 = vmul.f32 %v1699_v50, %v1676_v61 }
0x1000   :  { %v6936_v52 = vpop.permute.xlu1 %2140 }
0x1001   :  { %v1714_v36 = vmul.f32 %v6912_v41, %v1710_v9 }
0x1003   :  { %v6921_v59 = vadd.f32 %v6917_v34, %v1714_v36 }
0x1005   :  { %v1942_v37 = vpop.xlane.xlu2 %1941  ;;  %5684 = vmatmul.msk.f32.vlgmr.msra.gmra.mxu0 %vm60_vm0, %v6921_v59 }
0x1006   :  { %6003 = vrcp.f32 %v1942_v37 }
0x100c   :  { %v6004_v38 = vpop.eup %6003 }
0x100d   :  { %v1944_v39 = vmul.f32 %v6004_v38, %v6000_v2  ;;  %v2104_v40 = vpop.permute.xlu2 %2103  ;;  %v1777_v2 = vld [vmem:[%s8147_s3 + $0x130] sm:$0xff] }
0x100e   :  { %5699 = vmatpush.xpose.msk.msra.mxu3 %vm257_vm3, %v2104_v40  ;;  %1800 = vmatpush.msrb.mxu0 %v1777_v2 }
0x100f   :  { %5692 = vmatmul.msk.f32.vlgmr.msrb.gmra.mxu1 %vm257_vm3, %v1944_v39 }
0x1011   :  { %5700 = vmatmul.msk.f32.vlgmr.msra.gmra.mxu3 %vm257_vm3, %v2102_v51  ;;  %v1776_v51 = vld [vmem:[%s8147_s3 + $0x128] sm:$0xff] }
0x1012   :  { %1801 = vmatpush.msrb.mxu0 %v1776_v51 }
0x1014   :  { %1802 = vmatpush.msrb.mxu0 %v1775_v1 }
0x1016   :  { %1803 = vmatpush.msrb.mxu0 %v1774_v3 }
0x1017   :  { %5697 = vmatmul.msk.f32.vlgmr.msra.gmra.mxu1 %vm257_vm3, %v2037_v14 }
0x1018   :  { %1804 = vmatpush.msrb.mxu0 %v1773_v12 }
0x1024   :  { %v1996_v49 = vpop.f32.mrf.mxu3 }
0x1025   :  { %v1997_v6 = vadd.f32 %v1996_v49, %v6853_v19 }
0x1027   :  { %v1999_v53 = vsel %vm257_vm3, %v1997_v6, -inf }
0x1046   :  { %v1673_v7 = vpop.xlane.xlu2 %1672 }
0x1047   :  { %v1675_v42 = vmul.f32 %v1673_v7, %v6470_v46 }
0x1049   :  { %v6930_v22 = vsub.f32 %v1667_v8, %v1675_v42 }
0x104b   :  { %v1679_v45 = vmul.f32 %v6930_v22, %v6930_v22 }
0x104d   :  { %v1683_v47 = vsel %vm60_vm0, %v1679_v45, 0.0 }
0x104e   :  { %1684 = vadd.xlane.f32.xlu0 %v1683_v47 }
0x1056   :  { %2000 = vmax.xlane.f32.xlu0 %v1999_v53 }
0x105d   :  { %v2184_v35 = vpop.permute.xlu1 %2183 }
0x105e   :  { %5702 = vmatpush.xpose.msk.msrb.mxu1 %vm257_vm3, %v2184_v35 }
0x1061   :  { %5703 = vmatmul.msk.f32.vlgmr.msrb.gmra.mxu1 %vm257_vm3, %v6941_v27 }
0x1065   :  { %v2319_v56 = vpop.permute.xlu1 %2318 }
0x1066   :  { %5708 = vmatpush.xpose.msk.msra.mxu1 %vm257_vm3, %v2319_v56 }
0x1082   :  { %v1749_v21 = vpop.f32.mrf.mxu0 }
0x1083   :  { %v1750_v63 = vadd.f32 %v6973_v4, %v1749_v21 }
0x1085   :  { %v1757_v14 = vmul.f32 0.044715, %v1750_v63  ;;  %v1755_v45 = vmul.f32 0.5, %v1750_v63 }
0x1087   :  { %v1759_v55 = vmul.f32 %v1757_v14, %v1750_v63 }
0x1089   :  { %v1761_v17 = vmul.f32 %v1759_v55, %v1750_v63 }
0x108b   :  { %v1763_v10 = vadd.f32 %v1761_v17, %v1750_v63 }
0x108c   :  { %v6946_v15 = vpop.f32.mrf.mxu1 }
0x108d   :  { %v1765_v29 = vmul.f32 0.7978846, %v1763_v10 }
0x1094   :  { %v2061_v57 = vpop.f32.mrf.mxu1  ;;  %v2126_v58 = vpop.f32.mrf.mxu3 }
0x1095   :  { %v6949_v31 = vadd.f32 %v2061_v57, %v6853_v19  ;;  %v6952_v61 = vadd.f32 %v2126_v58, %v6853_v19 }
0x1097   :  { %v2129_v0 = vsel %vm257_vm3, %v6952_v61, -inf  ;;  %v2064_v62 = vsel %vm257_vm3, %v6949_v31, -inf }
0x1098   :  { %2130 = vmax.xlane.f32.xlu2 %v2129_v0  ;;  %2065 = vmax.xlane.f32.xlu0 %v2064_v62 }
0x10c1   :  { %v1685_v8 = vpop.xlane.xlu0 %1684 }
0x10c2   :  { %v1687_v11 = vmul.f32 %v1685_v8, %v6470_v46 }
0x10c4   :  { %v1689_v54 = vadd.f32 1e-12, %v1687_v11 }
0x10c6   :  { %6005 = vrsqrt.f32 %v1689_v54  ;;  %vm1706_vm14 = vweird.f32 %v1689_v54 }
0x10c9   :  { %v2001_v26 = vpop.xlane.xlu0 %2000 }
0x10ca   :  { %v2002_v16 = vsub.f32 %v1997_v6, %v2001_v26 }
0x10cc   :  { %v6006_v33 = vpop.eup %6005  ;;  %v2003_v20 = vmul.f32 1.442695, %v2002_v16 }
0x10cd   :  { %v1701_v5 = vmul.f32 %v6006_v33, %v1689_v54  ;;  %vm1707_vm13 = vweird.f32 %v6006_v33 }
0x10ce   :  { %6007 = vpow2.f32 %v2003_v20  ;;  %vm1708_vm15 = vmor %vm1706_vm14, %vm1707_vm13 }
0x10cf   :  { %v1702_v13 = vmul.f32 %v6006_v33, %v1701_v5  ;;  %6009 = vtanh.f32 %v1765_v29 }
0x10d1   :  { %v1703_v28 = vmul.f32 0.5, %v1702_v13 }
0x10d3   :  { %v1704_v30 = vsub.f32 1.5, %v1703_v28 }
0x10d4   :  { %v6008_v50 = vpop.eup %6007 }
0x10d5   :  { %v1705_v9 = vmul.f32 %v6006_v33, %v1704_v30  ;;  %v2005_v36 = vsel %vm257_vm3, %v6008_v50, 0.0  ;;  %v6010_v7 = vpop.eup %6009 }
0x10d6   :  { %2006 = vadd.xlane.f32.xlu2 %v2005_v36  ;;  %v1769_v42 = vadd.f32 1.0, %v6010_v7  ;;  %v2464_v7 = vld [vmem:[%s8147_s3 + $0x180] sm:$0xff] }
0x10d7   :  { %v1709_v37 = vsel %vm1708_vm15, %v6006_v33, %v1705_v9  ;;  %2485 = vmatpush.msrb.mxu1 %v2464_v7 }
0x10d8   :  { %v1711_v38 = vmul.f32 %v1709_v37, %v6930_v22  ;;  %v1771_v47 = vmul.f32 %v1769_v42, %v1755_v45  ;;  %v2463_v42 = vld [vmem:[%s8147_s3 + $0x178] sm:$0xff] }
0x10d9   :  { %2486 = vmatpush.msrb.mxu1 %v2463_v42 }
0x10da   :  { %v1715_v39 = vmul.f32 %v6912_v41, %v1711_v38 }
0x10dc   :  { %v6993_v40 = vadd.f32 %v6917_v34, %v1715_v39 }
0x10de   :  { %5685 = vmatmul.msk.f32.gmra.mxu0 %vm60_vm0, %v6993_v40 }
0x10e6   :  { %5686 = vmatmul.msk.f32.vlgmr.msrb.gmra.mxu0 %vm960_vm10, %v1771_v47 }
0x10ee   :  { %2010 = vrot.lane.b32.xlu2 %v6819_v43, %s6224_s24 }
0x10f6   :  { %2253 = vrot.lane.b32.xlu2 %v6902_v18, %s6219_s17 }
0x10fe   :  { %2383 = vrot.lane.b32.xlu2 %v6902_v18, %s6221_s19 }
0x1106   :  { %2316 = vrot.lane.b32.xlu2 %v6941_v27, %s6215_s29 }
0x110b   :  { %v2131_v41 = vpop.xlane.xlu2 %2130  ;;  %v2066_v34 = vpop.xlane.xlu0 %2065 }
0x110c   :  { %v2132_v22 = vsub.f32 %v6952_v61, %v2131_v41  ;;  %v2067_v6 = vsub.f32 %v6949_v31, %v2066_v34  ;;  %v2462_v34 = vld [vmem:[%s8147_s3 + $0x170] sm:$0xff] }
0x110d   :  { %2487 = vmatpush.msrb.mxu1 %v2462_v34 }
0x110e   :  { %v2133_v49 = vmul.f32 1.442695, %v2132_v22  ;;  %v2068_v53 = vmul.f32 1.442695, %v2067_v6 }
0x1110   :  { %6011 = vpow2.f32 %v2133_v49 }
0x1111   :  { %6013 = vpow2.f32 %v2068_v53  ;;  %v2461_v53 = vld [vmem:[%s8147_s3 + $0x168] sm:$0xff] }
0x1112   :  { %2488 = vmatpush.msrb.mxu1 %v2461_v53 }
0x1116   :  { %v6012_v35 = vpop.eup %6011 }
0x1117   :  { %v2135_v56 = vsel %vm257_vm3, %v6012_v35, 0.0  ;;  %v6014_v57 = vpop.eup %6013 }
0x1118   :  { %2136 = vadd.xlane.f32.xlu0 %v2135_v56  ;;  %v2070_v58 = vsel %vm257_vm3, %v6014_v57, 0.0 }
0x1120   :  { %2071 = vadd.xlane.f32.xlu0 %v2070_v58 }
0x1134   :  { %2075 = vrot.lane.b32.xlu0 %v6819_v43, %s6223_s2 }
0x113c   :  { %2251 = vrot.lane.b32.xlu0 %v6941_v27, %s6220_s18 }
0x1144   :  { %2381 = vrot.lane.b32.xlu0 %v6941_v27, %s6222_s1 }
0x1149   :  { %v2007_v31 = vpop.xlane.xlu2 %2006 }
0x114a   :  { %6015 = vrcp.f32 %v2007_v31 }
0x1150   :  { %v6016_v61 = vpop.eup %6015 }
0x1151   :  { %v2009_v0 = vmul.f32 %v6016_v61, %v6008_v50  ;;  %v2011_v62 = vpop.permute.xlu2 %2010  ;;  %v2211_v50 = vpop.f32.mrf.mxu1 }
0x1152   :  { %2031 = vmatpush.msrb.mxu2 %v2011_v62 }
0x1153   :  { %5695 = vmatmul.msk.f32.vlgmr.msrb.gmra.mxu2 %vm257_vm3, %v2009_v0 }
0x1154   :  { %2161 = vmatpush.msra.mxu2 %v6936_v52 }
0x1159   :  { %v2254_v25 = vpop.permute.xlu2 %2253 }
0x115a   :  { %5705 = vmatpush.xpose.msk.msrb.mxu3 %vm257_vm3, %v2254_v25 }
0x115b   :  { %v1752_v43 = vpop.f32.mrf.mxu0 }
0x115c   :  { %v1753_v44 = vadd.f32 %v6973_v4, %v1752_v43 }
0x115e   :  { %v1758_v48 = vmul.f32 0.044715, %v1753_v44  ;;  %v1756_v52 = vmul.f32 0.5, %v1753_v44 }
0x1160   :  { %v1760_v2 = vmul.f32 %v1758_v48, %v1753_v44 }
0x1161   :  { %v2384_v21 = vpop.permute.xlu2 %2383 }
0x1162   :  { %5711 = vmatpush.xpose.msk.msra.mxu3 %vm257_vm3, %v2384_v21  ;;  %v1762_v27 = vmul.f32 %v1760_v2, %v1753_v44 }
0x1163   :  { %v7030_v5 = vpop.f32.mrf.mxu0 }
0x1164   :  { %v1764_v51 = vadd.f32 %v1762_v27, %v1753_v44 }
0x1166   :  { %v1766_v1 = vmul.f32 0.7978846, %v1764_v51 }
0x1168   :  { %6017 = vtanh.f32 %v1766_v1  ;;  %v7075_v1 = vld [vmem:[%s8147_s3 + $0x188] ss:$0 sm:$0xff] }
0x1169   :  { %v2317_v63 = vpop.permute.xlu2 %2316 }
0x116a   :  { %5709 = vmatmul.msk.f32.vlgmr.msra.gmra.mxu1 %vm257_vm3, %v2317_v63 }
0x116e   :  { %v6018_v3 = vpop.eup %6017 }
0x116f   :  { %v1770_v8 = vadd.f32 1.0, %v6018_v3 }
0x1171   :  { %v1772_v11 = vmul.f32 %v1770_v8, %v1756_v52 }
0x1173   :  { %5687 = vmatmul.msk.f32.gmra.mxu0 %vm960_vm10, %v1772_v11 }
0x118b   :  { %v2137_v12 = vpop.xlane.xlu0 %2136 }
0x118c   :  { %6019 = vrcp.f32 %v2137_v12 }
0x1192   :  { %v6020_v4 = vpop.eup %6019 }
0x1193   :  { %v2139_v14 = vmul.f32 %v6020_v4, %v6012_v35  ;;  %v2072_v54 = vpop.xlane.xlu0 %2071 }
0x1194   :  { %6021 = vrcp.f32 %v2072_v54 }
0x1195   :  { %5701 = vmatmul.msk.f32.vlgmr.msra.gmra.mxu2 %vm257_vm3, %v2139_v14 }
0x119a   :  { %v6022_v55 = vpop.eup %6021 }
0x119b   :  { %v2074_v26 = vmul.f32 %v6022_v55, %v6014_v57 }
0x11a6   :  { %v2076_v16 = vpop.permute.xlu0 %2075 }
0x11a7   :  { %2096 = vmatpush.msra.mxu0 %v2076_v16 }
0x11a8   :  { %5698 = vmatmul.msk.f32.vlgmr.msra.gmra.mxu0 %vm257_vm3, %v2074_v26 }
0x11ae   :  { %v2252_v17 = vpop.permute.xlu0 %2251 }
0x11af   :  { %5706 = vmatmul.msk.f32.vlgmr.msrb.gmra.mxu3 %vm257_vm3, %v2252_v17 }
0x11b6   :  { %v2382_v33 = vpop.permute.xlu0 %2381 }
0x11b7   :  { %5712 = vmatmul.msk.f32.vlgmr.msra.gmra.mxu3 %vm257_vm3, %v2382_v33 }
0x11d6   :  { %v2033_v20 = vpop.f32.mrf.mxu2 }
0x11d7   :  { %2167 = vrot.lane.b32.xlu1 %v2033_v20, %s6226_s8 }
0x11df   :  { %2186 = vrot.lane.b32.xlu1 %v6414_v32, %s6220_s18 }
0x11e7   :  { %v2341_v22 = vpop.f32.mrf.mxu1 }
0x11f0   :  { %v7033_v13 = vpop.f32.mrf.mxu0 }
0x1218   :  { %v2163_v10 = vpop.f32.mrf.mxu2 }
0x1219   :  { %2175 = vrot.lane.b32.xlu2 %v2163_v10, %s6227_s9 }
0x1225   :  { %v2098_v28 = vpop.f32.mrf.mxu0 }
0x1226   :  { %2171 = vrot.lane.b32.xlu0 %v2098_v28, %s6228_s10 }
0x1232   :  { %v2276_v29 = vpop.f32.mrf.mxu3 }
0x123a   :  { %v2406_v9 = vpop.f32.mrf.mxu3 }
0x1249   :  { %v2168_v30 = vpop.permute.xlu1 %2167 }
0x124a   :  { %v2178_v35 = vsel %vm257_vm3, %v6946_v15, %v2168_v30 }
0x1251   :  { %v7036_v36 = vpop.permute.xlu1 %2186 }
0x1252   :  { %v2212_v37 = vadd.f32 %v2211_v50, %v7036_v36  ;;  %v2277_v38 = vadd.f32 %v2276_v29, %v7036_v36  ;;  %v2407_v39 = vadd.f32 %v2406_v9, %v7036_v36  ;;  %v2342_v49 = vadd.f32 %v2341_v22, %v7036_v36 }
0x1254   :  { %v2214_v45 = vsel %vm257_vm3, %v2212_v37, -inf  ;;  %v2279_v47 = vsel %vm257_vm3, %v2277_v38, -inf  ;;  %v2409_v41 = vsel %vm257_vm3, %v2407_v39, -inf  ;;  %v2344_v6 = vsel %vm257_vm3, %v2342_v49, -inf }
0x1255   :  { %2215 = vmax.xlane.f32.xlu2 %v2214_v45  ;;  %2280 = vmax.xlane.f32.xlu0 %v2279_v47  ;;  %v7097_v47 = vld [vmem:[%s8147_s3 + $0x150] ss:$0 sm:$0xff] }
0x1256   :  { %2410 = vmax.xlane.f32.xlu1 %v2409_v41  ;;  %v1807_v41 = vadd.f32 %v7097_v47, %v7030_v5 }
0x1258   :  { %v7102_v34 = vadd.f32 %v1807_v41, %v6921_v59 }
0x125a   :  { %v1814_v22 = vsel %vm60_vm0, %v7102_v34, 0.0 }
0x125d   :  { %2345 = vmax.xlane.f32.xlu0 %v2344_v6 }
0x1273   :  { %v2176_v57 = vpop.permute.xlu2 %2175 }
0x1298   :  { %v2172_v56 = vpop.permute.xlu0 %2171 }
0x1299   :  { %v2179_v58 = vsel %vm30_vm4, %v2178_v35, %v2172_v56 }
0x129a   :  { %v2180_v31 = vsel %vm529_vm5, %v2179_v58, %v2176_v57 }
0x129b   :  { %5714 = vmatmul.msk.f32.vlgmr.msrb.gmra.mxu1 %vm60_vm0, %v2180_v31 }
0x12c8   :  { %v2216_v61 = vpop.xlane.xlu2 %2215  ;;  %v2281_v0 = vpop.xlane.xlu0 %2280 }
0x12c9   :  { %v2217_v62 = vsub.f32 %v2212_v37, %v2216_v61  ;;  %v2282_v25 = vsub.f32 %v2277_v38, %v2281_v0  ;;  %v2411_v27 = vpop.xlane.xlu1 %2410  ;;  %v2553_v0 = vld [vmem:[%s8149_s4 + $0x68] sm:$0xff] }
0x12ca   :  { %v2412_v51 = vsub.f32 %v2407_v39, %v2411_v27  ;;  %v2550_v27 = vld [vmem:[%s8149_s4 + $0x50] sm:$0xff] }
0x12cb   :  { %v2218_v43 = vmul.f32 1.442695, %v2217_v62  ;;  %v2283_v44 = vmul.f32 1.442695, %v2282_v25  ;;  %v2552_v25 = vld [vmem:[%s8149_s4 + $0x60] sm:$0xff] }
0x12cc   :  { %v2413_v63 = vmul.f32 1.442695, %v2412_v51 }
0x12cd   :  { %6023 = vpow2.f32 %v2218_v43 }
0x12ce   :  { %6025 = vpow2.f32 %v2283_v44 }
0x12cf   :  { %6027 = vpow2.f32 %v2413_v63 }
0x12d0   :  { %v2346_v52 = vpop.xlane.xlu0 %2345 }
0x12d1   :  { %v2347_v12 = vsub.f32 %v2342_v49, %v2346_v52 }
0x12d3   :  { %v7063_v48 = vpop.eup %6023  ;;  %v2348_v14 = vmul.f32 1.442695, %v2347_v12  ;;  %v2608_v12 = vld [vmem:[%s8147_s3 + $0x1c8] sm:$0xff] }
0x12d4   :  { %v2220_v15 = vsel %vm257_vm3, %v7063_v48, 0.0  ;;  %v6026_v2 = vpop.eup %6025 }
0x12d5   :  { %2221 = vadd.xlane.f32.xlu0 %v2220_v15  ;;  %v2285_v21 = vsel %vm257_vm3, %v6026_v2, 0.0  ;;  %v6028_v54 = vpop.eup %6027  ;;  %6029 = vpow2.f32 %v2348_v14 }
0x12d6   :  { %2286 = vadd.xlane.f32.xlu1 %v2285_v21  ;;  %v2415_v55 = vsel %vm257_vm3, %v6028_v54, 0.0 }
0x12db   :  { %v7081_v26 = vpop.eup %6029 }
0x12dc   :  { %v2350_v16 = vsel %vm257_vm3, %v7081_v26, 0.0 }
0x12e9   :  { %2290 = vrot.lane.b32.xlu0 %v6902_v18, %s6224_s24 }
0x12f1   :  { %2355 = vrot.lane.b32.xlu0 %v6902_v18, %s6223_s2 }
0x1318   :  { %v2490_v3 = vpop.f32.mrf.mxu1 }
0x1319   :  { %v2491_v8 = vadd.f32 %v7075_v1, %v2490_v3  ;;  %v7133_v3 = vld [vmem:[%s8147_s3 + $0x198] ss:$0 sm:$0xff] }
0x131b   :  { %v2496_v11 = vadd.f32 %v2491_v8, %v6780_v60  ;;  %v2610_v8 = vld [vmem:[%s8147_s3 + $0x1d8] sm:$0xff] }
0x131c   :  { %2627 = vmatpush.msrb.mxu3 %v2610_v8 }
0x131d   :  { %v2498_v4 = vsel %vm60_vm0, %v2496_v11, 0.0 }
0x131e   :  { %2499 = vadd.xlane.f32.xlu2 %v2498_v4  ;;  %v2607_v4 = vld [vmem:[%s8147_s3 + $0x1c0] sm:$0xff] }
0x1326   :  { %2416 = vadd.xlane.f32.xlu2 %v2415_v55  ;;  %v2605_v55 = vld [vmem:[%s8147_s3 + $0x1b0] sm:$0xff] }
0x132e   :  { %2351 = vadd.xlane.f32.xlu2 %v2350_v16  ;;  %v2603_v16 = vld [vmem:[%s8147_s3 + $0x1a0] sm:$0xff] }
0x1346   :  { %2420 = vrot.lane.b32.xlu2 %v6902_v18, %s6225_s25 }
0x1348   :  { %v2222_v17 = vpop.xlane.xlu0 %2221 }
0x1349   :  { %v2287_v60 = vpop.xlane.xlu1 %2286 }
0x134a   :  { %6031 = vrcp.f32 %v2287_v60 }
0x1350   :  { %v6032_v33 = vpop.eup %6031 }
0x1351   :  { %v2289_v20 = vmul.f32 %v6032_v33, %v6026_v2  ;;  %v7122_v2 = vld [vmem:[%s8147_s3 + $0x190] ss:$0 sm:$0xff] }
0x135b   :  { %v2291_v10 = vpop.permute.xlu0 %2290 }
0x135c   :  { %2311 = vmatpush.msrb.mxu2 %v2291_v10 }
0x135d   :  { %5707 = vmatmul.msk.f32.vlgmr.msrb.gmra.mxu2 %vm257_vm3, %v2289_v20 }
0x1363   :  { %v2356_v62 = vpop.permute.xlu0 %2355 }
0x1391   :  { %v2500_v28 = vpop.xlane.xlu2 %2499 }
0x1392   :  { %v2504_v29 = vmul.f32 %v2500_v28, %v6470_v46 }
0x1394   :  { %v2506_v30 = vsub.f32 %v2496_v11, %v2504_v29  ;;  %v2609_v11 = vld [vmem:[%s8147_s3 + $0x1d0] sm:$0xff] }
0x1395   :  { %2628 = vmatpush.msrb.mxu3 %v2609_v11 }
0x1396   :  { %v2508_v50 = vmul.f32 %v2506_v30, %v2506_v30 }
0x1397   :  { %2629 = vmatpush.msrb.mxu3 %v2608_v12 }
0x1398   :  { %v2510_v9 = vsel %vm60_vm0, %v2508_v50, 0.0 }
0x1399   :  { %v2417_v37 = vpop.xlane.xlu2 %2416  ;;  %2511 = vadd.xlane.f32.xlu1 %v2510_v9  ;;  %2630 = vmatpush.msrb.mxu3 %v2607_v4  ;;  %v5893_v4 = vld [vmem:[%s8147_s3 + $0x160] ss:$0 sm:$0xff] }
0x139a   :  { %6033 = vrcp.f32 %v2417_v37 }
0x13a0   :  { %v6034_v39 = vpop.eup %6033 }
0x13a1   :  { %v2352_v38 = vpop.xlane.xlu2 %2351  ;;  %v2419_v7 = vmul.f32 %v6034_v39, %v6028_v54  ;;  %v2606_v54 = vld [vmem:[%s8147_s3 + $0x1b8] sm:$0xff] }
0x13a2   :  { %2631 = vmatpush.msrb.mxu3 %v2606_v54 }
0x13a4   :  { %2632 = vmatpush.msrb.mxu3 %v2605_v55 }
0x13a9   :  { %v2421_v42 = vpop.permute.xlu2 %2420 }
0x13aa   :  { %2441 = vmatpush.msra.mxu2 %v2421_v42  ;;  %v1810_v42 = vadd.f32 %v7097_v47, %v7033_v13 }
0x13ab   :  { %5713 = vmatmul.msk.f32.vlgmr.msra.gmra.mxu2 %vm257_vm3, %v2419_v7 }
0x13b2   :  { %2225 = vrot.lane.b32.xlu1 %v6902_v18, %s6216_s12 }
0x13e0   :  { %v2313_v45 = vpop.f32.mrf.mxu2 }
0x13e1   :  { %2447 = vrot.lane.b32.xlu0 %v2313_v45, %s6226_s8 }
0x140b   :  { %1815 = vadd.xlane.f32.xlu0 %v1814_v22  ;;  %v1813_v22 = vadd.f32 %v1810_v42, %v6993_v40  ;;  %v2699_v40 = vld [vmem:[%s8144_s5 + $0x90] sm:$0xff] }
0x140c   :  { %v2512_v49 = vpop.xlane.xlu1 %2511  ;;  %2726 = vmatpush.msrb.mxu2 %v2699_v40 }
0x140d   :  { %v2516_v18 = vmul.f32 %v2512_v49, %v6470_v46 }
0x140f   :  { %v2518_v6 = vadd.f32 1e-12, %v2516_v18  ;;  %v1817_v18 = vsel %vm60_vm0, %v1813_v22, 0.0 }
0x1411   :  { %6035 = vrsqrt.f32 %v2518_v6  ;;  %vm2526_vm2 = vweird.f32 %v2518_v6 }
0x1412   :  { %6037 = vrcp.f32 %v2222_v17  ;;  %v7168_v17 = vld [vmem:[%s8149_s4 + $0x70] ss:$0 sm:$0xff] }
0x1413   :  { %6039 = vrcp.f32 %v2352_v38 }
0x1417   :  { %v6036_v53 = vpop.eup %6035 }
0x1418   :  { %v2521_v35 = vmul.f32 %v6036_v53, %v2518_v6  ;;  %v6038_v58 = vpop.eup %6037  ;;  %vm2527_vm1 = vweird.f32 %v6036_v53 }
0x1419   :  { %v2224_v59 = vmul.f32 %v6038_v58, %v7063_v48  ;;  %vm2528_vm6 = vmor %vm2526_vm2, %vm2527_vm1  ;;  %v6040_v43 = vpop.eup %6039  ;;  %v2551_v48 = vld [vmem:[%s8149_s4 + $0x58] sm:$0xff]  ;;  %v2698_v58 = vld [vmem:[%s8144_s5 + $0x88] sm:$0xff] }
0x141a   :  { %v2522_v56 = vmul.f32 %v6036_v53, %v2521_v35  ;;  %v2354_v15 = vmul.f32 %v6040_v43, %v7081_v26  ;;  %v2604_v26 = vld [vmem:[%s8147_s3 + $0x1a8] sm:$0xff]  ;;  %2727 = vmatpush.msrb.mxu2 %v2698_v58 }
0x141b   :  { %2633 = vmatpush.msrb.mxu3 %v2604_v26 }
0x141c   :  { %v2523_v57 = vmul.f32 0.5, %v2522_v56 }
0x141d   :  { %2634 = vmatpush.msrb.mxu3 %v2603_v16 }
0x141e   :  { %v2524_v31 = vsub.f32 1.5, %v2523_v57 }
0x1420   :  { %v2525_v61 = vmul.f32 %v6036_v53, %v2524_v31  ;;  %v2697_v31 = vld [vmem:[%s8144_s5 + $0x80] sm:$0xff] }
0x1421   :  { %2728 = vmatpush.msrb.mxu2 %v2697_v31 }
0x1422   :  { %v2529_v44 = vsel %vm2528_vm6, %v6036_v53, %v2525_v61 }
0x1423   :  { %v2540_v21 = vmul.f32 %v2529_v44, %v2506_v30 }
0x1424   :  { %v2226_v5 = vpop.permute.xlu1 %2225 }
0x1425   :  { %2246 = vmatpush.msrb.mxu0 %v2226_v5  ;;  %v2544_v63 = vmul.f32 %v7122_v2, %v2540_v21  ;;  %v2696_v5 = vld [vmem:[%s8144_s5 + $0x78] sm:$0xff] }
0x1426   :  { %5704 = vmatmul.msk.f32.vlgmr.msrb.gmra.mxu0 %vm257_vm3, %v2224_v59  ;;  %v7195_v59 = vld [vmem:[%s8147_s3 + $0x1e0] ss:$0 sm:$0xff]  ;;  %2729 = vmatpush.msrb.mxu2 %v2696_v5 }
0x1427   :  { %2376 = vmatpush.msra.mxu0 %v2356_v62  ;;  %v7136_v52 = vadd.f32 %v7133_v3, %v2544_v63 }
0x1429   :  { %2574 = vmatpush.msrb.mxu0 %v2553_v0 }
0x142b   :  { %2575 = vmatpush.msrb.mxu0 %v2552_v25 }
0x142d   :  { %2576 = vmatpush.msrb.mxu0 %v2551_v48 }
0x142e   :  { %5710 = vmatmul.msk.f32.vlgmr.msra.gmra.mxu0 %vm257_vm3, %v2354_v15  ;;  %v2443_v51 = vpop.f32.mrf.mxu2 }
0x142f   :  { %2455 = vrot.lane.b32.xlu2 %v2443_v51, %s6227_s9  ;;  %2577 = vmatpush.msrb.mxu0 %v2550_v27 }
0x1436   :  { %5716 = vmatmul.msk.f32.vlgmr.msrb.gmra.mxu0 %vm60_vm0, %v7136_v52 }
0x1453   :  { %v2448_v37 = vpop.permute.xlu0 %2447 }
0x147e   :  { %v1816_v45 = vpop.xlane.xlu0 %1815 }
0x147f   :  { %v1820_v41 = vmul.f32 %v1816_v45, %v6470_v46 }
0x1481   :  { %v1822_v49 = vsub.f32 %v7102_v34, %v1820_v41 }
0x1483   :  { %v1824_v6 = vmul.f32 %v1822_v49, %v1822_v49 }
0x1485   :  { %v1826_v53 = vsel %vm60_vm0, %v1824_v6, 0.0 }
0x1489   :  { %v2456_v57 = vpop.permute.xlu2 %2455 }
0x14a3   :  { %v2248_v14 = vpop.f32.mrf.mxu0 }
0x14a4   :  { %v2458_v35 = vsel %vm257_vm3, %v2248_v14, %v2448_v37 }
0x14ab   :  { %v2378_v60 = vpop.f32.mrf.mxu0 }
0x14ac   :  { %2451 = vrot.lane.b32.xlu1 %v2378_v60, %s6228_s10 }
0x14b3   :  { %v2579_v33 = vpop.f32.mrf.mxu0 }
0x14b4   :  { %v2580_v20 = vadd.f32 %v7168_v17, %v2579_v33 }
0x14b6   :  { %v2587_v10 = vmul.f32 0.044715, %v2580_v20  ;;  %v2585_v38 = vmul.f32 0.5, %v2580_v20 }
0x14b8   :  { %v2589_v28 = vmul.f32 %v2587_v10, %v2580_v20 }
0x14ba   :  { %v2591_v29 = vmul.f32 %v2589_v28, %v2580_v20 }
0x14bc   :  { %v2593_v30 = vadd.f32 %v2591_v29, %v2580_v20 }
0x14be   :  { %v2595_v50 = vmul.f32 0.7978846, %v2593_v30 }
0x14c0   :  { %6041 = vtanh.f32 %v2595_v50 }
0x14c6   :  { %v6042_v9 = vpop.eup %6041 }
0x14c7   :  { %v2599_v39 = vadd.f32 1.0, %v6042_v9 }
0x14c9   :  { %v2601_v7 = vmul.f32 %v2599_v39, %v2585_v38 }
0x14cb   :  { %5718 = vmatmul.msk.f32.vlgmr.msrb.gmra.mxu3 %vm960_vm10, %v2601_v7 }
0x14d6   :  { %1818 = vadd.xlane.f32.xlu1 %v1817_v18 }
0x14de   :  { %1827 = vadd.xlane.f32.xlu1 %v1826_v53 }
0x151e   :  { %v2452_v56 = vpop.permute.xlu1 %2451 }
0x151f   :  { %v2459_v13 = vsel %vm30_vm4, %v2458_v35, %v2452_v56 }
0x1520   :  { %v2460_v47 = vsel %vm529_vm5, %v2459_v13, %v2456_v57 }
0x1521   :  { %5715 = vmatmul.msk.f32.gmra.mxu1 %vm60_vm0, %v2460_v47 }
0x1549   :  { %v1819_v34 = vpop.xlane.xlu1 %1818 }
0x154a   :  { %v1821_v26 = vmul.f32 %v1819_v34, %v6470_v46 }
0x154c   :  { %v1823_v33 = vsub.f32 %v1813_v22, %v1821_v26 }
0x154e   :  { %v2636_v61 = vpop.f32.mrf.mxu3  ;;  %v1825_v10 = vmul.f32 %v1823_v33, %v1823_v33 }
0x154f   :  { %v2637_v0 = vadd.f32 %v7195_v59, %v2636_v61 }
0x1550   :  { %v1829_v28 = vsel %vm60_vm0, %v1825_v10, 0.0 }
0x1551   :  { %v2642_v62 = vadd.f32 %v2637_v0, %v7136_v52  ;;  %v1828_v25 = vpop.xlane.xlu1 %1827  ;;  %v5892_v52 = vld [vmem:[%s8147_s3 + $0x158] ss:$0 sm:$0xff] }
0x1552   :  { %v1832_v43 = vmul.f32 %v1828_v25, %v6470_v46 }
0x1553   :  { %v2644_v44 = vsel %vm60_vm0, %v2642_v62, 0.0 }
0x1554   :  { %v1834_v48 = vadd.f32 1e-12, %v1832_v43  ;;  %2645 = vadd.xlane.f32.xlu0 %v2644_v44 }
0x1556   :  { %6043 = vrsqrt.f32 %v1834_v48  ;;  %vm1842_vm8 = vweird.f32 %v1834_v48 }
0x155c   :  { %v6044_v15 = vpop.eup %6043 }
0x155d   :  { %v1837_v21 = vmul.f32 %v6044_v15, %v1834_v48  ;;  %vm1843_vm7 = vweird.f32 %v6044_v15 }
0x155e   :  { %vm1844_vm9 = vmor %vm1842_vm8, %vm1843_vm7 }
0x155f   :  { %v1838_v27 = vmul.f32 %v6044_v15, %v1837_v21  ;;  %v7245_v21 = vld [vmem:[%s8147_s3 + $0x1e8] ss:$0 sm:$0xff] }
0x1561   :  { %v1839_v51 = vmul.f32 0.5, %v1838_v27 }
0x1563   :  { %v1840_v63 = vsub.f32 1.5, %v1839_v51 }
0x1565   :  { %v1841_v8 = vmul.f32 %v6044_v15, %v1840_v63  ;;  %v7250_v63 = vld [vmem:[%s8147_s3 + $0x1f0] ss:$0 sm:$0xff] }
0x1567   :  { %v1845_v11 = vsel %vm1844_vm9, %v6044_v15, %v1841_v8 }
0x1568   :  { %v1856_v12 = vmul.f32 %v1845_v11, %v1822_v49 }
0x156a   :  { %v1860_v14 = vmul.f32 %v5892_v52, %v1856_v12 }
0x156c   :  { %v7210_v54 = vadd.f32 %v5893_v4, %v1860_v14 }
0x156e   :  { %5720 = vmatmul.msk.f32.vlgmr.msrb.gmra.mxu2 %vm60_vm0, %v7210_v54 }
0x159e   :  { %v2493_v55 = vpop.f32.mrf.mxu1 }
0x159f   :  { %v2494_v16 = vadd.f32 %v7075_v1, %v2493_v55 }
0x15a1   :  { %v2497_v60 = vadd.f32 %v2494_v16, %v6871_v23  ;;  %v7224_v23 = vld [vmem:[%s8144_s5 + $0x98] ss:$0 sm:$0xff] }
0x15a3   :  { %v2501_v20 = vsel %vm60_vm0, %v2497_v60, 0.0 }
0x15a4   :  { %2502 = vadd.xlane.f32.xlu2 %v2501_v20 }
0x15ac   :  { %1830 = vadd.xlane.f32.xlu2 %v1829_v28 }
0x15c7   :  { %v2646_v29 = vpop.xlane.xlu0 %2645 }
0x15c8   :  { %v2650_v30 = vmul.f32 %v2646_v29, %v6470_v46 }
0x15ca   :  { %v2652_v50 = vsub.f32 %v2642_v62, %v2650_v30 }
0x15cc   :  { %v2654_v9 = vmul.f32 %v2652_v50, %v2652_v50 }
0x15ce   :  { %v2656_v37 = vsel %vm60_vm0, %v2654_v9, 0.0 }
0x15cf   :  { %2657 = vadd.xlane.f32.xlu1 %v2656_v37 }
0x15f1   :  { %v2731_v1 = vpop.f32.mrf.mxu2 }
0x15f2   :  { %v7227_v38 = vadd.f32 %v7224_v23, %v2731_v1 }
0x15f4   :  { %v7230_v39 = vmul.f32 0.35355338, %v7227_v38 }
0x15f6   :  { %2809 = vrot.lane.b32.xlu1 %v7230_v39, %s6220_s18 }
0x1617   :  { %v2503_v7 = vpop.xlane.xlu2 %2502 }
0x1618   :  { %v2505_v42 = vmul.f32 %v2503_v7, %v6470_v46 }
0x161a   :  { %v2507_v45 = vsub.f32 %v2497_v60, %v2505_v42 }
0x161c   :  { %v2509_v41 = vmul.f32 %v2507_v45, %v2507_v45 }
0x161e   :  { %v2513_v22 = vsel %vm60_vm0, %v2509_v41, 0.0 }
0x161f   :  { %2514 = vadd.xlane.f32.xlu0 %v2513_v22  ;;  %v1831_v49 = vpop.xlane.xlu2 %1830 }
0x1620   :  { %v1833_v18 = vmul.f32 %v1831_v49, %v6470_v46 }
0x1622   :  { %v1835_v6 = vadd.f32 1e-12, %v1833_v18 }
0x1624   :  { %6045 = vrsqrt.f32 %v1835_v6  ;;  %vm1852_vm12 = vweird.f32 %v1835_v6 }
0x162a   :  { %v6046_v53 = vpop.eup %6045 }
0x162b   :  { %v1847_v35 = vmul.f32 %v6046_v53, %v1835_v6  ;;  %vm1853_vm11 = vweird.f32 %v6046_v53 }
0x162c   :  { %vm1854_vm13 = vmor %vm1852_vm12, %vm1853_vm11 }
0x162d   :  { %v1848_v56 = vmul.f32 %v6046_v53, %v1847_v35 }
0x162f   :  { %v1849_v57 = vmul.f32 0.5, %v1848_v56 }
0x1631   :  { %v1850_v13 = vsub.f32 1.5, %v1849_v57 }
0x1633   :  { %v1851_v47 = vmul.f32 %v6046_v53, %v1850_v13 }
0x1635   :  { %v1855_v40 = vsel %vm1854_vm13, %v6046_v53, %v1851_v47 }
0x1636   :  { %v1857_v34 = vmul.f32 %v1855_v40, %v1823_v33 }
0x1638   :  { %v1861_v58 = vmul.f32 %v5892_v52, %v1857_v34 }
0x163a   :  { %v7237_v31 = vadd.f32 %v5893_v4, %v1861_v58 }
0x163c   :  { %5721 = vmatmul.msk.f32.gmra.mxu2 %vm60_vm0, %v7237_v31 }
0x1642   :  { %v2658_v5 = vpop.xlane.xlu1 %2657 }
0x1643   :  { %v2662_v61 = vmul.f32 %v2658_v5, %v6470_v46 }
0x1645   :  { %v2664_v0 = vadd.f32 1e-12, %v2662_v61 }
0x1647   :  { %6047 = vrsqrt.f32 %v2664_v0  ;;  %vm2672_vm15 = vweird.f32 %v2664_v0 }
0x164d   :  { %v6048_v62 = vpop.eup %6047 }
0x164e   :  { %v2667_v25 = vmul.f32 %v6048_v62, %v2664_v0  ;;  %vm2673_vm14 = vweird.f32 %v6048_v62 }
0x164f   :  { %vm2674_vm1 = vmor %vm2672_vm15, %vm2673_vm14 }
0x1650   :  { %v2668_v43 = vmul.f32 %v6048_v62, %v2667_v25 }
0x1652   :  { %v2669_v44 = vmul.f32 0.5, %v2668_v43 }
0x1654   :  { %v2670_v48 = vsub.f32 1.5, %v2669_v44 }
0x1656   :  { %v2671_v15 = vmul.f32 %v6048_v62, %v2670_v48 }
0x1658   :  { %v2675_v27 = vsel %vm2674_vm1, %v6048_v62, %v2671_v15 }
0x1659   :  { %v2686_v51 = vmul.f32 %v2675_v27, %v2652_v50 }
0x165b   :  { %v2690_v8 = vmul.f32 %v7245_v21, %v2686_v51 }
0x165d   :  { %v7254_v52 = vadd.f32 %v7250_v63, %v2690_v8 }
0x165f   :  { %5722 = vmatmul.msk.f32.gmra.mxu2 %vm60_vm0, %v7254_v52 }
0x1692   :  { %v2515_v11 = vpop.xlane.xlu0 %2514 }
0x1693   :  { %v2517_v12 = vmul.f32 %v2515_v11, %v6470_v46 }
0x1695   :  { %v2519_v4 = vadd.f32 1e-12, %v2517_v12 }
0x1697   :  { %6049 = vrsqrt.f32 %v2519_v4  ;;  %vm2536_vm6 = vweird.f32 %v2519_v4 }
0x169d   :  { %v6050_v14 = vpop.eup %6049 }
0x169e   :  { %v2531_v55 = vmul.f32 %v6050_v14, %v2519_v4  ;;  %vm2537_vm2 = vweird.f32 %v6050_v14 }
0x169f   :  { %vm2538_vm7 = vmor %vm2536_vm6, %vm2537_vm2 }
0x16a0   :  { %v2532_v26 = vmul.f32 %v6050_v14, %v2531_v55 }
0x16a2   :  { %v2533_v16 = vmul.f32 0.5, %v2532_v26 }
0x16a4   :  { %v2534_v60 = vsub.f32 1.5, %v2533_v16 }
0x16a6   :  { %v2535_v33 = vmul.f32 %v6050_v14, %v2534_v60 }
0x16a8   :  { %v2539_v20 = vsel %vm2538_vm7, %v6050_v14, %v2535_v33 }
0x16a9   :  { %v2541_v10 = vmul.f32 %v2539_v20, %v2507_v45 }
0x16ab   :  { %v2545_v28 = vmul.f32 %v7122_v2, %v2541_v10 }
0x16ad   :  { %v2549_v29 = vadd.f32 %v7133_v3, %v2545_v28 }
0x16af   :  { %5717 = vmatmul.msk.f32.gmra.mxu0 %vm60_vm0, %v2549_v29 }
0x16bf   :  { %v7262_v30 = vpop.f32.mrf.mxu2 }
0x16c0   :  { %v7300_v26 = vadd.f32 %v7224_v23, %v7262_v30 }
0x16c2   :  { %v7303_v16 = vmul.f32 0.35355338, %v7300_v26 }
0x16e2   :  { %v2737_v50 = vpop.f32.mrf.mxu2 }
0x16e3   :  { %v7265_v9 = vadd.f32 %v7224_v23, %v2737_v50 }
0x16e5   :  { %2811 = vrot.lane.b32.xlu0 %v7265_v9, %s6219_s17  ;;  %2745 = vrot.lane.b32.xlu2 %v7265_v9, %s6217_s13 }
0x172c   :  { %v2582_v37 = vpop.f32.mrf.mxu0 }
0x172d   :  { %v2583_v1 = vadd.f32 %v7168_v17, %v2582_v37  ;;  %v2810_v17 = vpop.permute.xlu1 %2809 }
0x172f   :  { %v2588_v2 = vmul.f32 0.044715, %v2583_v1  ;;  %v2586_v49 = vmul.f32 0.5, %v2583_v1 }
0x1731   :  { %v2590_v7 = vmul.f32 %v2588_v2, %v2583_v1 }
0x1733   :  { %v2592_v3 = vmul.f32 %v2590_v7, %v2583_v1 }
0x1735   :  { %v2594_v42 = vadd.f32 %v2592_v3, %v2583_v1 }
0x1737   :  { %v2596_v45 = vmul.f32 0.7978846, %v2594_v42 }
0x1739   :  { %6051 = vtanh.f32 %v2596_v45 }
0x173f   :  { %v6052_v41 = vpop.eup %6051  ;;  %v2746_v22 = vpop.permute.xlu2 %2745 }
0x1740   :  { %5724 = vmatpush.xpose.msk.msra.mxu1 %vm257_vm3, %v2746_v22  ;;  %v2600_v18 = vadd.f32 1.0, %v6052_v41 }
0x1742   :  { %v2602_v6 = vmul.f32 %v2600_v18, %v2586_v49 }
0x1743   :  { %5725 = vmatmul.msk.f32.vlgmr.msra.gmra.mxu1 %vm257_vm3, %v7230_v39 }
0x1744   :  { %5719 = vmatmul.msk.f32.gmra.mxu3 %vm960_vm10, %v2602_v6 }
0x1757   :  { %v2812_v53 = vpop.permute.xlu0 %2811 }
0x1758   :  { %5727 = vmatpush.xpose.msk.msrb.mxu1 %vm257_vm3, %v2812_v53 }
0x175b   :  { %5728 = vmatmul.msk.f32.vlgmr.msrb.gmra.mxu1 %vm257_vm3, %v2810_v17 }
0x17c0   :  { %v2769_v35 = vpop.f32.mrf.mxu1 }
0x17c1   :  { %v2770_v56 = vadd.f32 %v2769_v35, %v6853_v19 }
0x17c3   :  { %v2772_v57 = vsel %vm257_vm3, %v2770_v56, -inf }
0x17c4   :  { %2773 = vmax.xlane.f32.xlu2 %v2772_v57 }
0x17c7   :  { %v2639_v13 = vpop.f32.mrf.mxu3 }
0x17c8   :  { %v2640_v47 = vadd.f32 %v7195_v59, %v2639_v13 }
0x17ca   :  { %v2643_v40 = vadd.f32 %v2640_v47, %v2549_v29 }
0x17cc   :  { %v2647_v34 = vsel %vm60_vm0, %v2643_v40, 0.0 }
0x17cd   :  { %2648 = vadd.xlane.f32.xlu0 %v2647_v34 }
0x17d8   :  { %v2834_v58 = vpop.f32.mrf.mxu1 }
0x17d9   :  { %v2835_v5 = vadd.f32 %v2834_v58, %v6853_v19 }
0x17db   :  { %v2837_v61 = vsel %vm257_vm3, %v2835_v5, -inf }
0x17dc   :  { %2838 = vmax.xlane.f32.xlu1 %v2837_v61 }
0x17e1   :  { %2783 = vrot.lane.b32.xlu0 %v7265_v9, %s6216_s12 }
0x17f5   :  { %2848 = vrot.lane.b32.xlu1 %v7265_v9, %s6224_s24 }
0x17fd   :  { %2874 = vrot.lane.b32.xlu1 %v7230_v39, %s6215_s29 }
0x1837   :  { %v2774_v59 = vpop.xlane.xlu2 %2773 }
0x1838   :  { %v2775_v0 = vsub.f32 %v2770_v56, %v2774_v59 }
0x183a   :  { %v2776_v62 = vmul.f32 1.442695, %v2775_v0 }
0x183c   :  { %6053 = vpow2.f32 %v2776_v62 }
0x1840   :  { %v2649_v25 = vpop.xlane.xlu0 %2648 }
0x1841   :  { %v2651_v43 = vmul.f32 %v2649_v25, %v6470_v46 }
0x1842   :  { %v6054_v44 = vpop.eup %6053 }
0x1843   :  { %v2653_v48 = vsub.f32 %v2643_v40, %v2651_v43  ;;  %v2778_v15 = vsel %vm257_vm3, %v6054_v44, 0.0 }
0x1844   :  { %2779 = vadd.xlane.f32.xlu0 %v2778_v15 }
0x1845   :  { %v2655_v27 = vmul.f32 %v2653_v48, %v2653_v48 }
0x1847   :  { %v2659_v51 = vsel %vm60_vm0, %v2655_v27, 0.0 }
0x1848   :  { %2660 = vadd.xlane.f32.xlu2 %v2659_v51 }
0x184f   :  { %v2839_v8 = vpop.xlane.xlu1 %2838 }
0x1850   :  { %v2840_v11 = vsub.f32 %v2835_v5, %v2839_v8 }
0x1852   :  { %v2841_v12 = vmul.f32 1.442695, %v2840_v11 }
0x1853   :  { %v2784_v4 = vpop.permute.xlu0 %2783 }
0x1854   :  { %6055 = vpow2.f32 %v2841_v12  ;;  %2804 = vmatpush.msra.mxu0 %v2784_v4 }
0x1858   :  { %2941 = vrot.lane.b32.xlu0 %v7265_v9, %s6221_s19 }
0x185a   :  { %v6056_v14 = vpop.eup %6055 }
0x185b   :  { %v2843_v55 = vsel %vm257_vm3, %v6056_v14, 0.0 }
0x185c   :  { %2844 = vadd.xlane.f32.xlu2 %v2843_v55 }
0x1860   :  { %2939 = vrot.lane.b32.xlu0 %v7230_v39, %s6222_s1 }
0x1867   :  { %v2849_v60 = vpop.permute.xlu1 %2848 }
0x1868   :  { %3085 = vrot.lane.b32.xlu0 %v7303_v16, %s6220_s18  ;;  %2869 = vmatpush.msrb.mxu0 %v2849_v60 }
0x186f   :  { %v2875_v17 = vpop.permute.xlu1 %2874 }
0x1870   :  { %3150 = vrot.lane.b32.xlu0 %v7303_v16, %s6215_s29 }
0x1874   :  { %2876 = vrot.lane.b32.xlu2 %v7265_v9, %s6218_s16 }
0x18b7   :  { %v2780_v33 = vpop.xlane.xlu0 %2779 }
0x18b8   :  { %6057 = vrcp.f32 %v2780_v33 }
0x18bb   :  { %v2661_v39 = vpop.xlane.xlu2 %2660 }
0x18bc   :  { %v2663_v20 = vmul.f32 %v2661_v39, %v6470_v46 }
0x18be   :  { %v6058_v10 = vpop.eup %6057  ;;  %v2665_v28 = vadd.f32 1e-12, %v2663_v20 }
0x18bf   :  { %v2782_v29 = vmul.f32 %v6058_v10, %v6054_v44 }
0x18c0   :  { %6059 = vrsqrt.f32 %v2665_v28  ;;  %vm2682_vm9 = vweird.f32 %v2665_v28 }
0x18c1   :  { %5726 = vmatmul.msk.f32.vlgmr.msra.gmra.mxu0 %vm257_vm3, %v2782_v29 }
0x18c6   :  { %v6060_v30 = vpop.eup %6059 }
0x18c7   :  { %v2677_v50 = vmul.f32 %v6060_v30, %v2665_v28  ;;  %vm2683_vm8 = vweird.f32 %v6060_v30 }
0x18c8   :  { %vm2684_vm11 = vmor %vm2682_vm9, %vm2683_vm8 }
0x18c9   :  { %v2678_v37 = vmul.f32 %v6060_v30, %v2677_v50 }
0x18ca   :  { %v2942_v1 = vpop.permute.xlu0 %2941 }
0x18cb   :  { %v2679_v2 = vmul.f32 0.5, %v2678_v37  ;;  %5733 = vmatpush.xpose.msk.msra.mxu0 %vm257_vm3, %v2942_v1 }
0x18cd   :  { %v2680_v7 = vsub.f32 1.5, %v2679_v2  ;;  %v7377_v2 = vmul.f32 0.35355338, %v7265_v9 }
0x18cf   :  { %v2681_v3 = vmul.f32 %v6060_v30, %v2680_v7  ;;  %v2845_v42 = vpop.xlane.xlu2 %2844 }
0x18d0   :  { %6061 = vrcp.f32 %v2845_v42 }
0x18d1   :  { %v2685_v45 = vsel %vm2684_vm11, %v6060_v30, %v2681_v3 }
0x18d2   :  { %v2687_v41 = vmul.f32 %v2685_v45, %v2653_v48  ;;  %v2940_v35 = vpop.permute.xlu0 %2939 }
0x18d4   :  { %v2691_v22 = vmul.f32 %v7245_v21, %v2687_v41 }
0x18d6   :  { %v6062_v49 = vpop.eup %6061  ;;  %v7316_v18 = vadd.f32 %v7250_v63, %v2691_v22 }
0x18d7   :  { %v2847_v6 = vmul.f32 %v6062_v49, %v6056_v14  ;;  %v2877_v53 = vpop.permute.xlu2 %2876 }
0x18d8   :  { %5723 = vmatmul.msk.f32.gmra.mxu2 %vm60_vm0, %v7316_v18  ;;  %5730 = vmatpush.xpose.msk.msra.mxu3 %vm257_vm3, %v2877_v53 }
0x18d9   :  { %5729 = vmatmul.msk.f32.vlgmr.msrb.gmra.mxu0 %vm257_vm3, %v2847_v6 }
0x18da   :  { %v3086_v61 = vpop.permute.xlu0 %3085 }
0x18db   :  { %5731 = vmatmul.msk.f32.vlgmr.msra.gmra.mxu3 %vm257_vm3, %v2875_v17 }
0x18e1   :  { %5734 = vmatmul.msk.f32.vlgmr.msra.gmra.mxu0 %vm257_vm3, %v2940_v35 }
0x18e2   :  { %v3151_v0 = vpop.permute.xlu0 %3150 }
0x195b   :  { %v2740_v21 = vpop.f32.mrf.mxu2 }
0x195c   :  { %v7325_v56 = vadd.f32 %v7224_v23, %v2740_v21  ;;  %v7339_v23 = vpop.f32.mrf.mxu0 }
0x195e   :  { %3087 = vrot.lane.b32.xlu1 %v7325_v56, %s6219_s17  ;;  %3021 = vrot.lane.b32.xlu2 %v7325_v56, %s6217_s13  ;;  %v2899_v63 = vpop.f32.mrf.mxu3  ;;  %v7386_v42 = vmul.f32 0.35355338, %v7325_v56 }
0x195f   :  { %v2900_v57 = vadd.f32 %v2899_v63, %v6853_v19 }
0x1961   :  { %v2902_v13 = vsel %vm257_vm3, %v2900_v57, -inf }
0x1962   :  { %2903 = vmax.xlane.f32.xlu0 %v2902_v13 }
0x1964   :  { %v7343_v47 = vpop.f32.mrf.mxu0 }
0x1966   :  { %3217 = vrot.lane.b32.xlu1 %v7325_v56, %s6221_s19  ;;  %3152 = vrot.lane.b32.xlu2 %v7325_v56, %s6218_s16 }
0x196c   :  { %v2964_v40 = vpop.f32.mrf.mxu0 }
0x196d   :  { %v2965_v34 = vadd.f32 %v2964_v40, %v6853_v19 }
0x196e   :  { %3215 = vrot.lane.b32.xlu2 %v7303_v16, %s6222_s1 }
0x196f   :  { %v2967_v58 = vsel %vm257_vm3, %v2965_v34, -inf }
0x1976   :  { %2978 = vrot.lane.b32.xlu0 %v7265_v9, %s6225_s25 }
0x1990   :  { %2968 = vmax.xlane.f32.xlu1 %v2967_v58 }
0x19b8   :  { %v3022_v5 = vpop.permute.xlu2 %3021 }
0x19b9   :  { %5736 = vmatpush.xpose.msk.msra.mxu2 %vm257_vm3, %v3022_v5 }
0x19bc   :  { %5737 = vmatmul.msk.f32.vlgmr.msra.gmra.mxu2 %vm257_vm3, %v7303_v16 }
0x19c0   :  { %v3153_v59 = vpop.permute.xlu2 %3152 }
0x19c1   :  { %5742 = vmatpush.xpose.msk.msrb.mxu2 %vm257_vm3, %v3153_v59 }
0x19c4   :  { %5743 = vmatmul.msk.f32.vlgmr.msrb.gmra.mxu2 %vm257_vm3, %v3151_v0 }
0x19c8   :  { %v3216_v15 = vpop.permute.xlu2 %3215 }
0x19d0   :  { %v3088_v62 = vpop.permute.xlu1 %3087 }
0x19d1   :  { %5739 = vmatpush.xpose.msk.msrb.mxu0 %vm257_vm3, %v3088_v62 }
0x19d4   :  { %5740 = vmatmul.msk.f32.vlgmr.msrb.gmra.mxu0 %vm257_vm3, %v3086_v61 }
0x19d5   :  { %v2904_v25 = vpop.xlane.xlu0 %2903 }
0x19d6   :  { %v2905_v43 = vsub.f32 %v2900_v57, %v2904_v25 }
0x19d8   :  { %v2906_v44 = vmul.f32 1.442695, %v2905_v43  ;;  %v3218_v48 = vpop.permute.xlu1 %3217 }
0x19d9   :  { %5745 = vmatpush.xpose.msk.msra.mxu0 %vm257_vm3, %v3218_v48 }
0x19da   :  { %6063 = vpow2.f32 %v2906_v44 }
0x19dc   :  { %5746 = vmatmul.msk.f32.vlgmr.msra.gmra.mxu0 %vm257_vm3, %v3216_v15 }
0x19e0   :  { %v6064_v27 = vpop.eup %6063 }
0x19e1   :  { %v2908_v51 = vsel %vm257_vm3, %v6064_v27, 0.0 }
0x19e2   :  { %2909 = vadd.xlane.f32.xlu1 %v2908_v51 }
0x19e8   :  { %v2979_v8 = vpop.permute.xlu0 %2978 }
0x19e9   :  { %2999 = vmatpush.msrb.mxu3 %v2979_v8 }
0x1a03   :  { %v2969_v11 = vpop.xlane.xlu1 %2968 }
0x1a04   :  { %v2970_v12 = vsub.f32 %v2965_v34, %v2969_v11 }
0x1a06   :  { %v2971_v4 = vmul.f32 1.442695, %v2970_v12 }
0x1a08   :  { %6065 = vpow2.f32 %v2971_v4 }
0x1a0e   :  { %v6066_v14 = vpop.eup %6065 }
0x1a0f   :  { %v2973_v55 = vsel %vm257_vm3, %v6066_v14, 0.0 }
0x1a10   :  { %2974 = vadd.xlane.f32.xlu2 %v2973_v55 }
0x1a28   :  { %2913 = vrot.lane.b32.xlu2 %v7265_v9, %s6223_s2 }
0x1a30   :  { %3297 = vrot.lane.b32.xlu2 %v7227_v38, %s6217_s13 }
0x1a38   :  { %3428 = vrot.lane.b32.xlu2 %v7227_v38, %s6218_s16 }
0x1a3f   :  { %v3045_v33 = vpop.f32.mrf.mxu2 }
0x1a40   :  { %v3046_v20 = vadd.f32 %v3045_v33, %v7036_v36 }
0x1a42   :  { %v3048_v30 = vsel %vm257_vm3, %v3046_v20, -inf }
0x1a47   :  { %v3175_v50 = vpop.f32.mrf.mxu2 }
0x1a48   :  { %v3176_v37 = vadd.f32 %v3175_v50, %v7036_v36  ;;  %v3848_v50 = vld [vmem:[%s8147_s3 + $0x200] sm:$0xff] }
0x1a4a   :  { %v3178_v1 = vsel %vm257_vm3, %v3176_v37, -inf }
0x1a51   :  { %v3110_v16 = vpop.f32.mrf.mxu0 }
0x1a52   :  { %v3111_v60 = vadd.f32 %v3110_v16, %v7036_v36 }
0x1a54   :  { %v3113_v39 = vsel %vm257_vm3, %v3111_v60, -inf }
0x1a55   :  { %3114 = vmax.xlane.f32.xlu1 %v3113_v39  ;;  %v2910_v7 = vpop.xlane.xlu1 %2909 }
0x1a56   :  { %6067 = vrcp.f32 %v2910_v7 }
0x1a59   :  { %v3240_v10 = vpop.f32.mrf.mxu0 }
0x1a5a   :  { %v3241_v28 = vadd.f32 %v3240_v10, %v7036_v36 }
0x1a5c   :  { %v3243_v29 = vsel %vm257_vm3, %v3241_v28, -inf  ;;  %v6068_v45 = vpop.eup %6067 }
0x1a5d   :  { %3244 = vmax.xlane.f32.xlu0 %v3243_v29  ;;  %3049 = vmax.xlane.f32.xlu1 %v3048_v30  ;;  %v2912_v41 = vmul.f32 %v6068_v45, %v6064_v27  ;;  %v3849_v30 = vld [vmem:[%s8147_s3 + $0x208] sm:$0xff] }
0x1a65   :  { %3179 = vmax.xlane.f32.xlu1 %v3178_v1  ;;  %v3847_v1 = vld [vmem:[%s8147_s3 + $0x1f8] sm:$0xff] }
0x1a71   :  { %3573 = vrot.lane.b32.xlu0 %v7300_v26, %s6217_s13 }
0x1a79   :  { %3254 = vrot.lane.b32.xlu0 %v7325_v56, %s6225_s25 }
0x1a7e   :  { %3426 = vrot.lane.b32.xlu1 %v7377_v2, %s6215_s29 }
0x1a81   :  { %3704 = vrot.lane.b32.xlu0 %v7300_v26, %s6218_s16 }
0x1a83   :  { %v2975_v3 = vpop.xlane.xlu2 %2974 }
0x1a84   :  { %6069 = vrcp.f32 %v2975_v3 }
0x1a86   :  { %3124 = vrot.lane.b32.xlu1 %v7325_v56, %s6224_s24 }
0x1a89   :  { %3702 = vrot.lane.b32.xlu0 %v7386_v42, %s6215_s29 }
0x1a8a   :  { %v6070_v9 = vpop.eup %6069 }
0x1a8b   :  { %v2977_v22 = vmul.f32 %v6070_v9, %v6066_v14  ;;  %v2914_v49 = vpop.permute.xlu2 %2913 }
0x1a8c   :  { %2934 = vmatpush.msra.mxu1 %v2914_v49 }
0x1a8d   :  { %5732 = vmatmul.msk.f32.vlgmr.msra.gmra.mxu1 %vm257_vm3, %v2912_v41  ;;  %5735 = vmatmul.msk.f32.vlgmr.msrb.gmra.mxu3 %vm257_vm3, %v2977_v22 }
0x1a93   :  { %v3298_v6 = vpop.permute.xlu2 %3297 }
0x1a94   :  { %5748 = vmatpush.xpose.msk.msra.mxu2 %vm257_vm3, %v3298_v6 }
0x1a97   :  { %5749 = vmatmul.msk.f32.vlgmr.msra.gmra.mxu2 %vm257_vm3, %v7377_v2 }
0x1a9b   :  { %v3429_v53 = vpop.permute.xlu2 %3428 }
0x1a9c   :  { %5754 = vmatpush.xpose.msk.msrb.mxu2 %vm257_vm3, %v3429_v53 }
0x1ac8   :  { %v3115_v17 = vpop.xlane.xlu1 %3114 }
0x1ac9   :  { %v3116_v61 = vsub.f32 %v3111_v60, %v3115_v17 }
0x1acb   :  { %v3117_v43 = vmul.f32 1.442695, %v3116_v61 }
0x1ad0   :  { %v3050_v35 = vpop.xlane.xlu1 %3049  ;;  %v3245_v21 = vpop.xlane.xlu0 %3244 }
0x1ad1   :  { %v3051_v63 = vsub.f32 %v3046_v20, %v3050_v35  ;;  %v3246_v57 = vsub.f32 %v3241_v28, %v3245_v21 }
0x1ad3   :  { %v3052_v13 = vmul.f32 1.442695, %v3051_v63  ;;  %v3247_v40 = vmul.f32 1.442695, %v3246_v57 }
0x1ad5   :  { %6071 = vpow2.f32 %v3052_v13 }
0x1ad6   :  { %6073 = vpow2.f32 %v3247_v40 }
0x1ad8   :  { %v3180_v34 = vpop.xlane.xlu1 %3179 }
0x1ad9   :  { %v3181_v58 = vsub.f32 %v3176_v37, %v3180_v34 }
0x1adb   :  { %v6072_v5 = vpop.eup %6071  ;;  %v3182_v59 = vmul.f32 1.442695, %v3181_v58 }
0x1adc   :  { %v7396_v0 = vpop.eup %6073  ;;  %v3054_v62 = vsel %vm257_vm3, %v6072_v5, 0.0 }
0x1add   :  { %6075 = vpow2.f32 %v3182_v59  ;;  %3055 = vadd.xlane.f32.xlu2 %v3054_v62  ;;  %v3249_v25 = vsel %vm257_vm3, %v7396_v0, 0.0 }
0x1ade   :  { %3250 = vadd.xlane.f32.xlu0 %v3249_v25  ;;  %6077 = vpow2.f32 %v3117_v43  ;;  %v7451_v43 = vld [vmem:[%s8147_s3 + $0x218] ss:$0 sm:$0xff] }
0x1ae3   :  { %v6076_v44 = vpop.eup %6075  ;;  %v3574_v48 = vpop.permute.xlu0 %3573 }
0x1ae4   :  { %5760 = vmatpush.xpose.msk.msra.mxu2 %vm257_vm3, %v3574_v48  ;;  %v3184_v15 = vsel %vm257_vm3, %v6076_v44, 0.0  ;;  %v6078_v27 = vpop.eup %6077 }
0x1ae5   :  { %3185 = vadd.xlane.f32.xlu1 %v3184_v15  ;;  %v3119_v8 = vsel %vm257_vm3, %v6078_v27, 0.0 }
0x1aeb   :  { %v3255_v51 = vpop.permute.xlu0 %3254 }
0x1aed   :  { %3120 = vadd.xlane.f32.xlu1 %v3119_v8 }
0x1af0   :  { %v3427_v11 = vpop.permute.xlu1 %3426 }
0x1af1   :  { %5755 = vmatmul.msk.f32.vlgmr.msrb.gmra.mxu2 %vm257_vm3, %v3427_v11 }
0x1af3   :  { %v3705_v12 = vpop.permute.xlu0 %3704 }
0x1af4   :  { %5766 = vmatpush.xpose.msk.msrb.mxu2 %vm257_vm3, %v3705_v12 }
0x1af5   :  { %3059 = vrot.lane.b32.xlu2 %v7325_v56, %s6216_s12 }
0x1af8   :  { %v3125_v4 = vpop.permute.xlu1 %3124 }
0x1af9   :  { %3145 = vmatpush.msra.mxu3 %v3125_v4  ;;  %5761 = vmatmul.msk.f32.vlgmr.msra.gmra.mxu2 %vm257_vm3, %v7386_v42 }
0x1afb   :  { %3275 = vmatpush.msrb.mxu3 %v3255_v51  ;;  %v3703_v14 = vpop.permute.xlu0 %3702 }
0x1afd   :  { %3189 = vrot.lane.b32.xlu2 %v7325_v56, %s6223_s2 }
0x1b01   :  { %5767 = vmatmul.msk.f32.vlgmr.msrb.gmra.mxu2 %vm257_vm3, %v3703_v14 }
0x1b06   :  { %3005 = vrot.lane.b32.xlu1 %v7343_v47, %s6226_s8  ;;  %v3850_v47 = vld [vmem:[%s8147_s3 + $0x210] sm:$0xff] }
0x1b07   :  { %3877 = vmatpush.msra.mxu2 %v3850_v47 }
0x1b09   :  { %3878 = vmatpush.msra.mxu2 %v3849_v30 }
0x1b0a   :  { %v2936_v55 = vpop.f32.mrf.mxu1 }
0x1b0b   :  { %3009 = vrot.lane.b32.xlu0 %v2936_v55, %s6228_s10  ;;  %3879 = vmatpush.msra.mxu2 %v3848_v50 }
0x1b0d   :  { %3880 = vmatpush.msra.mxu2 %v3847_v1 }
0x1b10   :  { %v3001_v16 = vpop.f32.mrf.mxu3 }
0x1b11   :  { %3013 = vrot.lane.b32.xlu2 %v3001_v16, %s6227_s9 }
0x1b1a   :  { %v3321_v60 = vpop.f32.mrf.mxu2 }
0x1b1b   :  { %v3322_v33 = vadd.f32 %v3321_v60, %v6339_v24 }
0x1b1d   :  { %v3324_v39 = vsel %vm257_vm3, %v3322_v33, -inf }
0x1b35   :  { %3325 = vmax.xlane.f32.xlu0 %v3324_v39 }
0x1b50   :  { %v3056_v20 = vpop.xlane.xlu2 %3055 }
0x1b51   :  { %6079 = vrcp.f32 %v3056_v20  ;;  %v3251_v9 = vpop.xlane.xlu0 %3250 }
0x1b57   :  { %v6080_v56 = vpop.eup %6079 }
0x1b58   :  { %v3058_v10 = vmul.f32 %v6080_v56, %v6072_v5  ;;  %v3060_v28 = vpop.permute.xlu2 %3059  ;;  %v3186_v29 = vpop.xlane.xlu1 %3185 }
0x1b59   :  { %6081 = vrcp.f32 %v3186_v29  ;;  %3080 = vmatpush.msrb.mxu1 %v3060_v28 }
0x1b5a   :  { %5738 = vmatmul.msk.f32.vlgmr.msrb.gmra.mxu1 %vm257_vm3, %v3058_v10 }
0x1b5f   :  { %v6082_v37 = vpop.eup %6081 }
0x1b60   :  { %v3188_v7 = vmul.f32 %v6082_v37, %v6076_v44  ;;  %v3190_v3 = vpop.permute.xlu2 %3189  ;;  %v3121_v45 = vpop.xlane.xlu1 %3120 }
0x1b61   :  { %6083 = vrcp.f32 %v3121_v45  ;;  %3210 = vmatpush.msra.mxu1 %v3190_v3 }
0x1b62   :  { %5744 = vmatmul.msk.f32.vlgmr.msra.gmra.mxu1 %vm257_vm3, %v3188_v7  ;;  %6085 = vrcp.f32 %v3251_v9 }
0x1b67   :  { %v6084_v41 = vpop.eup %6083 }
0x1b68   :  { %v3123_v22 = vmul.f32 %v6084_v41, %v6078_v27  ;;  %v6086_v49 = vpop.eup %6085 }
0x1b69   :  { %v3253_v6 = vmul.f32 %v6086_v49, %v7396_v0 }
0x1b6a   :  { %5741 = vmatmul.msk.f32.vlgmr.msra.gmra.mxu3 %vm257_vm3, %v3123_v22 }
0x1b6b   :  { %v3014_v57 = vpop.permute.xlu2 %3013 }
0x1b72   :  { %5747 = vmatmul.msk.f32.vlgmr.msrb.gmra.mxu3 %vm257_vm3, %v3253_v6 }
0x1b74   :  { %v3451_v53 = vpop.f32.mrf.mxu2 }
0x1b75   :  { %v3452_v15 = vadd.f32 %v3451_v53, %v6339_v24 }
0x1b77   :  { %v3454_v8 = vsel %vm257_vm3, %v3452_v15, -inf }
0x1b78   :  { %v3006_v17 = vpop.permute.xlu1 %3005 }
0x1b79   :  { %v3016_v21 = vsel %vm257_vm3, %v7339_v23, %v3006_v17 }
0x1b7c   :  { %v3597_v35 = vpop.f32.mrf.mxu2 }
0x1b7d   :  { %v3010_v63 = vpop.permute.xlu0 %3009  ;;  %v3598_v14 = vadd.f32 %v3597_v35, %v6414_v32 }
0x1b7e   :  { %v3017_v13 = vsel %vm30_vm4, %v3016_v21, %v3010_v63 }
0x1b7f   :  { %v3018_v40 = vsel %vm529_vm5, %v3017_v13, %v3014_v57  ;;  %v3600_v55 = vsel %vm257_vm3, %v3598_v14, -inf }
0x1b80   :  { %5772 = vmatmul.msk.f32.vlgmr.msra.gmra.mxu2 %vm60_vm0, %v3018_v40 }
0x1b84   :  { %v3727_v34 = vpop.f32.mrf.mxu2 }
0x1b85   :  { %v7442_v58 = vadd.f32 %v3727_v34, %v6414_v32 }
0x1b87   :  { %v3730_v5 = vsel %vm257_vm3, %v7442_v58, -inf }
0x1b88   :  { %3731 = vmax.xlane.f32.xlu0 %v3730_v5 }
0x1ba8   :  { %v3326_v62 = vpop.xlane.xlu0 %3325 }
0x1ba9   :  { %v3327_v25 = vsub.f32 %v3322_v33, %v3326_v62 }
0x1bab   :  { %v3328_v44 = vmul.f32 1.442695, %v3327_v25 }
0x1bad   :  { %6087 = vpow2.f32 %v3328_v44 }
0x1bb3   :  { %v6088_v12 = vpop.eup %6087 }
0x1bb4   :  { %v3330_v4 = vsel %vm257_vm3, %v6088_v12, 0.0 }
0x1bd7   :  { %v3082_v61 = vpop.f32.mrf.mxu1 }
0x1bdf   :  { %v3212_v59 = vpop.f32.mrf.mxu1 }
0x1be0   :  { %3285 = vrot.lane.b32.xlu2 %v3212_v59, %s6228_s10 }
0x1bed   :  { %v3147_v23 = vpop.f32.mrf.mxu3 }
0x1bf5   :  { %v3277_v0 = vpop.f32.mrf.mxu3 }
0x1bf6   :  { %3289 = vrot.lane.b32.xlu1 %v3277_v0, %s6227_s9 }
0x1c03   :  { %v3882_v48 = vpop.f32.mrf.mxu2 }
0x1c04   :  { %v3883_v27 = vadd.f32 %v7451_v43, %v3882_v48 }
0x1c06   :  { %v3894_v51 = vadd.f32 %v3883_v27, %v7210_v54  ;;  %v3732_v54 = vpop.xlane.xlu0 %3731 }
0x1c07   :  { %v3733_v49 = vsub.f32 %v7442_v58, %v3732_v54 }
0x1c08   :  { %v3898_v11 = vsel %vm60_vm0, %v3894_v51, 0.0 }
0x1c09   :  { %3455 = vmax.xlane.f32.xlu2 %v3454_v8  ;;  %3899 = vadd.xlane.f32.xlu0 %v3898_v11  ;;  %v3734_v35 = vmul.f32 1.442695, %v3733_v49 }
0x1c11   :  { %3331 = vadd.xlane.f32.xlu0 %v3330_v4 }
0x1c20   :  { %3601 = vmax.xlane.f32.xlu1 %v3600_v55 }
0x1c21   :  { %3281 = vrot.lane.b32.xlu2 %v3147_v23, %s6226_s8 }
0x1c25   :  { %3335 = vrot.lane.b32.xlu0 %v7227_v38, %s6216_s12 }
0x1c2d   :  { %3363 = vrot.lane.b32.xlu0 %v7227_v38, %s6219_s17 }
0x1c35   :  { %3741 = vrot.lane.b32.xlu0 %v7300_v26, %s6223_s2 }
0x1c39   :  { %3465 = vrot.lane.b32.xlu1 %v7227_v38, %s6223_s2 }
0x1c3a   :  { %v3286_v16 = vpop.permute.xlu2 %3285 }
0x1c3d   :  { %3493 = vrot.lane.b32.xlu0 %v7227_v38, %s6221_s19 }
0x1c41   :  { %3361 = vrot.lane.b32.xlu1 %v7377_v2, %s6220_s18 }
0x1c45   :  { %3637 = vrot.lane.b32.xlu0 %v7386_v42, %s6220_s18 }
0x1c68   :  { %v3290_v50 = vpop.permute.xlu1 %3289 }
0x1c7c   :  { %v3456_v60 = vpop.xlane.xlu2 %3455  ;;  %v3900_v33 = vpop.xlane.xlu0 %3899 }
0x1c7d   :  { %v3457_v39 = vsub.f32 %v3452_v15, %v3456_v60  ;;  %v3910_v20 = vmul.f32 %v3900_v33, %v6470_v46  ;;  %v4001_v60 = vld [vmem:[%s8144_s5 + $0xb8] sm:$0xff] }
0x1c7f   :  { %v3458_v56 = vmul.f32 1.442695, %v3457_v39  ;;  %v7477_v10 = vsub.f32 %v3894_v51, %v3910_v20  ;;  %v4000_v39 = vld [vmem:[%s8144_s5 + $0xb0] sm:$0xff] }
0x1c81   :  { %6089 = vpow2.f32 %v3458_v56  ;;  %v3918_v28 = vmul.f32 %v7477_v10, %v7477_v10  ;;  %v3999_v56 = vld [vmem:[%s8144_s5 + $0xa8] sm:$0xff] }
0x1c83   :  { %v3922_v29 = vsel %vm60_vm0, %v3918_v28, 0.0 }
0x1c84   :  { %v3282_v47 = vpop.permute.xlu2 %3281  ;;  %3923 = vadd.xlane.f32.xlu1 %v3922_v29  ;;  %v3332_v45 = vpop.xlane.xlu0 %3331 }
0x1c85   :  { %v3292_v30 = vsel %vm257_vm3, %v3082_v61, %v3282_v47  ;;  %6091 = vrcp.f32 %v3332_v45 }
0x1c86   :  { %v3293_v37 = vsel %vm30_vm4, %v3292_v30, %v3286_v16  ;;  %v3998_v30 = vld [vmem:[%s8144_s5 + $0xa0] sm:$0xff] }
0x1c87   :  { %v6090_v1 = vpop.eup %6089  ;;  %v3294_v7 = vsel %vm529_vm5, %v3293_v37, %v3290_v50  ;;  %v7529_v50 = vld [vmem:[%s8147_s3 + $0x220] ss:$0 sm:$0xff] }
0x1c88   :  { %5773 = vmatmul.msk.f32.gmra.mxu2 %vm60_vm0, %v3294_v7  ;;  %v3460_v3 = vsel %vm257_vm3, %v6090_v1, 0.0 }
0x1c89   :  { %3461 = vadd.xlane.f32.xlu2 %v3460_v3 }
0x1c8b   :  { %v6092_v41 = vpop.eup %6091 }
0x1c8c   :  { %v3334_v53 = vmul.f32 %v6092_v41, %v6088_v12 }
0x1c93   :  { %v3602_v9 = vpop.xlane.xlu1 %3601 }
0x1c94   :  { %v3603_v22 = vsub.f32 %v3598_v14, %v3602_v9 }
0x1c96   :  { %v3604_v6 = vmul.f32 1.442695, %v3603_v22 }
0x1c97   :  { %v3336_v17 = vpop.permute.xlu0 %3335 }
0x1c98   :  { %6093 = vpow2.f32 %v3604_v6  ;;  %3356 = vmatpush.msrb.mxu1 %v3336_v17 }
0x1c99   :  { %5750 = vmatmul.msk.f32.vlgmr.msrb.gmra.mxu1 %vm257_vm3, %v3334_v53  ;;  %6095 = vpow2.f32 %v3734_v35 }
0x1c9d   :  { %3639 = vrot.lane.b32.xlu1 %v7300_v26, %s6219_s17 }
0x1c9e   :  { %v6094_v21 = vpop.eup %6093 }
0x1c9f   :  { %v3364_v63 = vpop.permute.xlu0 %3363  ;;  %v3606_v57 = vsel %vm257_vm3, %v6094_v21, 0.0  ;;  %v6096_v13 = vpop.eup %6095 }
0x1ca0   :  { %3607 = vadd.xlane.f32.xlu2 %v3606_v57  ;;  %5751 = vmatpush.xpose.msk.msrb.mxu0 %vm257_vm3, %v3364_v63  ;;  %v3736_v34 = vsel %vm257_vm3, %v6096_v13, 0.0 }
0x1ca5   :  { %3767 = vrot.lane.b32.xlu1 %v7386_v42, %s6222_s1 }
0x1ca7   :  { %v3742_v40 = vpop.permute.xlu0 %3741 }
0x1ca8   :  { %3737 = vadd.xlane.f32.xlu2 %v3736_v34 }
0x1cab   :  { %v3466_v58 = vpop.permute.xlu1 %3465 }
0x1cac   :  { %3486 = vmatpush.msra.mxu1 %v3466_v58 }
0x1caf   :  { %v3494_v5 = vpop.permute.xlu0 %3493 }
0x1cb0   :  { %5757 = vmatpush.xpose.msk.msra.mxu0 %vm257_vm3, %v3494_v5 }
0x1cb3   :  { %v3362_v61 = vpop.permute.xlu1 %3361 }
0x1cb4   :  { %5752 = vmatmul.msk.f32.vlgmr.msrb.gmra.mxu0 %vm257_vm3, %v3362_v61 }
0x1cb7   :  { %v3638_v9 = vpop.permute.xlu0 %3637 }
0x1cc0   :  { %3611 = vrot.lane.b32.xlu2 %v7300_v26, %s6216_s12 }
0x1cc8   :  { %3491 = vrot.lane.b32.xlu2 %v7377_v2, %s6222_s1 }
0x1cd0   :  { %3769 = vrot.lane.b32.xlu2 %v7300_v26, %s6221_s19 }
0x1cf7   :  { %v3924_v59 = vpop.xlane.xlu1 %3923 }
0x1cf8   :  { %v3934_v0 = vmul.f32 %v3924_v59, %v6470_v46 }
0x1cfa   :  { %v3938_v25 = vadd.f32 1e-12, %v3934_v0 }
0x1cfc   :  { %v3462_v42 = vpop.xlane.xlu2 %3461  ;;  %vm3948_vm13 = vweird.f32 %v3938_v25 }
0x1cfd   :  { %6097 = vrcp.f32 %v3462_v42  ;;  %v7567_v42 = vld [vmem:[%s8144_s5 + $0xc0] ss:$0 sm:$0xff] }
0x1cfe   :  { %6099 = vrsqrt.f32 %v3938_v25 }
0x1d03   :  { %v6098_v23 = vpop.eup %6097 }
0x1d04   :  { %v3464_v62 = vmul.f32 %v6098_v23, %v6090_v1  ;;  %v6100_v51 = vpop.eup %6099  ;;  %v7537_v1 = vld [vmem:[%s8147_s3 + $0x228] ss:$0 sm:$0xff] }
0x1d05   :  { %v3943_v11 = vmul.f32 %v6100_v51, %v3938_v25  ;;  %vm3949_vm12 = vweird.f32 %v6100_v51 }
0x1d06   :  { %5756 = vmatmul.msk.f32.vlgmr.msra.gmra.mxu1 %vm257_vm3, %v3464_v62  ;;  %vm3950_vm14 = vmor %vm3948_vm13, %vm3949_vm12 }
0x1d07   :  { %v3944_v12 = vmul.f32 %v6100_v51, %v3943_v11 }
0x1d09   :  { %v3945_v14 = vmul.f32 0.5, %v3944_v12 }
0x1d0b   :  { %v3885_v44 = vpop.f32.mrf.mxu2  ;;  %v3946_v54 = vsub.f32 1.5, %v3945_v14 }
0x1d0c   :  { %v3886_v48 = vadd.f32 %v7451_v43, %v3885_v44 }
0x1d0d   :  { %v3947_v33 = vmul.f32 %v6100_v51, %v3946_v54 }
0x1d0e   :  { %v7508_v15 = vadd.f32 %v3886_v48, %v7237_v31 }
0x1d0f   :  { %v3640_v2 = vpop.permute.xlu1 %3639  ;;  %v3951_v28 = vsel %vm3950_vm14, %v6100_v51, %v3947_v33 }
0x1d10   :  { %5763 = vmatpush.xpose.msk.msrb.mxu0 %vm257_vm3, %v3640_v2  ;;  %v3901_v27 = vsel %vm60_vm0, %v7508_v15, 0.0  ;;  %v3982_v37 = vmul.f32 %v3951_v28, %v7477_v10 }
0x1d11   :  { %3902 = vadd.xlane.f32.xlu0 %v3901_v27 }
0x1d12   :  { %v3988_v7 = vmul.f32 %v7529_v50, %v3982_v37 }
0x1d13   :  { %v3608_v8 = vpop.xlane.xlu2 %3607 }
0x1d14   :  { %6101 = vrcp.f32 %v3608_v8  ;;  %v7542_v22 = vadd.f32 %v7537_v1, %v3988_v7 }
0x1d16   :  { %v7550_v6 = vpop.f32.mrf.mxu1 }
0x1d17   :  { %v3768_v49 = vpop.permute.xlu1 %3767 }
0x1d1a   :  { %v6102_v55 = vpop.eup %6101 }
0x1d1b   :  { %v3738_v4 = vpop.xlane.xlu2 %3737  ;;  %v3610_v16 = vmul.f32 %v6102_v55, %v6094_v21 }
0x1d1c   :  { %6103 = vrcp.f32 %v3738_v4 }
0x1d22   :  { %v6104_v20 = vpop.eup %6103 }
0x1d23   :  { %v3612_v31 = vpop.permute.xlu2 %3611  ;;  %v3740_v29 = vmul.f32 %v6104_v20, %v6096_v13 }
0x1d24   :  { %3632 = vmatpush.msrb.mxu1 %v3612_v31 }
0x1d25   :  { %5762 = vmatmul.msk.f32.vlgmr.msrb.gmra.mxu1 %vm257_vm3, %v3610_v16 }
0x1d26   :  { %3762 = vmatpush.msra.mxu1 %v3742_v40 }
0x1d28   :  { %4022 = vmatpush.msrb.mxu1 %v4001_v60 }
0x1d2a   :  { %4023 = vmatpush.msrb.mxu1 %v4000_v39 }
0x1d2b   :  { %v3492_v47 = vpop.permute.xlu2 %3491 }
0x1d2c   :  { %4024 = vmatpush.msrb.mxu1 %v3999_v56  ;;  %5758 = vmatmul.msk.f32.vlgmr.msra.gmra.mxu0 %vm257_vm3, %v3492_v47 }
0x1d2d   :  { %5768 = vmatmul.msk.f32.vlgmr.msra.gmra.mxu1 %vm257_vm3, %v3740_v29 }
0x1d2e   :  { %4025 = vmatpush.msrb.mxu1 %v3998_v30 }
0x1d31   :  { %v3386_v3 = vpop.f32.mrf.mxu0 }
0x1d32   :  { %v3387_v45 = vadd.f32 %v3386_v3, %v6339_v24 }
0x1d33   :  { %v3770_v41 = vpop.permute.xlu2 %3769 }
0x1d34   :  { %5764 = vmatmul.msk.f32.vlgmr.msrb.gmra.mxu0 %vm257_vm3, %v3638_v9  ;;  %v3389_v10 = vsel %vm257_vm3, %v3387_v45, -inf }
0x1d35   :  { %5769 = vmatpush.xpose.msk.msra.mxu0 %vm257_vm3, %v3770_v41  ;;  %3390 = vmax.xlane.f32.xlu1 %v3389_v10 }
0x1d36   :  { %5776 = vmatmul.msk.f32.vlgmr.msrb.gmra.mxu1 %vm60_vm0, %v7542_v22 }
0x1d3c   :  { %5770 = vmatmul.msk.f32.vlgmr.msra.gmra.mxu0 %vm257_vm3, %v3768_v49 }
0x1d83   :  { %v7552_v53 = vpop.f32.mrf.mxu1 }
0x1d84   :  { %v3903_v35 = vpop.xlane.xlu0 %3902 }
0x1d85   :  { %v3911_v21 = vmul.f32 %v3903_v35, %v6470_v46 }
0x1d87   :  { %v7561_v58 = vsub.f32 %v7508_v15, %v3911_v21 }
0x1d89   :  { %v3919_v59 = vmul.f32 %v7561_v58, %v7561_v58 }
0x1d8b   :  { %v3925_v48 = vsel %vm60_vm0, %v3919_v59, 0.0 }
0x1da2   :  { %v7554_v17 = vpop.f32.mrf.mxu1 }
0x1da8   :  { %v3391_v63 = vpop.xlane.xlu1 %3390 }
0x1da9   :  { %v3516_v57 = vpop.f32.mrf.mxu0  ;;  %v3392_v34 = vsub.f32 %v3387_v45, %v3391_v63 }
0x1daa   :  { %v3517_v13 = vadd.f32 %v3516_v57, %v6339_v24  ;;  %v7558_v40 = vpop.f32.mrf.mxu1 }
0x1dab   :  { %v3393_v61 = vmul.f32 1.442695, %v3392_v34 }
0x1dac   :  { %v3519_v5 = vsel %vm257_vm3, %v3517_v13, -inf }
0x1dad   :  { %3520 = vmax.xlane.f32.xlu2 %v3519_v5  ;;  %6105 = vpow2.f32 %v3393_v61 }
0x1db1   :  { %v3662_v23 = vpop.f32.mrf.mxu0 }
0x1db2   :  { %v3663_v0 = vadd.f32 %v3662_v23, %v6414_v32 }
0x1db3   :  { %v4027_v62 = vpop.f32.mrf.mxu1  ;;  %v7579_v15 = vpop.eup %6105 }
0x1db4   :  { %v7573_v25 = vadd.f32 %v7567_v42, %v4027_v62  ;;  %v3665_v44 = vsel %vm257_vm3, %v3663_v0, -inf  ;;  %v3395_v2 = vsel %vm257_vm3, %v7579_v15, 0.0 }
0x1db5   :  { %3666 = vmax.xlane.f32.xlu0 %v3665_v44  ;;  %3926 = vadd.xlane.f32.xlu2 %v3925_v48 }
0x1db6   :  { %4035 = vrot.lane.b32.xlu1 %v7573_v25, %s6217_s13  ;;  %v7588_v27 = vmul.f32 0.35355338, %v7573_v25 }
0x1db9   :  { %v3792_v51 = vpop.f32.mrf.mxu0 }
0x1dba   :  { %v3793_v8 = vadd.f32 %v3792_v51, %v6414_v32 }
0x1dbc   :  { %v3795_v11 = vsel %vm257_vm3, %v3793_v8, -inf }
0x1dbd   :  { %3396 = vadd.xlane.f32.xlu2 %v3395_v2 }
0x1dbe   :  { %4101 = vrot.lane.b32.xlu1 %v7573_v25, %s6219_s17 }
0x1dc9   :  { %4166 = vrot.lane.b32.xlu0 %v7573_v25, %s6218_s16 }
0x1dd5   :  { %4164 = vrot.lane.b32.xlu2 %v7588_v27, %s6215_s29 }
0x1ddd   :  { %4099 = vrot.lane.b32.xlu2 %v7588_v27, %s6220_s18 }
0x1de8   :  { %3796 = vmax.xlane.f32.xlu1 %v3795_v11 }
0x1e01   :  { %3530 = vrot.lane.b32.xlu1 %v7227_v38, %s6225_s25 }
0x1e09   :  { %3806 = vrot.lane.b32.xlu1 %v7300_v26, %s6225_s25 }
0x1e20   :  { %v3521_v12 = vpop.xlane.xlu2 %3520 }
0x1e21   :  { %v3522_v4 = vsub.f32 %v3517_v13, %v3521_v12 }
0x1e23   :  { %v3523_v14 = vmul.f32 1.442695, %v3522_v4 }
0x1e25   :  { %6107 = vpow2.f32 %v3523_v14 }
0x1e28   :  { %v4036_v55 = vpop.permute.xlu1 %4035  ;;  %v3927_v54 = vpop.xlane.xlu2 %3926 }
0x1e29   :  { %5778 = vmatpush.xpose.msk.msrb.mxu0 %vm257_vm3, %v4036_v55  ;;  %v3935_v16 = vmul.f32 %v3927_v54, %v6470_v46  ;;  %v3667_v31 = vpop.xlane.xlu0 %3666 }
0x1e2a   :  { %v3668_v60 = vsub.f32 %v3663_v0, %v3667_v31 }
0x1e2b   :  { %v7602_v33 = vpop.eup %6107  ;;  %v3939_v39 = vadd.f32 1e-12, %v3935_v16 }
0x1e2c   :  { %v3669_v20 = vmul.f32 1.442695, %v3668_v60  ;;  %5779 = vmatmul.msk.f32.vlgmr.msrb.gmra.mxu0 %vm257_vm3, %v7588_v27  ;;  %v3525_v56 = vsel %vm257_vm3, %v7602_v33, 0.0 }
0x1e2d   :  { %6109 = vrsqrt.f32 %v3939_v39  ;;  %3526 = vadd.xlane.f32.xlu0 %v3525_v56  ;;  %vm3958_vm1 = vweird.f32 %v3939_v39 }
0x1e2e   :  { %6111 = vpow2.f32 %v3669_v20 }
0x1e30   :  { %v4102_v28 = vpop.permute.xlu1 %4101  ;;  %v3397_v29 = vpop.xlane.xlu2 %3396 }
0x1e31   :  { %5781 = vmatpush.xpose.msk.msra.mxu0 %vm257_vm3, %v4102_v28 }
0x1e33   :  { %v6110_v47 = vpop.eup %6109 }
0x1e34   :  { %v6112_v30 = vpop.eup %6111  ;;  %v3953_v37 = vmul.f32 %v6110_v47, %v3939_v39  ;;  %vm3959_vm15 = vweird.f32 %v6110_v47 }
0x1e35   :  { %v3671_v7 = vsel %vm257_vm3, %v6112_v30, 0.0  ;;  %vm3960_vm2 = vmor %vm3958_vm1, %vm3959_vm15 }
0x1e36   :  { %v3954_v3 = vmul.f32 %v6110_v47, %v3953_v37  ;;  %3672 = vadd.xlane.f32.xlu2 %v3671_v7 }
0x1e38   :  { %v3955_v45 = vmul.f32 0.5, %v3954_v3  ;;  %v4165_v9 = vpop.permute.xlu2 %4164 }
0x1e3a   :  { %v3956_v41 = vsub.f32 1.5, %v3955_v45 }
0x1e3b   :  { %v4167_v10 = vpop.permute.xlu0 %4166 }
0x1e3c   :  { %v3957_v49 = vmul.f32 %v6110_v47, %v3956_v41  ;;  %5784 = vmatpush.xpose.msk.msra.mxu1 %vm257_vm3, %v4167_v10 }
0x1e3e   :  { %v3961_v35 = vsel %vm3960_vm2, %v6110_v47, %v3957_v49 }
0x1e3f   :  { %v3983_v21 = vmul.f32 %v3961_v35, %v7561_v58 }
0x1e40   :  { %v4100_v63 = vpop.permute.xlu2 %4099 }
0x1e41   :  { %3400 = vrot.lane.b32.xlu0 %v7227_v38, %s6224_s24  ;;  %5782 = vmatmul.msk.f32.vlgmr.msra.gmra.mxu0 %vm257_vm3, %v4100_v63  ;;  %v3989_v57 = vmul.f32 %v7529_v50, %v3983_v21 }
0x1e43   :  { %v7617_v13 = vadd.f32 %v7537_v1, %v3989_v57 }
0x1e45   :  { %5777 = vmatmul.msk.f32.gmra.mxu1 %vm60_vm0, %v7617_v13 }
0x1e4d   :  { %5785 = vmatmul.msk.f32.vlgmr.msra.gmra.mxu1 %vm257_vm3, %v4165_v9 }
0x1e4e   :  { %3676 = vrot.lane.b32.xlu2 %v7300_v26, %s6224_s24 }
0x1e5b   :  { %v3797_v34 = vpop.xlane.xlu1 %3796 }
0x1e5c   :  { %v3798_v58 = vsub.f32 %v3793_v8, %v3797_v34 }
0x1e5e   :  { %v3799_v5 = vmul.f32 1.442695, %v3798_v58 }
0x1e60   :  { %6113 = vpow2.f32 %v3799_v5 }
0x1e61   :  { %6115 = vrcp.f32 %v3397_v29 }
0x1e66   :  { %v6114_v38 = vpop.eup %6113 }
0x1e67   :  { %v3801_v61 = vsel %vm257_vm3, %v6114_v38, 0.0  ;;  %v6116_v44 = vpop.eup %6115 }
0x1e68   :  { %v3399_v48 = vmul.f32 %v6116_v44, %v7579_v15 }
0x1e6b   :  { %3802 = vadd.xlane.f32.xlu0 %v3801_v61 }
0x1e73   :  { %v3531_v2 = vpop.permute.xlu1 %3530 }
0x1e7b   :  { %v3807_v4 = vpop.permute.xlu1 %3806 }
0x1e7f   :  { %4203 = vrot.lane.b32.xlu0 %v7573_v25, %s6223_s2 }
0x1ea0   :  { %v3527_v0 = vpop.xlane.xlu0 %3526 }
0x1ea1   :  { %6117 = vrcp.f32 %v3527_v0 }
0x1ea7   :  { %v6118_v11 = vpop.eup %6117 }
0x1ea8   :  { %v3529_v12 = vmul.f32 %v6118_v11, %v7602_v33 }
0x1ea9   :  { %v4059_v59 = vpop.f32.mrf.mxu0  ;;  %v3673_v62 = vpop.xlane.xlu2 %3672 }
0x1eaa   :  { %v7628_v23 = vadd.f32 %v4059_v59, %v6339_v24  ;;  %6119 = vrcp.f32 %v3673_v62 }
0x1eac   :  { %v4062_v26 = vsel %vm257_vm3, %v7628_v23, -inf }
0x1ead   :  { %4063 = vmax.xlane.f32.xlu2 %v4062_v26 }
0x1eb0   :  { %v6120_v14 = vpop.eup %6119 }
0x1eb1   :  { %v3677_v8 = vpop.permute.xlu2 %3676  ;;  %v3675_v54 = vmul.f32 %v6120_v14, %v6112_v30 }
0x1eb3   :  { %v3401_v51 = vpop.permute.xlu0 %3400 }
0x1eb4   :  { %3421 = vmatpush.msra.mxu3 %v3401_v51 }
0x1eb5   :  { %5753 = vmatmul.msk.f32.vlgmr.msra.gmra.mxu3 %vm257_vm3, %v3399_v48 }
0x1eb6   :  { %3551 = vmatpush.msrb.mxu3 %v3531_v2 }
0x1eb8   :  { %3697 = vmatpush.msra.mxu3 %v3677_v8 }
0x1ebd   :  { %5759 = vmatmul.msk.f32.vlgmr.msrb.gmra.mxu3 %vm257_vm3, %v3529_v12 }
0x1ebe   :  { %3827 = vmatpush.msrb.mxu3 %v3807_v4  ;;  %v4124_v45 = vpop.f32.mrf.mxu0 }
0x1ebf   :  { %v4125_v9 = vadd.f32 %v4124_v45, %v6339_v24 }
0x1ec1   :  { %v4127_v41 = vsel %vm257_vm3, %v4125_v9, -inf }
0x1ec2   :  { %v4030_v55 = vpop.f32.mrf.mxu1 }
0x1ec3   :  { %v7649_v37 = vadd.f32 %v7567_v42, %v4030_v55 }
0x1ec5   :  { %3561 = vrot.lane.b32.xlu2 %v7552_v53, %s6228_s10  ;;  %5765 = vmatmul.msk.f32.vlgmr.msra.gmra.mxu3 %vm257_vm3, %v3675_v54  ;;  %v7655_v3 = vmul.f32 0.35355338, %v7649_v37 }
0x1eca   :  { %v4189_v15 = vpop.f32.mrf.mxu1 }
0x1ecb   :  { %v4190_v16 = vadd.f32 %v4189_v15, %v6339_v24 }
0x1ecd   :  { %4073 = vrot.lane.b32.xlu2 %v7573_v25, %s6216_s12  ;;  %v4192_v31 = vsel %vm257_vm3, %v4190_v16, -inf }
0x1ece   :  { %4193 = vmax.xlane.f32.xlu1 %v4192_v31 }
0x1ed5   :  { %4138 = vrot.lane.b32.xlu2 %v7573_v25, %s6224_s24 }
0x1ede   :  { %v3803_v60 = vpop.xlane.xlu0 %3802 }
0x1edf   :  { %6121 = vrcp.f32 %v3803_v60 }
0x1ee5   :  { %v6122_v33 = vpop.eup %6121 }
0x1ee6   :  { %v3805_v39 = vmul.f32 %v6122_v33, %v6114_v38 }
0x1ee8   :  { %5771 = vmatmul.msk.f32.vlgmr.msrb.gmra.mxu3 %vm257_vm3, %v3805_v39 }
0x1ef1   :  { %v4204_v53 = vpop.permute.xlu0 %4203 }
0x1ef2   :  { %4224 = vmatpush.msrb.mxu0 %v4204_v53 }
0x1f20   :  { %v4064_v20 = vpop.xlane.xlu2 %4063 }
0x1f28   :  { %v3562_v56 = vpop.permute.xlu2 %3561 }
0x1f30   :  { %v4074_v28 = vpop.permute.xlu2 %4073 }
0x1f31   :  { %4094 = vmatpush.msra.mxu3 %v4074_v28 }
0x1f38   :  { %v4139_v29 = vpop.permute.xlu2 %4138  ;;  %v3423_v47 = vpop.f32.mrf.mxu3 }
0x1f39   :  { %4159 = vmatpush.msrb.mxu3 %v4139_v29  ;;  %3557 = vrot.lane.b32.xlu1 %v3423_v47, %s6226_s8 }
0x1f40   :  { %v3553_v30 = vpop.f32.mrf.mxu3 }
0x1f41   :  { %3565 = vrot.lane.b32.xlu0 %v3553_v30, %s6227_s9  ;;  %v4194_v10 = vpop.xlane.xlu1 %4193 }
0x1f42   :  { %v4195_v34 = vsub.f32 %v4190_v16, %v4194_v10 }
0x1f44   :  { %v4196_v58 = vmul.f32 1.442695, %v4195_v34 }
0x1f46   :  { %6123 = vpow2.f32 %v4196_v58 }
0x1f48   :  { %v3699_v7 = vpop.f32.mrf.mxu3 }
0x1f49   :  { %4311 = vrot.lane.b32.xlu0 %v7649_v37, %s6217_s13  ;;  %3833 = vrot.lane.b32.xlu2 %v3699_v7, %s6226_s8 }
0x1f51   :  { %4442 = vrot.lane.b32.xlu0 %v7649_v37, %s6218_s16  ;;  %4440 = vrot.lane.b32.xlu2 %v7655_v3, %s6215_s29 }
0x1f59   :  { %4231 = vrot.lane.b32.xlu0 %v7573_v25, %s6221_s19 }
0x1f61   :  { %3837 = vrot.lane.b32.xlu0 %v7558_v40, %s6228_s10 }
0x1f6b   :  { %v3829_v42 = vpop.f32.mrf.mxu3 }
0x1f6c   :  { %3841 = vrot.lane.b32.xlu2 %v3829_v42, %s6227_s9 }
0x1f74   :  { %4377 = vrot.lane.b32.xlu2 %v7649_v37, %s6219_s17 }
0x1f7c   :  { %4505 = vrot.lane.b32.xlu2 %v7655_v3, %s6222_s1 }
0x1f8b   :  { %4128 = vmax.xlane.f32.xlu0 %v4127_v41 }
0x1f9f   :  { %4229 = vrot.lane.b32.xlu0 %v7588_v27, %s6222_s1  ;;  %v4065_v27 = vsub.f32 %v7628_v23, %v4064_v20 }
0x1fa1   :  { %v4066_v61 = vmul.f32 1.442695, %v4065_v27 }
0x1fa3   :  { %v3834_v63 = vpop.permute.xlu2 %3833  ;;  %6125 = vpow2.f32 %v4066_v61 }
0x1fa4   :  { %v3844_v23 = vsel %vm257_vm3, %v7554_v17, %v3834_v63 }
0x1fab   :  { %v3558_v40 = vpop.permute.xlu1 %3557  ;;  %v4441_v38 = vpop.permute.xlu2 %4440 }
0x1fac   :  { %v3568_v49 = vsel %vm257_vm3, %v7550_v6, %v3558_v40  ;;  %v6124_v6 = vpop.eup %6123 }
0x1fad   :  { %v3569_v35 = vsel %vm30_vm4, %v3568_v49, %v3562_v56  ;;  %v4198_v62 = vsel %vm257_vm3, %v6124_v6, 0.0  ;;  %v6126_v44 = vpop.eup %6125 }
0x1fae   :  { %v4068_v2 = vsel %vm257_vm3, %v6126_v44, 0.0 }
0x1fb3   :  { %v3566_v21 = vpop.permute.xlu0 %3565 }
0x1fb4   :  { %v3570_v57 = vsel %vm529_vm5, %v3569_v35, %v3566_v21 }
0x1fb5   :  { %5774 = vmatmul.msk.f32.gmra.mxu2 %vm60_vm0, %v3570_v57 }
0x1fbb   :  { %v4312_v5 = vpop.permute.xlu0 %4311 }
0x1fbc   :  { %5790 = vmatpush.xpose.msk.msra.mxu0 %vm257_vm3, %v4312_v5 }
0x1fc3   :  { %v4443_v59 = vpop.permute.xlu0 %4442 }
0x1fc6   :  { %v3842_v0 = vpop.permute.xlu2 %3841 }
0x1fc9   :  { %4199 = vadd.xlane.f32.xlu0 %v4198_v62 }
0x1fcb   :  { %v4232_v26 = vpop.permute.xlu0 %4231 }
0x1fce   :  { %v4378_v48 = vpop.permute.xlu2 %4377 }
0x1fcf   :  { %5793 = vmatpush.xpose.msk.msrb.mxu2 %vm257_vm3, %v4378_v48 }
0x1fd1   :  { %4069 = vadd.xlane.f32.xlu0 %v4068_v2 }
0x1fd3   :  { %v3838_v51 = vpop.permute.xlu0 %3837 }
0x1fd4   :  { %v3845_v8 = vsel %vm30_vm4, %v3844_v23, %v3838_v51 }
0x1fd5   :  { %v3846_v11 = vsel %vm529_vm5, %v3845_v8, %v3842_v0 }
0x1fd6   :  { %5775 = vmatmul.msk.f32.gmra.mxu2 %vm60_vm0, %v3846_v11  ;;  %v4506_v41 = vpop.permute.xlu2 %4505 }
0x1fe5   :  { %4507 = vrot.lane.b32.xlu0 %v7649_v37, %s6221_s19 }
0x1ffe   :  { %v4129_v12 = vpop.xlane.xlu0 %4128 }
0x1fff   :  { %v4130_v4 = vsub.f32 %v4125_v9, %v4129_v12 }
0x2001   :  { %v4131_v14 = vmul.f32 1.442695, %v4130_v4 }
0x2003   :  { %6127 = vpow2.f32 %v4131_v14 }
0x2009   :  { %v6128_v55 = vpop.eup %6127 }
0x200a   :  { %v4133_v54 = vsel %vm257_vm3, %v6128_v55, 0.0 }
0x200b   :  { %4134 = vadd.xlane.f32.xlu1 %v4133_v54 }
0x2011   :  { %v4230_v17 = vpop.permute.xlu0 %4229 }
0x2024   :  { %4375 = vrot.lane.b32.xlu1 %v7655_v3, %s6220_s18 }
0x2038   :  { %v3888_v15 = vpop.f32.mrf.mxu2 }
0x2039   :  { %v3889_v16 = vadd.f32 %v7451_v43, %v3888_v15 }
0x203b   :  { %v3896_v31 = vadd.f32 %v3889_v16, %v7254_v52 }
0x203c   :  { %v4200_v60 = vpop.xlane.xlu0 %4199 }
0x203d   :  { %6129 = vrcp.f32 %v4200_v60  ;;  %v3904_v33 = vsel %vm60_vm0, %v3896_v31, 0.0 }
0x203e   :  { %3905 = vadd.xlane.f32.xlu2 %v3904_v33 }
0x2043   :  { %v6130_v39 = vpop.eup %6129 }
0x2044   :  { %v4202_v53 = vmul.f32 %v6130_v39, %v6124_v6  ;;  %v4070_v20 = vpop.xlane.xlu0 %4069 }
0x2045   :  { %6131 = vrcp.f32 %v4070_v20 }
0x2046   :  { %5786 = vmatmul.msk.f32.vlgmr.msrb.gmra.mxu0 %vm257_vm3, %v4202_v53 }
0x2047   :  { %5796 = vmatpush.xpose.msk.msrb.mxu0 %vm257_vm3, %v4443_v59 }
0x204b   :  { %v6132_v56 = vpop.eup %6131 }
0x204c   :  { %v4072_v28 = vmul.f32 %v6132_v56, %v6126_v44 }
0x204e   :  { %5780 = vmatmul.msk.f32.vlgmr.msra.gmra.mxu3 %vm257_vm3, %v4072_v28  ;;  %5791 = vmatmul.msk.f32.vlgmr.msra.gmra.mxu0 %vm257_vm3, %v7655_v3 }
0x204f   :  { %5787 = vmatpush.xpose.msk.msra.mxu3 %vm257_vm3, %v4232_v26 }
0x2056   :  { %5797 = vmatmul.msk.f32.vlgmr.msrb.gmra.mxu0 %vm257_vm3, %v4441_v38 }
0x2057   :  { %v4508_v52 = vpop.permute.xlu0 %4507 }
0x2058   :  { %5799 = vmatpush.xpose.msk.msra.mxu2 %vm257_vm3, %v4508_v52 }
0x2059   :  { %v3891_v29 = vpop.f32.mrf.mxu2 }
0x205a   :  { %v3892_v47 = vadd.f32 %v7451_v43, %v3891_v29 }
0x205c   :  { %v3897_v30 = vadd.f32 %v3892_v47, %v7316_v18 }
0x205e   :  { %v3907_v7 = vsel %vm60_vm0, %v3897_v30, 0.0 }
0x205f   :  { %3908 = vadd.xlane.f32.xlu2 %v3907_v7 }
0x207e   :  { %v4135_v42 = vpop.xlane.xlu1 %4134 }
0x207f   :  { %6133 = vrcp.f32 %v4135_v42 }
0x2085   :  { %v6134_v45 = vpop.eup %6133 }
0x2086   :  { %v4137_v9 = vmul.f32 %v6134_v45, %v6128_v55 }
0x2088   :  { %5783 = vmatmul.msk.f32.vlgmr.msrb.gmra.mxu3 %vm257_vm3, %v4137_v9 }
0x2090   :  { %5788 = vmatmul.msk.f32.vlgmr.msra.gmra.mxu3 %vm257_vm3, %v4230_v17 }
0x2096   :  { %v4376_v3 = vpop.permute.xlu1 %4375 }
0x2097   :  { %5794 = vmatmul.msk.f32.vlgmr.msrb.gmra.mxu2 %vm257_vm3, %v4376_v3 }
0x209f   :  { %5800 = vmatmul.msk.f32.vlgmr.msra.gmra.mxu2 %vm257_vm3, %v4506_v41 }
0x20b1   :  { %v3906_v49 = vpop.xlane.xlu2 %3905 }
0x20b2   :  { %v3912_v35 = vmul.f32 %v3906_v49, %v6470_v46 }
0x20b4   :  { %v7716_v57 = vsub.f32 %v3896_v31, %v3912_v35 }
0x20b6   :  { %v3920_v58 = vmul.f32 %v7716_v57, %v7716_v57 }
0x20b8   :  { %v3928_v5 = vsel %vm60_vm0, %v3920_v58, 0.0 }
0x20c3   :  { %v4226_v43 = vpop.f32.mrf.mxu0 }
0x20cb   :  { %v4335_v10 = vpop.f32.mrf.mxu0 }
0x20cc   :  { %v4336_v18 = vadd.f32 %v4335_v10, %v6414_v32 }
0x20ce   :  { %v4338_v40 = vsel %vm257_vm3, %v4336_v18, -inf }
0x20cf   :  { %4339 = vmax.xlane.f32.xlu0 %v4338_v40 }
0x20d1   :  { %v7724_v38 = vpop.f32.mrf.mxu3 }
0x20d2   :  { %v3909_v27 = vpop.xlane.xlu2 %3908 }
0x20d3   :  { %v4465_v21 = vpop.f32.mrf.mxu0  ;;  %v3913_v61 = vmul.f32 %v3909_v27, %v6470_v46 }
0x20d4   :  { %v4466_v63 = vadd.f32 %v4465_v21, %v6414_v32 }
0x20d5   :  { %v7728_v62 = vsub.f32 %v3897_v30, %v3913_v61 }
0x20d6   :  { %v4468_v34 = vsel %vm257_vm3, %v4466_v63, -inf }
0x20d7   :  { %4469 = vmax.xlane.f32.xlu1 %v4468_v34  ;;  %v3921_v44 = vmul.f32 %v7728_v62, %v7728_v62 }
0x20d9   :  { %v3931_v23 = vsel %vm60_vm0, %v3921_v44, 0.0  ;;  %v4677_v44 = vld [vmem:[%s8144_s5 + $0xe0] sm:$0xff] }
0x20df   :  { %3929 = vadd.xlane.f32.xlu1 %v3928_v5 }
0x20f8   :  { %4349 = vrot.lane.b32.xlu1 %v7649_v37, %s6216_s12 }
0x210b   :  { %v4161_v0 = vpop.f32.mrf.mxu3 }
0x2113   :  { %v4254_v8 = vpop.f32.mrf.mxu3 }
0x2114   :  { %v4255_v11 = vadd.f32 %v4254_v8, %v6339_v24 }
0x2116   :  { %v4257_v12 = vsel %vm257_vm3, %v4255_v11, -inf }
0x211a   :  { %v4400_v59 = vpop.f32.mrf.mxu2 }
0x211b   :  { %v4401_v6 = vadd.f32 %v4400_v59, %v6414_v32 }
0x211d   :  { %v4403_v26 = vsel %vm257_vm3, %v4401_v6, -inf }
0x211e   :  { %4404 = vmax.xlane.f32.xlu0 %v4403_v26 }
0x2122   :  { %v4530_v48 = vpop.f32.mrf.mxu2 }
0x2123   :  { %v4531_v2 = vadd.f32 %v4530_v48, %v6414_v32 }
0x2125   :  { %v4533_v51 = vsel %vm257_vm3, %v4531_v2, -inf }
0x2126   :  { %3932 = vadd.xlane.f32.xlu0 %v3931_v23  ;;  %4534 = vmax.xlane.f32.xlu2 %v4533_v51  ;;  %v4676_v23 = vld [vmem:[%s8144_s5 + $0xd8] sm:$0xff]  ;;  %v4675_v51 = vld [vmem:[%s8144_s5 + $0xd0] sm:$0xff] }
0x212e   :  { %4258 = vmax.xlane.f32.xlu0 %v4257_v12 }
0x213e   :  { %4479 = vrot.lane.b32.xlu2 %v7649_v37, %s6223_s2 }
0x2142   :  { %v4340_v24 = vpop.xlane.xlu0 %4339 }
0x2143   :  { %v4341_v60 = vsub.f32 %v4336_v18, %v4340_v24 }
0x2145   :  { %v4342_v39 = vmul.f32 1.442695, %v4341_v60 }
0x214a   :  { %v4470_v4 = vpop.xlane.xlu1 %4469 }
0x214b   :  { %v4471_v14 = vsub.f32 %v4466_v63, %v4470_v4 }
0x214d   :  { %v4472_v55 = vmul.f32 1.442695, %v4471_v14  ;;  %v4674_v14 = vld [vmem:[%s8144_s5 + $0xc8] sm:$0xff] }
0x214f   :  { %6135 = vpow2.f32 %v4472_v55 }
0x2152   :  { %v3930_v32 = vpop.xlane.xlu1 %3929 }
0x2153   :  { %v3936_v10 = vmul.f32 %v3930_v32, %v6470_v46 }
0x2155   :  { %v7740_v54 = vpop.eup %6135  ;;  %v3940_v18 = vadd.f32 1e-12, %v3936_v10  ;;  %v4588_v10 = vld [vmem:[%s8147_s3 + $0x248] sm:$0xff] }
0x2156   :  { %v4474_v17 = vsel %vm257_vm3, %v7740_v54, 0.0  ;;  %4609 = vmatpush.msra.mxu0 %v4588_v10 }
0x2157   :  { %vm3968_vm7 = vweird.f32 %v3940_v18 }
0x2167   :  { %4475 = vadd.xlane.f32.xlu2 %v4474_v17 }
0x216a   :  { %v4350_v15 = vpop.permute.xlu1 %4349 }
0x216b   :  { %4370 = vmatpush.msrb.mxu3 %v4350_v15 }
0x217f   :  { %4414 = vrot.lane.b32.xlu2 %v7649_v37, %s6224_s24 }
0x2187   :  { %4544 = vrot.lane.b32.xlu2 %v7649_v37, %s6225_s25 }
0x218f   :  { %4299 = vrot.lane.b32.xlu2 %v4226_v43, %s6228_s10 }
0x2191   :  { %v4405_v16 = vpop.xlane.xlu0 %4404 }
0x2192   :  { %v4406_v31 = vsub.f32 %v4401_v6, %v4405_v16 }
0x2194   :  { %v4407_v33 = vmul.f32 1.442695, %v4406_v31 }
0x2196   :  { %6137 = vpow2.f32 %v4407_v33 }
0x2197   :  { %6139 = vpow2.f32 %v4342_v39 }
0x2199   :  { %v4535_v53 = vpop.xlane.xlu2 %4534  ;;  %v3933_v20 = vpop.xlane.xlu0 %3932 }
0x219a   :  { %v4536_v56 = vsub.f32 %v4531_v2, %v4535_v53  ;;  %v3937_v40 = vmul.f32 %v3933_v20, %v6470_v46 }
0x219c   :  { %v7749_v28 = vpop.eup %6137  ;;  %v4537_v52 = vmul.f32 1.442695, %v4536_v56  ;;  %v3941_v49 = vadd.f32 1e-12, %v3937_v40  ;;  %v4586_v40 = vld [vmem:[%s8147_s3 + $0x238] sm:$0xff] }
0x219d   :  { %v4409_v29 = vsel %vm257_vm3, %v7749_v28, 0.0  ;;  %v6140_v30 = vpop.eup %6139 }
0x219e   :  { %6141 = vpow2.f32 %v4537_v52  ;;  %4410 = vadd.xlane.f32.xlu0 %v4409_v29  ;;  %v4344_v3 = vsel %vm257_vm3, %v6140_v30, 0.0  ;;  %vm3978_vm11 = vweird.f32 %v3941_v49 }
0x21a1   :  { %v4480_v37 = vpop.permute.xlu2 %4479  ;;  %v4259_v47 = vpop.xlane.xlu0 %4258 }
0x21a2   :  { %v4260_v7 = vsub.f32 %v4255_v11, %v4259_v47  ;;  %4500 = vmatpush.msra.mxu3 %v4480_v37 }
0x21a4   :  { %v7753_v42 = vpop.eup %6141  ;;  %v4261_v45 = vmul.f32 1.442695, %v4260_v7 }
0x21a5   :  { %v4539_v9 = vsel %vm257_vm3, %v7753_v42, 0.0 }
0x21a6   :  { %6143 = vpow2.f32 %v4261_v45  ;;  %4540 = vadd.xlane.f32.xlu1 %v4539_v9  ;;  %4345 = vadd.xlane.f32.xlu0 %v4344_v3 }
0x21a7   :  { %6145 = vrsqrt.f32 %v3940_v18 }
0x21a8   :  { %6147 = vrsqrt.f32 %v3941_v49 }
0x21ac   :  { %v6144_v41 = vpop.eup %6143 }
0x21ad   :  { %v4263_v43 = vsel %vm257_vm3, %v6144_v41, 0.0  ;;  %v6146_v35 = vpop.eup %6145 }
0x21ae   :  { %4264 = vadd.xlane.f32.xlu0 %v4263_v43  ;;  %v3963_v63 = vmul.f32 %v6146_v35, %v3940_v18  ;;  %v6148_v58 = vpop.eup %6147  ;;  %vm3969_vm6 = vweird.f32 %v6146_v35  ;;  %v4587_v18 = vld [vmem:[%s8147_s3 + $0x240] sm:$0xff] }
0x21af   :  { %v3973_v61 = vmul.f32 %v6148_v58, %v3941_v49  ;;  %vm3970_vm8 = vmor %vm3968_vm7, %vm3969_vm6  ;;  %vm3979_vm9 = vweird.f32 %v6148_v58  ;;  %4610 = vmatpush.msra.mxu0 %v4587_v18  ;;  %v4585_v49 = vld [vmem:[%s8147_s3 + $0x230] sm:$0xff] }
0x21b0   :  { %v3964_v34 = vmul.f32 %v6146_v35, %v3963_v63  ;;  %vm3980_vm12 = vmor %vm3978_vm11, %vm3979_vm9 }
0x21b1   :  { %v3974_v6 = vmul.f32 %v6148_v58, %v3973_v61  ;;  %4611 = vmatpush.msra.mxu0 %v4586_v40 }
0x21b2   :  { %v3965_v27 = vmul.f32 0.5, %v3964_v34 }
0x21b3   :  { %v3975_v2 = vmul.f32 0.5, %v3974_v6  ;;  %4612 = vmatpush.msra.mxu0 %v4585_v49 }
0x21b4   :  { %v3966_v59 = vsub.f32 1.5, %v3965_v27 }
0x21b5   :  { %v3976_v12 = vsub.f32 1.5, %v3975_v2 }
0x21b6   :  { %v3967_v48 = vmul.f32 %v6146_v35, %v3966_v59 }
0x21b7   :  { %v3977_v17 = vmul.f32 %v6148_v58, %v3976_v12 }
0x21b8   :  { %v3971_v11 = vsel %vm3970_vm8, %v6146_v35, %v3967_v48 }
0x21b9   :  { %v3984_v55 = vmul.f32 %v3971_v11, %v7716_v57  ;;  %v3981_v16 = vsel %vm3980_vm12, %v6148_v58, %v3977_v17 }
0x21ba   :  { %v3985_v57 = vmul.f32 %v3981_v16, %v7728_v62 }
0x21bb   :  { %v3990_v24 = vmul.f32 %v7529_v50, %v3984_v55 }
0x21bc   :  { %v3991_v39 = vmul.f32 %v7529_v50, %v3985_v57 }
0x21bd   :  { %v7782_v60 = vadd.f32 %v7537_v1, %v3990_v24 }
0x21be   :  { %v7790_v52 = vadd.f32 %v7537_v1, %v3991_v39  ;;  %v5901_v1 = vld [vmem:[%s8144_s5 + $0xe8] ss:$0 sm:$0xff] }
0x21c2   :  { %4268 = vrot.lane.b32.xlu0 %v7573_v25, %s6225_s25 }
0x21ca   :  { %4295 = vrot.lane.b32.xlu0 %v4161_v0, %s6226_s8 }
0x21da   :  { %v4476_v25 = vpop.xlane.xlu2 %4475 }
0x21e2   :  { %v4415_v15 = vpop.permute.xlu2 %4414 }
0x21ea   :  { %v4545_v53 = vpop.permute.xlu2 %4544 }
0x2211   :  { %v4411_v21 = vpop.xlane.xlu0 %4410 }
0x2219   :  { %v4346_v5 = vpop.xlane.xlu0 %4345  ;;  %v4541_v20 = vpop.xlane.xlu1 %4540 }
0x221a   :  { %6149 = vrcp.f32 %v4346_v5 }
0x221b   :  { %6151 = vrcp.f32 %v4476_v25 }
0x2220   :  { %v6150_v0 = vpop.eup %6149 }
0x2221   :  { %v4348_v26 = vmul.f32 %v6150_v0, %v6140_v30  ;;  %v6152_v8 = vpop.eup %6151  ;;  %v4265_v4 = vpop.xlane.xlu0 %4264 }
0x2222   :  { %v4478_v32 = vmul.f32 %v6152_v8, %v7740_v54  ;;  %6153 = vrcp.f32 %v4265_v4 }
0x2223   :  { %5792 = vmatmul.msk.f32.vlgmr.msrb.gmra.mxu3 %vm257_vm3, %v4348_v26  ;;  %6155 = vrcp.f32 %v4411_v21  ;;  %v4300_v21 = vpop.permute.xlu2 %4299 }
0x2224   :  { %4698 = vmatpush.msrb.mxu3 %v4677_v44  ;;  %6157 = vrcp.f32 %v4541_v20 }
0x2226   :  { %4699 = vmatpush.msrb.mxu3 %v4676_v23 }
0x2228   :  { %4700 = vmatpush.msrb.mxu3 %v4675_v51  ;;  %v6154_v31 = vpop.eup %6153 }
0x2229   :  { %v4267_v54 = vmul.f32 %v6154_v31, %v6144_v41  ;;  %v6156_v56 = vpop.eup %6155 }
0x222a   :  { %4701 = vmatpush.msrb.mxu3 %v4674_v14  ;;  %v4413_v62 = vmul.f32 %v6156_v56, %v7749_v28  ;;  %v6158_v29 = vpop.eup %6157 }
0x222b   :  { %5798 = vmatmul.msk.f32.vlgmr.msra.gmra.mxu3 %vm257_vm3, %v4478_v32  ;;  %v4543_v37 = vmul.f32 %v6158_v29, %v7753_v42 }
0x2233   :  { %5804 = vmatmul.msk.f32.vlgmr.msrb.gmra.mxu3 %vm60_vm0, %v7782_v60 }
0x2234   :  { %v4269_v33 = vpop.permute.xlu0 %4268 }
0x2235   :  { %4289 = vmatpush.msrb.mxu1 %v4269_v33 }
0x2236   :  { %5789 = vmatmul.msk.f32.vlgmr.msrb.gmra.mxu1 %vm257_vm3, %v4267_v54 }
0x2237   :  { %4435 = vmatpush.msra.mxu1 %v4415_v15 }
0x2239   :  { %4565 = vmatpush.msrb.mxu1 %v4545_v53 }
0x223b   :  { %5805 = vmatmul.msk.f32.gmra.mxu3 %vm60_vm0, %v7790_v52 }
0x223c   :  { %v4296_v63 = vpop.permute.xlu0 %4295 }
0x223d   :  { %v4306_v34 = vsel %vm257_vm3, %v7724_v38, %v4296_v63 }
0x223e   :  { %5795 = vmatmul.msk.f32.vlgmr.msra.gmra.mxu1 %vm257_vm3, %v4413_v62  ;;  %v4307_v5 = vsel %vm30_vm4, %v4306_v34, %v4300_v21 }
0x2246   :  { %5801 = vmatmul.msk.f32.vlgmr.msrb.gmra.mxu1 %vm257_vm3, %v4543_v37 }
0x22a6   :  { %v7798_v50 = vpop.f32.mrf.mxu3 }
0x22ae   :  { %v4502_v47 = vpop.f32.mrf.mxu3 }
0x22b3   :  { %v4291_v30 = vpop.f32.mrf.mxu1 }
0x22b4   :  { %4303 = vrot.lane.b32.xlu2 %v4291_v30, %s6227_s9 }
0x22b6   :  { %v4703_v28 = vpop.f32.mrf.mxu3 }
0x22b7   :  { %v7804_v7 = vadd.f32 %v5901_v1, %v4703_v28 }
0x22b9   :  { %4777 = vrot.lane.b32.xlu1 %v7804_v7, %s6219_s17  ;;  %v4709_v3 = vmul.f32 0.35355338, %v7804_v7 }
0x22bb   :  { %v4437_v45 = vpop.f32.mrf.mxu1 }
0x22bc   :  { %4575 = vrot.lane.b32.xlu2 %v4502_v47, %s6228_s10  ;;  %4571 = vrot.lane.b32.xlu0 %v4437_v45, %s6226_s8 }
0x22be   :  { %v4706_v42 = vpop.f32.mrf.mxu3 }
0x22bf   :  { %v7810_v9 = vadd.f32 %v5901_v1, %v4706_v42 }
0x22c1   :  { %4987 = vrot.lane.b32.xlu1 %v7810_v9, %s6217_s13  ;;  %v4985_v41 = vmul.f32 0.35355338, %v7810_v9  ;;  %v5861_v35 = vpack.i.bf16 %v7810_v9, %v7804_v7 }
0x22c3   :  { %v4567_v43 = vpop.f32.mrf.mxu1 }
0x22c4   :  { %4907 = vrot.lane.b32.xlu2 %v7804_v7, %s6221_s19  ;;  %4711 = vrot.lane.b32.xlu0 %v7804_v7, %s6217_s13 }
0x22c9   :  { %5118 = vrot.lane.b32.xlu1 %v7810_v9, %s6218_s16 }
0x22cc   :  { %4775 = vrot.lane.b32.xlu2 %v4709_v3, %s6220_s18  ;;  %4842 = vrot.lane.b32.xlu0 %v7804_v7, %s6218_s16 }
0x22d1   :  { %5181 = vrot.lane.b32.xlu1 %v4985_v41, %s6222_s1 }
0x22d4   :  { %4905 = vrot.lane.b32.xlu2 %v4709_v3, %s6222_s1  ;;  %4579 = vrot.lane.b32.xlu0 %v4567_v43, %s6227_s9 }
0x22dc   :  { %5051 = vrot.lane.b32.xlu2 %v4985_v41, %s6220_s18  ;;  %4840 = vrot.lane.b32.xlu0 %v4709_v3, %s6215_s29 }
0x22e4   :  { %5116 = vrot.lane.b32.xlu2 %v4985_v41, %s6215_s29  ;;  %5053 = vrot.lane.b32.xlu0 %v7810_v9, %s6219_s17 }
0x22ec   :  { %5183 = vrot.lane.b32.xlu0 %v7810_v9, %s6221_s19 }
0x22f4   :  { %5862 = vrot.lane.b32.xlu0 %v5861_v35, %s6216_s12 }
0x230e   :  { %v4304_v58 = vpop.permute.xlu2 %4303 }
0x230f   :  { %v4308_v27 = vsel %vm529_vm5, %v4307_v5, %v4304_v58 }
0x2310   :  { %5802 = vmatmul.msk.f32.vlgmr.msra.gmra.mxu0 %vm60_vm0, %v4308_v27 }
0x2316   :  { %v4576_v61 = vpop.permute.xlu2 %4575 }
0x231e   :  { %v4908_v59 = vpop.permute.xlu2 %4907 }
0x2326   :  { %v4776_v26 = vpop.permute.xlu2 %4775 }
0x232b   :  { %v4778_v6 = vpop.permute.xlu1 %4777 }
0x232e   :  { %v4572_v25 = vpop.permute.xlu0 %4571  ;;  %v4906_v8 = vpop.permute.xlu2 %4905 }
0x232f   :  { %v4582_v48 = vsel %vm257_vm3, %v7798_v50, %v4572_v25 }
0x2330   :  { %v4583_v2 = vsel %vm30_vm4, %v4582_v48, %v4576_v61 }
0x2333   :  { %v4988_v44 = vpop.permute.xlu1 %4987 }
0x2336   :  { %v4712_v0 = vpop.permute.xlu0 %4711  ;;  %v5052_v4 = vpop.permute.xlu2 %5051 }
0x2337   :  { %5806 = vmatpush.xpose.msk.msrb.mxu2 %vm257_vm3, %v4712_v0 }
0x233a   :  { %5807 = vmatmul.msk.f32.vlgmr.msrb.gmra.mxu2 %vm257_vm3, %v4709_v3 }
0x233b   :  { %5809 = vmatpush.xpose.msk.msra.mxu2 %vm257_vm3, %v4778_v6  ;;  %v5119_v12 = vpop.permute.xlu1 %5118 }
0x233e   :  { %v4843_v38 = vpop.permute.xlu0 %4842  ;;  %v5117_v32 = vpop.permute.xlu2 %5116 }
0x233f   :  { %5815 = vmatpush.xpose.msk.msrb.mxu2 %vm257_vm3, %v4908_v59  ;;  %5812 = vmatpush.xpose.msk.msrb.mxu0 %vm257_vm3, %v4843_v38 }
0x2342   :  { %5810 = vmatmul.msk.f32.vlgmr.msra.gmra.mxu2 %vm257_vm3, %v4776_v26 }
0x2343   :  { %5818 = vmatpush.xpose.msk.msra.mxu0 %vm257_vm3, %v4988_v44  ;;  %v5182_v17 = vpop.permute.xlu1 %5181 }
0x2346   :  { %v4580_v23 = vpop.permute.xlu0 %4579 }
0x2347   :  { %v4584_v51 = vsel %vm529_vm5, %v4583_v2, %v4580_v23 }
0x2348   :  { %5803 = vmatmul.msk.f32.gmra.mxu0 %vm60_vm0, %v4584_v51 }
0x234a   :  { %5816 = vmatmul.msk.f32.vlgmr.msrb.gmra.mxu2 %vm257_vm3, %v4906_v8 }
0x234e   :  { %v4841_v11 = vpop.permute.xlu0 %4840 }
0x2350   :  { %5813 = vmatmul.msk.f32.vlgmr.msrb.gmra.mxu0 %vm257_vm3, %v4841_v11 }
0x2351   :  { %5824 = vmatpush.xpose.msk.msrb.mxu0 %vm257_vm3, %v5119_v12 }
0x2356   :  { %v5054_v14 = vpop.permute.xlu0 %5053 }
0x2357   :  { %5821 = vmatpush.xpose.msk.msra.mxu2 %vm257_vm3, %v5054_v14 }
0x2358   :  { %5819 = vmatmul.msk.f32.vlgmr.msra.gmra.mxu0 %vm257_vm3, %v4985_v41 }
0x235a   :  { %5822 = vmatmul.msk.f32.vlgmr.msra.gmra.mxu2 %vm257_vm3, %v5052_v4 }
0x235e   :  { %v5184_v55 = vpop.permute.xlu0 %5183 }
0x235f   :  { %5827 = vmatpush.xpose.msk.msrb.mxu2 %vm257_vm3, %v5184_v55 }
0x2360   :  { %5825 = vmatmul.msk.f32.vlgmr.msrb.gmra.mxu0 %vm257_vm3, %v5117_v32 }
0x2362   :  { %5828 = vmatmul.msk.f32.vlgmr.msrb.gmra.mxu2 %vm257_vm3, %v5182_v17 }
0x2366   :  { %v7876_v15 = vpop.permute.xlu0 %5862 }
0x2367   :  { %v5864_v24 = vunpack.i.l.bf16 %v7876_v15  ;;  %v5865_v32 = vunpack.i.h.bf16 %v7876_v15 }
0x2369   :  { %4770 = vmatpush.msra.mxu1 %v5864_v24 }
0x238d   :  { %v7879_v16 = vpop.f32.mrf.mxu0 }
0x23bd   :  { %v4735_v31 = vpop.f32.mrf.mxu2 }
0x23be   :  { %v4736_v57 = vadd.f32 %v4735_v31, %v6853_v19 }
0x23c0   :  { %v4738_v54 = vsel %vm257_vm3, %v4736_v57, -inf }
0x23c1   :  { %4739 = vmax.xlane.f32.xlu0 %v4738_v54 }
0x23c5   :  { %v7883_v33 = vpop.f32.mrf.mxu0  ;;  %v4800_v39 = vpop.f32.mrf.mxu2 }
0x23c6   :  { %v4801_v53 = vadd.f32 %v4800_v39, %v6853_v19 }
0x23c8   :  { %v4803_v20 = vsel %vm257_vm3, %v4801_v53, -inf }
0x23c9   :  { %4804 = vmax.xlane.f32.xlu2 %v4803_v20 }
0x23cd   :  { %v4865_v56 = vpop.f32.mrf.mxu0  ;;  %v4930_v62 = vpop.f32.mrf.mxu2 }
0x23ce   :  { %v4866_v29 = vadd.f32 %v4865_v56, %v6853_v19  ;;  %v4931_v37 = vadd.f32 %v4930_v62, %v6853_v19 }
0x23d0   :  { %v4933_v50 = vsel %vm257_vm3, %v4931_v37, -inf  ;;  %v4868_v47 = vsel %vm257_vm3, %v4866_v29, -inf }
0x23d1   :  { %4934 = vmax.xlane.f32.xlu2 %v4933_v50  ;;  %4869 = vmax.xlane.f32.xlu1 %v4868_v47 }
0x23d5   :  { %v5011_v30 = vpop.f32.mrf.mxu0 }
0x23d6   :  { %v5012_v1 = vadd.f32 %v5011_v30, %v7036_v36 }
0x23d8   :  { %v5014_v28 = vsel %vm257_vm3, %v5012_v1, -inf }
0x23d9   :  { %5015 = vmax.xlane.f32.xlu0 %v5014_v28 }
0x23dd   :  { %v5076_v45 = vpop.f32.mrf.mxu2  ;;  %v5141_v42 = vpop.f32.mrf.mxu0 }
0x23de   :  { %v5077_v3 = vadd.f32 %v5076_v45, %v7036_v36  ;;  %v5142_v41 = vadd.f32 %v5141_v42, %v7036_v36 }
0x23e0   :  { %v5144_v19 = vsel %vm257_vm3, %v5142_v41, -inf  ;;  %v5079_v43 = vsel %vm257_vm3, %v5077_v3, -inf }
0x23e1   :  { %5145 = vmax.xlane.f32.xlu2 %v5144_v19  ;;  %5080 = vmax.xlane.f32.xlu1 %v5079_v43 }
0x23e5   :  { %v5206_v10 = vpop.f32.mrf.mxu2 }
0x23e6   :  { %v7902_v18 = vadd.f32 %v5206_v10, %v7036_v36 }
0x23e8   :  { %v5209_v40 = vsel %vm257_vm3, %v7902_v18, -inf }
0x23ed   :  { %4879 = vrot.lane.b32.xlu0 %v7804_v7, %s6223_s2 }
0x23fa   :  { %4814 = vrot.lane.b32.xlu1 %v7804_v7, %s6224_s24 }
0x2417   :  { %5210 = vmax.xlane.f32.xlu0 %v5209_v40 }
0x242b   :  { %4944 = vrot.lane.b32.xlu0 %v7804_v7, %s6225_s25 }
0x2434   :  { %v4740_v49 = vpop.xlane.xlu0 %4739 }
0x2435   :  { %v4741_v35 = vsub.f32 %v4736_v57, %v4740_v49 }
0x2437   :  { %v4742_v21 = vmul.f32 1.442695, %v4741_v35 }
0x2439   :  { %6159 = vpow2.f32 %v4742_v21 }
0x243c   :  { %v4805_v63 = vpop.xlane.xlu2 %4804 }
0x243d   :  { %v4806_v34 = vsub.f32 %v4801_v53, %v4805_v63 }
0x243f   :  { %v6160_v58 = vpop.eup %6159  ;;  %v4807_v5 = vmul.f32 1.442695, %v4806_v34 }
0x2440   :  { %v4744_v27 = vsel %vm257_vm3, %v6160_v58, 0.0 }
0x2441   :  { %6161 = vpow2.f32 %v4807_v5  ;;  %4745 = vadd.xlane.f32.xlu1 %v4744_v27 }
0x2444   :  { %v4870_v36 = vpop.xlane.xlu1 %4869  ;;  %v4935_v7 = vpop.xlane.xlu2 %4934 }
0x2445   :  { %v4871_v61 = vsub.f32 %v4866_v29, %v4870_v36  ;;  %v4936_v26 = vsub.f32 %v4931_v37, %v4935_v7 }
0x2447   :  { %v6162_v25 = vpop.eup %6161  ;;  %v4872_v59 = vmul.f32 1.442695, %v4871_v61  ;;  %v4937_v23 = vmul.f32 1.442695, %v4936_v26 }
0x2448   :  { %v4809_v6 = vsel %vm257_vm3, %v6162_v25, 0.0 }
0x2449   :  { %4810 = vadd.xlane.f32.xlu2 %v4809_v6  ;;  %6163 = vpow2.f32 %v4872_v59 }
0x244c   :  { %v5016_v0 = vpop.xlane.xlu0 %5015 }
0x244d   :  { %v5017_v38 = vsub.f32 %v5012_v1, %v5016_v0 }
0x244f   :  { %v5018_v44 = vmul.f32 1.442695, %v5017_v38  ;;  %v6164_v48 = vpop.eup %6163 }
0x2450   :  { %v4874_v2 = vsel %vm257_vm3, %v6164_v48, 0.0 }
0x2451   :  { %6165 = vpow2.f32 %v5018_v44  ;;  %4875 = vadd.xlane.f32.xlu1 %v4874_v2 }
0x2452   :  { %6167 = vpow2.f32 %v4937_v23 }
0x2454   :  { %v5146_v51 = vpop.xlane.xlu2 %5145  ;;  %v5081_v14 = vpop.xlane.xlu1 %5080 }
0x2455   :  { %v5147_v11 = vsub.f32 %v5142_v41, %v5146_v51  ;;  %v5082_v17 = vsub.f32 %v5077_v3, %v5081_v14  ;;  %v5902_v51 = vld [vmem:[%s8147_s3 + $0x250] ss:$0 sm:$0xff] }
0x2457   :  { %v6166_v8 = vpop.eup %6165  ;;  %v5148_v4 = vmul.f32 1.442695, %v5147_v11  ;;  %v5083_v57 = vmul.f32 1.442695, %v5082_v17  ;;  %v4615_v11 = vadd.f32 %v5902_v51, %v7879_v16  ;;  %v5264_v17 = vld [vmem:[%s8147_s3 + $0x280] sm:$0xff]  ;;  %v5263_v16 = vld [vmem:[%s8147_s3 + $0x278] sm:$0xff] }
0x2458   :  { %v5020_v12 = vsel %vm257_vm3, %v6166_v8, 0.0  ;;  %v6168_v55 = vpop.eup %6167  ;;  %5285 = vmatpush.msra.mxu0 %v5264_v17 }
0x2459   :  { %5021 = vadd.xlane.f32.xlu2 %v5020_v12  ;;  %6169 = vpow2.f32 %v5148_v4  ;;  %v4939_v31 = vsel %vm257_vm3, %v6168_v55, 0.0  ;;  %v4620_v4 = vadd.f32 %v4615_v11, %v7542_v22  ;;  %v5262_v22 = vld [vmem:[%s8147_s3 + $0x270] sm:$0xff] }
0x245a   :  { %6171 = vpow2.f32 %v5083_v57  ;;  %5286 = vmatpush.msra.mxu0 %v5263_v16 }
0x245c   :  { %5287 = vmatpush.msra.mxu0 %v5262_v22 }
0x245f   :  { %v4880_v24 = vpop.permute.xlu0 %4879  ;;  %v6170_v54 = vpop.eup %6169 }
0x2460   :  { %4900 = vmatpush.msra.mxu3 %v4880_v24  ;;  %v5150_v39 = vsel %vm257_vm3, %v6170_v54, 0.0  ;;  %v6172_v20 = vpop.eup %6171 }
0x2461   :  { %4940 = vadd.xlane.f32.xlu2 %v4939_v31  ;;  %v5085_v15 = vsel %vm257_vm3, %v6172_v20, 0.0 }
0x2462   :  { %5046 = vmatpush.msrb.mxu3 %v5865_v32  ;;  %v4622_v32 = vsel %vm60_vm0, %v4620_v4, 0.0 }
0x2469   :  { %5151 = vadd.xlane.f32.xlu2 %v5150_v39 }
0x246a   :  { %5155 = vrot.lane.b32.xlu1 %v7810_v9, %s6223_s2 }
0x246c   :  { %v4815_v53 = vpop.permute.xlu1 %4814 }
0x246d   :  { %4835 = vmatpush.msrb.mxu1 %v4815_v53 }
0x2471   :  { %5086 = vadd.xlane.f32.xlu2 %v5085_v15 }
0x2472   :  { %5220 = vrot.lane.b32.xlu1 %v7810_v9, %s6225_s25 }
0x2489   :  { %5090 = vrot.lane.b32.xlu2 %v7810_v9, %s6224_s24 }
0x248a   :  { %v5211_v56 = vpop.xlane.xlu0 %5210 }
0x248b   :  { %v5212_v62 = vsub.f32 %v7902_v18, %v5211_v56 }
0x248d   :  { %v5213_v29 = vmul.f32 1.442695, %v5212_v62 }
0x248f   :  { %6173 = vpow2.f32 %v5213_v29 }
0x2495   :  { %v6174_v37 = vpop.eup %6173 }
0x2496   :  { %v5215_v50 = vsel %vm257_vm3, %v6174_v37, 0.0 }
0x2497   :  { %5216 = vadd.xlane.f32.xlu0 %v5215_v50 }
0x249d   :  { %v4945_v45 = vpop.permute.xlu0 %4944 }
0x24b4   :  { %v4746_v47 = vpop.xlane.xlu1 %4745 }
0x24b5   :  { %6175 = vrcp.f32 %v4746_v47 }
0x24bb   :  { %v6176_v30 = vpop.eup %6175 }
0x24bc   :  { %v4748_v1 = vmul.f32 %v6176_v30, %v6160_v58  ;;  %v4811_v28 = vpop.xlane.xlu2 %4810 }
0x24bd   :  { %6177 = vrcp.f32 %v4811_v28  ;;  %v5903_v28 = vld [vmem:[%s8147_s3 + $0x288] ss:$0 sm:$0xff] }
0x24be   :  { %5808 = vmatmul.msk.f32.vlgmr.msra.gmra.mxu1 %vm257_vm3, %v4748_v1 }
0x24bf   :  { %4965 = vmatpush.msra.mxu1 %v4945_v45 }
0x24c3   :  { %v6178_v9 = vpop.eup %6177 }
0x24c4   :  { %v4813_v42 = vmul.f32 %v6178_v9, %v6162_v25  ;;  %v4876_v3 = vpop.xlane.xlu1 %4875 }
0x24c5   :  { %6179 = vrcp.f32 %v4876_v3 }
0x24c6   :  { %5811 = vmatmul.msk.f32.vlgmr.msrb.gmra.mxu1 %vm257_vm3, %v4813_v42 }
0x24cb   :  { %v6180_v41 = vpop.eup %6179 }
0x24cc   :  { %v5022_v19 = vpop.xlane.xlu2 %5021  ;;  %v4878_v43 = vmul.f32 %v6180_v41, %v6164_v48  ;;  %v5353_v41 = vld [vmem:[%s8149_s4 + $0x90] sm:$0xff] }
0x24cd   :  { %6181 = vrcp.f32 %v5022_v19 }
0x24ce   :  { %5814 = vmatmul.msk.f32.vlgmr.msra.gmra.mxu3 %vm257_vm3, %v4878_v43  ;;  %v5352_v43 = vld [vmem:[%s8149_s4 + $0x88] sm:$0xff] }
0x24d3   :  { %v6182_v10 = vpop.eup %6181 }
0x24d4   :  { %v5024_v18 = vmul.f32 %v6182_v10, %v6166_v8  ;;  %v4941_v40 = vpop.xlane.xlu2 %4940  ;;  %v4618_v8 = vadd.f32 %v5902_v51, %v7883_v33  ;;  %v5351_v10 = vld [vmem:[%s8149_s4 + $0x80] sm:$0xff] }
0x24d5   :  { %6183 = vrcp.f32 %v4941_v40 }
0x24d6   :  { %5820 = vmatmul.msk.f32.vlgmr.msrb.gmra.mxu3 %vm257_vm3, %v5024_v18  ;;  %v4621_v12 = vadd.f32 %v4618_v8, %v7617_v13  ;;  %v5261_v13 = vld [vmem:[%s8147_s3 + $0x268] sm:$0xff] }
0x24d7   :  { %5288 = vmatpush.msra.mxu0 %v5261_v13 }
0x24db   :  { %v6184_v49 = vpop.eup %6183 }
0x24dc   :  { %v4943_v35 = vmul.f32 %v6184_v49, %v6168_v55  ;;  %v5152_v21 = vpop.xlane.xlu2 %5151  ;;  %v5156_v63 = vpop.permute.xlu1 %5155  ;;  %v4625_v55 = vsel %vm60_vm0, %v4621_v12, 0.0 }
0x24dd   :  { %6185 = vrcp.f32 %v5152_v21  ;;  %5176 = vmatpush.msra.mxu3 %v5156_v63 }
0x24de   :  { %5817 = vmatmul.msk.f32.vlgmr.msra.gmra.mxu1 %vm257_vm3, %v4943_v35 }
0x24df   :  { %5374 = vmatpush.msrb.mxu3 %v5353_v41 }
0x24e1   :  { %5375 = vmatpush.msrb.mxu3 %v5352_v43 }
0x24e3   :  { %v6186_v34 = vpop.eup %6185  ;;  %5376 = vmatpush.msrb.mxu3 %v5351_v10 }
0x24e4   :  { %v5154_v58 = vmul.f32 %v6186_v34, %v6170_v54  ;;  %v5087_v5 = vpop.xlane.xlu2 %5086  ;;  %v5221_v25 = vpop.permute.xlu1 %5220 }
0x24e5   :  { %6187 = vrcp.f32 %v5087_v5 }
0x24e6   :  { %5826 = vmatmul.msk.f32.vlgmr.msra.gmra.mxu3 %vm257_vm3, %v5154_v58 }
0x24eb   :  { %v6188_v27 = vpop.eup %6187 }
0x24ec   :  { %v5089_v36 = vmul.f32 %v6188_v27, %v6172_v20  ;;  %v5091_v61 = vpop.permute.xlu2 %5090 }
0x24ed   :  { %5111 = vmatpush.msrb.mxu1 %v5091_v61 }
0x24ee   :  { %5823 = vmatmul.msk.f32.vlgmr.msrb.gmra.mxu1 %vm257_vm3, %v5089_v36 }
0x24ef   :  { %5241 = vmatpush.msra.mxu1 %v5221_v25 }
0x250a   :  { %v5217_v59 = vpop.xlane.xlu0 %5216 }
0x250b   :  { %6189 = vrcp.f32 %v5217_v59 }
0x2511   :  { %v6190_v6 = vpop.eup %6189 }
0x2512   :  { %v5219_v7 = vmul.f32 %v6190_v6, %v6174_v37 }
0x2514   :  { %5829 = vmatmul.msk.f32.vlgmr.msra.gmra.mxu1 %vm257_vm3, %v5219_v7 }
0x253b   :  { %v4772_v0 = vpop.f32.mrf.mxu1 }
0x2543   :  { %v4837_v38 = vpop.f32.mrf.mxu1 }
0x2544   :  { %4971 = vrot.lane.b32.xlu1 %v4837_v38, %s6226_s8 }
0x2551   :  { %v4902_v26 = vpop.f32.mrf.mxu3 }
0x2552   :  { %4975 = vrot.lane.b32.xlu2 %v4902_v26, %s6228_s10  ;;  %v5905_v26 = vld [vmem:[%s8147_s3 + $0x260] ss:$0 sm:$0xff] }
0x2559   :  { %v5048_v48 = vpop.f32.mrf.mxu3 }
0x255b   :  { %v4967_v44 = vpop.f32.mrf.mxu1 }
0x255c   :  { %4979 = vrot.lane.b32.xlu1 %v4967_v44, %s6227_s9 }
0x2569   :  { %v5178_v2 = vpop.f32.mrf.mxu3 }
0x256a   :  { %5251 = vrot.lane.b32.xlu1 %v5178_v2, %s6228_s10 }
0x256b   :  { %v5113_v23 = vpop.f32.mrf.mxu1 }
0x256c   :  { %5247 = vrot.lane.b32.xlu2 %v5113_v23, %s6226_s8 }
0x2591   :  { %v5243_v14 = vpop.f32.mrf.mxu1 }
0x2592   :  { %5255 = vrot.lane.b32.xlu0 %v5243_v14, %s6227_s9 }
0x2594   :  { %4626 = vadd.xlane.f32.xlu1 %v4625_v55 }
0x2595   :  { %4623 = vadd.xlane.f32.xlu2 %v4622_v32 }
0x25ac   :  { %v4976_v31 = vpop.permute.xlu2 %4975 }
0x25b6   :  { %v4972_v33 = vpop.permute.xlu1 %4971 }
0x25b7   :  { %v4982_v24 = vsel %vm257_vm3, %v4772_v0, %v4972_v33  ;;  %v5463_v33 = vld [vmem:[%s8147_s3 + $0x2d8] sm:$0xff] }
0x25b8   :  { %v4983_v57 = vsel %vm30_vm4, %v4982_v24, %v4976_v31  ;;  %5486 = vmatpush.msrb.mxu1 %v5463_v33  ;;  %v5462_v31 = vld [vmem:[%s8147_s3 + $0x2d0] sm:$0xff] }
0x25ba   :  { %5487 = vmatpush.msrb.mxu1 %v5462_v31 }
0x25c6   :  { %v5248_v53 = vpop.permute.xlu2 %5247 }
0x25c7   :  { %v5258_v15 = vsel %vm257_vm3, %v5048_v48, %v5248_v53  ;;  %v5460_v53 = vld [vmem:[%s8147_s3 + $0x2c0] sm:$0xff] }
0x25ce   :  { %v4980_v54 = vpop.permute.xlu1 %4979 }
0x25cf   :  { %v4984_v39 = vsel %vm529_vm5, %v4983_v57, %v4980_v54  ;;  %v5461_v54 = vld [vmem:[%s8147_s3 + $0x2c8] sm:$0xff] }
0x25d0   :  { %5830 = vmatmul.msk.f32.vlgmr.msra.gmra.mxu0 %vm60_vm0, %v4984_v39  ;;  %5488 = vmatpush.msrb.mxu1 %v5461_v54 }
0x25d2   :  { %5489 = vmatpush.msrb.mxu1 %v5460_v53 }
0x25dc   :  { %v5252_v20 = vpop.permute.xlu1 %5251 }
0x25dd   :  { %v5259_v56 = vsel %vm30_vm4, %v5258_v15, %v5252_v20  ;;  %v5459_v15 = vld [vmem:[%s8147_s3 + $0x2b8] sm:$0xff] }
0x25de   :  { %5490 = vmatpush.msrb.mxu1 %v5459_v15  ;;  %v5909_v15 = vld [vmem:[%s8147_s3 + $0x2e0] ss:$0 sm:$0xff] }
0x2604   :  { %v5256_v62 = vpop.permute.xlu0 %5255 }
0x2605   :  { %v5260_v29 = vsel %vm529_vm5, %v5259_v56, %v5256_v62  ;;  %v5458_v62 = vld [vmem:[%s8147_s3 + $0x2b0] sm:$0xff] }
0x2606   :  { %5831 = vmatmul.msk.f32.gmra.mxu0 %vm60_vm0, %v5260_v29  ;;  %5491 = vmatpush.msrb.mxu1 %v5458_v62 }
0x2607   :  { %v4627_v19 = vpop.xlane.xlu1 %4626 }
0x2608   :  { %v4624_v37 = vpop.xlane.xlu2 %4623  ;;  %v4629_v49 = vmul.f32 %v4627_v19, %v6470_v46 }
0x2609   :  { %v4628_v50 = vmul.f32 %v4624_v37, %v6470_v46  ;;  %v5457_v37 = vld [vmem:[%s8147_s3 + $0x2a8] sm:$0xff] }
0x260a   :  { %v7989_v58 = vsub.f32 %v4621_v12, %v4629_v49  ;;  %5492 = vmatpush.msrb.mxu1 %v5457_v37  ;;  %v5406_v49 = vld [vmem:[%s8149_s4 + $0xb8] sm:$0xff] }
0x260b   :  { %v4630_v47 = vsub.f32 %v4620_v4, %v4628_v50  ;;  %v5456_v50 = vld [vmem:[%s8147_s3 + $0x2a0] sm:$0xff]  ;;  %5427 = vmatpush.msra.mxu2 %v5406_v49 }
0x260c   :  { %v4633_v27 = vmul.f32 %v7989_v58, %v7989_v58  ;;  %5493 = vmatpush.msrb.mxu1 %v5456_v50 }
0x260d   :  { %v4632_v30 = vmul.f32 %v4630_v47, %v4630_v47 }
0x260e   :  { %v4637_v25 = vsel %vm60_vm0, %v4633_v27, 0.0 }
0x260f   :  { %v4634_v1 = vsel %vm60_vm0, %v4632_v30, 0.0 }
0x2610   :  { %4635 = vadd.xlane.f32.xlu1 %v4634_v1 }
0x264d   :  { %v5290_v45 = vpop.f32.mrf.mxu0 }
0x264e   :  { %v5291_v9 = vadd.f32 %v5903_v28, %v5290_v45  ;;  %v5906_v45 = vld [vmem:[%s8149_s4 + $0x98] ss:$0 sm:$0xff] }
0x2650   :  { %v5296_v42 = vadd.f32 %v5291_v9, %v7782_v60  ;;  %v5350_v60 = vld [vmem:[%s8149_s4 + $0x78] sm:$0xff] }
0x2651   :  { %5377 = vmatpush.msrb.mxu3 %v5350_v60 }
0x2652   :  { %v5298_v3 = vsel %vm60_vm0, %v5296_v42, 0.0 }
0x2653   :  { %5299 = vadd.xlane.f32.xlu0 %v5298_v3 }
0x2683   :  { %v4636_v18 = vpop.xlane.xlu1 %4635  ;;  %v5293_v40 = vpop.f32.mrf.mxu0 }
0x2684   :  { %v4640_v35 = vmul.f32 %v4636_v18, %v6470_v46  ;;  %v5294_v21 = vadd.f32 %v5903_v28, %v5293_v40 }
0x2686   :  { %v4642_v63 = vadd.f32 1e-12, %v4640_v35  ;;  %v5297_v34 = vadd.f32 %v5294_v21, %v7790_v52  ;;  %v5904_v52 = vld [vmem:[%s8147_s3 + $0x258] ss:$0 sm:$0xff]  ;;  %v5405_v21 = vld [vmem:[%s8149_s4 + $0xb0] sm:$0xff] }
0x2687   :  { %5428 = vmatpush.msra.mxu2 %v5405_v21 }
0x2688   :  { %6191 = vrsqrt.f32 %v4642_v63  ;;  %v5301_v5 = vsel %vm60_vm0, %v5297_v34, 0.0  ;;  %vm4650_vm4 = vweird.f32 %v4642_v63 }
0x2689   :  { %5302 = vadd.xlane.f32.xlu2 %v5301_v5 }
0x268e   :  { %v6192_v36 = vpop.eup %6191 }
0x268f   :  { %v4645_v61 = vmul.f32 %v6192_v36, %v4642_v63  ;;  %vm4651_vm3 = vweird.f32 %v6192_v36  ;;  %v5404_v63 = vld [vmem:[%s8149_s4 + $0xa8] sm:$0xff] }
0x2690   :  { %vm4652_vm5 = vmor %vm4650_vm4, %vm4651_vm3  ;;  %5429 = vmatpush.msra.mxu2 %v5404_v63 }
0x2691   :  { %v4646_v59 = vmul.f32 %v6192_v36, %v4645_v61  ;;  %4638 = vadd.xlane.f32.xlu2 %v4637_v25 }
0x2693   :  { %v4647_v6 = vmul.f32 0.5, %v4646_v59 }
0x2695   :  { %v4648_v7 = vsub.f32 1.5, %v4647_v6 }
0x2697   :  { %v4649_v0 = vmul.f32 %v6192_v36, %v4648_v7 }
0x2699   :  { %v4653_v38 = vsel %vm4652_vm5, %v6192_v36, %v4649_v0  ;;  %v5907_v0 = vld [vmem:[%s8147_s3 + $0x290] ss:$0 sm:$0xff] }
0x269a   :  { %v4664_v44 = vmul.f32 %v4653_v38, %v4630_v47  ;;  %v5908_v38 = vld [vmem:[%s8147_s3 + $0x298] ss:$0 sm:$0xff] }
0x269c   :  { %v4668_v48 = vmul.f32 %v5904_v52, %v4664_v44 }
0x269e   :  { %v8001_v2 = vadd.f32 %v5905_v26, %v4668_v48 }
0x26a0   :  { %5832 = vmatmul.msk.f32.vlgmr.msrb.gmra.mxu3 %vm60_vm0, %v8001_v2 }
0x26c6   :  { %v5300_v23 = vpop.xlane.xlu0 %5299 }
0x26c7   :  { %v5304_v51 = vmul.f32 %v5300_v23, %v6470_v46 }
0x26c9   :  { %v8006_v8 = vsub.f32 %v5296_v42, %v5304_v51 }
0x26cb   :  { %v5308_v11 = vmul.f32 %v8006_v8, %v8006_v8 }
0x26cd   :  { %v5310_v12 = vsel %vm60_vm0, %v5308_v11, 0.0 }
0x26ce   :  { %5311 = vadd.xlane.f32.xlu1 %v5310_v12 }
0x26fc   :  { %v5303_v4 = vpop.xlane.xlu2 %5302 }
0x26fd   :  { %v5305_v14 = vmul.f32 %v5303_v4, %v6470_v46 }
0x26ff   :  { %v8012_v55 = vsub.f32 %v5297_v34, %v5305_v14  ;;  %v5403_v34 = vld [vmem:[%s8149_s4 + $0xa0] sm:$0xff] }
0x2700   :  { %5430 = vmatpush.msra.mxu2 %v5403_v34 }
0x2701   :  { %v5309_v32 = vmul.f32 %v8012_v55, %v8012_v55 }
0x2703   :  { %v5313_v17 = vsel %vm60_vm0, %v5309_v32, 0.0 }
0x2704   :  { %5314 = vadd.xlane.f32.xlu2 %v5313_v17  ;;  %v4639_v16 = vpop.xlane.xlu2 %4638 }
0x2705   :  { %v4641_v22 = vmul.f32 %v4639_v16, %v6470_v46 }
0x2707   :  { %v4643_v13 = vadd.f32 1e-12, %v4641_v22 }
0x2709   :  { %6193 = vrsqrt.f32 %v4643_v13  ;;  %vm4660_vm14 = vweird.f32 %v4643_v13 }
0x270f   :  { %v6194_v24 = vpop.eup %6193 }
0x2710   :  { %v4655_v57 = vmul.f32 %v6194_v24, %v4643_v13  ;;  %vm4661_vm13 = vweird.f32 %v6194_v24 }
0x2711   :  { %vm4662_vm15 = vmor %vm4660_vm14, %vm4661_vm13 }
0x2712   :  { %v4656_v39 = vmul.f32 %v6194_v24, %v4655_v57 }
0x2714   :  { %v4657_v20 = vmul.f32 0.5, %v4656_v39 }
0x2716   :  { %v4658_v56 = vsub.f32 1.5, %v4657_v20 }
0x2718   :  { %v4659_v29 = vmul.f32 %v6194_v24, %v4658_v56 }
0x271a   :  { %v4663_v47 = vsel %vm4662_vm15, %v6194_v24, %v4659_v29 }
0x271b   :  { %v4665_v30 = vmul.f32 %v4663_v47, %v7989_v58 }
0x271d   :  { %v4669_v1 = vmul.f32 %v5904_v52, %v4665_v30 }
0x271f   :  { %v8043_v28 = vadd.f32 %v5905_v26, %v4669_v1  ;;  %v5910_v1 = vld [vmem:[%s8149_s4 + $0xc0] ss:$0 sm:$0xff] }
0x2721   :  { %5833 = vmatmul.msk.f32.gmra.mxu3 %vm60_vm0, %v8043_v28 }
0x2723   :  { %v5379_v9 = vpop.f32.mrf.mxu3 }
0x2724   :  { %v5380_v42 = vadd.f32 %v5906_v45, %v5379_v9 }
0x2726   :  { %v5387_v3 = vmul.f32 0.044715, %v5380_v42  ;;  %v5385_v18 = vmul.f32 0.5, %v5380_v42 }
0x2728   :  { %v5389_v41 = vmul.f32 %v5387_v3, %v5380_v42 }
0x272a   :  { %v5391_v19 = vmul.f32 %v5389_v41, %v5380_v42 }
0x272c   :  { %v5393_v43 = vadd.f32 %v5391_v19, %v5380_v42 }
0x272e   :  { %v5395_v10 = vmul.f32 0.7978846, %v5393_v43 }
0x2730   :  { %6195 = vtanh.f32 %v5395_v10 }
0x2736   :  { %v6196_v60 = vpop.eup %6195 }
0x2737   :  { %v5399_v40 = vadd.f32 1.0, %v6196_v60 }
0x2739   :  { %v5401_v35 = vmul.f32 %v5399_v40, %v5385_v18 }
0x273b   :  { %5836 = vmatmul.msk.f32.vlgmr.msrb.gmra.mxu1 %vm960_vm10, %v5401_v35 }
0x2741   :  { %v5312_v58 = vpop.xlane.xlu1 %5311 }
0x2742   :  { %v5316_v5 = vmul.f32 %v5312_v58, %v6470_v46 }
0x2744   :  { %v5318_v27 = vadd.f32 1e-12, %v5316_v5 }
0x2746   :  { %6197 = vrsqrt.f32 %v5318_v27  ;;  %vm5326_vm2 = vweird.f32 %v5318_v27 }
0x274c   :  { %v6198_v36 = vpop.eup %6197 }
0x274d   :  { %v5321_v61 = vmul.f32 %v6198_v36, %v5318_v27  ;;  %vm5327_vm1 = vweird.f32 %v6198_v36 }
0x274e   :  { %vm5328_vm6 = vmor %vm5326_vm2, %vm5327_vm1 }
0x274f   :  { %v5322_v25 = vmul.f32 %v6198_v36, %v5321_v61 }
0x2751   :  { %v5323_v59 = vmul.f32 0.5, %v5322_v25 }
0x2753   :  { %v5324_v6 = vsub.f32 1.5, %v5323_v59 }
0x2755   :  { %v5325_v7 = vmul.f32 %v6198_v36, %v5324_v6 }
0x2757   :  { %v5329_v52 = vsel %vm5328_vm6, %v6198_v36, %v5325_v7 }
0x2758   :  { %v5340_v26 = vmul.f32 %v5329_v52, %v8006_v8 }
0x275a   :  { %v5344_v44 = vmul.f32 %v5907_v0, %v5340_v26 }
0x275c   :  { %v8071_v48 = vadd.f32 %v5908_v38, %v5344_v44 }
0x275e   :  { %5834 = vmatmul.msk.f32.vlgmr.msra.gmra.mxu2 %vm60_vm0, %v8071_v48 }
0x2777   :  { %v5315_v23 = vpop.xlane.xlu2 %5314 }
0x2778   :  { %v5317_v51 = vmul.f32 %v5315_v23, %v6470_v46 }
0x277a   :  { %v5319_v11 = vadd.f32 1e-12, %v5317_v51 }
0x277c   :  { %6199 = vrsqrt.f32 %v5319_v11  ;;  %vm5336_vm8 = vweird.f32 %v5319_v11 }
0x2782   :  { %v6200_v12 = vpop.eup %6199 }
0x2783   :  { %v5331_v4 = vmul.f32 %v6200_v12, %v5319_v11  ;;  %vm5337_vm7 = vweird.f32 %v6200_v12 }
0x2784   :  { %vm5338_vm9 = vmor %vm5336_vm8, %vm5337_vm7 }
0x2785   :  { %v5332_v14 = vmul.f32 %v6200_v12, %v5331_v4 }
0x2787   :  { %v5333_v32 = vmul.f32 0.5, %v5332_v14 }
0x2789   :  { %v5334_v17 = vsub.f32 1.5, %v5333_v32 }
0x278b   :  { %v5335_v16 = vmul.f32 %v6200_v12, %v5334_v17 }
0x278d   :  { %v5339_v8 = vsel %vm5338_vm9, %v6200_v12, %v5335_v16 }
0x278e   :  { %v5341_v22 = vmul.f32 %v5339_v8, %v8012_v55 }
0x2790   :  { %v5345_v13 = vmul.f32 %v5907_v0, %v5341_v22 }
0x2792   :  { %v8077_v33 = vadd.f32 %v5908_v38, %v5345_v13 }
0x2794   :  { %5835 = vmatmul.msk.f32.gmra.mxu2 %vm60_vm0, %v8077_v33 }
0x27a4   :  { %v5382_v24 = vpop.f32.mrf.mxu3 }
0x27a5   :  { %v5383_v31 = vadd.f32 %v5906_v45, %v5382_v24 }
0x27a7   :  { %v5388_v57 = vmul.f32 0.044715, %v5383_v31  ;;  %v5386_v62 = vmul.f32 0.5, %v5383_v31 }
0x27a9   :  { %v5390_v54 = vmul.f32 %v5388_v57, %v5383_v31 }
0x27ab   :  { %v5392_v39 = vmul.f32 %v5390_v54, %v5383_v31 }
0x27ad   :  { %v5394_v53 = vadd.f32 %v5392_v39, %v5383_v31 }
0x27af   :  { %v5396_v20 = vmul.f32 0.7978846, %v5394_v53 }
0x27b1   :  { %6201 = vtanh.f32 %v5396_v20 }
0x27b7   :  { %v6202_v56 = vpop.eup %6201 }
0x27b8   :  { %v5495_v55 = vpop.f32.mrf.mxu1  ;;  %v5400_v29 = vadd.f32 1.0, %v6202_v56 }
0x27b9   :  { %v5496_v37 = vadd.f32 %v5909_v15, %v5495_v55  ;;  %v8111_v55 = vld [vmem:[%s8147_s3 + $0x2f0] ss:$0 sm:$0xff] }
0x27ba   :  { %v5402_v50 = vmul.f32 %v5400_v29, %v5386_v62 }
0x27bb   :  { %v5507_v47 = vadd.f32 %v5496_v37, %v8001_v2 }
0x27bc   :  { %5837 = vmatmul.msk.f32.gmra.mxu1 %vm960_vm10, %v5402_v50 }
0x27bd   :  { %v5511_v30 = vsel %vm60_vm0, %v5507_v47, 0.0 }
0x27be   :  { %5512 = vadd.xlane.f32.xlu1 %v5511_v30 }
0x27e1   :  { %v5432_v45 = vpop.f32.mrf.mxu2 }
0x27e2   :  { %v5433_v9 = vadd.f32 %v5910_v1, %v5432_v45 }
0x27e4   :  { %v5440_v42 = vmul.f32 0.044715, %v5433_v9  ;;  %v5438_v60 = vmul.f32 0.5, %v5433_v9 }
0x27e6   :  { %v5442_v3 = vmul.f32 %v5440_v42, %v5433_v9 }
0x27e8   :  { %v5444_v41 = vmul.f32 %v5442_v3, %v5433_v9 }
0x27ea   :  { %v5446_v19 = vadd.f32 %v5444_v41, %v5433_v9 }
0x27ec   :  { %v5448_v43 = vmul.f32 0.7978846, %v5446_v19 }
0x27ee   :  { %6203 = vtanh.f32 %v5448_v43 }
0x27f4   :  { %v6204_v10 = vpop.eup %6203 }
0x27f5   :  { %v5452_v2 = vadd.f32 1.0, %v6204_v10 }
0x27f7   :  { %v5454_v18 = vmul.f32 %v5452_v2, %v5438_v60 }
0x27f9   :  { %5838 = vmatmul.msk.f32.gmra.mxu1 %vm960_vm10, %v5454_v18 }
0x2817   :  { %v5435_v40 = vpop.f32.mrf.mxu2 }
0x2818   :  { %v5436_v49 = vadd.f32 %v5910_v1, %v5435_v40 }
0x281a   :  { %v5441_v35 = vmul.f32 0.044715, %v5436_v49  ;;  %v5439_v27 = vmul.f32 0.5, %v5436_v49 }
0x281c   :  { %v5443_v21 = vmul.f32 %v5441_v35, %v5436_v49 }
0x281e   :  { %v5445_v63 = vmul.f32 %v5443_v21, %v5436_v49 }
0x2820   :  { %v5447_v34 = vadd.f32 %v5445_v63, %v5436_v49 }
0x2822   :  { %v5449_v58 = vmul.f32 0.7978846, %v5447_v34 }
0x2824   :  { %6205 = vtanh.f32 %v5449_v58 }
0x282a   :  { %v6206_v5 = vpop.eup %6205 }
0x282b   :  { %v5453_v36 = vadd.f32 1.0, %v6206_v5 }
0x282d   :  { %v5455_v61 = vmul.f32 %v5453_v36, %v5439_v27 }
0x282f   :  { %5839 = vmatmul.msk.f32.gmra.mxu1 %vm960_vm10, %v5455_v61 }
0x2831   :  { %v5513_v25 = vpop.xlane.xlu1 %5512 }
0x2832   :  { %v5523_v6 = vmul.f32 %v5513_v25, %v6470_v46 }
0x2834   :  { %v5527_v52 = vsub.f32 %v5507_v47, %v5523_v6 }
0x2836   :  { %v5531_v26 = vmul.f32 %v5527_v52, %v5527_v52 }
0x2838   :  { %v5535_v44 = vsel %vm60_vm0, %v5531_v26, 0.0 }
0x2839   :  { %v5498_v59 = vpop.f32.mrf.mxu1 }
0x283a   :  { %v5499_v7 = vadd.f32 %v5909_v15, %v5498_v59 }
0x283c   :  { %v5508_v0 = vadd.f32 %v5499_v7, %v8043_v28 }
0x283e   :  { %v5514_v38 = vsel %vm60_vm0, %v5508_v0, 0.0 }
0x283f   :  { %5515 = vadd.xlane.f32.xlu0 %v5514_v38 }
0x2847   :  { %5536 = vadd.xlane.f32.xlu0 %v5535_v44 }
0x2876   :  { %v5501_v23 = vpop.f32.mrf.mxu1 }
0x2877   :  { %v5502_v51 = vadd.f32 %v5909_v15, %v5501_v23 }
0x2879   :  { %v5509_v11 = vadd.f32 %v5502_v51, %v8071_v48 }
0x287b   :  { %v5517_v12 = vsel %vm60_vm0, %v5509_v11, 0.0 }
0x287c   :  { %5518 = vadd.xlane.f32.xlu2 %v5517_v12 }
0x28ac   :  { %v5504_v4 = vpop.f32.mrf.mxu1 }
0x28ad   :  { %v5505_v14 = vadd.f32 %v5909_v15, %v5504_v4  ;;  %v8106_v15 = vld [vmem:[%s8147_s3 + $0x2e8] ss:$0 sm:$0xff] }
0x28af   :  { %v5510_v32 = vadd.f32 %v5505_v14, %v8077_v33 }
0x28b1   :  { %v5520_v28 = vsel %vm60_vm0, %v5510_v32, 0.0 }
0x28b2   :  { %v5516_v17 = vpop.xlane.xlu0 %5515  ;;  %5521 = vadd.xlane.f32.xlu1 %v5520_v28 }
0x28b3   :  { %v5524_v16 = vmul.f32 %v5516_v17, %v6470_v46 }
0x28b5   :  { %v5528_v8 = vsub.f32 %v5508_v0, %v5524_v16 }
0x28b7   :  { %v5532_v22 = vmul.f32 %v5528_v8, %v5528_v8 }
0x28b9   :  { %v5538_v13 = vsel %vm60_vm0, %v5532_v22, 0.0 }
0x28ba   :  { %5539 = vadd.xlane.f32.xlu2 %v5538_v13  ;;  %v5537_v24 = vpop.xlane.xlu0 %5536 }
0x28bb   :  { %v5547_v48 = vmul.f32 %v5537_v24, %v6470_v46 }
0x28bd   :  { %v5551_v31 = vadd.f32 1e-12, %v5547_v48 }
0x28bf   :  { %6207 = vrsqrt.f32 %v5551_v31  ;;  %vm5561_vm11 = vweird.f32 %v5551_v31 }
0x28c5   :  { %v6208_v57 = vpop.eup %6207 }
0x28c6   :  { %v5556_v54 = vmul.f32 %v6208_v57, %v5551_v31  ;;  %vm5562_vm10 = vweird.f32 %v6208_v57 }
0x28c7   :  { %vm5563_vm12 = vmor %vm5561_vm11, %vm5562_vm10 }
0x28c8   :  { %v5557_v39 = vmul.f32 %v6208_v57, %v5556_v54 }
0x28ca   :  { %v5558_v33 = vmul.f32 0.5, %v5557_v39 }
0x28cc   :  { %v5559_v53 = vsub.f32 1.5, %v5558_v33 }
0x28ce   :  { %v5560_v20 = vmul.f32 %v6208_v57, %v5559_v53 }
0x28d0   :  { %v5564_v56 = vsel %vm5563_vm12, %v6208_v57, %v5560_v20 }
0x28d1   :  { %v5595_v62 = vmul.f32 %v5564_v56, %v5527_v52 }
0x28d3   :  { %v5601_v29 = vmul.f32 %v8106_v15, %v5595_v62 }
0x28d5   :  { %v5607_v37 = vadd.f32 %v8111_v55, %v5601_v29 }
0x28d7   :  { %5611 = vst.msk [vmem:[%s8150_s6] sm:$0xff] %vm60_vm0, %v5607_v37 }
0x28ef   :  { %v5519_v50 = vpop.xlane.xlu2 %5518 }
0x28f0   :  { %v5525_v47 = vmul.f32 %v5519_v50, %v6470_v46 }
0x28f2   :  { %v5529_v30 = vsub.f32 %v5509_v11, %v5525_v47 }
0x28f4   :  { %v5533_v1 = vmul.f32 %v5529_v30, %v5529_v30 }
0x28f6   :  { %v5541_v45 = vsel %vm60_vm0, %v5533_v1, 0.0 }
0x28f7   :  { %5542 = vadd.xlane.f32.xlu1 %v5541_v45 }
0x2925   :  { %v5522_v9 = vpop.xlane.xlu1 %5521 }
0x2926   :  { %v5526_v42 = vmul.f32 %v5522_v9, %v6470_v46 }
0x2928   :  { %v5530_v3 = vsub.f32 %v5510_v32, %v5526_v42 }
0x292a   :  { %v5534_v41 = vmul.f32 %v5530_v3, %v5530_v3 }
0x292c   :  { %v5544_v19 = vsel %vm60_vm0, %v5534_v41, 0.0 }
0x292d   :  { %v5540_v43 = vpop.xlane.xlu2 %5539  ;;  %5545 = vadd.xlane.f32.xlu0 %v5544_v19 }
0x292e   :  { %v5548_v10 = vmul.f32 %v5540_v43, %v6470_v46 }
0x2930   :  { %v5552_v60 = vadd.f32 1e-12, %v5548_v10 }
0x2932   :  { %6209 = vrsqrt.f32 %v5552_v60  ;;  %vm5571_vm4 = vweird.f32 %v5552_v60 }
0x2938   :  { %v6210_v2 = vpop.eup %6209 }
0x2939   :  { %v5566_v18 = vmul.f32 %v6210_v2, %v5552_v60  ;;  %vm5572_vm3 = vweird.f32 %v6210_v2 }
0x293a   :  { %vm5573_vm5 = vmor %vm5571_vm4, %vm5572_vm3 }
0x293b   :  { %v5567_v40 = vmul.f32 %v6210_v2, %v5566_v18 }
0x293d   :  { %v5568_v49 = vmul.f32 0.5, %v5567_v40 }
0x293f   :  { %v5569_v35 = vsub.f32 1.5, %v5568_v49 }
0x2941   :  { %v5570_v21 = vmul.f32 %v6210_v2, %v5569_v35 }
0x2943   :  { %v5574_v63 = vsel %vm5573_vm5, %v6210_v2, %v5570_v21 }
0x2944   :  { %v5596_v34 = vmul.f32 %v5574_v63, %v5528_v8 }
0x2946   :  { %v5602_v58 = vmul.f32 %v8106_v15, %v5596_v34 }
0x2948   :  { %v5608_v5 = vadd.f32 %v8111_v55, %v5602_v58 }
0x294a   :  { %5612 = vst.msk [vmem:[%s8150_s6 + $0x8] sm:$0xff] %vm60_vm0, %v5608_v5 }
0x296a   :  { %v5543_v27 = vpop.xlane.xlu1 %5542 }
0x296b   :  { %v5549_v36 = vmul.f32 %v5543_v27, %v6470_v46 }
0x296d   :  { %v5553_v61 = vadd.f32 1e-12, %v5549_v36 }
0x296f   :  { %6211 = vrsqrt.f32 %v5553_v61  ;;  %vm5581_vm14 = vweird.f32 %v5553_v61 }
0x2975   :  { %v6212_v25 = vpop.eup %6211 }
0x2976   :  { %v5576_v59 = vmul.f32 %v6212_v25, %v5553_v61  ;;  %vm5582_vm13 = vweird.f32 %v6212_v25 }
0x2977   :  { %vm5583_vm15 = vmor %vm5581_vm14, %vm5582_vm13 }
0x2978   :  { %v5577_v6 = vmul.f32 %v6212_v25, %v5576_v59 }
0x297a   :  { %v5578_v7 = vmul.f32 0.5, %v5577_v6 }
0x297c   :  { %v5579_v0 = vsub.f32 1.5, %v5578_v7 }
0x297e   :  { %v5580_v52 = vmul.f32 %v6212_v25, %v5579_v0 }
0x2980   :  { %v5584_v38 = vsel %vm5583_vm15, %v6212_v25, %v5580_v52 }
0x2981   :  { %v5597_v26 = vmul.f32 %v5584_v38, %v5529_v30 }
0x2983   :  { %v5603_v44 = vmul.f32 %v8106_v15, %v5597_v26 }
0x2985   :  { %v5609_v23 = vadd.f32 %v8111_v55, %v5603_v44 }
0x2987   :  { %5613 = vst.msk [vmem:[%s8150_s6 + $0x10] sm:$0xff] %vm60_vm0, %v5609_v23 }
0x29a0   :  { %v5546_v51 = vpop.xlane.xlu0 %5545 }
0x29a1   :  { %v5550_v11 = vmul.f32 %v5546_v51, %v6470_v46 }
0x29a3   :  { %v5554_v12 = vadd.f32 1e-12, %v5550_v11 }
0x29a5   :  { %6213 = vrsqrt.f32 %v5554_v12  ;;  %vm5591_vm2 = vweird.f32 %v5554_v12 }
0x29ab   :  { %v6214_v4 = vpop.eup %6213 }
0x29ac   :  { %v5586_v14 = vmul.f32 %v6214_v4, %v5554_v12  ;;  %vm5592_vm1 = vweird.f32 %v6214_v4 }
0x29ad   :  { %vm5593_vm6 = vmor %vm5591_vm2, %vm5592_vm1 }
0x29ae   :  { %v5587_v32 = vmul.f32 %v6214_v4, %v5586_v14 }
0x29b0   :  { %v5588_v28 = vmul.f32 0.5, %v5587_v32 }
0x29b2   :  { %v5589_v17 = vsub.f32 1.5, %v5588_v28 }
0x29b4   :  { %v5590_v16 = vmul.f32 %v6214_v4, %v5589_v17 }
0x29b6   :  { %v5594_v8 = vsel %vm5593_vm6, %v6214_v4, %v5590_v16 }
0x29b7   :  { %v5598_v22 = vmul.f32 %v5594_v8, %v5530_v3 }
0x29b9   :  { %v5604_v13 = vmul.f32 %v8106_v15, %v5598_v22 }
0x29bb   :  { %v5610_v24 = vadd.f32 %v8111_v55, %v5604_v13 }
0x29bd   :  { %5614 = vst.msk [vmem:[%s8150_s6 + $0x18] sm:$0xff] %vm60_vm0, %v5610_v24 }

</bundles_post_ra>
